<compile_context>
chip_gen: v7x
topology: tpu7x:2x2x1
jax: 0.10.0
libtpu: 0.0.40
codegen_flags: <defaults>
</compile_context>

<pallas_src>
import functools

import jax
import jax.numpy as jnp
from jax import lax
from jax.experimental import pallas as pl
from jax.experimental.pallas import tpu as pltpu

_MXU_DTYPE = jnp.bfloat16  # MXU operands bf16; accumulation always f32.


def _check_row_tile(n, tile):
    # Block rows must either cover the full row dim or be a multiple of 8 (sublane).
    assert n % tile == 0 and (tile == n or tile % 8 == 0), (n, tile)


def _pick_row_tile(n, max_tile=2048):
    """Largest multiple-of-8 divisor of n that is <= max_tile and, when possible,
    yields >= 2 grid steps (so the v7x megacore can shard the 'parallel' axis)."""
    cap = min(max_tile, n // 2 if n >= 16 else n)
    best = None
    for t in range(8, cap + 1, 8):
        if n % t == 0:
            best = t
    return best if best is not None else n


# ---------------------------------------------------------------------------
# Pallas kernel 1: dense (linear) layer  y = x @ W + b, optional relu
# ---------------------------------------------------------------------------
def _linear_kernel(x_ref, w_ref, b_ref, o_ref, *, relu):
    x = x_ref[...].astype(_MXU_DTYPE)
    w = w_ref[...].astype(_MXU_DTYPE)           # no-op when weights stored bf16
    y = jnp.dot(x, w, preferred_element_type=jnp.float32) + b_ref[...]
    if relu:
        y = jnp.maximum(y, 0.0)
    o_ref[...] = y.astype(o_ref.dtype)


def linear_pallas(x, w, b, *, relu=False, tile_rows=None):
    """x: (N, K), w: (K, M) bf16, b: (M,) f32 -> (N, M) f32."""
    N, K = x.shape
    M = w.shape[1]
    tile = _pick_row_tile(N) if tile_rows is None else tile_rows
    _check_row_tile(N, tile)
    return pl.pallas_call(
        functools.partial(_linear_kernel, relu=relu),
        grid=(N // tile,),
        in_specs=[
            pl.BlockSpec((tile, K), lambda i: (i, 0)),
            pl.BlockSpec((K, M), lambda i: (0, 0)),
            pl.BlockSpec((1, M), lambda i: (0, 0)),
        ],
        out_specs=pl.BlockSpec((tile, M), lambda i: (i, 0)),
        out_shape=jax.ShapeDtypeStruct((N, M), jnp.float32),
        compiler_params=pltpu.CompilerParams(dimension_semantics=("parallel",)),
    )(x, w, b.reshape(1, M))


# ---------------------------------------------------------------------------
# Pallas kernel 2: fused  u2 = u @ W11 + b11 ;  u' = relu(u1 + u2)/nlayer + u
# Output aliases the `u` input buffer (dead after the combine each layer).
# ---------------------------------------------------------------------------
def _w11_combine_kernel(u_ref, u1_ref, w_ref, b_ref, o_ref, *, relu, inv_nlayer):
    u = u_ref[...]
    u2 = jnp.dot(u.astype(_MXU_DTYPE), w_ref[...].astype(_MXU_DTYPE),
                 preferred_element_type=jnp.float32) + b_ref[...]
    s = u1_ref[...] + u2
    if relu:
        s = jnp.maximum(s, 0.0)
    o_ref[...] = s * inv_nlayer + u


def w11_combine_pallas(u, u1, w, b, *, relu, nlayer, tile_rows=None):
    """u, u1: (Sx, Sy, B, C); w: (C, C) bf16; b: (C,) f32 -> same shape as u."""
    Sx, Sy, B, C = u.shape
    N = Sx * Sy * B
    tile = _pick_row_tile(N) if tile_rows is None else tile_rows
    _check_row_tile(N, tile)
    out = pl.pallas_call(
        functools.partial(_w11_combine_kernel, relu=relu,
                          inv_nlayer=1.0 / float(nlayer)),
        grid=(N // tile,),
        in_specs=[
            pl.BlockSpec((tile, C), lambda i: (i, 0)),
            pl.BlockSpec((tile, C), lambda i: (i, 0)),
            pl.BlockSpec((C, C), lambda i: (0, 0)),
            pl.BlockSpec((1, C), lambda i: (0, 0)),
        ],
        out_specs=pl.BlockSpec((tile, C), lambda i: (i, 0)),
        out_shape=jax.ShapeDtypeStruct((N, C), jnp.float32),
        input_output_aliases={0: 0},   # reuse u's buffer for the output
        compiler_params=pltpu.CompilerParams(dimension_semantics=("parallel",)),
    )(u.reshape(N, C), u1.reshape(N, C), w, b.reshape(1, C))
    return out.reshape(Sx, Sy, B, C)


# ---------------------------------------------------------------------------
# Pallas kernel 3: fused head
#   h  = relu(x @ W1 + b1);  y = h @ W2 + b2
#   out0 = damage + tanh(0.1 * y[:, 0:1])      (tanh_general, alpha=0.1, on EUP)
#   out12 = y[:, 1:3]
# ---------------------------------------------------------------------------
def _head_kernel(x_ref, dmg_ref, w1_ref, b1_ref, w2_ref, b2_ref, o0_ref, o12_ref):
    x = x_ref[...].astype(_MXU_DTYPE)
    h = jnp.dot(x, w1_ref[...].astype(_MXU_DTYPE),
                preferred_element_type=jnp.float32) + b1_ref[...]
    h = jnp.maximum(h, 0.0)
    y = jnp.dot(h.astype(_MXU_DTYPE), w2_ref[...].astype(_MXU_DTYPE),
                preferred_element_type=jnp.float32) + b2_ref[...]
    o0_ref[...] = dmg_ref[...] + jnp.tanh(0.1 * y[:, 0:1])
    o12_ref[...] = y[:, 1:3]


def head_pallas(x, damage, w1, b1, w2, b2, *, tile_rows=None):
    """x: (N, width); damage: (N, 1) -> (out0 (N,1), out12 (N,2))."""
    N, K = x.shape
    H = w1.shape[1]
    M = w2.shape[1]
    assert M == 3, M
    tile = _pick_row_tile(N, max_tile=1024) if tile_rows is None else tile_rows
    _check_row_tile(N, tile)
    return pl.pallas_call(
        _head_kernel,
        grid=(N // tile,),
        in_specs=[
            pl.BlockSpec((tile, K), lambda i: (i, 0)),
            pl.BlockSpec((tile, 1), lambda i: (i, 0)),
            pl.BlockSpec((K, H), lambda i: (0, 0)),
            pl.BlockSpec((1, H), lambda i: (0, 0)),
            pl.BlockSpec((H, M), lambda i: (0, 0)),
            pl.BlockSpec((1, M), lambda i: (0, 0)),
        ],
        out_specs=[
            pl.BlockSpec((tile, 1), lambda i: (i, 0)),
            pl.BlockSpec((tile, 2), lambda i: (i, 0)),
        ],
        out_shape=[jax.ShapeDtypeStruct((N, 1), jnp.float32),
                   jax.ShapeDtypeStruct((N, 2), jnp.float32)],
        compiler_params=pltpu.CompilerParams(dimension_semantics=("parallel",)),
    )(x, damage, w1, b1.reshape(1, H), w2, b2.reshape(1, M))


# ---------------------------------------------------------------------------
# Pallas kernel 4: spectral channel mixing, writing the FULL output spectrum.
#
# Input  xri : (Sx, Syh, 2B, C)  = [real | imag] of rfft2(u) stacked on the batch axis
# Weight w   : (2*m1, m2, Ci, 2Co) bf16 = [weights1 ; weights2] rows, [wr | wi] cols
# Outputs    : real / imag of the full (Sx, Syh, B, Co) spectrum (zeros outside modes)
#
# Grid iterates over Sx in blocks of modes1 rows.  Block 0 -> weights1 (low modes),
# last block -> weights2 (high negative modes), middle blocks are zero-filled.
# Per retained mode the complex multiply is ONE (2B, Ci) x (Ci, 2Co) MXU matmul;
# real/imag are recombined with two VALU add/subs on slices of the result.
# ---------------------------------------------------------------------------
def _spectral_kernel(xri_ref, w_ref, or_ref, oi_ref, *, modes1, modes2, batch, cout, nrb):
    # Zero the whole row-block first: covers the un-retained columns (>= modes2)
    # and the middle (non-mode) row blocks.
    or_ref[...] = jnp.zeros_like(or_ref)
    oi_ref[...] = jnp.zeros_like(oi_ref)

    r = pl.program_id(0)

    @pl.when((r == 0) | (r == nrb - 1))
    def _():
        # Static unroll over the modes1 row-modes of this block; each step is one
        # batched matmul over the modes2 column-modes (a known-good Mosaic lowering).
        for mx in range(modes1):
            xs = xri_ref[mx].astype(_MXU_DTYPE)          # (m2, 2B, Ci)
            ws = w_ref[mx].astype(_MXU_DTYPE)            # (m2, Ci, 2Co)
            p = jnp.einsum("ybi,yio->ybo", xs, ws,
                           preferred_element_type=jnp.float32)   # (m2, 2B, 2Co)
            out_r = p[:, :batch, :cout] - p[:, batch:, cout:]     # xr@wr - xi@wi
            out_i = p[:, :batch, cout:] + p[:, batch:, :cout]     # xr@wi + xi@wr
            or_ref[mx, :modes2, :, :] = out_r
            oi_ref[mx, :modes2, :, :] = out_i


def spectral_conv2d(u, w_stacked, modes1, modes2):
    """u: (Sx, Sy, B, C) f32.  w_stacked: (2*m1, m2, C, 2*C) bf16."""
    Sx, Sy, B, C = u.shape
    Syh = Sy // 2 + 1
    assert Sx % modes1 == 0 and Sx >= 2 * modes1, (Sx, modes1)
    assert modes2 <= Syh, (modes2, Syh)
    nrb = Sx // modes1

    # TODO(synk): FFT + real/imag split / complex recombine stay in plain JAX.
    x_ft = jnp.fft.rfft2(u, axes=(0, 1))                                # (Sx,Syh,B,C) c64
    xri = jnp.concatenate([jnp.real(x_ft), jnp.imag(x_ft)], axis=2)     # (Sx,Syh,2B,C) f32

    out_r, out_i = pl.pallas_call(
        functools.partial(_spectral_kernel, modes1=modes1, modes2=modes2,
                          batch=B, cout=C, nrb=nrb),
        grid=(nrb,),
        in_specs=[
            # only the retained low-frequency columns [0:modes2] are ever DMA'd in
            pl.BlockSpec((modes1, modes2, 2 * B, C), lambda r: (r, 0, 0, 0)),
            # block 0 -> weights1, every later block -> weights2 (middle blocks fetch
            # it redundantly but skip the compute via pl.when)
            pl.BlockSpec((modes1, modes2, C, 2 * C),
                         lambda r: (jnp.minimum(r, 1), 0, 0, 0)),
        ],
        out_specs=[
            pl.BlockSpec((modes1, Syh, B, C), lambda r: (r, 0, 0, 0)),
            pl.BlockSpec((modes1, Syh, B, C), lambda r: (r, 0, 0, 0)),
        ],
        out_shape=[jax.ShapeDtypeStruct((Sx, Syh, B, C), jnp.float32)] * 2,
        compiler_params=pltpu.CompilerParams(dimension_semantics=("parallel",)),
    )(xri, w_stacked)

    out_ft = lax.complex(out_r, out_i)
    return jnp.fft.irfft2(out_ft, s=(Sx, Sy), axes=(0, 1))              # (Sx,Sy,B,C) f32


# ---------------------------------------------------------------------------
# FNO2d forward
# ---------------------------------------------------------------------------
def fno2d_forward(x, params, *, modes1, modes2, width, nlayer):
    B, Sx, Sy, Cin = x.shape
    N = Sx * Sy * B

    # internal (Sx, Sy, B, C) layout (see header); transposes here are tiny glue
    xt = jnp.transpose(x, (1, 2, 0, 3))                  # (Sx, Sy, B, Cin)
    damage = xt[..., 0:1].reshape(N, 1)

    # fc00: lift to `width` channels
    u = linear_pallas(xt.reshape(N, Cin), params["fc00_w"], params["fc00_b"])
    u = u.reshape(Sx, Sy, B, width)

    # NOTE: the reference module shares one SpectralConv2d and one Conv1d across all
    # layers (self.convlayer11 / self.w11) — the weight reuse below is intentional.
    for layer in range(nlayer):
        u1 = spectral_conv2d(u, params["spec_w"], modes1, modes2)
        relu_flag = layer < nlayer - 1                   # last layer: no relu
        u = w11_combine_pallas(u, u1, params["w11_w"], params["w11_b"],
                               relu=relu_flag, nlayer=nlayer)

    out0, out12 = head_pallas(u.reshape(N, width), damage,
                              params["fc1_w"], params["fc1_b"],
                              params["fc2_w"], params["fc2_b"])

    # back to the reference (B, Sx, Sy, 1) layout (tiny glue on 3 output channels)
    out0 = jnp.transpose(out0.reshape(Sx, Sy, B, 1), (2, 0, 1, 3))
    c1 = jnp.transpose(out12[:, 0:1].reshape(Sx, Sy, B, 1), (2, 0, 1, 3))
    c2 = jnp.transpose(out12[:, 1:2].reshape(Sx, Sy, B, 1), (2, 0, 1, 3))
    out1 = jnp.concatenate([c1, c2], axis=1)             # (B, 2*Sx, Sy, 1)
    return out0, out1


# ---------------------------------------------------------------------------
# deterministic parameter construction (shapes from the module __init__)
# ---------------------------------------------------------------------------
def _pack_spectral(w1r, w1i, w2r, w2i):
    """torch weights1/2: (Ci, Co, m1, m2) real+imag ->
    stacked (2*m1, m2, Ci, 2*Co): rows [0:m1]=weights1, [m1:2m1]=weights2;
    last axis = [w_real | w_imag] (so one MXU matmul yields both products)."""
    def pack(wr, wi):
        wr = jnp.transpose(wr, (2, 3, 0, 1))             # (m1, m2, Ci, Co)
        wi = jnp.transpose(wi, (2, 3, 0, 1))
        return jnp.concatenate([wr, wi], axis=-1)        # (m1, m2, Ci, 2Co)
    return jnp.concatenate([pack(w1r, w1i), pack(w2r, w2i)], axis=0)


def init_params(key, *, width, modes1, modes2):
    ks = jax.random.split(key, 10)
    scale = 1.0 / (width * width)
    shp = (width, width, modes1, modes2)
    w1r = scale * jax.random.uniform(ks[0], shp, jnp.float32)
    w1i = scale * jax.random.uniform(ks[1], shp, jnp.float32)
    w2r = scale * jax.random.uniform(ks[2], shp, jnp.float32)
    w2i = scale * jax.random.uniform(ks[3], shp, jnp.float32)

    # weights stored bf16 (halves weight DMA + VMEM); biases stay f32.
    return {
        "fc00_w": (0.1 * jax.random.normal(ks[4], (5, width), jnp.float32)).astype(_MXU_DTYPE),
        "fc00_b": jnp.zeros((width,), jnp.float32),
        # Conv1d(width, width, 1) == (in, out) matmul on channels-last rows
        "w11_w": (0.1 * jax.random.normal(ks[5], (width, width), jnp.float32)).astype(_MXU_DTYPE),
        "w11_b": 0.01 * jax.random.normal(ks[6], (width,), jnp.float32),
        "spec_w": _pack_spectral(w1r, w1i, w2r, w2i).astype(_MXU_DTYPE),
        "fc1_w": (0.1 * jax.random.normal(ks[7], (width, 128), jnp.float32)).astype(_MXU_DTYPE),
        "fc1_b": jnp.zeros((128,), jnp.float32),
        "fc2_w": (0.1 * jax.random.normal(ks[8], (128, 3), jnp.float32)).astype(_MXU_DTYPE),
        "fc2_b": jnp.zeros((3,), jnp.float32),
    }


if __name__ == "__main__":
    B, S = 2, 16
    width = 32
    modes1 = modes2 = 8
    nlayer = 3

    key = jax.random.PRNGKey(0)
    kx, kp = jax.random.split(key)
    x = jax.random.normal(kx, (B, S, S, 5), jnp.float32)   # (a(x,y), ..., x, y)
    params = init_params(kp, width=width, modes1=modes1, modes2=modes2)

    fwd = jax.jit(functools.partial(
        fno2d_forward, modes1=modes1, modes2=modes2, width=width, nlayer=nlayer))
    out0, out1 = fwd(x, params)
    jax.block_until_ready(out0)
    jax.block_until_ready(out1)

    assert out0.shape == (B, S, S, 1), out0.shape
    assert out1.shape == (B, 2 * S, S, 1), out1.shape
    assert jnp.all(jnp.isfinite(out0)) and jnp.all(jnp.isfinite(out1))
    print("KERNEL_OK")
</pallas_src>

<mosaic_0001>
module attributes {stable_mosaic.version = 11 : i64} {
  func.func @_linear_kernel(%arg0: i32, %arg1: memref<256x5xf32, #tpu.memory_space<vmem>>, %arg2: memref<5x32xbf16, #tpu.memory_space<vmem>>, %arg3: memref<1x32xf32, #tpu.memory_space<vmem>>, %arg4: memref<256x32xf32, #tpu.memory_space<vmem>>) attributes {dimension_semantics = [#tpu.dimension_semantics<parallel>], iteration_bounds = array<i64: 2>, scalar_prefetch = 0 : i64, scratch_operands = 0 : i64, tpu.core_type = #tpu.core_type<tc>, window_params = [{transform_indices = @transform_0, window_bounds = array<i64: 256, 5>}, {pipeline_mode = #tpu.pipeline_mode<synchronous>, transform_indices = @transform_1, window_bounds = array<i64: 5, 32>}, {pipeline_mode = #tpu.pipeline_mode<synchronous>, transform_indices = @transform_2, window_bounds = array<i64: 1, 32>}, {transform_indices = @transform_3, window_bounds = array<i64: 256, 32>}]} {
    %c0 = arith.constant 0 : index
    %c0_0 = arith.constant 0 : index
    %0 = vector.load %arg1[%c0, %c0_0] : memref<256x5xf32, #tpu.memory_space<vmem>>, vector<256x5xf32>
    %1 = arith.truncf %0 : vector<256x5xf32> to vector<256x5xbf16>
    %c0_1 = arith.constant 0 : index
    %c0_2 = arith.constant 0 : index
    %2 = vector.load %arg2[%c0_1, %c0_2] : memref<5x32xbf16, #tpu.memory_space<vmem>>, vector<5x32xbf16>
    %cst = arith.constant dense<0.000000e+00> : vector<256x32xf32>
    %3 = tpu.matmul %1, %2, %cst {dimension_numbers = #tpu.dot_dimension_numbers<[1], [0], [0], [1], [0, 0, 1, 1], [], []>} : vector<256x5xbf16>, vector<5x32xbf16>, vector<256x32xf32> -> vector<256x32xf32>
    %c0_3 = arith.constant 0 : index
    %c0_4 = arith.constant 0 : index
    %4 = vector.load %arg3[%c0_3, %c0_4] : memref<1x32xf32, #tpu.memory_space<vmem>>, vector<1x32xf32>
    %5 = vector.broadcast %4 : vector<1x32xf32> to vector<256x32xf32>
    %6 = arith.addf %3, %5 : vector<256x32xf32>
    %c0_5 = arith.constant 0 : index
    %c0_6 = arith.constant 0 : index
    %7 = vector.load %arg4[%c0_5, %c0_6] : memref<256x32xf32, #tpu.memory_space<vmem>>, vector<256x32xf32>
    tpu.vector_store %arg4[%c0_5, %c0_6], %6 {strides = array<i32>} : memref<256x32xf32, #tpu.memory_space<vmem>>, vector<256x32xf32>,
    return
  }
  func.func @transform_0(%arg0: i32) -> (i32, i32) {
    %c0_i32 = arith.constant 0 : i32
    %c0_i32_0 = arith.constant 0 : i32
    return %arg0, %c0_i32 : i32, i32
  }
  func.func @transform_1(%arg0: i32) -> (i32, i32) {
    %c0_i32 = arith.constant 0 : i32
    %c0_i32_0 = arith.constant 0 : i32
    %c0_i32_1 = arith.constant 0 : i32
    return %c0_i32, %c0_i32_0 : i32, i32
  }
  func.func @transform_2(%arg0: i32) -> (i32, i32) {
    %c0_i32 = arith.constant 0 : i32
    %c0_i32_0 = arith.constant 0 : i32
    %c0_i32_1 = arith.constant 0 : i32
    return %c0_i32, %c0_i32_0 : i32, i32
  }
  func.func @transform_3(%arg0: i32) -> (i32, i32) {
    %c0_i32 = arith.constant 0 : i32
    %c0_i32_0 = arith.constant 0 : i32
    return %arg0, %c0_i32 : i32, i32
  }
}

module attributes {stable_mosaic.version = 11 : i64} {
  func.func @_spectral_kernel(%arg0: i32, %arg1: memref<8x8x4x32xf32, #tpu.memory_space<vmem>>, %arg2: memref<8x8x32x64xbf16, #tpu.memory_space<vmem>>, %arg3: memref<8x9x2x32xf32, #tpu.memory_space<vmem>>, %arg4: memref<8x9x2x32xf32, #tpu.memory_space<vmem>>) attributes {dimension_semantics = [#tpu.dimension_semantics<parallel>], iteration_bounds = array<i64: 2>, scalar_prefetch = 0 : i64, scratch_operands = 0 : i64, tpu.core_type = #tpu.core_type<tc>, window_params = [{transform_indices = @transform_0, window_bounds = array<i64: 8, 8, 4, 32>}, {transform_indices = @transform_1, window_bounds = array<i64: 8, 8, 32, 64>}, {transform_indices = @transform_2, window_bounds = array<i64: 8, 9, 2, 32>}, {transform_indices = @transform_3, window_bounds = array<i64: 8, 9, 2, 32>}]} {
    %cst = arith.constant 0.000000e+00 : f32
    %0 = vector.broadcast %cst : f32 to vector<8x9x2x32xf32>
    %c0 = arith.constant 0 : index
    %c0_0 = arith.constant 0 : index
    %c0_1 = arith.constant 0 : index
    %c0_2 = arith.constant 0 : index
    %1 = vector.load %arg3[%c0, %c0_0, %c0_1, %c0_2] : memref<8x9x2x32xf32, #tpu.memory_space<vmem>>, vector<8x9x2x32xf32>
    tpu.vector_store %arg3[%c0, %c0_0, %c0_1, %c0_2], %0 {strides = array<i32>} : memref<8x9x2x32xf32, #tpu.memory_space<vmem>>, vector<8x9x2x32xf32>,
    %cst_3 = arith.constant 0.000000e+00 : f32
    %2 = vector.broadcast %cst_3 : f32 to vector<8x9x2x32xf32>
    %c0_4 = arith.constant 0 : index
    %c0_5 = arith.constant 0 : index
    %c0_6 = arith.constant 0 : index
    %c0_7 = arith.constant 0 : index
    %3 = vector.load %arg4[%c0_4, %c0_5, %c0_6, %c0_7] : memref<8x9x2x32xf32, #tpu.memory_space<vmem>>, vector<8x9x2x32xf32>
    tpu.vector_store %arg4[%c0_4, %c0_5, %c0_6, %c0_7], %2 {strides = array<i32>} : memref<8x9x2x32xf32, #tpu.memory_space<vmem>>, vector<8x9x2x32xf32>,
    %c0_i32 = arith.constant 0 : i32
    %4 = arith.cmpi eq, %arg0, %c0_i32 : i32
    %c1_i32 = arith.constant 1 : i32
    %5 = arith.cmpi eq, %arg0, %c1_i32 : i32
    %6 = arith.ori %4, %5 : i1
    %7 = arith.extui %6 : i1 to i32
    %c0_i32_8 = arith.constant 0 : i32
    %8 = arith.cmpi ne, %7, %c0_i32_8 : i32
    scf.if %8 {
      %c0_9 = arith.constant 0 : index
      %c0_10 = arith.constant 0 : index
      %c0_11 = arith.constant 0 : index
      %c0_12 = arith.constant 0 : index
      %9 = vector.load %arg1[%c0_9, %c0_10, %c0_11, %c0_12] : memref<8x8x4x32xf32, #tpu.memory_space<vmem>>, vector<1x8x4x32xf32>
      %10 = vector.shape_cast %9 : vector<1x8x4x32xf32> to vector<8x4x32xf32>
      %11 = arith.truncf %10 : vector<8x4x32xf32> to vector<8x4x32xbf16>
      %c0_13 = arith.constant 0 : index
      %c0_14 = arith.constant 0 : index
      %c0_15 = arith.constant 0 : index
      %c0_16 = arith.constant 0 : index
      %12 = vector.load %arg2[%c0_13, %c0_14, %c0_15, %c0_16] : memref<8x8x32x64xbf16, #tpu.memory_space<vmem>>, vector<1x8x32x64xbf16>
      %13 = vector.shape_cast %12 : vector<1x8x32x64xbf16> to vector<8x32x64xbf16>
      "tpu.trace_start"() <{level = 10 : i32, message = "ybi,yio->ybo"}> : () -> ()
      %cst_17 = arith.constant dense<0.000000e+00> : vector<8x4x64xf32>
      %14 = tpu.matmul %11, %13, %cst_17 {dimension_numbers = #tpu.dot_dimension_numbers<[2], [1], [1], [2], [0, 0, 0, 1, 1, 2], [0], [0]>} : vector<8x4x32xbf16>, vector<8x32x64xbf16>, vector<8x4x64xf32> -> vector<8x4x64xf32>
      "tpu.trace_stop"() : () -> ()
      %15 = vector.extract_strided_slice %14 {offsets = [0, 0, 0], sizes = [8, 2, 32], strides = [1, 1, 1]} : vector<8x4x64xf32> to vector<8x2x32xf32>
      %16 = vector.extract_strided_slice %14 {offsets = [0, 2, 32], sizes = [8, 2, 32], strides = [1, 1, 1]} : vector<8x4x64xf32> to vector<8x2x32xf32>
      %17 = arith.subf %15, %16 : vector<8x2x32xf32>
      %18 = vector.extract_strided_slice %14 {offsets = [0, 0, 32], sizes = [8, 2, 32], strides = [1, 1, 1]} : vector<8x4x64xf32> to vector<8x2x32xf32>
      %19 = vector.extract_strided_slice %14 {offsets = [0, 2, 0], sizes = [8, 2, 32], strides = [1, 1, 1]} : vector<8x4x64xf32> to vector<8x2x32xf32>
      %20 = arith.addf %18, %19 : vector<8x2x32xf32>
      %c0_18 = arith.constant 0 : index
      %c0_19 = arith.constant 0 : index
      %c0_20 = arith.constant 0 : index
      %c0_21 = arith.constant 0 : index
      %21 = vector.load %arg3[%c0_18, %c0_19, %c0_20, %c0_21] : memref<8x9x2x32xf32, #tpu.memory_space<vmem>>, vector<1x8x2x32xf32>
      %22 = vector.shape_cast %21 : vector<1x8x2x32xf32> to vector<8x2x32xf32>
      %23 = vector.shape_cast %17 : vector<8x2x32xf32> to vector<1x8x2x32xf32>
      tpu.vector_store %arg3[%c0_18, %c0_19, %c0_20, %c0_21], %23 {strides = array<i32>} : memref<8x9x2x32xf32, #tpu.memory_space<vmem>>, vector<1x8x2x32xf32>,
      %c0_22 = arith.constant 0 : index
      %c0_23 = arith.constant 0 : index
      %c0_24 = arith.constant 0 : index
      %c0_25 = arith.constant 0 : index
      %24 = vector.load %arg4[%c0_22, %c0_23, %c0_24, %c0_25] : memref<8x9x2x32xf32, #tpu.memory_space<vmem>>, vector<1x8x2x32xf32>
      %25 = vector.shape_cast %24 : vector<1x8x2x32xf32> to vector<8x2x32xf32>
      %26 = vector.shape_cast %20 : vector<8x2x32xf32> to vector<1x8x2x32xf32>
      tpu.vector_store %arg4[%c0_22, %c0_23, %c0_24, %c0_25], %26 {strides = array<i32>} : memref<8x9x2x32xf32, #tpu.memory_space<vmem>>, vector<1x8x2x32xf32>,
      %c1 = arith.constant 1 : index
      %c0_26 = arith.constant 0 : index
      %c0_27 = arith.constant 0 : index
      %c0_28 = arith.constant 0 : index
      %27 = vector.load %arg1[%c1, %c0_26, %c0_27, %c0_28] : memref<8x8x4x32xf32, #tpu.memory_space<vmem>>, vector<1x8x4x32xf32>
      %28 = vector.shape_cast %27 : vector<1x8x4x32xf32> to vector<8x4x32xf32>
      %29 = arith.truncf %28 : vector<8x4x32xf32> to vector<8x4x32xbf16>
      %c1_29 = arith.constant 1 : index
      %c0_30 = arith.constant 0 : index
      %c0_31 = arith.constant 0 : index
      %c0_32 = arith.constant 0 : index
      %30 = vector.load %arg2[%c1_29, %c0_30, %c0_31, %c0_32] : memref<8x8x32x64xbf16, #tpu.memory_space<vmem>>, vector<1x8x32x64xbf16>
      %31 = vector.shape_cast %30 : vector<1x8x32x64xbf16> to vector<8x32x64xbf16>
      "tpu.trace_start"() <{level = 10 : i32, message = "ybi,yio->ybo"}> : () -> ()
      %cst_33 = arith.constant dense<0.000000e+00> : vector<8x4x64xf32>
      %32 = tpu.matmul %29, %31, %cst_33 {dimension_numbers = #tpu.dot_dimension_numbers<[2], [1], [1], [2], [0, 0, 0, 1, 1, 2], [0], [0]>} : vector<8x4x32xbf16>, vector<8x32x64xbf16>, vector<8x4x64xf32> -> vector<8x4x64xf32>
      "tpu.trace_stop"() : () -> ()
      %33 = vector.extract_strided_slice %32 {offsets = [0, 0, 0], sizes = [8, 2, 32], strides = [1, 1, 1]} : vector<8x4x64xf32> to vector<8x2x32xf32>
      %34 = vector.extract_strided_slice %32 {offsets = [0, 2, 32], sizes = [8, 2, 32], strides = [1, 1, 1]} : vector<8x4x64xf32> to vector<8x2x32xf32>
      %35 = arith.subf %33, %34 : vector<8x2x32xf32>
      %36 = vector.extract_strided_slice %32 {offsets = [0, 0, 32], sizes = [8, 2, 32], strides = [1, 1, 1]} : vector<8x4x64xf32> to vector<8x2x32xf32>
      %37 = vector.extract_strided_slice %32 {offsets = [0, 2, 0], sizes = [8, 2, 32], strides = [1, 1, 1]} : vector<8x4x64xf32> to vector<8x2x32xf32>
      %38 = arith.addf %36, %37 : vector<8x2x32xf32>
      %c1_34 = arith.constant 1 : index
      %c0_35 = arith.constant 0 : index
      %c0_36 = arith.constant 0 : index
      %c0_37 = arith.constant 0 : index
      %39 = vector.load %arg3[%c1_34, %c0_35, %c0_36, %c0_37] : memref<8x9x2x32xf32, #tpu.memory_space<vmem>>, vector<1x8x2x32xf32>
      %40 = vector.shape_cast %39 : vector<1x8x2x32xf32> to vector<8x2x32xf32>
      %41 = vector.shape_cast %35 : vector<8x2x32xf32> to vector<1x8x2x32xf32>
      tpu.vector_store %arg3[%c1_34, %c0_35, %c0_36, %c0_37], %41 {strides = array<i32>} : memref<8x9x2x32xf32, #tpu.memory_space<vmem>>, vector<1x8x2x32xf32>,
      %c1_38 = arith.constant 1 : index
      %c0_39 = arith.constant 0 : index
      %c0_40 = arith.constant 0 : index
      %c0_41 = arith.constant 0 : index
      %42 = vector.load %arg4[%c1_38, %c0_39, %c0_40, %c0_41] : memref<8x9x2x32xf32, #tpu.memory_space<vmem>>, vector<1x8x2x32xf32>
      %43 = vector.shape_cast %42 : vector<1x8x2x32xf32> to vector<8x2x32xf32>
      %44 = vector.shape_cast %38 : vector<8x2x32xf32> to vector<1x8x2x32xf32>
      tpu.vector_store %arg4[%c1_38, %c0_39, %c0_40, %c0_41], %44 {strides = array<i32>} : memref<8x9x2x32xf32, #tpu.memory_space<vmem>>, vector<1x8x2x32xf32>,
      %c2 = arith.constant 2 : index
      %c0_42 = arith.constant 0 : index
      %c0_43 = arith.constant 0 : index
      %c0_44 = arith.constant 0 : index
      %45 = vector.load %arg1[%c2, %c0_42, %c0_43, %c0_44] : memref<8x8x4x32xf32, #tpu.memory_space<vmem>>, vector<1x8x4x32xf32>
      %46 = vector.shape_cast %45 : vector<1x8x4x32xf32> to vector<8x4x32xf32>
      %47 = arith.truncf %46 : vector<8x4x32xf32> to vector<8x4x32xbf16>
      %c2_45 = arith.constant 2 : index
      %c0_46 = arith.constant 0 : index
      %c0_47 = arith.constant 0 : index
      %c0_48 = arith.constant 0 : index
      %48 = vector.load %arg2[%c2_45, %c0_46, %c0_47, %c0_48] : memref<8x8x32x64xbf16, #tpu.memory_space<vmem>>, vector<1x8x32x64xbf16>
      %49 = vector.shape_cast %48 : vector<1x8x32x64xbf16> to vector<8x32x64xbf16>
      "tpu.trace_start"() <{level = 10 : i32, message = "ybi,yio->ybo"}> : () -> ()
      %cst_49 = arith.constant dense<0.000000e+00> : vector<8x4x64xf32>
      %50 = tpu.matmul %47, %49, %cst_49 {dimension_numbers = #tpu.dot_dimension_numbers<[2], [1], [1], [2], [0, 0, 0, 1, 1, 2], [0], [0]>} : vector<8x4x32xbf16>, vector<8x32x64xbf16>, vector<8x4x64xf32> -> vector<8x4x64xf32>
      "tpu.trace_stop"() : () -> ()
      %51 = vector.extract_strided_slice %50 {offsets = [0, 0, 0], sizes = [8, 2, 32], strides = [1, 1, 1]} : vector<8x4x64xf32> to vector<8x2x32xf32>
      %52 = vector.extract_strided_slice %50 {offsets = [0, 2, 32], sizes = [8, 2, 32], strides = [1, 1, 1]} : vector<8x4x64xf32> to vector<8x2x32xf32>
      %53 = arith.subf %51, %52 : vector<8x2x32xf32>
      %54 = vector.extract_strided_slice %50 {offsets = [0, 0, 32], sizes = [8, 2, 32], strides = [1, 1, 1]} : vector<8x4x64xf32> to vector<8x2x32xf32>
      %55 = vector.extract_strided_slice %50 {offsets = [0, 2, 0], sizes = [8, 2, 32], strides = [1, 1, 1]} : vector<8x4x64xf32> to vector<8x2x32xf32>
      %56 = arith.addf %54, %55 : vector<8x2x32xf32>
      %c2_50 = arith.constant 2 : index
      %c0_51 = arith.constant 0 : index
      %c0_52 = arith.constant 0 : index
      %c0_53 = arith.constant 0 : index
      %57 = vector.load %arg3[%c2_50, %c0_51, %c0_52, %c0_53] : memref<8x9x2x32xf32, #tpu.memory_space<vmem>>, vector<1x8x2x32xf32>
      %58 = vector.shape_cast %57 : vector<1x8x2x32xf32> to vector<8x2x32xf32>
      %59 = vector.shape_cast %53 : vector<8x2x32xf32> to vector<1x8x2x32xf32>
      tpu.vector_store %arg3[%c2_50, %c0_51, %c0_52, %c0_53], %59 {strides = array<i32>} : memref<8x9x2x32xf32, #tpu.memory_space<vmem>>, vector<1x8x2x32xf32>,
      %c2_54 = arith.constant 2 : index
      %c0_55 = arith.constant 0 : index
      %c0_56 = arith.constant 0 : index
      %c0_57 = arith.constant 0 : index
      %60 = vector.load %arg4[%c2_54, %c0_55, %c0_56, %c0_57] : memref<8x9x2x32xf32, #tpu.memory_space<vmem>>, vector<1x8x2x32xf32>
      %61 = vector.shape_cast %60 : vector<1x8x2x32xf32> to vector<8x2x32xf32>
      %62 = vector.shape_cast %56 : vector<8x2x32xf32> to vector<1x8x2x32xf32>
      tpu.vector_store %arg4[%c2_54, %c0_55, %c0_56, %c0_57], %62 {strides = array<i32>} : memref<8x9x2x32xf32, #tpu.memory_space<vmem>>, vector<1x8x2x32xf32>,
      %c3 = arith.constant 3 : index
      %c0_58 = arith.constant 0 : index
      %c0_59 = arith.constant 0 : index
      %c0_60 = arith.constant 0 : index
      %63 = vector.load %arg1[%c3, %c0_58, %c0_59, %c0_60] : memref<8x8x4x32xf32, #tpu.memory_space<vmem>>, vector<1x8x4x32xf32>
      %64 = vector.shape_cast %63 : vector<1x8x4x32xf32> to vector<8x4x32xf32>
      %65 = arith.truncf %64 : vector<8x4x32xf32> to vector<8x4x32xbf16>
      %c3_61 = arith.constant 3 : index
      %c0_62 = arith.constant 0 : index
      %c0_63 = arith.constant 0 : index
      %c0_64 = arith.constant 0 : index
      %66 = vector.load %arg2[%c3_61, %c0_62, %c0_63, %c0_64] : memref<8x8x32x64xbf16, #tpu.memory_space<vmem>>, vector<1x8x32x64xbf16>
      %67 = vector.shape_cast %66 : vector<1x8x32x64xbf16> to vector<8x32x64xbf16>
      "tpu.trace_start"() <{level = 10 : i32, message = "ybi,yio->ybo"}> : () -> ()
      %cst_65 = arith.constant dense<0.000000e+00> : vector<8x4x64xf32>
      %68 = tpu.matmul %65, %67, %cst_65 {dimension_numbers = #tpu.dot_dimension_numbers<[2], [1], [1], [2], [0, 0, 0, 1, 1, 2], [0], [0]>} : vector<8x4x32xbf16>, vector<8x32x64xbf16>, vector<8x4x64xf32> -> vector<8x4x64xf32>
      "tpu.trace_stop"() : () -> ()
      %69 = vector.extract_strided_slice %68 {offsets = [0, 0, 0], sizes = [8, 2, 32], strides = [1, 1, 1]} : vector<8x4x64xf32> to vector<8x2x32xf32>
      %70 = vector.extract_strided_slice %68 {offsets = [0, 2, 32], sizes = [8, 2, 32], strides = [1, 1, 1]} : vector<8x4x64xf32> to vector<8x2x32xf32>
      %71 = arith.subf %69, %70 : vector<8x2x32xf32>
      %72 = vector.extract_strided_slice %68 {offsets = [0, 0, 32], sizes = [8, 2, 32], strides = [1, 1, 1]} : vector<8x4x64xf32> to vector<8x2x32xf32>
      %73 = vector.extract_strided_slice %68 {offsets = [0, 2, 0], sizes = [8, 2, 32], strides = [1, 1, 1]} : vector<8x4x64xf32> to vector<8x2x32xf32>
      %74 = arith.addf %72, %73 : vector<8x2x32xf32>
      %c3_66 = arith.constant 3 : index
      %c0_67 = arith.constant 0 : index
      %c0_68 = arith.constant 0 : index
      %c0_69 = arith.constant 0 : index
      %75 = vector.load %arg3[%c3_66, %c0_67, %c0_68, %c0_69] : memref<8x9x2x32xf32, #tpu.memory_space<vmem>>, vector<1x8x2x32xf32>
      %76 = vector.shape_cast %75 : vector<1x8x2x32xf32> to vector<8x2x32xf32>
      %77 = vector.shape_cast %71 : vector<8x2x32xf32> to vector<1x8x2x32xf32>
      tpu.vector_store %arg3[%c3_66, %c0_67, %c0_68, %c0_69], %77 {strides = array<i32>} : memref<8x9x2x32xf32, #tpu.memory_space<vmem>>, vector<1x8x2x32xf32>,
      %c3_70 = arith.constant 3 : index
      %c0_71 = arith.constant 0 : index
      %c0_72 = arith.constant 0 : index
      %c0_73 = arith.constant 0 : index
      %78 = vector.load %arg4[%c3_70, %c0_71, %c0_72, %c0_73] : memref<8x9x2x32xf32, #tpu.memory_space<vmem>>, vector<1x8x2x32xf32>
      %79 = vector.shape_cast %78 : vector<1x8x2x32xf32> to vector<8x2x32xf32>
      %80 = vector.shape_cast %74 : vector<8x2x32xf32> to vector<1x8x2x32xf32>
      tpu.vector_store %arg4[%c3_70, %c0_71, %c0_72, %c0_73], %80 {strides = array<i32>} : memref<8x9x2x32xf32, #tpu.memory_space<vmem>>, vector<1x8x2x32xf32>,
      %c4 = arith.constant 4 : index
      %c0_74 = arith.constant 0 : index
      %c0_75 = arith.constant 0 : index
      %c0_76 = arith.constant 0 : index
      %81 = vector.load %arg1[%c4, %c0_74, %c0_75, %c0_76] : memref<8x8x4x32xf32, #tpu.memory_space<vmem>>, vector<1x8x4x32xf32>
      %82 = vector.shape_cast %81 : vector<1x8x4x32xf32> to vector<8x4x32xf32>
      %83 = arith.truncf %82 : vector<8x4x32xf32> to vector<8x4x32xbf16>
      %c4_77 = arith.constant 4 : index
      %c0_78 = arith.constant 0 : index
      %c0_79 = arith.constant 0 : index
      %c0_80 = arith.constant 0 : index
      %84 = vector.load %arg2[%c4_77, %c0_78, %c0_79, %c0_80] : memref<8x8x32x64xbf16, #tpu.memory_space<vmem>>, vector<1x8x32x64xbf16>
      %85 = vector.shape_cast %84 : vector<1x8x32x64xbf16> to vector<8x32x64xbf16>
      "tpu.trace_start"() <{level = 10 : i32, message = "ybi,yio->ybo"}> : () -> ()
      %cst_81 = arith.constant dense<0.000000e+00> : vector<8x4x64xf32>
      %86 = tpu.matmul %83, %85, %cst_81 {dimension_numbers = #tpu.dot_dimension_numbers<[2], [1], [1], [2], [0, 0, 0, 1, 1, 2], [0], [0]>} : vector<8x4x32xbf16>, vector<8x32x64xbf16>, vector<8x4x64xf32> -> vector<8x4x64xf32>
      "tpu.trace_stop"() : () -> ()
      %87 = vector.extract_strided_slice %86 {offsets = [0, 0, 0], sizes = [8, 2, 32], strides = [1, 1, 1]} : vector<8x4x64xf32> to vector<8x2x32xf32>
      %88 = vector.extract_strided_slice %86 {offsets = [0, 2, 32], sizes = [8, 2, 32], strides = [1, 1, 1]} : vector<8x4x64xf32> to vector<8x2x32xf32>
      %89 = arith.subf %87, %88 : vector<8x2x32xf32>
      %90 = vector.extract_strided_slice %86 {offsets = [0, 0, 32], sizes = [8, 2, 32], strides = [1, 1, 1]} : vector<8x4x64xf32> to vector<8x2x32xf32>
      %91 = vector.extract_strided_slice %86 {offsets = [0, 2, 0], sizes = [8, 2, 32], strides = [1, 1, 1]} : vector<8x4x64xf32> to vector<8x2x32xf32>
      %92 = arith.addf %90, %91 : vector<8x2x32xf32>
      %c4_82 = arith.constant 4 : index
      %c0_83 = arith.constant 0 : index
      %c0_84 = arith.constant 0 : index
      %c0_85 = arith.constant 0 : index
      %93 = vector.load %arg3[%c4_82, %c0_83, %c0_84, %c0_85] : memref<8x9x2x32xf32, #tpu.memory_space<vmem>>, vector<1x8x2x32xf32>
      %94 = vector.shape_cast %93 : vector<1x8x2x32xf32> to vector<8x2x32xf32>
      %95 = vector.shape_cast %89 : vector<8x2x32xf32> to vector<1x8x2x32xf32>
      tpu.vector_store %arg3[%c4_82, %c0_83, %c0_84, %c0_85], %95 {strides = array<i32>} : memref<8x9x2x32xf32, #tpu.memory_space<vmem>>, vector<1x8x2x32xf32>,
      %c4_86 = arith.constant 4 : index
      %c0_87 = arith.constant 0 : index
      %c0_88 = arith.constant 0 : index
      %c0_89 = arith.constant 0 : index
      %96 = vector.load %arg4[%c4_86, %c0_87, %c0_88, %c0_89] : memref<8x9x2x32xf32, #tpu.memory_space<vmem>>, vector<1x8x2x32xf32>
      %97 = vector.shape_cast %96 : vector<1x8x2x32xf32> to vector<8x2x32xf32>
      %98 = vector.shape_cast %92 : vector<8x2x32xf32> to vector<1x8x2x32xf32>
      tpu.vector_store %arg4[%c4_86, %c0_87, %c0_88, %c0_89], %98 {strides = array<i32>} : memref<8x9x2x32xf32, #tpu.memory_space<vmem>>, vector<1x8x2x32xf32>,
      %c5 = arith.constant 5 : index
      %c0_90 = arith.constant 0 : index
      %c0_91 = arith.constant 0 : index
      %c0_92 = arith.constant 0 : index
      %99 = vector.load %arg1[%c5, %c0_90, %c0_91, %c0_92] : memref<8x8x4x32xf32, #tpu.memory_space<vmem>>, vector<1x8x4x32xf32>
      %100 = vector.shape_cast %99 : vector<1x8x4x32xf32> to vector<8x4x32xf32>
      %101 = arith.truncf %100 : vector<8x4x32xf32> to vector<8x4x32xbf16>
      %c5_93 = arith.constant 5 : index
      %c0_94 = arith.constant 0 : index
      %c0_95 = arith.constant 0 : index
      %c0_96 = arith.constant 0 : index
      %102 = vector.load %arg2[%c5_93, %c0_94, %c0_95, %c0_96] : memref<8x8x32x64xbf16, #tpu.memory_space<vmem>>, vector<1x8x32x64xbf16>
      %103 = vector.shape_cast %102 : vector<1x8x32x64xbf16> to vector<8x32x64xbf16>
      "tpu.trace_start"() <{level = 10 : i32, message = "ybi,yio->ybo"}> : () -> ()
      %cst_97 = arith.constant dense<0.000000e+00> : vector<8x4x64xf32>
      %104 = tpu.matmul %101, %103, %cst_97 {dimension_numbers = #tpu.dot_dimension_numbers<[2], [1], [1], [2], [0, 0, 0, 1, 1, 2], [0], [0]>} : vector<8x4x32xbf16>, vector<8x32x64xbf16>, vector<8x4x64xf32> -> vector<8x4x64xf32>
      "tpu.trace_stop"() : () -> ()
      %105 = vector.extract_strided_slice %104 {offsets = [0, 0, 0], sizes = [8, 2, 32], strides = [1, 1, 1]} : vector<8x4x64xf32> to vector<8x2x32xf32>
      %106 = vector.extract_strided_slice %104 {offsets = [0, 2, 32], sizes = [8, 2, 32], strides = [1, 1, 1]} : vector<8x4x64xf32> to vector<8x2x32xf32>
      %107 = arith.subf %105, %106 : vector<8x2x32xf32>
      %108 = vector.extract_strided_slice %104 {offsets = [0, 0, 32], sizes = [8, 2, 32], strides = [1, 1, 1]} : vector<8x4x64xf32> to vector<8x2x32xf32>
      %109 = vector.extract_strided_slice %104 {offsets = [0, 2, 0], sizes = [8, 2, 32], strides = [1, 1, 1]} : vector<8x4x64xf32> to vector<8x2x32xf32>
      %110 = arith.addf %108, %109 : vector<8x2x32xf32>
      %c5_98 = arith.constant 5 : index
      %c0_99 = arith.constant 0 : index
      %c0_100 = arith.constant 0 : index
      %c0_101 = arith.constant 0 : index
      %111 = vector.load %arg3[%c5_98, %c0_99, %c0_100, %c0_101] : memref<8x9x2x32xf32, #tpu.memory_space<vmem>>, vector<1x8x2x32xf32>
      %112 = vector.shape_cast %111 : vector<1x8x2x32xf32> to vector<8x2x32xf32>
      %113 = vector.shape_cast %107 : vector<8x2x32xf32> to vector<1x8x2x32xf32>
      tpu.vector_store %arg3[%c5_98, %c0_99, %c0_100, %c0_101], %113 {strides = array<i32>} : memref<8x9x2x32xf32, #tpu.memory_space<vmem>>, vector<1x8x2x32xf32>,
      %c5_102 = arith.constant 5 : index
      %c0_103 = arith.constant 0 : index
      %c0_104 = arith.constant 0 : index
      %c0_105 = arith.constant 0 : index
      %114 = vector.load %arg4[%c5_102, %c0_103, %c0_104, %c0_105] : memref<8x9x2x32xf32, #tpu.memory_space<vmem>>, vector<1x8x2x32xf32>
      %115 = vector.shape_cast %114 : vector<1x8x2x32xf32> to vector<8x2x32xf32>
      %116 = vector.shape_cast %110 : vector<8x2x32xf32> to vector<1x8x2x32xf32>
      tpu.vector_store %arg4[%c5_102, %c0_103, %c0_104, %c0_105], %116 {strides = array<i32>} : memref<8x9x2x32xf32, #tpu.memory_space<vmem>>, vector<1x8x2x32xf32>,
      %c6 = arith.constant 6 : index
      %c0_106 = arith.constant 0 : index
      %c0_107 = arith.constant 0 : index
      %c0_108 = arith.constant 0 : index
      %117 = vector.load %arg1[%c6, %c0_106, %c0_107, %c0_108] : memref<8x8x4x32xf32, #tpu.memory_space<vmem>>, vector<1x8x4x32xf32>
      %118 = vector.shape_cast %117 : vector<1x8x4x32xf32> to vector<8x4x32xf32>
      %119 = arith.truncf %118 : vector<8x4x32xf32> to vector<8x4x32xbf16>
      %c6_109 = arith.constant 6 : index
      %c0_110 = arith.constant 0 : index
      %c0_111 = arith.constant 0 : index
      %c0_112 = arith.constant 0 : index
      %120 = vector.load %arg2[%c6_109, %c0_110, %c0_111, %c0_112] : memref<8x8x32x64xbf16, #tpu.memory_space<vmem>>, vector<1x8x32x64xbf16>
      %121 = vector.shape_cast %120 : vector<1x8x32x64xbf16> to vector<8x32x64xbf16>
      "tpu.trace_start"() <{level = 10 : i32, message = "ybi,yio->ybo"}> : () -> ()
      %cst_113 = arith.constant dense<0.000000e+00> : vector<8x4x64xf32>
      %122 = tpu.matmul %119, %121, %cst_113 {dimension_numbers = #tpu.dot_dimension_numbers<[2], [1], [1], [2], [0, 0, 0, 1, 1, 2], [0], [0]>} : vector<8x4x32xbf16>, vector<8x32x64xbf16>, vector<8x4x64xf32> -> vector<8x4x64xf32>
      "tpu.trace_stop"() : () -> ()
      %123 = vector.extract_strided_slice %122 {offsets = [0, 0, 0], sizes = [8, 2, 32], strides = [1, 1, 1]} : vector<8x4x64xf32> to vector<8x2x32xf32>
      %124 = vector.extract_strided_slice %122 {offsets = [0, 2, 32], sizes = [8, 2, 32], strides = [1, 1, 1]} : vector<8x4x64xf32> to vector<8x2x32xf32>
      %125 = arith.subf %123, %124 : vector<8x2x32xf32>
      %126 = vector.extract_strided_slice %122 {offsets = [0, 0, 32], sizes = [8, 2, 32], strides = [1, 1, 1]} : vector<8x4x64xf32> to vector<8x2x32xf32>
      %127 = vector.extract_strided_slice %122 {offsets = [0, 2, 0], sizes = [8, 2, 32], strides = [1, 1, 1]} : vector<8x4x64xf32> to vector<8x2x32xf32>
      %128 = arith.addf %126, %127 : vector<8x2x32xf32>
      %c6_114 = arith.constant 6 : index
      %c0_115 = arith.constant 0 : index
      %c0_116 = arith.constant 0 : index
      %c0_117 = arith.constant 0 : index
      %129 = vector.load %arg3[%c6_114, %c0_115, %c0_116, %c0_117] : memref<8x9x2x32xf32, #tpu.memory_space<vmem>>, vector<1x8x2x32xf32>
      %130 = vector.shape_cast %129 : vector<1x8x2x32xf32> to vector<8x2x32xf32>
      %131 = vector.shape_cast %125 : vector<8x2x32xf32> to vector<1x8x2x32xf32>
      tpu.vector_store %arg3[%c6_114, %c0_115, %c0_116, %c0_117], %131 {strides = array<i32>} : memref<8x9x2x32xf32, #tpu.memory_space<vmem>>, vector<1x8x2x32xf32>,
      %c6_118 = arith.constant 6 : index
      %c0_119 = arith.constant 0 : index
      %c0_120 = arith.constant 0 : index
      %c0_121 = arith.constant 0 : index
      %132 = vector.load %arg4[%c6_118, %c0_119, %c0_120, %c0_121] : memref<8x9x2x32xf32, #tpu.memory_space<vmem>>, vector<1x8x2x32xf32>
      %133 = vector.shape_cast %132 : vector<1x8x2x32xf32> to vector<8x2x32xf32>
      %134 = vector.shape_cast %128 : vector<8x2x32xf32> to vector<1x8x2x32xf32>
      tpu.vector_store %arg4[%c6_118, %c0_119, %c0_120, %c0_121], %134 {strides = array<i32>} : memref<8x9x2x32xf32, #tpu.memory_space<vmem>>, vector<1x8x2x32xf32>,
      %c7 = arith.constant 7 : index
      %c0_122 = arith.constant 0 : index
      %c0_123 = arith.constant 0 : index
      %c0_124 = arith.constant 0 : index
      %135 = vector.load %arg1[%c7, %c0_122, %c0_123, %c0_124] : memref<8x8x4x32xf32, #tpu.memory_space<vmem>>, vector<1x8x4x32xf32>
      %136 = vector.shape_cast %135 : vector<1x8x4x32xf32> to vector<8x4x32xf32>
      %137 = arith.truncf %136 : vector<8x4x32xf32> to vector<8x4x32xbf16>
      %c7_125 = arith.constant 7 : index
      %c0_126 = arith.constant 0 : index
      %c0_127 = arith.constant 0 : index
      %c0_128 = arith.constant 0 : index
      %138 = vector.load %arg2[%c7_125, %c0_126, %c0_127, %c0_128] : memref<8x8x32x64xbf16, #tpu.memory_space<vmem>>, vector<1x8x32x64xbf16>
      %139 = vector.shape_cast %138 : vector<1x8x32x64xbf16> to vector<8x32x64xbf16>
      "tpu.trace_start"() <{level = 10 : i32, message = "ybi,yio->ybo"}> : () -> ()
      %cst_129 = arith.constant dense<0.000000e+00> : vector<8x4x64xf32>
      %140 = tpu.matmul %137, %139, %cst_129 {dimension_numbers = #tpu.dot_dimension_numbers<[2], [1], [1], [2], [0, 0, 0, 1, 1, 2], [0], [0]>} : vector<8x4x32xbf16>, vector<8x32x64xbf16>, vector<8x4x64xf32> -> vector<8x4x64xf32>
      "tpu.trace_stop"() : () -> ()
      %141 = vector.extract_strided_slice %140 {offsets = [0, 0, 0], sizes = [8, 2, 32], strides = [1, 1, 1]} : vector<8x4x64xf32> to vector<8x2x32xf32>
      %142 = vector.extract_strided_slice %140 {offsets = [0, 2, 32], sizes = [8, 2, 32], strides = [1, 1, 1]} : vector<8x4x64xf32> to vector<8x2x32xf32>
      %143 = arith.subf %141, %142 : vector<8x2x32xf32>
      %144 = vector.extract_strided_slice %140 {offsets = [0, 0, 32], sizes = [8, 2, 32], strides = [1, 1, 1]} : vector<8x4x64xf32> to vector<8x2x32xf32>
      %145 = vector.extract_strided_slice %140 {offsets = [0, 2, 0], sizes = [8, 2, 32], strides = [1, 1, 1]} : vector<8x4x64xf32> to vector<8x2x32xf32>
      %146 = arith.addf %144, %145 : vector<8x2x32xf32>
      %c7_130 = arith.constant 7 : index
      %c0_131 = arith.constant 0 : index
      %c0_132 = arith.constant 0 : index
      %c0_133 = arith.constant 0 : index
      %147 = vector.load %arg3[%c7_130, %c0_131, %c0_132, %c0_133] : memref<8x9x2x32xf32, #tpu.memory_space<vmem>>, vector<1x8x2x32xf32>
      %148 = vector.shape_cast %147 : vector<1x8x2x32xf32> to vector<8x2x32xf32>
      %149 = vector.shape_cast %143 : vector<8x2x32xf32> to vector<1x8x2x32xf32>
      tpu.vector_store %arg3[%c7_130, %c0_131, %c0_132, %c0_133], %149 {strides = array<i32>} : memref<8x9x2x32xf32, #tpu.memory_space<vmem>>, vector<1x8x2x32xf32>,
      %c7_134 = arith.constant 7 : index
      %c0_135 = arith.constant 0 : index
      %c0_136 = arith.constant 0 : index
      %c0_137 = arith.constant 0 : index
      %150 = vector.load %arg4[%c7_134, %c0_135, %c0_136, %c0_137] : memref<8x9x2x32xf32, #tpu.memory_space<vmem>>, vector<1x8x2x32xf32>
      %151 = vector.shape_cast %150 : vector<1x8x2x32xf32> to vector<8x2x32xf32>
      %152 = vector.shape_cast %146 : vector<8x2x32xf32> to vector<1x8x2x32xf32>
      tpu.vector_store %arg4[%c7_134, %c0_135, %c0_136, %c0_137], %152 {strides = array<i32>} : memref<8x9x2x32xf32, #tpu.memory_space<vmem>>, vector<1x8x2x32xf32>,
    } else {
    }
    return
  }
  func.func @transform_0(%arg0: i32) -> (i32, i32, i32, i32) {
    %c0_i32 = arith.constant 0 : i32
    %c0_i32_0 = arith.constant 0 : i32
    %c0_i32_1 = arith.constant 0 : i32
    %c0_i32_2 = arith.constant 0 : i32
    return %arg0, %c0_i32, %c0_i32_0, %c0_i32_1 : i32, i32, i32, i32
  }
  func.func @transform_1(%arg0: i32) -> (i32, i32, i32, i32) {
    %c1_i32 = arith.constant 1 : i32
    %0 = arith.minsi %arg0, %c1_i32 : i32
    %c0_i32 = arith.constant 0 : i32
    %c0_i32_0 = arith.constant 0 : i32
    %c0_i32_1 = arith.constant 0 : i32
    %c0_i32_2 = arith.constant 0 : i32
    return %0, %c0_i32, %c0_i32_0, %c0_i32_1 : i32, i32, i32, i32
  }
  func.func @transform_2(%arg0: i32) -> (i32, i32, i32, i32) {
    %c0_i32 = arith.constant 0 : i32
    %c0_i32_0 = arith.constant 0 : i32
    %c0_i32_1 = arith.constant 0 : i32
    %c0_i32_2 = arith.constant 0 : i32
    return %arg0, %c0_i32, %c0_i32_0, %c0_i32_1 : i32, i32, i32, i32
  }
  func.func @transform_3(%arg0: i32) -> (i32, i32, i32, i32) {
    %c0_i32 = arith.constant 0 : i32
    %c0_i32_0 = arith.constant 0 : i32
    %c0_i32_1 = arith.constant 0 : i32
    %c0_i32_2 = arith.constant 0 : i32
    return %arg0, %c0_i32, %c0_i32_0, %c0_i32_1 : i32, i32, i32, i32
  }
}

module attributes {stable_mosaic.version = 11 : i64} {
  func.func @_w11_combine_kernel(%arg0: i32, %arg1: memref<256x32xf32, #tpu.memory_space<vmem>>, %arg2: memref<256x32xf32, #tpu.memory_space<vmem>>, %arg3: memref<32x32xbf16, #tpu.memory_space<vmem>>, %arg4: memref<1x32xf32, #tpu.memory_space<vmem>>, %arg5: memref<256x32xf32, #tpu.memory_space<vmem>>) attributes {dimension_semantics = [#tpu.dimension_semantics<parallel>], iteration_bounds = array<i64: 2>, scalar_prefetch = 0 : i64, scratch_operands = 0 : i64, tpu.core_type = #tpu.core_type<tc>, window_params = [{transform_indices = @transform_0, window_bounds = array<i64: 256, 32>}, {transform_indices = @transform_1, window_bounds = array<i64: 256, 32>}, {pipeline_mode = #tpu.pipeline_mode<synchronous>, transform_indices = @transform_2, window_bounds = array<i64: 32, 32>}, {pipeline_mode = #tpu.pipeline_mode<synchronous>, transform_indices = @transform_3, window_bounds = array<i64: 1, 32>}, {transform_indices = @transform_4, window_bounds = array<i64: 256, 32>}]} {
    %c0 = arith.constant 0 : index
    %c0_0 = arith.constant 0 : index
    %0 = vector.load %arg1[%c0, %c0_0] : memref<256x32xf32, #tpu.memory_space<vmem>>, vector<256x32xf32>
    %1 = arith.truncf %0 : vector<256x32xf32> to vector<256x32xbf16>
    %c0_1 = arith.constant 0 : index
    %c0_2 = arith.constant 0 : index
    %2 = vector.load %arg3[%c0_1, %c0_2] : memref<32x32xbf16, #tpu.memory_space<vmem>>, vector<32x32xbf16>
    %cst = arith.constant dense<0.000000e+00> : vector<256x32xf32>
    %3 = tpu.matmul %1, %2, %cst {dimension_numbers = #tpu.dot_dimension_numbers<[1], [0], [0], [1], [0, 0, 1, 1], [], []>} : vector<256x32xbf16>, vector<32x32xbf16>, vector<256x32xf32> -> vector<256x32xf32>
    %c0_3 = arith.constant 0 : index
    %c0_4 = arith.constant 0 : index
    %4 = vector.load %arg4[%c0_3, %c0_4] : memref<1x32xf32, #tpu.memory_space<vmem>>, vector<1x32xf32>
    %5 = vector.broadcast %4 : vector<1x32xf32> to vector<256x32xf32>
    %6 = arith.addf %3, %5 : vector<256x32xf32>
    %c0_5 = arith.constant 0 : index
    %c0_6 = arith.constant 0 : index
    %7 = vector.load %arg2[%c0_5, %c0_6] : memref<256x32xf32, #tpu.memory_space<vmem>>, vector<256x32xf32>
    %8 = arith.addf %7, %6 : vector<256x32xf32>
    %cst_7 = arith.constant 0.000000e+00 : f32
    %9 = vector.broadcast %cst_7 : f32 to vector<256x32xf32>
    %10 = arith.maximumf %8, %9 : vector<256x32xf32>
    %cst_8 = arith.constant 0.333333343 : f32
    %11 = vector.broadcast %cst_8 : f32 to vector<256x32xf32>
    %12 = arith.mulf %10, %11 : vector<256x32xf32>
    %13 = arith.addf %12, %0 : vector<256x32xf32>
    %c0_9 = arith.constant 0 : index
    %c0_10 = arith.constant 0 : index
    %14 = vector.load %arg5[%c0_9, %c0_10] : memref<256x32xf32, #tpu.memory_space<vmem>>, vector<256x32xf32>
    tpu.vector_store %arg5[%c0_9, %c0_10], %13 {strides = array<i32>} : memref<256x32xf32, #tpu.memory_space<vmem>>, vector<256x32xf32>,
    return
  }
  func.func @transform_0(%arg0: i32) -> (i32, i32) {
    %c0_i32 = arith.constant 0 : i32
    %c0_i32_0 = arith.constant 0 : i32
    return %arg0, %c0_i32 : i32, i32
  }
  func.func @transform_1(%arg0: i32) -> (i32, i32) {
    %c0_i32 = arith.constant 0 : i32
    %c0_i32_0 = arith.constant 0 : i32
    return %arg0, %c0_i32 : i32, i32
  }
  func.func @transform_2(%arg0: i32) -> (i32, i32) {
    %c0_i32 = arith.constant 0 : i32
    %c0_i32_0 = arith.constant 0 : i32
    %c0_i32_1 = arith.constant 0 : i32
    return %c0_i32, %c0_i32_0 : i32, i32
  }
  func.func @transform_3(%arg0: i32) -> (i32, i32) {
    %c0_i32 = arith.constant 0 : i32
    %c0_i32_0 = arith.constant 0 : i32
    %c0_i32_1 = arith.constant 0 : i32
    return %c0_i32, %c0_i32_0 : i32, i32
  }
  func.func @transform_4(%arg0: i32) -> (i32, i32) {
    %c0_i32 = arith.constant 0 : i32
    %c0_i32_0 = arith.constant 0 : i32
    return %arg0, %c0_i32 : i32, i32
  }
}

module attributes {stable_mosaic.version = 11 : i64} {
  func.func @_w11_combine_kernel(%arg0: i32, %arg1: memref<256x32xf32, #tpu.memory_space<vmem>>, %arg2: memref<256x32xf32, #tpu.memory_space<vmem>>, %arg3: memref<32x32xbf16, #tpu.memory_space<vmem>>, %arg4: memref<1x32xf32, #tpu.memory_space<vmem>>, %arg5: memref<256x32xf32, #tpu.memory_space<vmem>>) attributes {dimension_semantics = [#tpu.dimension_semantics<parallel>], iteration_bounds = array<i64: 2>, scalar_prefetch = 0 : i64, scratch_operands = 0 : i64, tpu.core_type = #tpu.core_type<tc>, window_params = [{transform_indices = @transform_0, window_bounds = array<i64: 256, 32>}, {transform_indices = @transform_1, window_bounds = array<i64: 256, 32>}, {pipeline_mode = #tpu.pipeline_mode<synchronous>, transform_indices = @transform_2, window_bounds = array<i64: 32, 32>}, {pipeline_mode = #tpu.pipeline_mode<synchronous>, transform_indices = @transform_3, window_bounds = array<i64: 1, 32>}, {transform_indices = @transform_4, window_bounds = array<i64: 256, 32>}]} {
    %c0 = arith.constant 0 : index
    %c0_0 = arith.constant 0 : index
    %0 = vector.load %arg1[%c0, %c0_0] : memref<256x32xf32, #tpu.memory_space<vmem>>, vector<256x32xf32>
    %1 = arith.truncf %0 : vector<256x32xf32> to vector<256x32xbf16>
    %c0_1 = arith.constant 0 : index
    %c0_2 = arith.constant 0 : index
    %2 = vector.load %arg3[%c0_1, %c0_2] : memref<32x32xbf16, #tpu.memory_space<vmem>>, vector<32x32xbf16>
    %cst = arith.constant dense<0.000000e+00> : vector<256x32xf32>
    %3 = tpu.matmul %1, %2, %cst {dimension_numbers = #tpu.dot_dimension_numbers<[1], [0], [0], [1], [0, 0, 1, 1], [], []>} : vector<256x32xbf16>, vector<32x32xbf16>, vector<256x32xf32> -> vector<256x32xf32>
    %c0_3 = arith.constant 0 : index
    %c0_4 = arith.constant 0 : index
    %4 = vector.load %arg4[%c0_3, %c0_4] : memref<1x32xf32, #tpu.memory_space<vmem>>, vector<1x32xf32>
    %5 = vector.broadcast %4 : vector<1x32xf32> to vector<256x32xf32>
    %6 = arith.addf %3, %5 : vector<256x32xf32>
    %c0_5 = arith.constant 0 : index
    %c0_6 = arith.constant 0 : index
    %7 = vector.load %arg2[%c0_5, %c0_6] : memref<256x32xf32, #tpu.memory_space<vmem>>, vector<256x32xf32>
    %8 = arith.addf %7, %6 : vector<256x32xf32>
    %cst_7 = arith.constant 0.333333343 : f32
    %9 = vector.broadcast %cst_7 : f32 to vector<256x32xf32>
    %10 = arith.mulf %8, %9 : vector<256x32xf32>
    %11 = arith.addf %10, %0 : vector<256x32xf32>
    %c0_8 = arith.constant 0 : index
    %c0_9 = arith.constant 0 : index
    %12 = vector.load %arg5[%c0_8, %c0_9] : memref<256x32xf32, #tpu.memory_space<vmem>>, vector<256x32xf32>
    tpu.vector_store %arg5[%c0_8, %c0_9], %11 {strides = array<i32>} : memref<256x32xf32, #tpu.memory_space<vmem>>, vector<256x32xf32>,
    return
  }
  func.func @transform_0(%arg0: i32) -> (i32, i32) {
    %c0_i32 = arith.constant 0 : i32
    %c0_i32_0 = arith.constant 0 : i32
    return %arg0, %c0_i32 : i32, i32
  }
  func.func @transform_1(%arg0: i32) -> (i32, i32) {
    %c0_i32 = arith.constant 0 : i32
    %c0_i32_0 = arith.constant 0 : i32
    return %arg0, %c0_i32 : i32, i32
  }
  func.func @transform_2(%arg0: i32) -> (i32, i32) {
    %c0_i32 = arith.constant 0 : i32
    %c0_i32_0 = arith.constant 0 : i32
    %c0_i32_1 = arith.constant 0 : i32
    return %c0_i32, %c0_i32_0 : i32, i32
  }
  func.func @transform_3(%arg0: i32) -> (i32, i32) {
    %c0_i32 = arith.constant 0 : i32
    %c0_i32_0 = arith.constant 0 : i32
    %c0_i32_1 = arith.constant 0 : i32
    return %c0_i32, %c0_i32_0 : i32, i32
  }
  func.func @transform_4(%arg0: i32) -> (i32, i32) {
    %c0_i32 = arith.constant 0 : i32
    %c0_i32_0 = arith.constant 0 : i32
    return %arg0, %c0_i32 : i32, i32
  }
}

module attributes {stable_mosaic.version = 11 : i64} {
  func.func @_head_kernel(%arg0: i32, %arg1: memref<256x32xf32, #tpu.memory_space<vmem>>, %arg2: memref<256x1xf32, #tpu.memory_space<vmem>>, %arg3: memref<32x128xbf16, #tpu.memory_space<vmem>>, %arg4: memref<1x128xf32, #tpu.memory_space<vmem>>, %arg5: memref<128x3xbf16, #tpu.memory_space<vmem>>, %arg6: memref<1x3xf32, #tpu.memory_space<vmem>>, %arg7: memref<256x1xf32, #tpu.memory_space<vmem>>, %arg8: memref<256x2xf32, #tpu.memory_space<vmem>>) attributes {dimension_semantics = [#tpu.dimension_semantics<parallel>], iteration_bounds = array<i64: 2>, scalar_prefetch = 0 : i64, scratch_operands = 0 : i64, tpu.core_type = #tpu.core_type<tc>, window_params = [{transform_indices = @transform_0, window_bounds = array<i64: 256, 32>}, {transform_indices = @transform_1, window_bounds = array<i64: 256, 1>}, {pipeline_mode = #tpu.pipeline_mode<synchronous>, transform_indices = @transform_2, window_bounds = array<i64: 32, 128>}, {pipeline_mode = #tpu.pipeline_mode<synchronous>, transform_indices = @transform_3, window_bounds = array<i64: 1, 128>}, {pipeline_mode = #tpu.pipeline_mode<synchronous>, transform_indices = @transform_4, window_bounds = array<i64: 128, 3>}, {pipeline_mode = #tpu.pipeline_mode<synchronous>, transform_indices = @transform_5, window_bounds = array<i64: 1, 3>}, {transform_indices = @transform_6, window_bounds = array<i64: 256, 1>}, {transform_indices = @transform_7, window_bounds = array<i64: 256, 2>}]} {
    %c0 = arith.constant 0 : index
    %c0_0 = arith.constant 0 : index
    %0 = vector.load %arg1[%c0, %c0_0] : memref<256x32xf32, #tpu.memory_space<vmem>>, vector<256x32xf32>
    %1 = arith.truncf %0 : vector<256x32xf32> to vector<256x32xbf16>
    %c0_1 = arith.constant 0 : index
    %c0_2 = arith.constant 0 : index
    %2 = vector.load %arg3[%c0_1, %c0_2] : memref<32x128xbf16, #tpu.memory_space<vmem>>, vector<32x128xbf16>
    %cst = arith.constant dense<0.000000e+00> : vector<256x128xf32>
    %3 = tpu.matmul %1, %2, %cst {dimension_numbers = #tpu.dot_dimension_numbers<[1], [0], [0], [1], [0, 0, 1, 1], [], []>} : vector<256x32xbf16>, vector<32x128xbf16>, vector<256x128xf32> -> vector<256x128xf32>
    %c0_3 = arith.constant 0 : index
    %c0_4 = arith.constant 0 : index
    %4 = vector.load %arg4[%c0_3, %c0_4] : memref<1x128xf32, #tpu.memory_space<vmem>>, vector<1x128xf32>
    %5 = vector.broadcast %4 : vector<1x128xf32> to vector<256x128xf32>
    %6 = arith.addf %3, %5 : vector<256x128xf32>
    %cst_5 = arith.constant 0.000000e+00 : f32
    %7 = vector.broadcast %cst_5 : f32 to vector<256x128xf32>
    %8 = arith.maximumf %6, %7 : vector<256x128xf32>
    %9 = arith.truncf %8 : vector<256x128xf32> to vector<256x128xbf16>
    %c0_6 = arith.constant 0 : index
    %c0_7 = arith.constant 0 : index
    %10 = vector.load %arg5[%c0_6, %c0_7] : memref<128x3xbf16, #tpu.memory_space<vmem>>, vector<128x3xbf16>
    %cst_8 = arith.constant dense<0.000000e+00> : vector<256x3xf32>
    %11 = tpu.matmul %9, %10, %cst_8 {dimension_numbers = #tpu.dot_dimension_numbers<[1], [0], [0], [1], [0, 0, 1, 1], [], []>} : vector<256x128xbf16>, vector<128x3xbf16>, vector<256x3xf32> -> vector<256x3xf32>
    %c0_9 = arith.constant 0 : index
    %c0_10 = arith.constant 0 : index
    %12 = vector.load %arg6[%c0_9, %c0_10] : memref<1x3xf32, #tpu.memory_space<vmem>>, vector<1x3xf32>
    %13 = vector.broadcast %12 : vector<1x3xf32> to vector<256x3xf32>
    %14 = arith.addf %11, %13 : vector<256x3xf32>
    %c0_11 = arith.constant 0 : index
    %c0_12 = arith.constant 0 : index
    %15 = vector.load %arg2[%c0_11, %c0_12] : memref<256x1xf32, #tpu.memory_space<vmem>>, vector<256x1xf32>
    %16 = vector.extract_strided_slice %14 {offsets = [0, 0], sizes = [256, 1], strides = [1, 1]} : vector<256x3xf32> to vector<256x1xf32>
    %cst_13 = arith.constant 1.000000e-01 : f32
    %17 = vector.broadcast %cst_13 : f32 to vector<256x1xf32>
    %18 = arith.mulf %17, %16 : vector<256x1xf32>
    %19 = math.tanh %18 : vector<256x1xf32>
    %20 = arith.addf %15, %19 : vector<256x1xf32>
    %c0_14 = arith.constant 0 : index
    %c0_15 = arith.constant 0 : index
    %21 = vector.load %arg7[%c0_14, %c0_15] : memref<256x1xf32, #tpu.memory_space<vmem>>, vector<256x1xf32>
    tpu.vector_store %arg7[%c0_14, %c0_15], %20 {strides = array<i32>} : memref<256x1xf32, #tpu.memory_space<vmem>>, vector<256x1xf32>,
    %22 = vector.extract_strided_slice %14 {offsets = [0, 1], sizes = [256, 2], strides = [1, 1]} : vector<256x3xf32> to vector<256x2xf32>
    %c0_16 = arith.constant 0 : index
    %c0_17 = arith.constant 0 : index
    %23 = vector.load %arg8[%c0_16, %c0_17] : memref<256x2xf32, #tpu.memory_space<vmem>>, vector<256x2xf32>
    tpu.vector_store %arg8[%c0_16, %c0_17], %22 {strides = array<i32>} : memref<256x2xf32, #tpu.memory_space<vmem>>, vector<256x2xf32>,
    return
  }
  func.func @transform_0(%arg0: i32) -> (i32, i32) {
    %c0_i32 = arith.constant 0 : i32
    %c0_i32_0 = arith.constant 0 : i32
    return %arg0, %c0_i32 : i32, i32
  }
  func.func @transform_1(%arg0: i32) -> (i32, i32) {
    %c0_i32 = arith.constant 0 : i32
    %c0_i32_0 = arith.constant 0 : i32
    return %arg0, %c0_i32 : i32, i32
  }
  func.func @transform_2(%arg0: i32) -> (i32, i32) {
    %c0_i32 = arith.constant 0 : i32
    %c0_i32_0 = arith.constant 0 : i32
    %c0_i32_1 = arith.constant 0 : i32
    return %c0_i32, %c0_i32_0 : i32, i32
  }
  func.func @transform_3(%arg0: i32) -> (i32, i32) {
    %c0_i32 = arith.constant 0 : i32
    %c0_i32_0 = arith.constant 0 : i32
    %c0_i32_1 = arith.constant 0 : i32
    return %c0_i32, %c0_i32_0 : i32, i32
  }
  func.func @transform_4(%arg0: i32) -> (i32, i32) {
    %c0_i32 = arith.constant 0 : i32
    %c0_i32_0 = arith.constant 0 : i32
    %c0_i32_1 = arith.constant 0 : i32
    return %c0_i32, %c0_i32_0 : i32, i32
  }
  func.func @transform_5(%arg0: i32) -> (i32, i32) {
    %c0_i32 = arith.constant 0 : i32
    %c0_i32_0 = arith.constant 0 : i32
    %c0_i32_1 = arith.constant 0 : i32
    return %c0_i32, %c0_i32_0 : i32, i32
  }
  func.func @transform_6(%arg0: i32) -> (i32, i32) {
    %c0_i32 = arith.constant 0 : i32
    %c0_i32_0 = arith.constant 0 : i32
    return %arg0, %c0_i32 : i32, i32
  }
  func.func @transform_7(%arg0: i32) -> (i32, i32) {
    %c0_i32 = arith.constant 0 : i32
    %c0_i32_0 = arith.constant 0 : i32
    return %arg0, %c0_i32 : i32, i32
  }
}

</mosaic_0001>

<bundles_post_ra>
// kernel: fno2d_forward.8
= control target key start
LH: loop header
LB: loop body
LE: loop exit
PB: predicated region body
PF: predicated region fallthrough
CT: control target
= control target key end

     0   :  { %s656_s12 = smov 0   ;;  %s836_s0 = inlined_call_operand.vmem [shape: f32[512,5], index: 0, kind: input, shape index: {}]   ;;  %s837_s1 = inlined_call_operand.vmem [shape: bf16[5,32], index: 1, kind: input, shape index: {}]   ;;  %s838_s2 = inlined_call_operand.vmem [shape: f32[1,32], index: 2, kind: input, shape index: {}]   ;;  %s839_s3 = inlined_call_operand.vmem [shape: f32[512,32], index: 3, kind: output, shape index: {}]  }
   0x1 LB: > { %s537_s13 = sadd.s32 4294967295, %s633_s12   ;;  %p541_p0 = scmp.ge.s32.totalorder %s633_s12, 1  ;;  %s633_s12 = sphi %s656_s12, %s13_s12  }
   0x2   : > { %p138_p1 = scmp.lt.s32.totalorder %s633_s12, 3 }
   0x4   : > { %p139_p2 = pnand %p541_p0, %p138_p1 }
   0x5   : > { %v223_v0 = vld [vmem:[%s837_s1] sm:$0x7] (!%p139_p2)  ;;  %vm280_vm0 = vcmask (!%p139_p2), 1041408   ;;  %vm281_vm1 = vcmask (!%p139_p2), 1042432   ;;  %s542_s16 = sshll.u32 (!%p139_p2), %s537_s13, 5  ;;  %v635_v1 = vmov (!%p139_p2), 65535  }
   0x6   : > { %142 = sbr.rel (%p139_p2) target bundleno = 263 (0x107), region = 32  ;;  %v282_v2 = vsel (!%p139_p2), %vm280_vm0, 4294967295, %v635_v1  ;;  %p163_p3 = scmp.lt.s32.totalorder (!%p139_p2), %s542_s16, 63  ;;  %vm231_vm2 = vcmask (!%p139_p2), 39936   ;;  %v728_v53 = vld [vmem:[%s838_s2] ss:$0 sm:$0xff] (!%p139_p2) }
   0x7   : > { %v283_v3 = vsel (!%p139_p2), %vm281_vm1, %v282_v2, 0  ;;  %vm448_vm3 = vcmask (!%p139_p2), 261120  }
   0x8   : > { %v285_v4 = vand.u32 (!%p139_p2), %v283_v3, %v223_v0 }
   0xa   : > { %582 = vmatprep.subr.bf16.mxu0 (!%p139_p2), %v285_v4  ;;  %616 = vmatprep.subr.bf16.mxu1 (!%p139_p2), %v285_v4 }
   0xb   : > { %583 = vmatpush3.bf16.msra.mxu0 (!%p139_p2), %v285_v4  ;;  %617 = vmatpush3.bf16.msra.mxu1 (!%p139_p2), %v285_v4 }
   0xd   : > { %s841_s16 = smov (!%p163_p3, %s542_s16), 63 }
   0xe   : > { %s543_s17 = sshll.u32 %s841_s16, 3 }
   0xf   : > { %s675_s20 = scalar_lea.vmem %s836_s0, %s543_s17  ;;  %s735_s25 = scalar_lea.vmem %s839_s3, %s543_s17 }
  0x10   : > { %v175_v5 = vld [vmem:[%s675_s20] sm:$0xff]  ;;  %v176_v6 = vld [vmem:[%s675_s20 + $0x8] sm:$0xff]  ;;  %v177_v10 = vld [vmem:[%s675_s20 + $0x10] sm:$0xff] }
  0x11   : > { %v191_v7 = vld [vmem:[%s675_s20 + $0x80] sm:$0xff]  ;;  %v207_v8 = vpack.c.bf16 %v176_v6, %v175_v5  ;;  %v192_v9 = vld [vmem:[%s675_s20 + $0x88] sm:$0xff]  ;;  %v178_v11 = vld [vmem:[%s675_s20 + $0x18] sm:$0xff] }
  0x12   : > { %v215_v12 = vpack.c.bf16 %v192_v9, %v191_v7  ;;  %v208_v13 = vpack.c.bf16 %v178_v11, %v177_v10  ;;  %v193_v14 = vld [vmem:[%s675_s20 + $0x90] sm:$0xff]  ;;  %v194_v15 = vld [vmem:[%s675_s20 + $0x98] sm:$0xff]  ;;  %v179_v16 = vld [vmem:[%s675_s20 + $0x20] sm:$0xff] }
  0x13   : > { %584 = vmatprep.mubr.msk.bf16.mxu0 %vm231_vm2, %v207_v8  ;;  %v216_v17 = vpack.c.bf16 %v194_v15, %v193_v14  ;;  %v180_v18 = vld [vmem:[%s675_s20 + $0x28] sm:$0xff]  ;;  %v195_v19 = vld [vmem:[%s675_s20 + $0xa0] sm:$0xff]  ;;  %v181_v23 = vld [vmem:[%s675_s20 + $0x30] sm:$0xff] }
  0x14   : > { %v196_v20 = vld [vmem:[%s675_s20 + $0xa8] sm:$0xff]  ;;  %600 = vmatprep.mubr.msk.bf16.mxu1 %vm231_vm2, %v215_v12  ;;  %585 = vmatmul.mubr.msk.bf16.vlgmr.msra.gmra.mrb[0].mxu0 %vm231_vm2, %v208_v13  ;;  %v209_v21 = vpack.c.bf16 %v180_v18, %v179_v16  ;;  %v182_v24 = vld [vmem:[%s675_s20 + $0x38] sm:$0xff]  ;;  %v197_v25 = vld [vmem:[%s675_s20 + $0xb0] sm:$0xff] }
  0x15   : > { %v217_v22 = vpack.c.bf16 %v196_v20, %v195_v19  ;;  %601 = vmatmul.mubr.msk.bf16.vlgmr.msra.gmra.mrb[0].mxu1 %vm231_vm2, %v216_v17  ;;  %v198_v26 = vld [vmem:[%s675_s20 + $0xb8] sm:$0xff]  ;;  %v183_v27 = vld [vmem:[%s675_s20 + $0x40] sm:$0xff]  ;;  %v184_v28 = vld [vmem:[%s675_s20 + $0x48] sm:$0xff]  ;;  %v210_v31 = vpack.c.bf16 %v182_v24, %v181_v23 }
  0x16   : > { %588 = vmatprep.mubr.msk.bf16.mxu0 %vm231_vm2, %v209_v21  ;;  %v199_v29 = vld [vmem:[%s675_s20 + $0xc0] sm:$0xff]  ;;  %v200_v30 = vld [vmem:[%s675_s20 + $0xc8] sm:$0xff]  ;;  %v218_v32 = vpack.c.bf16 %v198_v26, %v197_v25  ;;  %v211_v33 = vpack.c.bf16 %v184_v28, %v183_v27  ;;  %v185_v35 = vld [vmem:[%s675_s20 + $0x50] sm:$0xff] }
  0x17   : > { %604 = vmatprep.mubr.msk.bf16.mxu1 %vm231_vm2, %v217_v22  ;;  %v219_v34 = vpack.c.bf16 %v200_v30, %v199_v29  ;;  %v186_v36 = vld [vmem:[%s675_s20 + $0x58] sm:$0xff]  ;;  %v201_v37 = vld [vmem:[%s675_s20 + $0xd0] sm:$0xff]  ;;  %v187_v39 = vld [vmem:[%s675_s20 + $0x60] sm:$0xff] }
  0x18   : > { %v202_v38 = vld [vmem:[%s675_s20 + $0xd8] sm:$0xff]  ;;  %v188_v40 = vld [vmem:[%s675_s20 + $0x68] sm:$0xff]  ;;  %v203_v41 = vld [vmem:[%s675_s20 + $0xe0] sm:$0xff]  ;;  %v212_v43 = vpack.c.bf16 %v186_v36, %v185_v35 }
  0x19   : > { %v204_v42 = vld [vmem:[%s675_s20 + $0xe8] sm:$0xff]  ;;  %v220_v44 = vpack.c.bf16 %v202_v38, %v201_v37  ;;  %v213_v45 = vpack.c.bf16 %v188_v40, %v187_v39  ;;  %v189_v47 = vld [vmem:[%s675_s20 + $0x70] sm:$0xff]  ;;  %v190_v48 = vld [vmem:[%s675_s20 + $0x78] sm:$0xff] }
  0x1a   : > { %v221_v46 = vpack.c.bf16 %v204_v42, %v203_v41  ;;  %v205_v49 = vld [vmem:[%s675_s20 + $0xf0] sm:$0xff]  ;;  %v206_v50 = vld [vmem:[%s675_s20 + $0xf8] sm:$0xff]  ;;  %v214_v51 = vpack.c.bf16 %v190_v48, %v189_v47 }
  0x1b   : > { %v222_v52 = vpack.c.bf16 %v206_v50, %v205_v49 }
  0x1c   : > { %589 = vmatmul.mubr.msk.bf16.gmra.mrb[4].mxu0 %vm231_vm2, %v210_v31 }
  0x1d   : > { %605 = vmatmul.mubr.msk.bf16.gmra.mrb[4].mxu1 %vm231_vm2, %v218_v32  ;;  %592 = vmatprep.mubr.msk.bf16.mxu0 %vm231_vm2, %v211_v33 }
  0x1e   : > { %608 = vmatprep.mubr.msk.bf16.mxu1 %vm231_vm2, %v219_v34 }
  0x24   : > { %593 = vmatmul.mubr.msk.bf16.gmra.mrb[8].mxu0 %vm231_vm2, %v212_v43 }
  0x25   : > { %609 = vmatmul.mubr.msk.bf16.gmra.mrb[8].mxu1 %vm231_vm2, %v220_v44  ;;  %596 = vmatprep.mubr.msk.bf16.mxu0 %vm231_vm2, %v213_v45 }
  0x26   : > { %612 = vmatprep.mubr.msk.bf16.mxu1 %vm231_vm2, %v221_v46 }
  0x2c   : > { %597 = vmatmul.mubr.msk.bf16.gmra.mrb[12].mxu0 %vm231_vm2, %v214_v51 }
  0x2d   : > { %613 = vmatmul.mubr.msk.bf16.gmra.mrb[12].mxu1 %vm231_vm2, %v222_v52 }
  0xe7   : > { %v586_v54 = vpop.f32.mrb[0].mxu0 }
  0xe8   : > { %v330_v55 = vadd.f32 %v586_v54, %v728_v53  ;;  %v602_v56 = vpop.f32.mrb[0].mxu1  ;;  %v321_v57 = vpop.f32.mrb[1].mxu0 }
  0xe9   : > { %v394_v58 = vadd.f32 %v602_v56, %v728_v53  ;;  %v322_v59 = vadd.f32 %v728_v53, %v321_v57  ;;  %v385_v60 = vpop.f32.mrb[1].mxu1  ;;  %v587_v61 = vpop.f32.mrb[2].mxu0 }
  0xea   : > { %451 = vst.msk [vmem:[%s735_s25 + $0x10] sm:$0xff] %vm448_vm3, %v330_v55  ;;  %v386_v62 = vadd.f32 %v728_v53, %v385_v60  ;;  %v333_v63 = vadd.f32 %v587_v61, %v728_v53  ;;  %v603_v0 = vpop.f32.mrb[2].mxu1  ;;  %v324_v1 = vpop.f32.mrb[3].mxu0 }
  0xeb   : > { %467 = vst.msk [vmem:[%s735_s25 + $0x90] sm:$0xff] %vm448_vm3, %v394_v58  ;;  %449 = vst.msk [vmem:[%s735_s25] sm:$0xff] %vm448_vm3, %v322_v59  ;;  %v397_v2 = vadd.f32 %v603_v0, %v728_v53  ;;  %v325_v3 = vadd.f32 %v728_v53, %v324_v1  ;;  %v388_v4 = vpop.f32.mrb[3].mxu1 }
  0xec   : > { %465 = vst.msk [vmem:[%s735_s25 + $0x80] sm:$0xff] %vm448_vm3, %v386_v62  ;;  %452 = vst.msk [vmem:[%s735_s25 + $0x18] sm:$0xff] %vm448_vm3, %v333_v63  ;;  %v389_v5 = vadd.f32 %v728_v53, %v388_v4 }
  0xed   : > { %468 = vst.msk [vmem:[%s735_s25 + $0x98] sm:$0xff] %vm448_vm3, %v397_v2  ;;  %450 = vst.msk [vmem:[%s735_s25 + $0x8] sm:$0xff] %vm448_vm3, %v325_v3 }
  0xee   : > { %466 = vst.msk [vmem:[%s735_s25 + $0x88] sm:$0xff] %vm448_vm3, %v389_v5 }
  0xef   : > { %v590_v6 = vpop.f32.mrb[4].mxu0 }
  0xf0   : > { %v346_v7 = vadd.f32 %v590_v6, %v728_v53  ;;  %v606_v8 = vpop.f32.mrb[4].mxu1  ;;  %v337_v9 = vpop.f32.mrb[5].mxu0 }
  0xf1   : > { %v410_v10 = vadd.f32 %v606_v8, %v728_v53  ;;  %v338_v11 = vadd.f32 %v728_v53, %v337_v9  ;;  %v401_v12 = vpop.f32.mrb[5].mxu1  ;;  %v591_v13 = vpop.f32.mrb[6].mxu0 }
  0xf2   : > { %455 = vst.msk [vmem:[%s735_s25 + $0x30] sm:$0xff] %vm448_vm3, %v346_v7  ;;  %v402_v14 = vadd.f32 %v728_v53, %v401_v12  ;;  %v349_v15 = vadd.f32 %v591_v13, %v728_v53  ;;  %v607_v16 = vpop.f32.mrb[6].mxu1  ;;  %v340_v17 = vpop.f32.mrb[7].mxu0 }
  0xf3   : > { %471 = vst.msk [vmem:[%s735_s25 + $0xb0] sm:$0xff] %vm448_vm3, %v410_v10  ;;  %453 = vst.msk [vmem:[%s735_s25 + $0x20] sm:$0xff] %vm448_vm3, %v338_v11  ;;  %v413_v18 = vadd.f32 %v607_v16, %v728_v53  ;;  %v341_v19 = vadd.f32 %v728_v53, %v340_v17  ;;  %v404_v20 = vpop.f32.mrb[7].mxu1 }
  0xf4   : > { %469 = vst.msk [vmem:[%s735_s25 + $0xa0] sm:$0xff] %vm448_vm3, %v402_v14  ;;  %456 = vst.msk [vmem:[%s735_s25 + $0x38] sm:$0xff] %vm448_vm3, %v349_v15  ;;  %v405_v21 = vadd.f32 %v728_v53, %v404_v20 }
  0xf5   : > { %472 = vst.msk [vmem:[%s735_s25 + $0xb8] sm:$0xff] %vm448_vm3, %v413_v18  ;;  %454 = vst.msk [vmem:[%s735_s25 + $0x28] sm:$0xff] %vm448_vm3, %v341_v19 }
  0xf6   : > { %470 = vst.msk [vmem:[%s735_s25 + $0xa8] sm:$0xff] %vm448_vm3, %v405_v21 }
  0xf7   : > { %v594_v22 = vpop.f32.mrb[8].mxu0 }
  0xf8   : > { %v362_v23 = vadd.f32 %v594_v22, %v728_v53  ;;  %v610_v24 = vpop.f32.mrb[8].mxu1  ;;  %v353_v25 = vpop.f32.mrb[9].mxu0 }
  0xf9   : > { %v426_v26 = vadd.f32 %v610_v24, %v728_v53  ;;  %v354_v27 = vadd.f32 %v728_v53, %v353_v25  ;;  %v417_v28 = vpop.f32.mrb[9].mxu1  ;;  %v595_v29 = vpop.f32.mrb[10].mxu0 }
  0xfa   : > { %459 = vst.msk [vmem:[%s735_s25 + $0x50] sm:$0xff] %vm448_vm3, %v362_v23  ;;  %v418_v30 = vadd.f32 %v728_v53, %v417_v28  ;;  %v365_v31 = vadd.f32 %v595_v29, %v728_v53  ;;  %v611_v32 = vpop.f32.mrb[10].mxu1  ;;  %v356_v33 = vpop.f32.mrb[11].mxu0 }
  0xfb   : > { %475 = vst.msk [vmem:[%s735_s25 + $0xd0] sm:$0xff] %vm448_vm3, %v426_v26  ;;  %457 = vst.msk [vmem:[%s735_s25 + $0x40] sm:$0xff] %vm448_vm3, %v354_v27  ;;  %v429_v34 = vadd.f32 %v611_v32, %v728_v53  ;;  %v357_v35 = vadd.f32 %v728_v53, %v356_v33  ;;  %v420_v36 = vpop.f32.mrb[11].mxu1 }
  0xfc   : > { %473 = vst.msk [vmem:[%s735_s25 + $0xc0] sm:$0xff] %vm448_vm3, %v418_v30  ;;  %460 = vst.msk [vmem:[%s735_s25 + $0x58] sm:$0xff] %vm448_vm3, %v365_v31  ;;  %v421_v37 = vadd.f32 %v728_v53, %v420_v36 }
  0xfd   : > { %476 = vst.msk [vmem:[%s735_s25 + $0xd8] sm:$0xff] %vm448_vm3, %v429_v34  ;;  %458 = vst.msk [vmem:[%s735_s25 + $0x48] sm:$0xff] %vm448_vm3, %v357_v35 }
  0xfe   : > { %474 = vst.msk [vmem:[%s735_s25 + $0xc8] sm:$0xff] %vm448_vm3, %v421_v37 }
  0xff   : > { %v598_v38 = vpop.f32.mrb[12].mxu0 }
 0x100   : > { %v378_v39 = vadd.f32 %v598_v38, %v728_v53  ;;  %v614_v40 = vpop.f32.mrb[12].mxu1  ;;  %v369_v41 = vpop.f32.mrb[13].mxu0 }
 0x101   : > { %v442_v42 = vadd.f32 %v614_v40, %v728_v53  ;;  %v370_v43 = vadd.f32 %v728_v53, %v369_v41  ;;  %v433_v44 = vpop.f32.mrb[13].mxu1  ;;  %v599_v45 = vpop.f32.mrb[14].mxu0 }
 0x102   : > { %463 = vst.msk [vmem:[%s735_s25 + $0x70] sm:$0xff] %vm448_vm3, %v378_v39  ;;  %v434_v46 = vadd.f32 %v728_v53, %v433_v44  ;;  %v381_v47 = vadd.f32 %v599_v45, %v728_v53  ;;  %v615_v48 = vpop.f32.mrb[14].mxu1  ;;  %v372_v49 = vpop.f32.mrb[15].mxu0 }
 0x103   : > { %479 = vst.msk [vmem:[%s735_s25 + $0xf0] sm:$0xff] %vm448_vm3, %v442_v42  ;;  %461 = vst.msk [vmem:[%s735_s25 + $0x60] sm:$0xff] %vm448_vm3, %v370_v43  ;;  %v445_v50 = vadd.f32 %v615_v48, %v728_v53  ;;  %v373_v51 = vadd.f32 %v728_v53, %v372_v49  ;;  %v436_v52 = vpop.f32.mrb[15].mxu1 }
 0x104   : > { %477 = vst.msk [vmem:[%s735_s25 + $0xe0] sm:$0xff] %vm448_vm3, %v434_v46  ;;  %464 = vst.msk [vmem:[%s735_s25 + $0x78] sm:$0xff] %vm448_vm3, %v381_v47  ;;  %v437_v54 = vadd.f32 %v728_v53, %v436_v52 }
 0x105   : > { %480 = vst.msk [vmem:[%s735_s25 + $0xf8] sm:$0xff] %vm448_vm3, %v445_v50  ;;  %462 = vst.msk [vmem:[%s735_s25 + $0x68] sm:$0xff] %vm448_vm3, %v373_v51 }
 0x106   : > { %478 = vst.msk [vmem:[%s735_s25 + $0xe8] sm:$0xff] %vm448_vm3, %v437_v54 }
 0x107 PF: > { %s13_s12 = sadd.s32 1, %s633_s12  }
 0x108   : > { %p10_p4 = scmp.ge.s32.totalorder %s13_s12, 4  }
 0x10a   :  { %12 = sbr.rel (!%p10_p4) target bundleno = 1 (0x1), region = 62 }

// kernel: reverse.6
= control target key start
LH: loop header
LB: loop body
LE: loop exit
PB: predicated region body
PF: predicated region fallthrough
CT: control target
= control target key end

     0   :  { %s344_s0 = inlined_call_operand.vmem [shape: f32[2,32,16,7], index: 0, kind: input, shape index: {}]   ;;  %s345_s1 = inlined_call_operand.vmem [shape: f32[2,32,16,7], index: 1, kind: output, shape index: {}]  }
   0x1   :  { %v112_v0 = vld [vmem:[%s344_s0 + $0x60] sm:$0xff]  ;;  %v113_v1 = vld [vmem:[%s344_s0 + $0xd0] sm:$0xff]  ;;  %v138_v14 = vld [vmem:[%s344_s0 + $0x68] sm:$0xff] }
   0x2   :  { %v115_v2 = vld [vmem:[%s344_s0 + $0x50] sm:$0xff]  ;;  %4 = vst [vmem:[%s345_s1] sm:$0xff] %v112_v0  ;;  %114 = vst [vmem:[%s345_s1 + $0x70] sm:$0xff] %v113_v1  ;;  %v117_v3 = vld [vmem:[%s344_s0 + $0xc0] sm:$0xff] }
   0x3   :  { %116 = vst [vmem:[%s345_s1 + $0x10] sm:$0xff] %v115_v2  ;;  %v119_v4 = vld [vmem:[%s344_s0 + $0x40] sm:$0xff]  ;;  %v121_v5 = vld [vmem:[%s344_s0 + $0xb0] sm:$0xff]  ;;  %118 = vst [vmem:[%s345_s1 + $0x80] sm:$0xff] %v117_v3 }
   0x4   :  { %120 = vst [vmem:[%s345_s1 + $0x20] sm:$0xff] %v119_v4  ;;  %122 = vst [vmem:[%s345_s1 + $0x90] sm:$0xff] %v121_v5  ;;  %v123_v6 = vld [vmem:[%s344_s0 + $0x30] sm:$0xff]  ;;  %v125_v7 = vld [vmem:[%s344_s0 + $0xa0] sm:$0xff] }
   0x5   :  { %v127_v8 = vld [vmem:[%s344_s0 + $0x20] sm:$0xff]  ;;  %124 = vst [vmem:[%s345_s1 + $0x30] sm:$0xff] %v123_v6  ;;  %126 = vst [vmem:[%s345_s1 + $0xa0] sm:$0xff] %v125_v7  ;;  %v129_v9 = vld [vmem:[%s344_s0 + $0x90] sm:$0xff] }
   0x6   :  { %128 = vst [vmem:[%s345_s1 + $0x40] sm:$0xff] %v127_v8  ;;  %v131_v10 = vld [vmem:[%s344_s0 + $0x10] sm:$0xff]  ;;  %v133_v11 = vld [vmem:[%s344_s0 + $0x80] sm:$0xff]  ;;  %130 = vst [vmem:[%s345_s1 + $0xb0] sm:$0xff] %v129_v9 }
   0x7   :  { %132 = vst [vmem:[%s345_s1 + $0x50] sm:$0xff] %v131_v10  ;;  %134 = vst [vmem:[%s345_s1 + $0xc0] sm:$0xff] %v133_v11  ;;  %v49_v12 = vld [vmem:[%s344_s0] sm:$0xff]  ;;  %v136_v13 = vld [vmem:[%s344_s0 + $0x70] sm:$0xff] }
   0x8   :  { %135 = vst [vmem:[%s345_s1 + $0x60] sm:$0xff] %v49_v12  ;;  %137 = vst [vmem:[%s345_s1 + $0xd0] sm:$0xff] %v136_v13  ;;  %v140_v15 = vld [vmem:[%s344_s0 + $0xd8] sm:$0xff]  ;;  %v144_v17 = vld [vmem:[%s344_s0 + $0xc8] sm:$0xff] }
   0x9   :  { %139 = vst [vmem:[%s345_s1 + $0x8] sm:$0xff] %v138_v14  ;;  %v142_v16 = vld [vmem:[%s344_s0 + $0x58] sm:$0xff]  ;;  %141 = vst [vmem:[%s345_s1 + $0x78] sm:$0xff] %v140_v15  ;;  %v146_v18 = vld [vmem:[%s344_s0 + $0x48] sm:$0xff] }
   0xa   :  { %143 = vst [vmem:[%s345_s1 + $0x18] sm:$0xff] %v142_v16  ;;  %145 = vst [vmem:[%s345_s1 + $0x88] sm:$0xff] %v144_v17  ;;  %v148_v19 = vld [vmem:[%s344_s0 + $0xb8] sm:$0xff]  ;;  %v152_v21 = vld [vmem:[%s344_s0 + $0xa8] sm:$0xff] }
   0xb   :  { %v150_v20 = vld [vmem:[%s344_s0 + $0x38] sm:$0xff]  ;;  %147 = vst [vmem:[%s345_s1 + $0x28] sm:$0xff] %v146_v18  ;;  %149 = vst [vmem:[%s345_s1 + $0x98] sm:$0xff] %v148_v19  ;;  %v154_v22 = vld [vmem:[%s344_s0 + $0x28] sm:$0xff] }
   0xc   :  { %151 = vst [vmem:[%s345_s1 + $0x38] sm:$0xff] %v150_v20  ;;  %v156_v23 = vld [vmem:[%s344_s0 + $0x98] sm:$0xff]  ;;  %153 = vst [vmem:[%s345_s1 + $0xa8] sm:$0xff] %v152_v21  ;;  %v160_v25 = vld [vmem:[%s344_s0 + $0x88] sm:$0xff] }
   0xd   :  { %155 = vst [vmem:[%s345_s1 + $0x48] sm:$0xff] %v154_v22  ;;  %157 = vst [vmem:[%s345_s1 + $0xb8] sm:$0xff] %v156_v23  ;;  %v158_v24 = vld [vmem:[%s344_s0 + $0x18] sm:$0xff]  ;;  %v162_v26 = vld [vmem:[%s344_s0 + $0x8] sm:$0xff] }
   0xe   :  { %159 = vst [vmem:[%s345_s1 + $0x58] sm:$0xff] %v158_v24  ;;  %161 = vst [vmem:[%s345_s1 + $0xc8] sm:$0xff] %v160_v25  ;;  %v164_v27 = vld [vmem:[%s344_s0 + $0x78] sm:$0xff] }
   0xf   :  { %163 = vst [vmem:[%s345_s1 + $0x68] sm:$0xff] %v162_v26  ;;  %165 = vst [vmem:[%s345_s1 + $0xd8] sm:$0xff] %v164_v27 }

// kernel: fno2d_forward.9
= control target key start
LH: loop header
LB: loop body
LE: loop exit
PB: predicated region body
PF: predicated region fallthrough
CT: control target
= control target key end

     0   :  { %s7262_s12 = smov 0   ;;  %s7264_s13 = smov 0   ;;  %s9221_s0 = inlined_call_operand.vmem [shape: f32[16,9,4,32], index: 0, kind: input, shape index: {}]   ;;  %s9222_s1 = inlined_call_operand.vmem [shape: bf16[16,8,32,64], index: 1, kind: input, shape index: {}]   ;;  %s9223_s2 = inlined_call_operand.vmem [shape: f32[16,9,2,32], index: 2, kind: output, shape index: {0}]   ;;  %s9224_s3 = inlined_call_operand.vmem [shape: f32[16,9,2,32], index: 3, kind: output, shape index: {1}]  }
   0x1   :  { %s7266_s14 = smov 0  }
   0x2 LB: > { %s7278_s15 = sadd.s32 4294967295, %s7235_s14   ;;  %s7281_s16 = sadd.s32 1, %s7235_s14   ;;  %s7235_s14 = sphi %s7266_s14, %s9228_s14   ;;  %s7231_s13 = sphi %s7264_s13, %s9227_s13   ;;  %s7227_s12 = sphi %s7262_s12, %s9226_s12  }
   0x3   : > { %s18_s17 = ssub.s32 %s7235_s14, %s7281_s16  ;;  %s21_s18 = sadd.s32 1, %s7231_s13 }
   0x4   : > { %p19_p0 = scmp.eq.s32.totalorder %s18_s17, 0  ;;  %p28_p1 = scmp.ne.s32.totalorder %s7231_s13, %s7227_s12 }
   0x5   : > { %p29_p2 = scmp.eq.s32.totalorder %s7235_s14, 0  ;;  %p5749_p4 = scmp.ge.s32.totalorder %s7235_s14, 2 }
   0x6   : > { %s7290_s19 = scalar_select %p19_p0, %s7231_s13, %s21_s18  }
   0x7   : > { %p30_p3 = por %p29_p2, %p28_p1  ;;  %136 = sbr.rel (%p5749_p4) target bundleno = 35 (0x23), region = 16 }
   0xe   : > { %139 = sbr.rel (!%p30_p3) target bundleno = 35 (0x23), region = 20  ;;  %s141_s20 = sand.u32 (%p30_p3), 1, %s7231_s13  }
   0xf   : > { %s7054_s21 = smul.u32 (%p30_p3), 288, %s7235_s14  ;;  %s5750_s22 = sshll.u32 (%p30_p3), %s141_s20, 8 }
  0x10   : > { %s7303_s26 = scalar_lea.vmem (%p30_p3), [#allocation2], %s5750_s22 }
  0x11   : > { %s7298_s25 = scalar_lea.vmem (%p30_p3), %s9221_s0, %s7054_s21 }
  0x12   : > { %v163_v0 = vld [vmem:[%s7298_s25] sm:$0xff] (%p30_p3)   ;;  %v167_v1 = vld [vmem:[%s7298_s25 + $0x8] sm:$0xff] (%p30_p3)   ;;  %v171_v2 = vld [vmem:[%s7298_s25 + $0x10] sm:$0xff] (%p30_p3)  }
  0x13   : > { %164 = vst [vmem:[%s7303_s26] sm:$0xff] (%p30_p3), %v163_v0   ;;  %168 = vst [vmem:[%s7303_s26 + $0x8] sm:$0xff] (%p30_p3), %v167_v1   ;;  %v175_v3 = vld [vmem:[%s7298_s25 + $0x18] sm:$0xff] (%p30_p3)   ;;  %v179_v4 = vld [vmem:[%s7298_s25 + $0x24] sm:$0xff] (%p30_p3)  }
  0x14   : > { %172 = vst [vmem:[%s7303_s26 + $0x10] sm:$0xff] (%p30_p3), %v171_v2   ;;  %v183_v5 = vld [vmem:[%s7298_s25 + $0x2c] sm:$0xff] (%p30_p3)   ;;  %176 = vst [vmem:[%s7303_s26 + $0x18] sm:$0xff] (%p30_p3), %v175_v3   ;;  %v187_v6 = vld [vmem:[%s7298_s25 + $0x34] sm:$0xff] (%p30_p3)  }
  0x15   : > { %180 = vst [vmem:[%s7303_s26 + $0x20] sm:$0xff] %v179_v4   ;;  %184 = vst [vmem:[%s7303_s26 + $0x28] sm:$0xff] %v183_v5   ;;  %v191_v7 = vld [vmem:[%s7298_s25 + $0x3c] sm:$0xff]   ;;  %v195_v8 = vld [vmem:[%s7298_s25 + $0x48] sm:$0xff]  }
  0x16   : > { %188 = vst [vmem:[%s7303_s26 + $0x30] sm:$0xff] %v187_v6   ;;  %192 = vst [vmem:[%s7303_s26 + $0x38] sm:$0xff] %v191_v7   ;;  %v199_v9 = vld [vmem:[%s7298_s25 + $0x50] sm:$0xff]   ;;  %v203_v10 = vld [vmem:[%s7298_s25 + $0x58] sm:$0xff]  }
  0x17   : > { %196 = vst [vmem:[%s7303_s26 + $0x40] sm:$0xff] %v195_v8   ;;  %v207_v11 = vld [vmem:[%s7298_s25 + $0x60] sm:$0xff]   ;;  %200 = vst [vmem:[%s7303_s26 + $0x48] sm:$0xff] %v199_v9   ;;  %v211_v12 = vld [vmem:[%s7298_s25 + $0x6c] sm:$0xff]  }
  0x18   : > { %204 = vst [vmem:[%s7303_s26 + $0x50] sm:$0xff] %v203_v10   ;;  %208 = vst [vmem:[%s7303_s26 + $0x58] sm:$0xff] %v207_v11   ;;  %v215_v13 = vld [vmem:[%s7298_s25 + $0x74] sm:$0xff]   ;;  %v219_v14 = vld [vmem:[%s7298_s25 + $0x7c] sm:$0xff]  }
  0x19   : > { %212 = vst [vmem:[%s7303_s26 + $0x60] sm:$0xff] %v211_v12   ;;  %216 = vst [vmem:[%s7303_s26 + $0x68] sm:$0xff] %v215_v13   ;;  %v223_v15 = vld [vmem:[%s7298_s25 + $0x84] sm:$0xff]   ;;  %v227_v16 = vld [vmem:[%s7298_s25 + $0x90] sm:$0xff]  }
  0x1a   : > { %220 = vst [vmem:[%s7303_s26 + $0x70] sm:$0xff] %v219_v14   ;;  %v231_v17 = vld [vmem:[%s7298_s25 + $0x98] sm:$0xff]   ;;  %224 = vst [vmem:[%s7303_s26 + $0x78] sm:$0xff] %v223_v15   ;;  %v235_v18 = vld [vmem:[%s7298_s25 + $0xa0] sm:$0xff]  }
  0x1b   : > { %228 = vst [vmem:[%s7303_s26 + $0x80] sm:$0xff] %v227_v16   ;;  %232 = vst [vmem:[%s7303_s26 + $0x88] sm:$0xff] %v231_v17   ;;  %v239_v19 = vld [vmem:[%s7298_s25 + $0xa8] sm:$0xff]   ;;  %v243_v20 = vld [vmem:[%s7298_s25 + $0xb4] sm:$0xff]  }
  0x1c   : > { %236 = vst [vmem:[%s7303_s26 + $0x90] sm:$0xff] %v235_v18   ;;  %240 = vst [vmem:[%s7303_s26 + $0x98] sm:$0xff] %v239_v19   ;;  %v247_v21 = vld [vmem:[%s7298_s25 + $0xbc] sm:$0xff]   ;;  %v251_v22 = vld [vmem:[%s7298_s25 + $0xc4] sm:$0xff]  }
  0x1d   : > { %244 = vst [vmem:[%s7303_s26 + $0xa0] sm:$0xff] %v243_v20   ;;  %v255_v23 = vld [vmem:[%s7298_s25 + $0xcc] sm:$0xff]   ;;  %248 = vst [vmem:[%s7303_s26 + $0xa8] sm:$0xff] %v247_v21   ;;  %v259_v24 = vld [vmem:[%s7298_s25 + $0xd8] sm:$0xff]  }
  0x1e   : > { %252 = vst [vmem:[%s7303_s26 + $0xb0] sm:$0xff] %v251_v22   ;;  %256 = vst [vmem:[%s7303_s26 + $0xb8] sm:$0xff] %v255_v23   ;;  %v263_v25 = vld [vmem:[%s7298_s25 + $0xe0] sm:$0xff]   ;;  %v267_v26 = vld [vmem:[%s7298_s25 + $0xe8] sm:$0xff]  }
  0x1f   : > { %260 = vst [vmem:[%s7303_s26 + $0xc0] sm:$0xff] %v259_v24   ;;  %264 = vst [vmem:[%s7303_s26 + $0xc8] sm:$0xff] %v263_v25   ;;  %v271_v27 = vld [vmem:[%s7298_s25 + $0xf0] sm:$0xff]   ;;  %v275_v28 = vld [vmem:[%s7298_s25 + $0xfc] sm:$0xff]  }
  0x20   : > { %268 = vst [vmem:[%s7303_s26 + $0xd0] sm:$0xff] %v267_v26   ;;  %v279_v29 = vld [vmem:[%s7298_s25 + $0x104] sm:$0xff]   ;;  %272 = vst [vmem:[%s7303_s26 + $0xd8] sm:$0xff] %v271_v27   ;;  %v283_v30 = vld [vmem:[%s7298_s25 + $0x10c] sm:$0xff]  }
  0x21   : > { %276 = vst [vmem:[%s7303_s26 + $0xe0] sm:$0xff] %v275_v28   ;;  %280 = vst [vmem:[%s7303_s26 + $0xe8] sm:$0xff] %v279_v29   ;;  %v287_v31 = vld [vmem:[%s7298_s25 + $0x114] sm:$0xff]  }
  0x22   : > { %284 = vst [vmem:[%s7303_s26 + $0xf0] sm:$0xff] %v283_v30   ;;  %288 = vst [vmem:[%s7303_s26 + $0xf8] sm:$0xff] %v287_v31  }
  0x23 PF: > { %p5754_p5 = scmp.ge.s32.totalorder %s7235_s14, 1  ;;  %p454_p6 = scmp.lt.s32.totalorder %s7235_s14, 3 }
  0x25   : > { %p455_p7 = pnand %p5754_p5, %p454_p6 }
  0x26   : > { %s461_s27 = sand.u32 (!%p455_p7), 1, %s7227_s12   ;;  %p500_p8 = scmp.lt.s32.totalorder (!%p455_p7), %s7278_s15, 1  ;;  %vm526_vm0 = vcmask (!%p455_p7), 254976   ;;  %v7237_v32 = vmov (!%p455_p7), 0.0  }
  0x27   : > { %458 = sbr.rel (%p455_p7) target bundleno = 834 (0x342), region = 65  ;;  %s7370_s28 = sshll.u32 (!%p455_p7), %s461_s27, 8 }
  0x28   : > { %s5759_s29 = sshll.u32 (!%p455_p7), %s7278_s15, 3  ;;  %p671_p10 = scmp.eq.s32.totalorder (!%p455_p7), %s7278_s15, 0 }
  0x29   : > { %p512_p9 = scmp.lt.s32.totalorder (!%p455_p7), %s5759_s29, 15  ;;  %p672_p12 = scmp.eq.s32.totalorder (!%p455_p7), %s7278_s15, 1 }
  0x2a   : > { %s7840_s20 = scalar_lea.vmem (!%p455_p7), [#allocation2], %s7370_s28 }
  0x2b   : > { %p7388_p13 = por (!%p455_p7), %p672_p12, %p671_p10 }
  0x2e   : > { %s501_s30 = scalar_select %p500_p8, %s7278_s15, 1 }
  0x2f   : > { %s9230_s29 = smov (!%p512_p9, %s5759_s29), 15  ;;  %v7238_v34 = vmov (%p7388_p13), 0.0   ;;  %vm7239_vm1 = vmmov (%p7388_p13), 0   ;;  %v677_v38 = vld [vmem:[%s7840_s20] sm:$0xf] (%p7388_p13)  ;;  %vm737_vm2 = vcmask (%p7388_p13), 261120  }
  0x30   : > { %s5756_s4 = sshll.u32 %s501_s30, 3  ;;  %s7055_s5 = smul.u32 18, %s9230_s29  ;;  %6542 = vmatprep.subr.bf16.mxu0 (%p7388_p13), %v7238_v34  ;;  %6550 = vmatprep.subr.bf16.mxu1 (%p7388_p13), %v7238_v34  ;;  %v678_v39 = vld [vmem:[%s7840_s20 + $0x4] sm:$0xf] (%p7388_p13)  ;;  %v685_v40 = vpack.c.bf16 (%p7388_p13), %v677_v38, %v677_v38  ;;  %v679_v46 = vld [vmem:[%s7840_s20 + $0x8] sm:$0xf] (%p7388_p13) }
  0x31   : > { %p503_p11 = scmp.lt.s32.totalorder %s5756_s4, 15  ;;  %6546 = vmatprep.mubr.msk.bf16.mxu0 (%p7388_p13), %vm7239_vm1, %v7238_v34  ;;  %6554 = vmatprep.mubr.msk.bf16.mxu1 (%p7388_p13), %vm7239_vm1, %v7238_v34  ;;  %v686_v41 = vpack.c.bf16 (%p7388_p13), %v678_v39, %v678_v39  ;;  %v680_v47 = vld [vmem:[%s7840_s20 + $0xc] sm:$0xf] (%p7388_p13)  ;;  %v687_v48 = vpack.c.bf16 (%p7388_p13), %v679_v46, %v679_v46  ;;  %v681_v53 = vld [vmem:[%s7840_s20 + $0x10] sm:$0xf] (%p7388_p13)  ;;  %s7240_s21 = smov (%p7388_p13), 96  }
  0x32   : > { %s7386_s8 = scalar_lea.vmem %s9223_s2, %s7055_s5  ;;  %s7614_s14 = scalar_lea.vmem %s9224_s3, %s7055_s5  ;;  %v688_v50 = vpack.c.bf16 (%p7388_p13), %v680_v47, %v680_v47  ;;  %v682_v55 = vld [vmem:[%s7840_s20 + $0x14] sm:$0xf] (%p7388_p13)  ;;  %v689_v56 = vpack.c.bf16 (%p7388_p13), %v681_v53, %v681_v53  ;;  %v683_v61 = vld [vmem:[%s7840_s20 + $0x18] sm:$0xf] (%p7388_p13)  ;;  %v684_v63 = vld [vmem:[%s7840_s20 + $0x1c] sm:$0xf] (%p7388_p13) }
  0x33   : > { %s9232_s4 = smov (!%p503_p11, %s5756_s4), 15  ;;  %527 = vst.msk [vmem:[%s7386_s8] sm:$0x3] %vm526_vm0, %v7237_v32  ;;  %528 = vst.msk [vmem:[%s7386_s8 + $0x2] sm:$0x3] %vm526_vm0, %v7237_v32  ;;  %v690_v58 = vpack.c.bf16 (%p7388_p13), %v682_v55, %v682_v55  ;;  %v691_v0 = vpack.c.bf16 (%p7388_p13), %v683_v61, %v683_v61  ;;  %v692_v2 = vpack.c.bf16 (%p7388_p13), %v684_v63, %v684_v63  ;;  %s7241_s22 = smov (%p7388_p13), 32  }
  0x34   : > { %s6349_s10 = sshll.u32 %s9232_s4, 7  ;;  %529 = vst.msk [vmem:[%s7386_s8 + $0x4] sm:$0x3] %vm526_vm0, %v7237_v32  ;;  %530 = vst.msk [vmem:[%s7386_s8 + $0x6] sm:$0x3] %vm526_vm0, %v7237_v32 }
  0x35   : > { %531 = vst.msk [vmem:[%s7386_s8 + $0x8] sm:$0x3] %vm526_vm0, %v7237_v32  ;;  %532 = vst.msk [vmem:[%s7386_s8 + $0xa] sm:$0x3] %vm526_vm0, %v7237_v32  ;;  %s7621_s18 = scalar_lea.vmem %s9222_s1, %s6349_s10  ;;  %v5787_v6 = vld [vmem:[%s7840_s20 + $0x20] sm:$0xf] (%p7388_p13) }
  0x36   : > { %533 = vst.msk [vmem:[%s7386_s8 + $0xc] sm:$0x3] %vm526_vm0, %v7237_v32  ;;  %534 = vst.msk [vmem:[%s7386_s8 + $0xe] sm:$0x3] %vm526_vm0, %v7237_v32  ;;  %v7085_v33 = vld [vmem:[%s7621_s18] sm:$0xff] (%p7388_p13)   ;;  %v7086_v35 = vld [vmem:[%s7621_s18 + $0x10] sm:$0xff] (%p7388_p13)   ;;  %v1303_v8 = vpack.c.bf16 (%p7388_p13), %v5787_v6, %v5787_v6 }
  0x37   : > { %535 = vst.msk [vmem:[%s7386_s8 + $0x10] sm:$0x3] %vm526_vm0, %v7237_v32  ;;  %536 = vst.msk [vmem:[%s7386_s8 + $0x12] sm:$0x3] %vm526_vm0, %v7237_v32  ;;  %6543 = vmatpush3.bf16.msra.mxu0 (%p7388_p13), %v7085_v33  ;;  %v7087_v36 = vld [vmem:[%s7621_s18 + $0x8] sm:$0xff] (%p7388_p13)   ;;  %6551 = vmatpush3.bf16.msra.mxu1 (%p7388_p13), %v7086_v35  ;;  %v7088_v37 = vld [vmem:[%s7621_s18 + $0x18] sm:$0xff] (%p7388_p13)  }
  0x38   : > { %537 = vst.msk [vmem:[%s7386_s8 + $0x14] sm:$0x3] %vm526_vm0, %v7237_v32  ;;  %538 = vst.msk [vmem:[%s7386_s8 + $0x16] sm:$0x3] %vm526_vm0, %v7237_v32  ;;  %6544 = vmatprep.subr.bf16.mxu0 (%p7388_p13), %v7238_v34  ;;  %6552 = vmatprep.subr.bf16.mxu1 (%p7388_p13), %v7238_v34  ;;  %v7089_v42 = vld [vmem:[%s7621_s18 + $0x20] sm:$0xff] (%p7388_p13)   ;;  %v7090_v43 = vld [vmem:[%s7621_s18 + $0x30] sm:$0xff] (%p7388_p13)  }
  0x39   : > { %539 = vst.msk [vmem:[%s7386_s8 + $0x18] sm:$0x3] %vm526_vm0, %v7237_v32  ;;  %540 = vst.msk [vmem:[%s7386_s8 + $0x1a] sm:$0x3] %vm526_vm0, %v7237_v32  ;;  %v7091_v44 = vld [vmem:[%s7621_s18 + $0x28] sm:$0xff] (%p7388_p13)   ;;  %v7092_v45 = vld [vmem:[%s7621_s18 + $0x38] sm:$0xff] (%p7388_p13)  }
  0x3a   : > { %541 = vst.msk [vmem:[%s7386_s8 + $0x1c] sm:$0x3] %vm526_vm0, %v7237_v32  ;;  %542 = vst.msk [vmem:[%s7386_s8 + $0x1e] sm:$0x3] %vm526_vm0, %v7237_v32  ;;  %v7093_v49 = vld [vmem:[%s7621_s18 + $0x40] sm:$0xff] (%p7388_p13)   ;;  %v7094_v51 = vld [vmem:[%s7621_s18 + $0x50] sm:$0xff] (%p7388_p13)  }
  0x3b   : > { %543 = vst.msk [vmem:[%s7386_s8 + $0x20] sm:$0x3] %vm526_vm0, %v7237_v32  ;;  %544 = vst.msk [vmem:[%s7386_s8 + $0x22] sm:$0x3] %vm526_vm0, %v7237_v32  ;;  %6545 = vmatpush3.bf16.msra.mxu0 (%p7388_p13), %v7087_v36  ;;  %6553 = vmatpush3.bf16.msra.mxu1 (%p7388_p13), %v7088_v37  ;;  %v7095_v52 = vld [vmem:[%s7621_s18 + $0x48] sm:$0xff] (%p7388_p13)   ;;  %v7096_v54 = vld [vmem:[%s7621_s18 + $0x58] sm:$0xff] (%p7388_p13)  }
  0x3c   : > { %545 = vst.msk [vmem:[%s7386_s8 + $0x24] sm:$0x3] %vm526_vm0, %v7237_v32  ;;  %546 = vst.msk [vmem:[%s7386_s8 + $0x26] sm:$0x3] %vm526_vm0, %v7237_v32  ;;  %6558 = vmatprep.subr.bf16.mxu0 (%p7388_p13), %v7238_v34  ;;  %6566 = vmatprep.subr.bf16.mxu1 (%p7388_p13), %v7238_v34  ;;  %v7097_v57 = vld [vmem:[%s7621_s18 + $0x60] sm:$0xff] (%p7388_p13)   ;;  %v7098_v59 = vld [vmem:[%s7621_s18 + $0x70] sm:$0xff] (%p7388_p13)  }
  0x3d   : > { %547 = vst.msk [vmem:[%s7386_s8 + $0x28] sm:$0x3] %vm526_vm0, %v7237_v32  ;;  %548 = vst.msk [vmem:[%s7386_s8 + $0x2a] sm:$0x3] %vm526_vm0, %v7237_v32  ;;  %v7099_v60 = vld [vmem:[%s7621_s18 + $0x68] sm:$0xff] (%p7388_p13)   ;;  %v7100_v62 = vld [vmem:[%s7621_s18 + $0x78] sm:$0xff] (%p7388_p13)  }
  0x3e   : > { %549 = vst.msk [vmem:[%s7386_s8 + $0x2c] sm:$0x3] %vm526_vm0, %v7237_v32  ;;  %550 = vst.msk [vmem:[%s7386_s8 + $0x2e] sm:$0x3] %vm526_vm0, %v7237_v32  ;;  %6547 = vmatmul.mubr.msk.bf16.vlgmr.msra.gmra.mrb[0].mxu0 (%p7388_p13), %vm737_vm2, %v685_v40  ;;  %6555 = vmatmul.mubr.msk.bf16.vlgmr.msra.gmra.mrb[0].mxu1 (%p7388_p13), %vm737_vm2, %v686_v41  ;;  %v7101_v1 = vld [vmem:[%s7621_s18 + $0x80] sm:$0xff] (%p7388_p13)   ;;  %v7102_v3 = vld [vmem:[%s7621_s18 + $0x90] sm:$0xff] (%p7388_p13)  }
  0x3f   : > { %551 = vst.msk [vmem:[%s7386_s8 + $0x30] sm:$0x3] %vm526_vm0, %v7237_v32  ;;  %552 = vst.msk [vmem:[%s7386_s8 + $0x32] sm:$0x3] %vm526_vm0, %v7237_v32  ;;  %6559 = vmatpush3.bf16.msra.mxu0 (%p7388_p13), %v7089_v42  ;;  %6567 = vmatpush3.bf16.msra.mxu1 (%p7388_p13), %v7090_v43  ;;  %v7103_v4 = vld [vmem:[%s7621_s18 + $0x88] sm:$0xff] (%p7388_p13)   ;;  %v7104_v5 = vld [vmem:[%s7621_s18 + $0x98] sm:$0xff] (%p7388_p13)  }
  0x40   : > { %553 = vst.msk [vmem:[%s7386_s8 + $0x34] sm:$0x3] %vm526_vm0, %v7237_v32  ;;  %554 = vst.msk [vmem:[%s7386_s8 + $0x36] sm:$0x3] %vm526_vm0, %v7237_v32  ;;  %6560 = vmatprep.subr.bf16.mxu0 (%p7388_p13), %v7238_v34  ;;  %6568 = vmatprep.subr.bf16.mxu1 (%p7388_p13), %v7238_v34  ;;  %v5788_v7 = vld [vmem:[%s7840_s20 + $0x24] sm:$0xf] (%p7388_p13) }
  0x41   : > { %555 = vst.msk [vmem:[%s7386_s8 + $0x38] sm:$0x3] %vm526_vm0, %v7237_v32  ;;  %556 = vst.msk [vmem:[%s7386_s8 + $0x3a] sm:$0x3] %vm526_vm0, %v7237_v32  ;;  %6562 = vmatprep.mubr.msk.bf16.mxu0 (%p7388_p13), %vm7239_vm1, %v7238_v34  ;;  %6570 = vmatprep.mubr.msk.bf16.mxu1 (%p7388_p13), %vm7239_vm1, %v7238_v34  ;;  %v7105_v9 = vld [vmem:[%s7621_s18 + $0xa0] sm:$0xff] (%p7388_p13)   ;;  %v1304_v10 = vpack.c.bf16 (%p7388_p13), %v5788_v7, %v5788_v7  ;;  %v7106_v11 = vld [vmem:[%s7621_s18 + $0xb0] sm:$0xff] (%p7388_p13)  }
  0x42   : > { %557 = vst.msk [vmem:[%s7386_s8 + $0x3c] sm:$0x3] %vm526_vm0, %v7237_v32  ;;  %558 = vst.msk [vmem:[%s7386_s8 + $0x3e] sm:$0x3] %vm526_vm0, %v7237_v32  ;;  %v7107_v12 = vld [vmem:[%s7621_s18 + $0xa8] sm:$0xff] (%p7388_p13)   ;;  %v7108_v13 = vld [vmem:[%s7621_s18 + $0xb8] sm:$0xff] (%p7388_p13)  }
  0x43   : > { %559 = vst.msk [vmem:[%s7386_s8 + $0x40] sm:$0x3] %vm526_vm0, %v7237_v32  ;;  %560 = vst.msk [vmem:[%s7386_s8 + $0x42] sm:$0x3] %vm526_vm0, %v7237_v32  ;;  %6561 = vmatpush3.bf16.msra.mxu0 (%p7388_p13), %v7091_v44  ;;  %6569 = vmatpush3.bf16.msra.mxu1 (%p7388_p13), %v7092_v45  ;;  %v5789_v14 = vld [vmem:[%s7840_s20 + $0x28] sm:$0xf] (%p7388_p13) }
  0x44   : > { %561 = vst.msk [vmem:[%s7386_s8 + $0x44] sm:$0x3] %vm526_vm0, %v7237_v32  ;;  %562 = vst.msk [vmem:[%s7386_s8 + $0x46] sm:$0x3] %vm526_vm0, %v7237_v32  ;;  %6574 = vmatprep.subr.bf16.mxu0 (%p7388_p13), %v7238_v34  ;;  %6582 = vmatprep.subr.bf16.mxu1 (%p7388_p13), %v7238_v34  ;;  %v5790_v15 = vld [vmem:[%s7840_s20 + $0x2c] sm:$0xf] (%p7388_p13)  ;;  %v1305_v16 = vpack.c.bf16 (%p7388_p13), %v5789_v14, %v5789_v14 }
  0x45   : > { %563 = vst.msk [vmem:[%s7386_s8 + $0x48] sm:$0x3] %vm526_vm0, %v7237_v32  ;;  %564 = vst.msk [vmem:[%s7386_s8 + $0x4a] sm:$0x3] %vm526_vm0, %v7237_v32  ;;  %v7109_v17 = vld [vmem:[%s7621_s18 + $0xc0] sm:$0xff] (%p7388_p13)   ;;  %v1306_v18 = vpack.c.bf16 (%p7388_p13), %v5790_v15, %v5790_v15  ;;  %v7110_v19 = vld [vmem:[%s7621_s18 + $0xd0] sm:$0xff] (%p7388_p13)  }
  0x46   : > { %565 = vst.msk [vmem:[%s7386_s8 + $0x4c] sm:$0x3] %vm526_vm0, %v7237_v32  ;;  %566 = vst.msk [vmem:[%s7386_s8 + $0x4e] sm:$0x3] %vm526_vm0, %v7237_v32  ;;  %6563 = vmatmul.mubr.msk.bf16.vlgmr.msra.gmra.mrb[4].mxu0 (%p7388_p13), %vm737_vm2, %v687_v48  ;;  %6571 = vmatmul.mubr.msk.bf16.vlgmr.msra.gmra.mrb[4].mxu1 (%p7388_p13), %vm737_vm2, %v688_v50  ;;  %v7111_v20 = vld [vmem:[%s7621_s18 + $0xc8] sm:$0xff] (%p7388_p13)   ;;  %v7112_v21 = vld [vmem:[%s7621_s18 + $0xd8] sm:$0xff] (%p7388_p13)  }
  0x47   : > { %567 = vst.msk [vmem:[%s7386_s8 + $0x50] sm:$0x3] %vm526_vm0, %v7237_v32  ;;  %568 = vst.msk [vmem:[%s7386_s8 + $0x52] sm:$0x3] %vm526_vm0, %v7237_v32  ;;  %6575 = vmatpush3.bf16.msra.mxu0 (%p7388_p13), %v7093_v49  ;;  %6583 = vmatpush3.bf16.msra.mxu1 (%p7388_p13), %v7094_v51  ;;  %v5791_v22 = vld [vmem:[%s7840_s20 + $0x30] sm:$0xf] (%p7388_p13) }
  0x48   : > { %569 = vst.msk [vmem:[%s7386_s8 + $0x54] sm:$0x3] %vm526_vm0, %v7237_v32  ;;  %570 = vst.msk [vmem:[%s7386_s8 + $0x56] sm:$0x3] %vm526_vm0, %v7237_v32  ;;  %6576 = vmatprep.subr.bf16.mxu0 (%p7388_p13), %v7238_v34  ;;  %6584 = vmatprep.subr.bf16.mxu1 (%p7388_p13), %v7238_v34  ;;  %v5792_v23 = vld [vmem:[%s7840_s20 + $0x34] sm:$0xf] (%p7388_p13)  ;;  %v1307_v24 = vpack.c.bf16 (%p7388_p13), %v5791_v22, %v5791_v22 }
  0x49   : > { %571 = vst.msk [vmem:[%s7386_s8 + $0x58] sm:$0x3] %vm526_vm0, %v7237_v32  ;;  %572 = vst.msk [vmem:[%s7386_s8 + $0x5a] sm:$0x3] %vm526_vm0, %v7237_v32  ;;  %6578 = vmatprep.mubr.msk.bf16.mxu0 (%p7388_p13), %vm7239_vm1, %v7238_v34  ;;  %6586 = vmatprep.mubr.msk.bf16.mxu1 (%p7388_p13), %vm7239_vm1, %v7238_v34  ;;  %v7113_v25 = vld [vmem:[%s7621_s18 + $0xe0] sm:$0xff] (%p7388_p13)   ;;  %v1308_v26 = vpack.c.bf16 (%p7388_p13), %v5792_v23, %v5792_v23  ;;  %v7114_v27 = vld [vmem:[%s7621_s18 + $0xf0] sm:$0xff] (%p7388_p13)  }
  0x4a   : > { %573 = vst.msk [vmem:[%s7386_s8 + $0x5c] sm:$0x3] %vm526_vm0, %v7237_v32  ;;  %574 = vst.msk [vmem:[%s7386_s8 + $0x5e] sm:$0x3] %vm526_vm0, %v7237_v32  ;;  %v7115_v28 = vld [vmem:[%s7621_s18 + $0xe8] sm:$0xff] (%p7388_p13)   ;;  %v7116_v29 = vld [vmem:[%s7621_s18 + $0xf8] sm:$0xff] (%p7388_p13)  }
  0x4b   : > { %575 = vst.msk [vmem:[%s7386_s8 + $0x60] sm:$0x3] %vm526_vm0, %v7237_v32  ;;  %576 = vst.msk [vmem:[%s7386_s8 + $0x62] sm:$0x3] %vm526_vm0, %v7237_v32  ;;  %6577 = vmatpush3.bf16.msra.mxu0 (%p7388_p13), %v7095_v52  ;;  %6585 = vmatpush3.bf16.msra.mxu1 (%p7388_p13), %v7096_v54  ;;  %v5793_v30 = vld [vmem:[%s7840_s20 + $0x38] sm:$0xf] (%p7388_p13) }
  0x4c   : > { %577 = vst.msk [vmem:[%s7386_s8 + $0x64] sm:$0x3] %vm526_vm0, %v7237_v32  ;;  %578 = vst.msk [vmem:[%s7386_s8 + $0x66] sm:$0x3] %vm526_vm0, %v7237_v32  ;;  %6590 = vmatprep.subr.bf16.mxu0 (%p7388_p13), %v7238_v34  ;;  %6598 = vmatprep.subr.bf16.mxu1 (%p7388_p13), %v7238_v34  ;;  %v5794_v31 = vld [vmem:[%s7840_s20 + $0x3c] sm:$0xf] (%p7388_p13) }
  0x4d   : > { %579 = vst.msk [vmem:[%s7386_s8 + $0x68] sm:$0x3] %vm526_vm0, %v7237_v32  ;;  %580 = vst.msk [vmem:[%s7386_s8 + $0x6a] sm:$0x3] %vm526_vm0, %v7237_v32  ;;  %v7117_v33 = vld [vmem:[%s7621_s18 + $0x100] sm:$0xff] (%p7388_p13)   ;;  %v1310_v35 = vpack.c.bf16 (%p7388_p13), %v5794_v31, %v5794_v31  ;;  %v7118_v36 = vld [vmem:[%s7621_s18 + $0x110] sm:$0xff] (%p7388_p13)  }
  0x4e   : > { %581 = vst.msk [vmem:[%s7386_s8 + $0x6c] sm:$0x3] %vm526_vm0, %v7237_v32  ;;  %582 = vst.msk [vmem:[%s7386_s8 + $0x6e] sm:$0x3] %vm526_vm0, %v7237_v32  ;;  %6579 = vmatmul.mubr.msk.bf16.vlgmr.msra.gmra.mrb[8].mxu0 (%p7388_p13), %vm737_vm2, %v689_v56  ;;  %6587 = vmatmul.mubr.msk.bf16.vlgmr.msra.gmra.mrb[8].mxu1 (%p7388_p13), %vm737_vm2, %v690_v58  ;;  %v7119_v37 = vld [vmem:[%s7621_s18 + $0x108] sm:$0xff] (%p7388_p13)   ;;  %v7120_v38 = vld [vmem:[%s7621_s18 + $0x118] sm:$0xff] (%p7388_p13)  }
  0x4f   : > { %583 = vst.msk [vmem:[%s7386_s8 + $0x70] sm:$0x3] %vm526_vm0, %v7237_v32  ;;  %584 = vst.msk [vmem:[%s7386_s8 + $0x72] sm:$0x3] %vm526_vm0, %v7237_v32  ;;  %6591 = vmatpush3.bf16.msra.mxu0 (%p7388_p13), %v7097_v57  ;;  %6599 = vmatpush3.bf16.msra.mxu1 (%p7388_p13), %v7098_v59  ;;  %v5867_v39 = vld [vmem:[%s7840_s20 + $0x40] sm:$0xf] (%p7388_p13) }
  0x50   : > { %585 = vst.msk [vmem:[%s7386_s8 + $0x74] sm:$0x3] %vm526_vm0, %v7237_v32  ;;  %586 = vst.msk [vmem:[%s7386_s8 + $0x76] sm:$0x3] %vm526_vm0, %v7237_v32  ;;  %6592 = vmatprep.subr.bf16.mxu0 (%p7388_p13), %v7238_v34  ;;  %6600 = vmatprep.subr.bf16.mxu1 (%p7388_p13), %v7238_v34  ;;  %v5868_v40 = vld [vmem:[%s7840_s20 + $0x44] sm:$0xf] (%p7388_p13)  ;;  %v1923_v41 = vpack.c.bf16 (%p7388_p13), %v5867_v39, %v5867_v39 }
  0x51   : > { %587 = vst.msk [vmem:[%s7386_s8 + $0x78] sm:$0x3] %vm526_vm0, %v7237_v32  ;;  %588 = vst.msk [vmem:[%s7386_s8 + $0x7a] sm:$0x3] %vm526_vm0, %v7237_v32  ;;  %6594 = vmatprep.mubr.msk.bf16.mxu0 (%p7388_p13), %vm7239_vm1, %v7238_v34  ;;  %6602 = vmatprep.mubr.msk.bf16.mxu1 (%p7388_p13), %vm7239_vm1, %v7238_v34  ;;  %v7121_v42 = vld [vmem:[%s7621_s18 + $0x120] sm:$0xff] (%p7388_p13)   ;;  %v1924_v43 = vpack.c.bf16 (%p7388_p13), %v5868_v40, %v5868_v40  ;;  %v7122_v44 = vld [vmem:[%s7621_s18 + $0x130] sm:$0xff] (%p7388_p13)  }
  0x52   : > { %589 = vst.msk [vmem:[%s7386_s8 + $0x7c] sm:$0x3] %vm526_vm0, %v7237_v32  ;;  %590 = vst.msk [vmem:[%s7386_s8 + $0x7e] sm:$0x3] %vm526_vm0, %v7237_v32  ;;  %v7123_v45 = vld [vmem:[%s7621_s18 + $0x128] sm:$0xff] (%p7388_p13)   ;;  %v7124_v46 = vld [vmem:[%s7621_s18 + $0x138] sm:$0xff] (%p7388_p13)  }
  0x53   : > { %591 = vst.msk [vmem:[%s7386_s8 + $0x80] sm:$0x3] %vm526_vm0, %v7237_v32  ;;  %592 = vst.msk [vmem:[%s7386_s8 + $0x82] sm:$0x3] %vm526_vm0, %v7237_v32  ;;  %6593 = vmatpush3.bf16.msra.mxu0 (%p7388_p13), %v7099_v60  ;;  %6601 = vmatpush3.bf16.msra.mxu1 (%p7388_p13), %v7100_v62  ;;  %v5869_v47 = vld [vmem:[%s7840_s20 + $0x48] sm:$0xf] (%p7388_p13) }
  0x54   : > { %593 = vst.msk [vmem:[%s7386_s8 + $0x84] sm:$0x3] %vm526_vm0, %v7237_v32  ;;  %594 = vst.msk [vmem:[%s7386_s8 + $0x86] sm:$0x3] %vm526_vm0, %v7237_v32  ;;  %6606 = vmatprep.subr.bf16.mxu0 (%p7388_p13), %v7238_v34  ;;  %6614 = vmatprep.subr.bf16.mxu1 (%p7388_p13), %v7238_v34  ;;  %v5870_v48 = vld [vmem:[%s7840_s20 + $0x4c] sm:$0xf] (%p7388_p13)  ;;  %v1925_v49 = vpack.c.bf16 (%p7388_p13), %v5869_v47, %v5869_v47 }
  0x55   : > { %595 = vst.msk [vmem:[%s7386_s8 + $0x88] sm:$0x3] %vm526_vm0, %v7237_v32  ;;  %596 = vst.msk [vmem:[%s7386_s8 + $0x8a] sm:$0x3] %vm526_vm0, %v7237_v32  ;;  %v7125_v50 = vld [vmem:[%s7621_s18 + $0x140] sm:$0xff] (%p7388_p13)   ;;  %v1926_v51 = vpack.c.bf16 (%p7388_p13), %v5870_v48, %v5870_v48  ;;  %v7126_v52 = vld [vmem:[%s7621_s18 + $0x150] sm:$0xff] (%p7388_p13)  }
  0x56   : > { %597 = vst.msk [vmem:[%s7386_s8 + $0x8c] sm:$0x3] %vm526_vm0, %v7237_v32  ;;  %598 = vst.msk [vmem:[%s7386_s8 + $0x8e] sm:$0x3] %vm526_vm0, %v7237_v32  ;;  %6595 = vmatmul.mubr.msk.bf16.vlgmr.msra.gmra.mrb[12].mxu0 (%p7388_p13), %vm737_vm2, %v691_v0  ;;  %6603 = vmatmul.mubr.msk.bf16.vlgmr.msra.gmra.mrb[12].mxu1 (%p7388_p13), %vm737_vm2, %v692_v2  ;;  %v7127_v53 = vld [vmem:[%s7621_s18 + $0x148] sm:$0xff] (%p7388_p13)   ;;  %v7128_v55 = vld [vmem:[%s7621_s18 + $0x158] sm:$0xff] (%p7388_p13)  }
  0x57   : > { %599 = vst.msk [vmem:[%s7614_s14] sm:$0x3] %vm526_vm0, %v7237_v32  ;;  %600 = vst.msk [vmem:[%s7614_s14 + $0x2] sm:$0x3] %vm526_vm0, %v7237_v32  ;;  %6607 = vmatpush3.bf16.msra.mxu0 (%p7388_p13), %v7101_v1  ;;  %6615 = vmatpush3.bf16.msra.mxu1 (%p7388_p13), %v7102_v3  ;;  %v5871_v54 = vld [vmem:[%s7840_s20 + $0x50] sm:$0xf] (%p7388_p13) }
  0x58   : > { %601 = vst.msk [vmem:[%s7614_s14 + $0x4] sm:$0x3] %vm526_vm0, %v7237_v32  ;;  %602 = vst.msk [vmem:[%s7614_s14 + $0x6] sm:$0x3] %vm526_vm0, %v7237_v32  ;;  %6608 = vmatprep.subr.bf16.mxu0 (%p7388_p13), %v7238_v34  ;;  %6616 = vmatprep.subr.bf16.mxu1 (%p7388_p13), %v7238_v34  ;;  %v5872_v56 = vld [vmem:[%s7840_s20 + $0x54] sm:$0xf] (%p7388_p13)  ;;  %v1927_v57 = vpack.c.bf16 (%p7388_p13), %v5871_v54, %v5871_v54 }
  0x59   : > { %603 = vst.msk [vmem:[%s7614_s14 + $0x8] sm:$0x3] %vm526_vm0, %v7237_v32  ;;  %604 = vst.msk [vmem:[%s7614_s14 + $0xa] sm:$0x3] %vm526_vm0, %v7237_v32  ;;  %6610 = vmatprep.mubr.msk.bf16.mxu0 (%p7388_p13), %vm7239_vm1, %v7238_v34  ;;  %6618 = vmatprep.mubr.msk.bf16.mxu1 (%p7388_p13), %vm7239_vm1, %v7238_v34  ;;  %v7129_v58 = vld [vmem:[%s7621_s18 + $0x160] sm:$0xff] (%p7388_p13)   ;;  %v1928_v59 = vpack.c.bf16 (%p7388_p13), %v5872_v56, %v5872_v56  ;;  %v7130_v60 = vld [vmem:[%s7621_s18 + $0x170] sm:$0xff] (%p7388_p13)  }
  0x5a   : > { %605 = vst.msk [vmem:[%s7614_s14 + $0xc] sm:$0x3] %vm526_vm0, %v7237_v32  ;;  %606 = vst.msk [vmem:[%s7614_s14 + $0xe] sm:$0x3] %vm526_vm0, %v7237_v32  ;;  %v7131_v61 = vld [vmem:[%s7621_s18 + $0x168] sm:$0xff] (%p7388_p13)   ;;  %v7132_v62 = vld [vmem:[%s7621_s18 + $0x178] sm:$0xff] (%p7388_p13)  }
  0x5b   : > { %607 = vst.msk [vmem:[%s7614_s14 + $0x10] sm:$0x3] %vm526_vm0, %v7237_v32  ;;  %608 = vst.msk [vmem:[%s7614_s14 + $0x12] sm:$0x3] %vm526_vm0, %v7237_v32  ;;  %6609 = vmatpush3.bf16.msra.mxu0 (%p7388_p13), %v7103_v4  ;;  %6617 = vmatpush3.bf16.msra.mxu1 (%p7388_p13), %v7104_v5  ;;  %v5873_v63 = vld [vmem:[%s7840_s20 + $0x58] sm:$0xf] (%p7388_p13) }
  0x5c   : > { %609 = vst.msk [vmem:[%s7614_s14 + $0x14] sm:$0x3] %vm526_vm0, %v7237_v32  ;;  %610 = vst.msk [vmem:[%s7614_s14 + $0x16] sm:$0x3] %vm526_vm0, %v7237_v32  ;;  %6622 = vmatprep.subr.bf16.mxu0 (%p7388_p13), %v7238_v34  ;;  %6630 = vmatprep.subr.bf16.mxu1 (%p7388_p13), %v7238_v34  ;;  %v5874_v0 = vld [vmem:[%s7840_s20 + $0x5c] sm:$0xf] (%p7388_p13)  ;;  %v1929_v1 = vpack.c.bf16 (%p7388_p13), %v5873_v63, %v5873_v63 }
  0x5d   : > { %611 = vst.msk [vmem:[%s7614_s14 + $0x18] sm:$0x3] %vm526_vm0, %v7237_v32  ;;  %612 = vst.msk [vmem:[%s7614_s14 + $0x1a] sm:$0x3] %vm526_vm0, %v7237_v32  ;;  %v7133_v2 = vld [vmem:[%s7621_s18 + $0x180] sm:$0xff] (%p7388_p13)   ;;  %v1930_v3 = vpack.c.bf16 (%p7388_p13), %v5874_v0, %v5874_v0  ;;  %v7134_v4 = vld [vmem:[%s7621_s18 + $0x190] sm:$0xff] (%p7388_p13)  }
  0x5e   : > { %613 = vst.msk [vmem:[%s7614_s14 + $0x1c] sm:$0x3] %vm526_vm0, %v7237_v32  ;;  %614 = vst.msk [vmem:[%s7614_s14 + $0x1e] sm:$0x3] %vm526_vm0, %v7237_v32  ;;  %6611 = vmatmul.mubr.msk.bf16.vlgmr.msra.gmra.mrb[16].mxu0 (%p7388_p13), %vm737_vm2, %v1303_v8  ;;  %6619 = vmatmul.mubr.msk.bf16.vlgmr.msra.gmra.mrb[16].mxu1 (%p7388_p13), %vm737_vm2, %v1304_v10  ;;  %v7135_v5 = vld [vmem:[%s7621_s18 + $0x188] sm:$0xff] (%p7388_p13)   ;;  %v7136_v6 = vld [vmem:[%s7621_s18 + $0x198] sm:$0xff] (%p7388_p13)  }
  0x5f   : > { %615 = vst.msk [vmem:[%s7614_s14 + $0x20] sm:$0x3] %vm526_vm0, %v7237_v32  ;;  %616 = vst.msk [vmem:[%s7614_s14 + $0x22] sm:$0x3] %vm526_vm0, %v7237_v32  ;;  %6623 = vmatpush3.bf16.msra.mxu0 (%p7388_p13), %v7105_v9  ;;  %6631 = vmatpush3.bf16.msra.mxu1 (%p7388_p13), %v7106_v11  ;;  %v5947_v7 = vld [vmem:[%s7840_s20 + $0x60] sm:$0xf] (%p7388_p13) }
  0x60   : > { %617 = vst.msk [vmem:[%s7614_s14 + $0x24] sm:$0x3] %vm526_vm0, %v7237_v32  ;;  %618 = vst.msk [vmem:[%s7614_s14 + $0x26] sm:$0x3] %vm526_vm0, %v7237_v32  ;;  %6624 = vmatprep.subr.bf16.mxu0 (%p7388_p13), %v7238_v34  ;;  %6632 = vmatprep.subr.bf16.mxu1 (%p7388_p13), %v7238_v34  ;;  %v5948_v8 = vld [vmem:[%s7840_s20 + $0x64] sm:$0xf] (%p7388_p13)  ;;  %v2543_v9 = vpack.c.bf16 (%p7388_p13), %v5947_v7, %v5947_v7 }
  0x61   : > { %619 = vst.msk [vmem:[%s7614_s14 + $0x28] sm:$0x3] %vm526_vm0, %v7237_v32  ;;  %620 = vst.msk [vmem:[%s7614_s14 + $0x2a] sm:$0x3] %vm526_vm0, %v7237_v32  ;;  %6626 = vmatprep.mubr.msk.bf16.mxu0 (%p7388_p13), %vm7239_vm1, %v7238_v34  ;;  %6634 = vmatprep.mubr.msk.bf16.mxu1 (%p7388_p13), %vm7239_vm1, %v7238_v34  ;;  %v7137_v10 = vld [vmem:[%s7621_s18 + $0x1a0] sm:$0xff] (%p7388_p13)   ;;  %v2544_v11 = vpack.c.bf16 (%p7388_p13), %v5948_v8, %v5948_v8  ;;  %v7140_v14 = vld [vmem:[%s7621_s18 + $0x1b8] sm:$0xff] (%p7388_p13)  }
  0x62   : > { %621 = vst.msk [vmem:[%s7614_s14 + $0x2c] sm:$0x3] %vm526_vm0, %v7237_v32  ;;  %622 = vst.msk [vmem:[%s7614_s14 + $0x2e] sm:$0x3] %vm526_vm0, %v7237_v32  ;;  %v5949_v15 = vld [vmem:[%s7840_s20 + $0x68] sm:$0xf] (%p7388_p13) }
  0x63   : > { %623 = vst.msk [vmem:[%s7614_s14 + $0x30] sm:$0x3] %vm526_vm0, %v7237_v32  ;;  %624 = vst.msk [vmem:[%s7614_s14 + $0x32] sm:$0x3] %vm526_vm0, %v7237_v32  ;;  %6625 = vmatpush3.bf16.msra.mxu0 (%p7388_p13), %v7107_v12  ;;  %6633 = vmatpush3.bf16.msra.mxu1 (%p7388_p13), %v7108_v13  ;;  %v7138_v12 = vld [vmem:[%s7621_s18 + $0x1b0] sm:$0xff] (%p7388_p13)   ;;  %v7139_v13 = vld [vmem:[%s7621_s18 + $0x1a8] sm:$0xff] (%p7388_p13)  }
  0x64   : > { %625 = vst.msk [vmem:[%s7614_s14 + $0x34] sm:$0x3] %vm526_vm0, %v7237_v32  ;;  %626 = vst.msk [vmem:[%s7614_s14 + $0x36] sm:$0x3] %vm526_vm0, %v7237_v32  ;;  %6638 = vmatprep.subr.bf16.mxu0 (%p7388_p13), %v7238_v34  ;;  %6646 = vmatprep.subr.bf16.mxu1 (%p7388_p13), %v7238_v34  ;;  %v7144_v22 = vld [vmem:[%s7621_s18 + $0x1d8] sm:$0xff] (%p7388_p13)   ;;  %v7159_v54 = vld [vmem:[%s7621_s18 + $0x248] sm:$0xff] (%p7388_p13)  }
  0x65   : > { %627 = vst.msk [vmem:[%s7614_s14 + $0x38] sm:$0x3] %vm526_vm0, %v7237_v32  ;;  %628 = vst.msk [vmem:[%s7614_s14 + $0x3a] sm:$0x3] %vm526_vm0, %v7237_v32  ;;  %v5951_v23 = vld [vmem:[%s7840_s20 + $0x70] sm:$0xf] (%p7388_p13) }
  0x66   : > { %629 = vst.msk [vmem:[%s7614_s14 + $0x3c] sm:$0x3] %vm526_vm0, %v7237_v32  ;;  %630 = vst.msk [vmem:[%s7614_s14 + $0x3e] sm:$0x3] %vm526_vm0, %v7237_v32  ;;  %6627 = vmatmul.mubr.msk.bf16.vlgmr.msra.gmra.mrb[20].mxu0 (%p7388_p13), %vm737_vm2, %v1305_v16  ;;  %6635 = vmatmul.mubr.msk.bf16.vlgmr.msra.gmra.mrb[20].mxu1 (%p7388_p13), %vm737_vm2, %v1306_v18  ;;  %v5950_v16 = vld [vmem:[%s7840_s20 + $0x6c] sm:$0xf] (%p7388_p13) }
  0x67   : > { %631 = vst.msk [vmem:[%s7614_s14 + $0x40] sm:$0x3] %vm526_vm0, %v7237_v32  ;;  %632 = vst.msk [vmem:[%s7614_s14 + $0x42] sm:$0x3] %vm526_vm0, %v7237_v32  ;;  %6639 = vmatpush3.bf16.msra.mxu0 (%p7388_p13), %v7109_v17  ;;  %6647 = vmatpush3.bf16.msra.mxu1 (%p7388_p13), %v7110_v19  ;;  %v2545_v17 = vpack.c.bf16 (%p7388_p13), %v5949_v15, %v5949_v15  ;;  %v7141_v18 = vld [vmem:[%s7621_s18 + $0x1c0] sm:$0xff] (%p7388_p13)   ;;  %v2546_v19 = vpack.c.bf16 (%p7388_p13), %v5950_v16, %v5950_v16  ;;  %v7148_v31 = vld [vmem:[%s7621_s18 + $0x1f8] sm:$0xff] (%p7388_p13)  }
  0x68   : > { %633 = vst.msk [vmem:[%s7614_s14 + $0x44] sm:$0x3] %vm526_vm0, %v7237_v32  ;;  %634 = vst.msk [vmem:[%s7614_s14 + $0x46] sm:$0x3] %vm526_vm0, %v7237_v32  ;;  %6640 = vmatprep.subr.bf16.mxu0 (%p7388_p13), %v7238_v34  ;;  %6648 = vmatprep.subr.bf16.mxu1 (%p7388_p13), %v7238_v34  ;;  %v6027_v39 = vld [vmem:[%s7840_s20 + $0x80] sm:$0xf] (%p7388_p13) }
  0x69   : > { %635 = vst.msk [vmem:[%s7614_s14 + $0x48] sm:$0x3] %vm526_vm0, %v7237_v32  ;;  %636 = vst.msk [vmem:[%s7614_s14 + $0x4a] sm:$0x3] %vm526_vm0, %v7237_v32  ;;  %6642 = vmatprep.mubr.msk.bf16.mxu0 (%p7388_p13), %vm7239_vm1, %v7238_v34  ;;  %6650 = vmatprep.mubr.msk.bf16.mxu1 (%p7388_p13), %vm7239_vm1, %v7238_v34  ;;  %v7152_v40 = vld [vmem:[%s7621_s18 + $0x218] sm:$0xff] (%p7388_p13)  }
  0x6a   : > { %637 = vst.msk [vmem:[%s7614_s14 + $0x4c] sm:$0x3] %vm526_vm0, %v7237_v32  ;;  %638 = vst.msk [vmem:[%s7614_s14 + $0x4e] sm:$0x3] %vm526_vm0, %v7237_v32  ;;  %v6029_v47 = vld [vmem:[%s7840_s20 + $0x88] sm:$0xf] (%p7388_p13) }
  0x6b   : > { %639 = vst.msk [vmem:[%s7614_s14 + $0x50] sm:$0x3] %vm526_vm0, %v7237_v32  ;;  %640 = vst.msk [vmem:[%s7614_s14 + $0x52] sm:$0x3] %vm526_vm0, %v7237_v32  ;;  %6641 = vmatpush3.bf16.msra.mxu0 (%p7388_p13), %v7111_v20  ;;  %6649 = vmatpush3.bf16.msra.mxu1 (%p7388_p13), %v7112_v21  ;;  %v7142_v20 = vld [vmem:[%s7621_s18 + $0x1d0] sm:$0xff] (%p7388_p13)   ;;  %v7143_v21 = vld [vmem:[%s7621_s18 + $0x1c8] sm:$0xff] (%p7388_p13)  }
  0x6c   : > { %641 = vst.msk [vmem:[%s7614_s14 + $0x54] sm:$0x3] %vm526_vm0, %v7237_v32  ;;  %642 = vst.msk [vmem:[%s7614_s14 + $0x56] sm:$0x3] %vm526_vm0, %v7237_v32  ;;  %6654 = vmatprep.subr.bf16.mxu0 (%p7388_p13), %v7238_v34  ;;  %6662 = vmatprep.subr.bf16.mxu1 (%p7388_p13), %v7238_v34  ;;  %v7156_v48 = vld [vmem:[%s7621_s18 + $0x238] sm:$0xff] (%p7388_p13)  }
  0x6d   : > { %643 = vst.msk [vmem:[%s7614_s14 + $0x58] sm:$0x3] %vm526_vm0, %v7237_v32  ;;  %644 = vst.msk [vmem:[%s7614_s14 + $0x5a] sm:$0x3] %vm526_vm0, %v7237_v32  ;;  %v7160_v56 = vld [vmem:[%s7621_s18 + $0x258] sm:$0xff] (%p7388_p13)  }
  0x6e   : > { %645 = vst.msk [vmem:[%s7614_s14 + $0x5c] sm:$0x3] %vm526_vm0, %v7237_v32  ;;  %646 = vst.msk [vmem:[%s7614_s14 + $0x5e] sm:$0x3] %vm526_vm0, %v7237_v32  ;;  %6643 = vmatmul.mubr.msk.bf16.vlgmr.msra.gmra.mrb[24].mxu0 (%p7388_p13), %vm737_vm2, %v1307_v24  ;;  %6651 = vmatmul.mubr.msk.bf16.vlgmr.msra.gmra.mrb[24].mxu1 (%p7388_p13), %vm737_vm2, %v1308_v26  ;;  %v5952_v24 = vld [vmem:[%s7840_s20 + $0x74] sm:$0xf] (%p7388_p13)  ;;  %v2547_v26 = vpack.c.bf16 (%p7388_p13), %v5951_v23, %v5951_v23 }
  0x6f   : > { %647 = vst.msk [vmem:[%s7614_s14 + $0x60] sm:$0x3] %vm526_vm0, %v7237_v32  ;;  %648 = vst.msk [vmem:[%s7614_s14 + $0x62] sm:$0x3] %vm526_vm0, %v7237_v32  ;;  %6655 = vmatpush3.bf16.msra.mxu0 (%p7388_p13), %v7113_v25  ;;  %6663 = vmatpush3.bf16.msra.mxu1 (%p7388_p13), %v7114_v27  ;;  %v7145_v25 = vld [vmem:[%s7621_s18 + $0x1e0] sm:$0xff] (%p7388_p13)   ;;  %v2548_v27 = vpack.c.bf16 (%p7388_p13), %v5952_v24, %v5952_v24  ;;  %v7164_v0 = vld [vmem:[%s7621_s18 + $0x278] sm:$0xff] (%p7388_p13)  }
  0x70   : > { %649 = vst.msk [vmem:[%s7614_s14 + $0x64] sm:$0x3] %vm526_vm0, %v7237_v32  ;;  %650 = vst.msk [vmem:[%s7614_s14 + $0x66] sm:$0x3] %vm526_vm0, %v7237_v32  ;;  %6656 = vmatprep.subr.bf16.mxu0 (%p7388_p13), %v7238_v34  ;;  %6664 = vmatprep.subr.bf16.mxu1 (%p7388_p13), %v7238_v34  ;;  %v6033_v63 = vld [vmem:[%s7840_s20 + $0x98] sm:$0xf] (%p7388_p13) }
  0x71   : > { %651 = vst.msk [vmem:[%s7614_s14 + $0x68] sm:$0x3] %vm526_vm0, %v7237_v32  ;;  %652 = vst.msk [vmem:[%s7614_s14 + $0x6a] sm:$0x3] %vm526_vm0, %v7237_v32  ;;  %6658 = vmatprep.mubr.msk.bf16.mxu0 (%p7388_p13), %vm7239_vm1, %v7238_v34  ;;  %6666 = vmatprep.mubr.msk.bf16.mxu1 (%p7388_p13), %vm7239_vm1, %v7238_v34  ;;  %v6107_v7 = vld [vmem:[%s7840_s20 + $0xa0] sm:$0xf] (%p7388_p13) }
  0x72   : > { %653 = vst.msk [vmem:[%s7614_s14 + $0x6c] sm:$0x3] %vm526_vm0, %v7237_v32  ;;  %654 = vst.msk [vmem:[%s7614_s14 + $0x6e] sm:$0x3] %vm526_vm0, %v7237_v32  ;;  %v7168_v8 = vld [vmem:[%s7621_s18 + $0x298] sm:$0xff] (%p7388_p13)  }
  0x73   : > { %655 = vst.msk [vmem:[%s7614_s14 + $0x70] sm:$0x3] %vm526_vm0, %v7237_v32  ;;  %656 = vst.msk [vmem:[%s7614_s14 + $0x72] sm:$0x3] %vm526_vm0, %v7237_v32  ;;  %6657 = vmatpush3.bf16.msra.mxu0 (%p7388_p13), %v7115_v28  ;;  %6665 = vmatpush3.bf16.msra.mxu1 (%p7388_p13), %v7116_v29  ;;  %v7146_v28 = vld [vmem:[%s7621_s18 + $0x1f0] sm:$0xff] (%p7388_p13)   ;;  %v7147_v29 = vld [vmem:[%s7621_s18 + $0x1e8] sm:$0xff] (%p7388_p13)  }
  0x74   : > { %657 = vst.msk [vmem:[%s7614_s14 + $0x74] sm:$0x3] %vm526_vm0, %v7237_v32  ;;  %658 = vst.msk [vmem:[%s7614_s14 + $0x76] sm:$0x3] %vm526_vm0, %v7237_v32  ;;  %676 = sbr.rel (!%p7388_p13) target bundleno = 834 (0x342), region = 73  ;;  %6670 = vmatprep.subr.bf16.mxu0 (%p7388_p13), %v7238_v34  ;;  %6678 = vmatprep.subr.bf16.mxu1 (%p7388_p13), %v7238_v34  ;;  %v7172_v16 = vld [vmem:[%s7621_s18 + $0x2b8] sm:$0xff] (%p7388_p13)  }
  0x75   : > { %659 = vst.msk [vmem:[%s7614_s14 + $0x78] sm:$0x3] %vm526_vm0, %v7237_v32  ;;  %660 = vst.msk [vmem:[%s7614_s14 + $0x7a] sm:$0x3] %vm526_vm0, %v7237_v32  ;;  %v6109_v15 = vld [vmem:[%s7840_s20 + $0xa8] sm:$0xf] (%p7388_p13) }
  0x76   : > { %661 = vst.msk [vmem:[%s7614_s14 + $0x7c] sm:$0x3] %vm526_vm0, %v7237_v32  ;;  %662 = vst.msk [vmem:[%s7614_s14 + $0x7e] sm:$0x3] %vm526_vm0, %v7237_v32  ;;  %6667 = vmatmul.mubr.msk.bf16.vlgmr.msra.gmra.mrb[28].mxu1 (%p7388_p13), %vm737_vm2, %v1310_v35  ;;  %v7149_v35 = vld [vmem:[%s7621_s18 + $0x200] sm:$0xff] (%p7388_p13)   ;;  %v7176_v24 = vld [vmem:[%s7621_s18 + $0x2d8] sm:$0xff] (%p7388_p13)  }
  0x77   : > { %663 = vst.msk [vmem:[%s7614_s14 + $0x80] sm:$0x3] %vm526_vm0, %v7237_v32  ;;  %664 = vst.msk [vmem:[%s7614_s14 + $0x82] sm:$0x3] %vm526_vm0, %v7237_v32  ;;  %6679 = vmatpush3.bf16.msra.mxu1 (%p7388_p13), %v7118_v36  ;;  %6682 = vmatprep.mubr.msk.bf16.mxu1 (%p7388_p13), %vm7239_vm1, %v7238_v34  ;;  %v7150_v36 = vld [vmem:[%s7621_s18 + $0x210] sm:$0xff] (%p7388_p13)  }
  0x78   : > { %665 = vst.msk [vmem:[%s7614_s14 + $0x84] sm:$0x3] %vm526_vm0, %v7237_v32  ;;  %666 = vst.msk [vmem:[%s7614_s14 + $0x86] sm:$0x3] %vm526_vm0, %v7237_v32  ;;  %6680 = vmatprep.subr.bf16.mxu1 (%p7388_p13), %v7238_v34  ;;  %v6111_v23 = vld [vmem:[%s7840_s20 + $0xb0] sm:$0xf] (%p7388_p13) }
  0x79   : > { %667 = vst.msk [vmem:[%s7614_s14 + $0x88] sm:$0x3] %vm526_vm0, %v7237_v32  ;;  %668 = vst.msk [vmem:[%s7614_s14 + $0x8a] sm:$0x3] %vm526_vm0, %v7237_v32 }
  0x7a   : > { %669 = vst.msk [vmem:[%s7614_s14 + $0x8c] sm:$0x3] %vm526_vm0, %v7237_v32  ;;  %670 = vst.msk [vmem:[%s7614_s14 + $0x8e] sm:$0x3] %vm526_vm0, %v7237_v32  ;;  %v1309_v32 = vpack.c.bf16 (%p7388_p13), %v5793_v30, %v5793_v30  ;;  %v5953_v30 = vld [vmem:[%s7840_s20 + $0x78] sm:$0xf] (%p7388_p13) }
  0x7b   : > { %6681 = vmatpush3.bf16.msra.mxu1 %v7120_v38  ;;  %v7151_v38 = vld [vmem:[%s7621_s18 + $0x208] sm:$0xff]  }
  0x7c   : > { %6659 = vmatmul.mubr.msk.bf16.vlgmr.msra.gmra.mrb[28].mxu0 %vm737_vm2, %v1309_v32  ;;  %6694 = vmatprep.subr.bf16.mxu1 %v7238_v34  ;;  %v5954_v32 = vld [vmem:[%s7840_s20 + $0x7c] sm:$0xf] }
  0x7d   : > { %6671 = vmatpush3.bf16.msra.mxu0 %v7117_v33  ;;  %6674 = vmatprep.mubr.msk.bf16.mxu0 %vm7239_vm1, %v7238_v34  ;;  %v2549_v33 = vpack.c.bf16 %v5953_v30, %v5953_v30  ;;  %v7179_v30 = vld [vmem:[%s7621_s18 + $0x2e8] sm:$0xff]  }
  0x7e   : > { %6672 = vmatprep.subr.bf16.mxu0 %v7238_v34  ;;  %6683 = vmatmul.mubr.msk.bf16.vlgmr.msra.gmra.mrb[32].mxu1 %vm737_vm2, %v1924_v43  ;;  %v3163_v43 = vpack.c.bf16 %v6027_v39, %v6027_v39  ;;  %v7183_v39 = vld [vmem:[%s7621_s18 + $0x308] sm:$0xff]  }
  0x7f   : > { %6695 = vmatpush3.bf16.msra.mxu1 %v7122_v44  ;;  %6698 = vmatprep.mubr.msk.bf16.mxu1 %vm7239_vm1, %v7238_v34 }
  0x80   : > { %6696 = vmatprep.subr.bf16.mxu1 %v7238_v34 }
  0x81   : > { %6673 = vmatpush3.bf16.msra.mxu0 %v7119_v37  ;;  %v2550_v37 = vpack.c.bf16 %v5954_v32, %v5954_v32  ;;  %v7180_v32 = vld [vmem:[%s7621_s18 + $0x2f8] sm:$0xff]  }
  0x82   : > { %6686 = vmatprep.subr.bf16.mxu0 %v7238_v34 }
  0x83   : > { %6697 = vmatpush3.bf16.msra.mxu1 %v7124_v46  ;;  %v7155_v46 = vld [vmem:[%s7621_s18 + $0x228] sm:$0xff]  }
  0x84   : > { %6675 = vmatmul.mubr.msk.bf16.vlgmr.msra.gmra.mrb[32].mxu0 %vm737_vm2, %v1923_v41  ;;  %6710 = vmatprep.subr.bf16.mxu1 %v7238_v34  ;;  %v6028_v41 = vld [vmem:[%s7840_s20 + $0x84] sm:$0xf] }
  0x85   : > { %6687 = vmatpush3.bf16.msra.mxu0 %v7121_v42  ;;  %6690 = vmatprep.mubr.msk.bf16.mxu0 %vm7239_vm1, %v7238_v34  ;;  %v7153_v42 = vld [vmem:[%s7621_s18 + $0x220] sm:$0xff]   ;;  %v3164_v44 = vpack.c.bf16 %v6028_v41, %v6028_v41  ;;  %v7184_v41 = vld [vmem:[%s7621_s18 + $0x318] sm:$0xff]  }
  0x86   : > { %6688 = vmatprep.subr.bf16.mxu0 %v7238_v34  ;;  %6699 = vmatmul.mubr.msk.bf16.vlgmr.msra.gmra.mrb[36].mxu1 %vm737_vm2, %v1926_v51 }
  0x87   : > { %6711 = vmatpush3.bf16.msra.mxu1 %v7126_v52  ;;  %6714 = vmatprep.mubr.msk.bf16.mxu1 %vm7239_vm1, %v7238_v34  ;;  %v7157_v52 = vld [vmem:[%s7621_s18 + $0x240] sm:$0xff]  }
  0x88   : > { %6712 = vmatprep.subr.bf16.mxu1 %v7238_v34 }
  0x89   : > { %6689 = vmatpush3.bf16.msra.mxu0 %v7123_v45  ;;  %v7154_v45 = vld [vmem:[%s7621_s18 + $0x230] sm:$0xff]  }
  0x8a   : > { %6702 = vmatprep.subr.bf16.mxu0 %v7238_v34 }
  0x8b   : > { %6713 = vmatpush3.bf16.msra.mxu1 %v7128_v55  ;;  %v6031_v55 = vld [vmem:[%s7840_s20 + $0x90] sm:$0xf] }
  0x8c   : > { %6691 = vmatmul.mubr.msk.bf16.vlgmr.msra.gmra.mrb[36].mxu0 %vm737_vm2, %v1925_v49  ;;  %6726 = vmatprep.subr.bf16.mxu1 %v7238_v34  ;;  %v6030_v49 = vld [vmem:[%s7840_s20 + $0x8c] sm:$0xf] }
  0x8d   : > { %6703 = vmatpush3.bf16.msra.mxu0 %v7125_v50  ;;  %6706 = vmatprep.mubr.msk.bf16.mxu0 %vm7239_vm1, %v7238_v34  ;;  %v3165_v50 = vpack.c.bf16 %v6029_v47, %v6029_v47  ;;  %v3166_v51 = vpack.c.bf16 %v6030_v49, %v6030_v49  ;;  %v7187_v47 = vld [vmem:[%s7621_s18 + $0x328] sm:$0xff]   ;;  %v7188_v49 = vld [vmem:[%s7621_s18 + $0x338] sm:$0xff]  }
  0x8e   : > { %6704 = vmatprep.subr.bf16.mxu0 %v7238_v34  ;;  %6715 = vmatmul.mubr.msk.bf16.vlgmr.msra.gmra.mrb[40].mxu1 %vm737_vm2, %v1928_v59 }
  0x8f   : > { %6727 = vmatpush3.bf16.msra.mxu1 %v7130_v60  ;;  %6730 = vmatprep.mubr.msk.bf16.mxu1 %vm7239_vm1, %v7238_v34  ;;  %v7161_v60 = vld [vmem:[%s7621_s18 + $0x260] sm:$0xff]  }
  0x90   : > { %6728 = vmatprep.subr.bf16.mxu1 %v7238_v34 }
  0x91   : > { %6705 = vmatpush3.bf16.msra.mxu0 %v7127_v53  ;;  %v7158_v53 = vld [vmem:[%s7621_s18 + $0x250] sm:$0xff]  }
  0x92   : > { %6718 = vmatprep.subr.bf16.mxu0 %v7238_v34 }
  0x93   : > { %6729 = vmatpush3.bf16.msra.mxu1 %v7132_v62  ;;  %v7163_v62 = vld [vmem:[%s7621_s18 + $0x268] sm:$0xff]  }
  0x94   : > { %6707 = vmatmul.mubr.msk.bf16.vlgmr.msra.gmra.mrb[40].mxu0 %vm737_vm2, %v1927_v57  ;;  %6742 = vmatprep.subr.bf16.mxu1 %v7238_v34  ;;  %v6032_v57 = vld [vmem:[%s7840_s20 + $0x94] sm:$0xf] }
  0x95   : > { %6719 = vmatpush3.bf16.msra.mxu0 %v7129_v58  ;;  %6722 = vmatprep.mubr.msk.bf16.mxu0 %vm7239_vm1, %v7238_v34  ;;  %v3167_v58 = vpack.c.bf16 %v6031_v55, %v6031_v55  ;;  %v3168_v59 = vpack.c.bf16 %v6032_v57, %v6032_v57  ;;  %v7191_v55 = vld [vmem:[%s7621_s18 + $0x348] sm:$0xff]   ;;  %v7192_v57 = vld [vmem:[%s7621_s18 + $0x358] sm:$0xff]  }
  0x96   : > { %6720 = vmatprep.subr.bf16.mxu0 %v7238_v34  ;;  %6731 = vmatmul.mubr.msk.bf16.vlgmr.msra.gmra.mrb[44].mxu1 %vm737_vm2, %v1930_v3 }
  0x97   : > { %6743 = vmatpush3.bf16.msra.mxu1 %v7134_v4  ;;  %6746 = vmatprep.mubr.msk.bf16.mxu1 %vm7239_vm1, %v7238_v34  ;;  %v7165_v4 = vld [vmem:[%s7621_s18 + $0x280] sm:$0xff]  }
  0x98   : > { %6744 = vmatprep.subr.bf16.mxu1 %v7238_v34 }
  0x99   : > { %6721 = vmatpush3.bf16.msra.mxu0 %v7131_v61  ;;  %v7162_v61 = vld [vmem:[%s7621_s18 + $0x270] sm:$0xff]  }
  0x9a   : > { %6734 = vmatprep.subr.bf16.mxu0 %v7238_v34 }
  0x9b   : > { %6745 = vmatpush3.bf16.msra.mxu1 %v7136_v6  ;;  %v7167_v6 = vld [vmem:[%s7621_s18 + $0x288] sm:$0xff]  }
  0x9c   : > { %6723 = vmatmul.mubr.msk.bf16.vlgmr.msra.gmra.mrb[44].mxu0 %vm737_vm2, %v1929_v1  ;;  %6758 = vmatprep.subr.bf16.mxu1 %v7238_v34  ;;  %v6034_v1 = vld [vmem:[%s7840_s20 + $0x9c] sm:$0xf] }
  0x9d   : > { %6735 = vmatpush3.bf16.msra.mxu0 %v7133_v2  ;;  %6738 = vmatprep.mubr.msk.bf16.mxu0 %vm7239_vm1, %v7238_v34  ;;  %v3169_v2 = vpack.c.bf16 %v6033_v63, %v6033_v63  ;;  %v3170_v3 = vpack.c.bf16 %v6034_v1, %v6034_v1  ;;  %v7195_v63 = vld [vmem:[%s7621_s18 + $0x368] sm:$0xff]   ;;  %v7196_v1 = vld [vmem:[%s7621_s18 + $0x378] sm:$0xff]  }
  0x9e   : > { %6736 = vmatprep.subr.bf16.mxu0 %v7238_v34  ;;  %6747 = vmatmul.mubr.msk.bf16.vlgmr.msra.gmra.mrb[48].mxu1 %vm737_vm2, %v2544_v11 }
  0x9f   : > { %6759 = vmatpush3.bf16.msra.mxu1 %v7138_v12  ;;  %6762 = vmatprep.mubr.msk.bf16.mxu1 %vm7239_vm1, %v7238_v34  ;;  %v7169_v12 = vld [vmem:[%s7621_s18 + $0x2a0] sm:$0xff]  }
  0xa0   : > { %6760 = vmatprep.subr.bf16.mxu1 %v7238_v34 }
  0xa1   : > { %6737 = vmatpush3.bf16.msra.mxu0 %v7135_v5  ;;  %v7166_v5 = vld [vmem:[%s7621_s18 + $0x290] sm:$0xff]  }
  0xa2   : > { %6750 = vmatprep.subr.bf16.mxu0 %v7238_v34 }
  0xa3   : > { %6761 = vmatpush3.bf16.msra.mxu1 %v7140_v14  ;;  %v7171_v14 = vld [vmem:[%s7621_s18 + $0x2a8] sm:$0xff]  }
  0xa4   : > { %6739 = vmatmul.mubr.msk.bf16.vlgmr.msra.gmra.mrb[48].mxu0 %vm737_vm2, %v2543_v9  ;;  %6774 = vmatprep.subr.bf16.mxu1 %v7238_v34  ;;  %v6108_v9 = vld [vmem:[%s7840_s20 + $0xa4] sm:$0xf] }
  0xa5   : > { %6751 = vmatpush3.bf16.msra.mxu0 %v7137_v10  ;;  %6754 = vmatprep.mubr.msk.bf16.mxu0 %vm7239_vm1, %v7238_v34  ;;  %v3783_v10 = vpack.c.bf16 %v6107_v7, %v6107_v7  ;;  %v3784_v11 = vpack.c.bf16 %v6108_v9, %v6108_v9 }
  0xa6   : > { %6752 = vmatprep.subr.bf16.mxu0 %v7238_v34  ;;  %6763 = vmatmul.mubr.msk.bf16.vlgmr.msra.gmra.mrb[52].mxu1 %vm737_vm2, %v2546_v19 }
  0xa7   : > { %6775 = vmatpush3.bf16.msra.mxu1 %v7142_v20  ;;  %6778 = vmatprep.mubr.msk.bf16.mxu1 %vm7239_vm1, %v7238_v34  ;;  %v7173_v20 = vld [vmem:[%s7621_s18 + $0x2c0] sm:$0xff]  }
  0xa8   : > { %6776 = vmatprep.subr.bf16.mxu1 %v7238_v34 }
  0xa9   : > { %6753 = vmatpush3.bf16.msra.mxu0 %v7139_v13  ;;  %v7170_v13 = vld [vmem:[%s7621_s18 + $0x2b0] sm:$0xff]  }
  0xaa   : > { %6766 = vmatprep.subr.bf16.mxu0 %v7238_v34 }
  0xab   : > { %6777 = vmatpush3.bf16.msra.mxu1 %v7144_v22  ;;  %v7175_v22 = vld [vmem:[%s7621_s18 + $0x2c8] sm:$0xff]  }
  0xac   : > { %6755 = vmatmul.mubr.msk.bf16.vlgmr.msra.gmra.mrb[52].mxu0 %vm737_vm2, %v2545_v17  ;;  %6790 = vmatprep.subr.bf16.mxu1 %v7238_v34  ;;  %v6110_v17 = vld [vmem:[%s7840_s20 + $0xac] sm:$0xf] }
  0xad   : > { %6767 = vmatpush3.bf16.msra.mxu0 %v7141_v18  ;;  %6770 = vmatprep.mubr.msk.bf16.mxu0 %vm7239_vm1, %v7238_v34  ;;  %v3785_v18 = vpack.c.bf16 %v6109_v15, %v6109_v15  ;;  %v3786_v19 = vpack.c.bf16 %v6110_v17, %v6110_v17  ;;  %v7198_v15 = vld [vmem:[%s7621_s18 + $0x390] sm:$0xff]   ;;  %v7199_v17 = vld [vmem:[%s7621_s18 + $0x388] sm:$0xff]  }
  0xae   : > { %6768 = vmatprep.subr.bf16.mxu0 %v7238_v34  ;;  %6779 = vmatmul.mubr.msk.bf16.vlgmr.msra.gmra.mrb[56].mxu1 %vm737_vm2, %v2548_v27 }
  0xaf   : > { %6791 = vmatpush3.bf16.msra.mxu1 %v7146_v28  ;;  %6794 = vmatprep.mubr.msk.bf16.mxu1 %vm7239_vm1, %v7238_v34  ;;  %v7177_v28 = vld [vmem:[%s7621_s18 + $0x2e0] sm:$0xff]  }
  0xb0   : > { %6792 = vmatprep.subr.bf16.mxu1 %v7238_v34 }
  0xb1   : > { %6769 = vmatpush3.bf16.msra.mxu0 %v7143_v21  ;;  %v7174_v21 = vld [vmem:[%s7621_s18 + $0x2d0] sm:$0xff]  }
  0xb2   : > { %6782 = vmatprep.subr.bf16.mxu0 %v7238_v34 }
  0xb3   : > { %6793 = vmatpush3.bf16.msra.mxu1 %v7148_v31  ;;  %v6113_v31 = vld [vmem:[%s7840_s20 + $0xb8] sm:$0xf] }
  0xb4   : > { %6771 = vmatmul.mubr.msk.bf16.vlgmr.msra.gmra.mrb[56].mxu0 %vm737_vm2, %v2547_v26  ;;  %6806 = vmatprep.subr.bf16.mxu1 %v7238_v34  ;;  %v3787_v26 = vpack.c.bf16 %v6111_v23, %v6111_v23 }
  0xb5   : > { %6783 = vmatpush3.bf16.msra.mxu0 %v7145_v25  ;;  %6786 = vmatprep.mubr.msk.bf16.mxu0 %vm7239_vm1, %v7238_v34  ;;  %v6112_v25 = vld [vmem:[%s7840_s20 + $0xb4] sm:$0xf] }
  0xb6   : > { %6784 = vmatprep.subr.bf16.mxu0 %v7238_v34  ;;  %6795 = vmatmul.mubr.msk.bf16.vlgmr.msra.gmra.mrb[60].mxu1 %vm737_vm2, %v2550_v37  ;;  %v3788_v27 = vpack.c.bf16 %v6112_v25, %v6112_v25  ;;  %v7181_v37 = vld [vmem:[%s7621_s18 + $0x300] sm:$0xff]  }
  0xb7   : > { %6807 = vmatpush3.bf16.msra.mxu1 %v7150_v36  ;;  %6810 = vmatprep.mubr.msk.bf16.mxu1 %vm7239_vm1, %v7238_v34  ;;  %v6268_v25 = vld [vmem:[%s7840_s20 + $0xe4] sm:$0xf] }
  0xb8   : > { %6808 = vmatprep.subr.bf16.mxu1 %v7238_v34 }
  0xb9   : > { %6785 = vmatpush3.bf16.msra.mxu0 %v7147_v29  ;;  %v7178_v29 = vld [vmem:[%s7621_s18 + $0x2f0] sm:$0xff]  }
  0xba   : > { %6798 = vmatprep.subr.bf16.mxu0 %v7238_v34 }
  0xbb   : > { %6809 = vmatpush3.bf16.msra.mxu1 %v7152_v40  ;;  %v6187_v40 = vld [vmem:[%s7840_s20 + $0xc0] sm:$0xf] }
  0xbc   : > { %6787 = vmatmul.mubr.msk.bf16.vlgmr.msra.gmra.mrb[60].mxu0 %vm737_vm2, %v2549_v33  ;;  %6822 = vmatprep.subr.bf16.mxu1 %v7238_v34  ;;  %v6114_v33 = vld [vmem:[%s7840_s20 + $0xbc] sm:$0xf] }
  0xbd   : > { %6799 = vmatpush3.bf16.msra.mxu0 %v7149_v35  ;;  %6802 = vmatprep.mubr.msk.bf16.mxu0 %vm7239_vm1, %v7238_v34  ;;  %v3789_v35 = vpack.c.bf16 %v6113_v31, %v6113_v31  ;;  %v3790_v36 = vpack.c.bf16 %v6114_v33, %v6114_v33  ;;  %v5024_v33 = vpack.c.bf16 %v6268_v25, %v6268_v25 }
  0xbe   : > { %6800 = vmatprep.subr.bf16.mxu0 %v7238_v34  ;;  %6811 = vmatmul.mubr.msk.bf16.vlgmr.msra.gmra.mrb[64].mxu1 %vm737_vm2, %v3164_v44 }
  0xbf   : > { %6823 = vmatpush3.bf16.msra.mxu1 %v7154_v45  ;;  %6826 = vmatprep.mubr.msk.bf16.mxu1 %vm7239_vm1, %v7238_v34  ;;  %v7185_v45 = vld [vmem:[%s7621_s18 + $0x320] sm:$0xff]  }
  0xc0   : > { %6824 = vmatprep.subr.bf16.mxu1 %v7238_v34 }
  0xc1   : > { %6801 = vmatpush3.bf16.msra.mxu0 %v7151_v38  ;;  %v7182_v38 = vld [vmem:[%s7621_s18 + $0x310] sm:$0xff]  }
  0xc2   : > { %6814 = vmatprep.subr.bf16.mxu0 %v7238_v34 }
  0xc3   : > { %6825 = vmatpush3.bf16.msra.mxu1 %v7156_v48  ;;  %v6189_v48 = vld [vmem:[%s7840_s20 + $0xc8] sm:$0xf] }
  0xc4   : > { %6803 = vmatmul.mubr.msk.bf16.vlgmr.msra.gmra.mrb[64].mxu0 %vm737_vm2, %v3163_v43  ;;  %6838 = vmatprep.subr.bf16.mxu1 %v7238_v34  ;;  %v4403_v43 = vpack.c.bf16 %v6187_v40, %v6187_v40 }
  0xc5   : > { %6815 = vmatpush3.bf16.msra.mxu0 %v7153_v42  ;;  %6818 = vmatprep.mubr.msk.bf16.mxu0 %vm7239_vm1, %v7238_v34  ;;  %v6188_v42 = vld [vmem:[%s7840_s20 + $0xc4] sm:$0xf] }
  0xc6   : > { %6816 = vmatprep.subr.bf16.mxu0 %v7238_v34  ;;  %6827 = vmatmul.mubr.msk.bf16.vlgmr.msra.gmra.mrb[68].mxu1 %vm737_vm2, %v3166_v51  ;;  %v4404_v44 = vpack.c.bf16 %v6188_v42, %v6188_v42  ;;  %v4405_v51 = vpack.c.bf16 %v6189_v48, %v6189_v48  ;;  %v7204_v42 = vld [vmem:[%s7621_s18 + $0x3b8] sm:$0xff]  }
  0xc7   : > { %6839 = vmatpush3.bf16.msra.mxu1 %v7158_v53  ;;  %6842 = vmatprep.mubr.msk.bf16.mxu1 %vm7239_vm1, %v7238_v34  ;;  %v7189_v53 = vld [vmem:[%s7621_s18 + $0x340] sm:$0xff]  }
  0xc8   : > { %6840 = vmatprep.subr.bf16.mxu1 %v7238_v34 }
  0xc9   : > { %6817 = vmatpush3.bf16.msra.mxu0 %v7155_v46  ;;  %v7186_v46 = vld [vmem:[%s7621_s18 + $0x330] sm:$0xff]  }
  0xca   : > { %6830 = vmatprep.subr.bf16.mxu0 %v7238_v34 }
  0xcb   : > { %6841 = vmatpush3.bf16.msra.mxu1 %v7160_v56  ;;  %v6191_v56 = vld [vmem:[%s7840_s20 + $0xd0] sm:$0xf] }
  0xcc   : > { %6819 = vmatmul.mubr.msk.bf16.vlgmr.msra.gmra.mrb[68].mxu0 %vm737_vm2, %v3165_v50  ;;  %6854 = vmatprep.subr.bf16.mxu1 %v7238_v34  ;;  %v6190_v50 = vld [vmem:[%s7840_s20 + $0xcc] sm:$0xf] }
  0xcd   : > { %6831 = vmatpush3.bf16.msra.mxu0 %v7157_v52  ;;  %6834 = vmatprep.mubr.msk.bf16.mxu0 %vm7239_vm1, %v7238_v34  ;;  %v4406_v52 = vpack.c.bf16 %v6190_v50, %v6190_v50 }
  0xce   : > { %6832 = vmatprep.subr.bf16.mxu0 %v7238_v34  ;;  %6843 = vmatmul.mubr.msk.bf16.vlgmr.msra.gmra.mrb[72].mxu1 %vm737_vm2, %v3168_v59  ;;  %v4407_v59 = vpack.c.bf16 %v6191_v56, %v6191_v56 }
  0xcf   : > { %6855 = vmatpush3.bf16.msra.mxu1 %v7162_v61  ;;  %6858 = vmatprep.mubr.msk.bf16.mxu1 %vm7239_vm1, %v7238_v34  ;;  %v7193_v61 = vld [vmem:[%s7621_s18 + $0x360] sm:$0xff]  }
  0xd0   : > { %6856 = vmatprep.subr.bf16.mxu1 %v7238_v34 }
  0xd1   : > { %6833 = vmatpush3.bf16.msra.mxu0 %v7159_v54  ;;  %v7190_v54 = vld [vmem:[%s7621_s18 + $0x350] sm:$0xff]  }
  0xd2   : > { %6846 = vmatprep.subr.bf16.mxu0 %v7238_v34 }
  0xd3   : > { %6857 = vmatpush3.bf16.msra.mxu1 %v7164_v0  ;;  %v6193_v0 = vld [vmem:[%s7840_s20 + $0xd8] sm:$0xf] }
  0xd4   : > { %6835 = vmatmul.mubr.msk.bf16.vlgmr.msra.gmra.mrb[72].mxu0 %vm737_vm2, %v3167_v58  ;;  %6870 = vmatprep.subr.bf16.mxu1 %v7238_v34  ;;  %v6192_v58 = vld [vmem:[%s7840_s20 + $0xd4] sm:$0xf]  ;;  %v4409_v7 = vpack.c.bf16 %v6193_v0, %v6193_v0 }
  0xd5   : > { %6847 = vmatpush3.bf16.msra.mxu0 %v7161_v60  ;;  %6850 = vmatprep.mubr.msk.bf16.mxu0 %vm7239_vm1, %v7238_v34  ;;  %v4408_v60 = vpack.c.bf16 %v6192_v58, %v6192_v58 }
  0xd6   : > { %6848 = vmatprep.subr.bf16.mxu0 %v7238_v34  ;;  %6859 = vmatmul.mubr.msk.bf16.vlgmr.msra.gmra.mrb[76].mxu1 %vm737_vm2, %v3170_v3 }
  0xd7   : > { %6871 = vmatpush3.bf16.msra.mxu1 %v7166_v5  ;;  %6874 = vmatprep.mubr.msk.bf16.mxu1 %vm7239_vm1, %v7238_v34 }
  0xd8   : > { %6872 = vmatprep.subr.bf16.mxu1 %v7238_v34 }
  0xd9   : > { %6849 = vmatpush3.bf16.msra.mxu0 %v7163_v62  ;;  %v7194_v62 = vld [vmem:[%s7621_s18 + $0x370] sm:$0xff]  }
  0xda   : > { %6862 = vmatprep.subr.bf16.mxu0 %v7238_v34 }
  0xdb   : > { %6873 = vmatpush3.bf16.msra.mxu1 %v7168_v8 }
  0xdc   : > { %6851 = vmatmul.mubr.msk.bf16.vlgmr.msra.gmra.mrb[76].mxu0 %vm737_vm2, %v3169_v2  ;;  %6886 = vmatprep.subr.bf16.mxu1 %v7238_v34  ;;  %v6194_v2 = vld [vmem:[%s7840_s20 + $0xdc] sm:$0xf] }
  0xdd   : > { %6863 = vmatpush3.bf16.msra.mxu0 %v7165_v4  ;;  %6866 = vmatprep.mubr.msk.bf16.mxu0 %vm7239_vm1, %v7238_v34 }
  0xde   : > { %6864 = vmatprep.subr.bf16.mxu0 %v7238_v34  ;;  %6875 = vmatmul.mubr.msk.bf16.vlgmr.msra.gmra.mrb[80].mxu1 %vm737_vm2, %v3784_v11  ;;  %v4410_v11 = vpack.c.bf16 %v6194_v2, %v6194_v2 }
  0xdf   : > { %6887 = vmatpush3.bf16.msra.mxu1 %v7170_v13  ;;  %6890 = vmatprep.mubr.msk.bf16.mxu1 %vm7239_vm1, %v7238_v34 }
  0xe0   : > { %6888 = vmatprep.subr.bf16.mxu1 %v7238_v34 }
  0xe1   : > { %6865 = vmatpush3.bf16.msra.mxu0 %v7167_v6 }
  0xe2   : > { %6878 = vmatprep.subr.bf16.mxu0 %v7238_v34 }
  0xe3   : > { %6889 = vmatpush3.bf16.msra.mxu1 %v7172_v16 }
  0xe4   : > { %6867 = vmatmul.mubr.msk.bf16.vlgmr.msra.gmra.mrb[80].mxu0 %vm737_vm2, %v3783_v10  ;;  %6902 = vmatprep.subr.bf16.mxu1 %v7238_v34 }
  0xe5   : > { %6879 = vmatpush3.bf16.msra.mxu0 %v7169_v12  ;;  %6882 = vmatprep.mubr.msk.bf16.mxu0 %vm7239_vm1, %v7238_v34  ;;  %v7197_v12 = vld [vmem:[%s7621_s18 + $0x380] sm:$0xff]  }
  0xe6   : > { %6880 = vmatprep.subr.bf16.mxu0 %v7238_v34  ;;  %6891 = vmatmul.mubr.msk.bf16.vlgmr.msra.gmra.mrb[84].mxu1 %vm737_vm2, %v3786_v19 }
  0xe7   : > { %6903 = vmatpush3.bf16.msra.mxu1 %v7174_v21  ;;  %6906 = vmatprep.mubr.msk.bf16.mxu1 %vm7239_vm1, %v7238_v34 }
  0xe8   : > { %6904 = vmatprep.subr.bf16.mxu1 %v7238_v34 }
  0xe9   : > { %6881 = vmatpush3.bf16.msra.mxu0 %v7171_v14 }
  0xea   : > { %6894 = vmatprep.subr.bf16.mxu0 %v7238_v34 }
  0xeb   : > { %6905 = vmatpush3.bf16.msra.mxu1 %v7176_v24 }
  0xec   : > { %6883 = vmatmul.mubr.msk.bf16.vlgmr.msra.gmra.mrb[84].mxu0 %vm737_vm2, %v3785_v18  ;;  %6918 = vmatprep.subr.bf16.mxu1 %v7238_v34  ;;  %v6267_v18 = vld [vmem:[%s7840_s20 + $0xe0] sm:$0xf] }
  0xed   : > { %6895 = vmatpush3.bf16.msra.mxu0 %v7173_v20  ;;  %6898 = vmatprep.mubr.msk.bf16.mxu0 %vm7239_vm1, %v7238_v34  ;;  %v7200_v20 = vld [vmem:[%s7621_s18 + $0x398] sm:$0xff]   ;;  %v5023_v24 = vpack.c.bf16 %v6267_v18, %v6267_v18 }
  0xee   : > { %6896 = vmatprep.subr.bf16.mxu0 %v7238_v34  ;;  %6907 = vmatmul.mubr.msk.bf16.vlgmr.msra.gmra.mrb[88].mxu1 %vm737_vm2, %v3788_v27  ;;  %v6274_v18 = vld [vmem:[%s7840_s20 + $0xfc] sm:$0xf] }
  0xef   : > { %6919 = vmatpush3.bf16.msra.mxu1 %v7178_v29  ;;  %6922 = vmatprep.mubr.msk.bf16.mxu1 %vm7239_vm1, %v7238_v34 }
  0xf0   : > { %6920 = vmatprep.subr.bf16.mxu1 %v7238_v34 }
  0xf1   : > { %6897 = vmatpush3.bf16.msra.mxu0 %v7175_v22 }
  0xf2   : > { %6910 = vmatprep.subr.bf16.mxu0 %v7238_v34 }
  0xf3   : > { %6921 = vmatpush3.bf16.msra.mxu1 %v7180_v32 }
  0xf4   : > { %6899 = vmatmul.mubr.msk.bf16.vlgmr.msra.gmra.mrb[88].mxu0 %vm737_vm2, %v3787_v26  ;;  %6934 = vmatprep.subr.bf16.mxu1 %v7238_v34 }
  0xf5   : > { %6911 = vmatpush3.bf16.msra.mxu0 %v7177_v28  ;;  %6914 = vmatprep.mubr.msk.bf16.mxu0 %vm7239_vm1, %v7238_v34  ;;  %v7201_v28 = vld [vmem:[%s7621_s18 + $0x3a0] sm:$0xff]  }
  0xf6   : > { %6912 = vmatprep.subr.bf16.mxu0 %v7238_v34  ;;  %6923 = vmatmul.mubr.msk.bf16.vlgmr.msra.gmra.mrb[92].mxu1 %vm737_vm2, %v3790_v36  ;;  %v7203_v36 = vld [vmem:[%s7621_s18 + $0x3a8] sm:$0xff]  }
  0xf7   : > { %6935 = vmatpush3.bf16.msra.mxu1 %v7182_v38  ;;  %6938 = vmatprep.mubr.msk.bf16.mxu1 %vm7239_vm1, %v7238_v34 }
  0xf8   : > { %6936 = vmatprep.subr.bf16.mxu1 %v7238_v34 }
  0xf9   : > { %6913 = vmatpush3.bf16.msra.mxu0 %v7179_v30 }
  0xfa   : > { %6926 = vmatprep.subr.bf16.mxu0 %v7238_v34 }
  0xfb   : > { %6937 = vmatpush3.bf16.msra.mxu1 %v7184_v41 }
  0xfc   : > { %6915 = vmatmul.mubr.msk.bf16.vlgmr.msra.gmra.mrb[92].mxu0 %vm737_vm2, %v3789_v35  ;;  %6950 = vmatprep.subr.bf16.mxu1 %v7238_v34  ;;  %v7202_v35 = vld [vmem:[%s7621_s18 + $0x3b0] sm:$0xff]  }
  0xfd   : > { %6927 = vmatpush3.bf16.msra.mxu0 %v7181_v37  ;;  %6930 = vmatprep.mubr.msk.bf16.mxu0 %vm7239_vm1, %v7238_v34  ;;  %v6269_v37 = vld [vmem:[%s7840_s20 + $0xe8] sm:$0xf] }
  0xfe   : > { %6928 = vmatprep.subr.bf16.mxu0 %v7238_v34  ;;  %6939 = vmatmul.mubr.msk.bf16.vlgmr.msra.gmra.mrb[96].mxu1 %vm737_vm2, %v4404_v44  ;;  %v6270_v44 = vld [vmem:[%s7840_s20 + $0xec] sm:$0xf] }
  0xff   : > { %6951 = vmatpush3.bf16.msra.mxu1 %v7186_v46  ;;  %6954 = vmatprep.mubr.msk.bf16.mxu1 %vm7239_vm1, %v7238_v34 }
 0x100   : > { %6952 = vmatprep.subr.bf16.mxu1 %v7238_v34 }
 0x101   : > { %6929 = vmatpush3.bf16.msra.mxu0 %v7183_v39 }
 0x102   : > { %6942 = vmatprep.subr.bf16.mxu0 %v7238_v34 }
 0x103   : > { %6953 = vmatpush3.bf16.msra.mxu1 %v7188_v49 }
 0x104   : > { %6931 = vmatmul.mubr.msk.bf16.vlgmr.msra.gmra.mrb[96].mxu0 %vm737_vm2, %v4403_v43  ;;  %6966 = vmatprep.subr.bf16.mxu1 %v7238_v34  ;;  %v5025_v43 = vpack.c.bf16 %v6269_v37, %v6269_v37 }
 0x105   : > { %6943 = vmatpush3.bf16.msra.mxu0 %v7185_v45  ;;  %6946 = vmatprep.mubr.msk.bf16.mxu0 %vm7239_vm1, %v7238_v34 }
 0x106   : > { %6944 = vmatprep.subr.bf16.mxu0 %v7238_v34  ;;  %6955 = vmatmul.mubr.msk.bf16.vlgmr.msra.gmra.mrb[100].mxu1 %vm737_vm2, %v4406_v52  ;;  %v5026_v52 = vpack.c.bf16 %v6270_v44, %v6270_v44 }
 0x107   : > { %6967 = vmatpush3.bf16.msra.mxu1 %v7190_v54  ;;  %6970 = vmatprep.mubr.msk.bf16.mxu1 %vm7239_vm1, %v7238_v34  ;;  %v7207_v54 = vld [vmem:[%s7621_s18 + $0x3c8] sm:$0xff]  }
 0x108   : > { %6968 = vmatprep.subr.bf16.mxu1 %v7238_v34 }
 0x109   : > { %6945 = vmatpush3.bf16.msra.mxu0 %v7187_v47  ;;  %v7205_v47 = vld [vmem:[%s7621_s18 + $0x3c0] sm:$0xff]  }
 0x10a   : > { %6958 = vmatprep.subr.bf16.mxu0 %v7238_v34 }
 0x10b   : > { %6969 = vmatpush3.bf16.msra.mxu1 %v7192_v57 }
 0x10c   : > { %6947 = vmatmul.mubr.msk.bf16.vlgmr.msra.gmra.mrb[100].mxu0 %vm737_vm2, %v4405_v51  ;;  %6982 = vmatprep.subr.bf16.mxu1 %v7238_v34 }
 0x10d   : > { %6959 = vmatpush3.bf16.msra.mxu0 %v7189_v53  ;;  %6962 = vmatprep.mubr.msk.bf16.mxu0 %vm7239_vm1, %v7238_v34  ;;  %v7206_v53 = vld [vmem:[%s7621_s18 + $0x3d0] sm:$0xff]  }
 0x10e   : > { %6960 = vmatprep.subr.bf16.mxu0 %v7238_v34  ;;  %6971 = vmatmul.mubr.msk.bf16.vlgmr.msra.gmra.mrb[104].mxu1 %vm737_vm2, %v4408_v60  ;;  %v7208_v60 = vld [vmem:[%s7621_s18 + $0x3d8] sm:$0xff]  }
 0x10f   : > { %6983 = vmatpush3.bf16.msra.mxu1 %v7194_v62  ;;  %6986 = vmatprep.mubr.msk.bf16.mxu1 %vm7239_vm1, %v7238_v34  ;;  %v6272_v62 = vld [vmem:[%s7840_s20 + $0xf4] sm:$0xf] }
 0x110   : > { %6984 = vmatprep.subr.bf16.mxu1 %v7238_v34 }
 0x111   : > { %6961 = vmatpush3.bf16.msra.mxu0 %v7191_v55  ;;  %v8285_v3 = vpop.f32.mrb[0].mxu0  ;;  %v8290_v4 = vpop.f32.mrb[0].mxu1  ;;  %v6271_v55 = vld [vmem:[%s7840_s20 + $0xf0] sm:$0xf] }
 0x112   : > { %6974 = vmatprep.subr.bf16.mxu0 %v7238_v34  ;;  %v6548_v5 = vpop.f32.mrb[1].mxu0  ;;  %v1174_v6 = vrot.slane %v8285_v3, 2  ;;  %v6556_v9 = vpop.f32.mrb[1].mxu1  ;;  %v1175_v10 = vrot.slane %v8290_v4, 2 }
 0x113   : > { %v778_v8 = vpop.f32.mrb[2].mxu0  ;;  %v833_v13 = vpop.f32.mrb[2].mxu1  ;;  %6985 = vmatpush3.bf16.msra.mxu1 %v7196_v1  ;;  %v7209_v1 = vld [vmem:[%s7621_s18 + $0x3e0] sm:$0xff]   ;;  %v7210_v9 = vld [vmem:[%s7621_s18 + $0x3f0] sm:$0xff]  }
 0x114   : > { %6963 = vmatmul.mubr.msk.bf16.vlgmr.msra.gmra.mrb[104].mxu0 %vm737_vm2, %v4407_v59  ;;  %1182 = vrot.lane.b32.xlu0 %v1174_v6, %s7240_s21  ;;  %v6549_v14 = vpop.f32.mrb[3].mxu0  ;;  %v6557_v16 = vpop.f32.mrb[3].mxu1  ;;  %v5028_v8 = vpack.c.bf16 %v6272_v62, %v6272_v62 }
 0x115   : > { %6975 = vmatpush3.bf16.msra.mxu0 %v7193_v61  ;;  %6978 = vmatprep.mubr.msk.bf16.mxu0 %vm7239_vm1, %v7238_v34  ;;  %v5027_v61 = vpack.c.bf16 %v6271_v55, %v6271_v55  ;;  %v7212_v16 = vld [vmem:[%s7621_s18 + $0x3f8] sm:$0xff]  }
 0x116   : > { %6976 = vmatprep.subr.bf16.mxu0 %v7238_v34  ;;  %1216 = vrot.lane.b32.xlu1 %v1175_v10, %s7241_s22 }
 0x117   : > { %6998 = vmatprep.subr.bf16.mxu1 %v7238_v34  ;;  %6987 = vmatmul.mubr.msk.bf16.vlgmr.msra.gmra.mrb[108].mxu1 %vm737_vm2, %v4410_v11  ;;  %v6273_v11 = vld [vmem:[%s7840_s20 + $0xf8] sm:$0xf] }
 0x118   : > { %1184 = vrot.lane.b32.xlu0 %v1175_v10, %s7240_s21  ;;  %6999 = vmatpush3.bf16.msra.mxu1 %v7198_v15  ;;  %v7211_v10 = vld [vmem:[%s7621_s18 + $0x3e8] sm:$0xff]  }
 0x119   : > { %6977 = vmatpush3.bf16.msra.mxu0 %v7195_v63  ;;  %v8307_v19 = vpop.f32.mrb[4].mxu0  ;;  %7000 = vmatprep.subr.bf16.mxu1 %v7238_v34  ;;  %v8313_v23 = vpop.f32.mrb[4].mxu1 }
 0x11a   : > { %6990 = vmatprep.subr.bf16.mxu0 %v7238_v34  ;;  %v1176_v21 = vrot.slane %v8307_v19, 2  ;;  %v6564_v22 = vpop.f32.mrb[5].mxu0  ;;  %7002 = vmatprep.mubr.msk.bf16.mxu1 %vm7239_vm1, %v7238_v34  ;;  %v6572_v27 = vpop.f32.mrb[5].mxu1  ;;  %v1177_v29 = vrot.slane %v8313_v23, 2 }
 0x11b   : > { %v888_v26 = vpop.f32.mrb[6].mxu0  ;;  %v943_v31 = vpop.f32.mrb[6].mxu1  ;;  %v5030_v27 = vpack.c.bf16 %v6274_v18, %v6274_v18 }
 0x11c   : > { %6979 = vmatmul.mubr.msk.bf16.vlgmr.msra.gmra.mrb[108].mxu0 %vm737_vm2, %v4409_v7  ;;  %1214 = vrot.lane.b32.xlu0 %v1174_v6, %s7241_s22  ;;  %v6565_v30 = vpop.f32.mrb[7].mxu0  ;;  %v6573_v32 = vpop.f32.mrb[7].mxu1 }
 0x11d   : > { %6991 = vmatpush3.bf16.msra.mxu0 %v7197_v12  ;;  %6994 = vmatprep.mubr.msk.bf16.mxu0 %vm7239_vm1, %v7238_v34 }
 0x11e   : > { %6992 = vmatprep.subr.bf16.mxu0 %v7238_v34  ;;  %1186 = vrot.lane.b32.xlu1 %v1176_v21, %s7240_s21 }
 0x11f   : > { %7001 = vmatpush3.bf16.msra.mxu1 %v7200_v20 }
 0x120   : > { %7014 = vmatprep.subr.bf16.mxu1 %v7238_v34  ;;  %1218 = vrot.lane.b32.xlu0 %v1176_v21, %s7241_s22 }
 0x121   : > { %6993 = vmatpush3.bf16.msra.mxu0 %v7199_v17  ;;  %v8334_v38 = vpop.f32.mrb[8].mxu0  ;;  %v8339_v40 = vpop.f32.mrb[8].mxu1  ;;  %v5029_v17 = vpack.c.bf16 %v6273_v11, %v6273_v11 }
 0x122   : > { %7006 = vmatprep.subr.bf16.mxu0 %v7238_v34  ;;  %1188 = vrot.lane.b32.xlu1 %v1177_v29, %s7240_s21  ;;  %v1178_v39 = vrot.slane %v8334_v38, 2  ;;  %v6580_v41 = vpop.f32.mrb[9].mxu0  ;;  %v6588_v45 = vpop.f32.mrb[9].mxu1  ;;  %v1179_v48 = vrot.slane %v8339_v40, 2 }
 0x123   : > { %7003 = vmatmul.mubr.msk.bf16.vlgmr.msra.gmra.mrb[112].mxu1 %vm737_vm2, %v5024_v33  ;;  %v998_v46 = vpop.f32.mrb[10].mxu0  ;;  %v1053_v49 = vpop.f32.mrb[10].mxu1 }
 0x124   : > { %6995 = vmatmul.mubr.msk.bf16.vlgmr.msra.gmra.mrb[112].mxu0 %vm737_vm2, %v5023_v24  ;;  %7015 = vmatpush3.bf16.msra.mxu1 %v7202_v35  ;;  %v6581_v50 = vpop.f32.mrb[11].mxu0  ;;  %v6589_v51 = vpop.f32.mrb[11].mxu1 }
 0x125   : > { %7007 = vmatpush3.bf16.msra.mxu0 %v7201_v28  ;;  %7010 = vmatprep.mubr.msk.bf16.mxu0 %vm7239_vm1, %v7238_v34 }
 0x126   : > { %7008 = vmatprep.subr.bf16.mxu0 %v7238_v34  ;;  %7018 = vmatprep.mubr.msk.bf16.mxu1 %vm7239_vm1, %v7238_v34 }
 0x127   : > { %7016 = vmatprep.subr.bf16.mxu1 %v7238_v34  ;;  %1220 = vrot.lane.b32.xlu1 %v1177_v29, %s7241_s22 }
 0x128   : > { %1190 = vrot.lane.b32.xlu0 %v1178_v39, %s7240_s21  ;;  %7017 = vmatpush3.bf16.msra.mxu1 %v7204_v42 }
 0x129   : > { %7009 = vmatpush3.bf16.msra.mxu0 %v7203_v36  ;;  %7030 = vmatprep.subr.bf16.mxu1 %v7238_v34  ;;  %v8358_v56 = vpop.f32.mrb[12].mxu0  ;;  %v8363_v58 = vpop.f32.mrb[12].mxu1 }
 0x12a   : > { %7022 = vmatprep.subr.bf16.mxu0 %v7238_v34  ;;  %v1180_v57 = vrot.slane %v8358_v56, 2  ;;  %v6596_v59 = vpop.f32.mrb[13].mxu0  ;;  %v6604_v63 = vpop.f32.mrb[13].mxu1  ;;  %v1181_v2 = vrot.slane %v8363_v58, 2 }
 0x12b   : > { %1192 = vrot.lane.b32.xlu1 %v1179_v48, %s7240_s21  ;;  %7019 = vmatmul.mubr.msk.bf16.vlgmr.msra.gmra.mrb[116].mxu1 %vm737_vm2, %v5026_v52  ;;  %v1108_v0 = vpop.f32.mrb[14].mxu0  ;;  %v1163_v5 = vpop.f32.mrb[14].mxu1 }
 0x12c   : > { %7011 = vmatmul.mubr.msk.bf16.vlgmr.msra.gmra.mrb[116].mxu0 %vm737_vm2, %v5025_v43  ;;  %1222 = vrot.lane.b32.xlu0 %v1178_v39, %s7241_s22  ;;  %v6597_v6 = vpop.f32.mrb[15].mxu0  ;;  %v6605_v7 = vpop.f32.mrb[15].mxu1 }
 0x12d   : > { %7023 = vmatpush3.bf16.msra.mxu0 %v7205_v47  ;;  %7031 = vmatpush3.bf16.msra.mxu1 %v7206_v53 }
 0x12e   : > { %7024 = vmatprep.subr.bf16.mxu0 %v7238_v34  ;;  %7026 = vmatprep.mubr.msk.bf16.mxu0 %vm7239_vm1, %v7238_v34 }
 0x12f   : > { %7032 = vmatprep.subr.bf16.mxu1 %v7238_v34  ;;  %1224 = vrot.lane.b32.xlu1 %v1179_v48, %s7241_s22 }
 0x130   : > { %1194 = vrot.lane.b32.xlu0 %v1180_v57, %s7240_s21  ;;  %7034 = vmatprep.mubr.msk.bf16.mxu1 %vm7239_vm1, %v7238_v34 }
 0x131   : > { %7025 = vmatpush3.bf16.msra.mxu0 %v7207_v54  ;;  %7033 = vmatpush3.bf16.msra.mxu1 %v7208_v60  ;;  %v8384_v12 = vpop.f32.mrb[16].mxu0  ;;  %v8389_v14 = vpop.f32.mrb[16].mxu1 }
 0x132   : > { %7038 = vmatprep.subr.bf16.mxu0 %v7238_v34  ;;  %7046 = vmatprep.subr.bf16.mxu1 %v7238_v34  ;;  %v1792_v13 = vrot.slane %v8384_v12, 2  ;;  %v6612_v15 = vpop.f32.mrb[17].mxu0  ;;  %v6620_v20 = vpop.f32.mrb[17].mxu1  ;;  %v1793_v22 = vrot.slane %v8389_v14, 2 }
 0x133   : > { %1196 = vrot.lane.b32.xlu1 %v1181_v2, %s7240_s21  ;;  %v1396_v21 = vpop.f32.mrb[18].mxu0  ;;  %v1451_v24 = vpop.f32.mrb[18].mxu1 }
 0x134   : > { %7027 = vmatmul.mubr.msk.bf16.vlgmr.msra.gmra.mrb[120].mxu0 %vm737_vm2, %v5027_v61  ;;  %1226 = vrot.lane.b32.xlu0 %v1180_v57, %s7241_s22  ;;  %v6613_v25 = vpop.f32.mrb[19].mxu0  ;;  %v6621_v26 = vpop.f32.mrb[19].mxu1 }
 0x135   : > { %7039 = vmatpush3.bf16.msra.mxu0 %v7209_v1  ;;  %7035 = vmatmul.mubr.msk.bf16.vlgmr.msra.gmra.mrb[120].mxu1 %vm737_vm2, %v5028_v8 }
 0x136   : > { %7040 = vmatprep.subr.bf16.mxu0 %v7238_v34  ;;  %7047 = vmatpush3.bf16.msra.mxu1 %v7210_v9 }
 0x137   : > { %7042 = vmatprep.mubr.msk.bf16.mxu0 %vm7239_vm1, %v7238_v34  ;;  %7048 = vmatprep.subr.bf16.mxu1 %v7238_v34 }
 0x138   : > { %1228 = vrot.lane.b32.xlu1 %v1181_v2, %s7241_s22  ;;  %1800 = vrot.lane.b32.xlu0 %v1792_v13, %s7240_s21 }
 0x139   : > { %7041 = vmatpush3.bf16.msra.mxu0 %v7211_v10  ;;  %7050 = vmatprep.mubr.msk.bf16.mxu1 %vm7239_vm1, %v7238_v34  ;;  %v8404_v28 = vpop.f32.mrb[20].mxu0  ;;  %v8408_v30 = vpop.f32.mrb[20].mxu1 }
 0x13a   : > { %7049 = vmatpush3.bf16.msra.mxu1 %v7212_v16  ;;  %v1794_v29 = vrot.slane %v8404_v28, 2  ;;  %v6628_v31 = vpop.f32.mrb[21].mxu0  ;;  %v6636_v32 = vpop.f32.mrb[21].mxu1  ;;  %v1795_v34 = vrot.slane %v8408_v30, 2 }
 0x13b   : > { %v1506_v33 = vpop.f32.mrb[22].mxu0  ;;  %v1561_v35 = vpop.f32.mrb[22].mxu1 }
 0x13c   : > { %7043 = vmatmul.mubr.msk.bf16.vlgmr.msra.gmra.mrb[124].mxu0 %vm737_vm2, %v5029_v17  ;;  %1802 = vrot.lane.b32.xlu1 %v1793_v22, %s7240_s21  ;;  %v6629_v36 = vpop.f32.mrb[23].mxu0  ;;  %v6637_v37 = vpop.f32.mrb[23].mxu1 }
 0x13d   : > { %1832 = vrot.lane.b32.xlu0 %v1792_v13, %s7241_s22  ;;  %7051 = vmatmul.mubr.msk.bf16.vlgmr.msra.gmra.mrb[124].mxu1 %vm737_vm2, %v5030_v27 }
 0x140   : > { %1834 = vrot.lane.b32.xlu1 %v1793_v22, %s7241_s22 }
 0x141   : > { %1804 = vrot.lane.b32.xlu0 %v1794_v29, %s7240_s21  ;;  %v8415_v39 = vpop.f32.mrb[24].mxu0  ;;  %v8418_v42 = vpop.f32.mrb[24].mxu1 }
 0x142   : > { %v1796_v41 = vrot.slane %v8415_v39, 2  ;;  %v6644_v43 = vpop.f32.mrb[25].mxu0  ;;  %v6652_v44 = vpop.f32.mrb[25].mxu1  ;;  %v1797_v46 = vrot.slane %v8418_v42, 2 }
 0x143   : > { %v1616_v45 = vpop.f32.mrb[26].mxu0  ;;  %v1671_v47 = vpop.f32.mrb[26].mxu1 }
 0x144   : > { %1806 = vrot.lane.b32.xlu1 %v1795_v34, %s7240_s21  ;;  %v6645_v48 = vpop.f32.mrb[27].mxu0  ;;  %v6653_v49 = vpop.f32.mrb[27].mxu1 }
 0x145   : > { %1836 = vrot.lane.b32.xlu0 %v1794_v29, %s7241_s22 }
 0x148   : > { %1838 = vrot.lane.b32.xlu1 %v1795_v34, %s7241_s22 }
 0x149   : > { %1808 = vrot.lane.b32.xlu0 %v1796_v41, %s7240_s21  ;;  %v8428_v52 = vpop.f32.mrb[28].mxu1 }
 0x14a   : > { %v6668_v54 = vpop.f32.mrb[29].mxu1  ;;  %v1799_v57 = vrot.slane %v8428_v52, 2 }
 0x14b   : > { %v1781_v59 = vpop.f32.mrb[30].mxu1 }
 0x14c   : > { %1810 = vrot.lane.b32.xlu1 %v1797_v46, %s7240_s21  ;;  %v6669_v61 = vpop.f32.mrb[31].mxu1 }
 0x14d   : > { %1840 = vrot.lane.b32.xlu0 %v1796_v41, %s7241_s22 }
 0x14f   : > { %v8425_v50 = vpop.f32.mrb[28].mxu0 }
 0x150   : > { %v1798_v51 = vrot.slane %v8425_v50, 2  ;;  %v6660_v53 = vpop.f32.mrb[29].mxu0  ;;  %1842 = vrot.lane.b32.xlu1 %v1797_v46, %s7241_s22 }
 0x151   : > { %v1726_v55 = vpop.f32.mrb[30].mxu0  ;;  %v8438_v0 = vpop.f32.mrb[32].mxu1 }
 0x152   : > { %1812 = vrot.lane.b32.xlu0 %v1798_v51, %s7240_s21  ;;  %v6661_v60 = vpop.f32.mrb[31].mxu0  ;;  %v6684_v2 = vpop.f32.mrb[33].mxu1  ;;  %v2413_v6 = vrot.slane %v8438_v0, 2 }
 0x153   : > { %v2071_v7 = vpop.f32.mrb[34].mxu1 }
 0x154   : > { %1814 = vrot.lane.b32.xlu1 %v1799_v57, %s7240_s21  ;;  %v6685_v9 = vpop.f32.mrb[35].mxu1 }
 0x156   : > { %1844 = vrot.lane.b32.xlu0 %v1798_v51, %s7241_s22 }
 0x157   : > { %v8435_v62 = vpop.f32.mrb[32].mxu0 }
 0x158   : > { %v2412_v63 = vrot.slane %v8435_v62, 2  ;;  %v6676_v1 = vpop.f32.mrb[33].mxu0  ;;  %1846 = vrot.lane.b32.xlu1 %v1799_v57, %s7241_s22 }
 0x159   : > { %v2016_v5 = vpop.f32.mrb[34].mxu0  ;;  %v8448_v13 = vpop.f32.mrb[36].mxu1 }
 0x15a   : > { %2420 = vrot.lane.b32.xlu0 %v2412_v63, %s7240_s21  ;;  %v6677_v8 = vpop.f32.mrb[35].mxu0  ;;  %v6700_v16 = vpop.f32.mrb[37].mxu1  ;;  %v2415_v18 = vrot.slane %v8448_v13, 2 }
 0x15b   : > { %v2181_v20 = vpop.f32.mrb[38].mxu1 }
 0x15c   : > { %2422 = vrot.lane.b32.xlu1 %v2413_v6, %s7240_s21  ;;  %v6701_v22 = vpop.f32.mrb[39].mxu1 }
 0x15e   : > { %2452 = vrot.lane.b32.xlu0 %v2412_v63, %s7241_s22 }
 0x15f   : > { %v8445_v10 = vpop.f32.mrb[36].mxu0 }
 0x160   : > { %v2414_v11 = vrot.slane %v8445_v10, 2  ;;  %v6692_v15 = vpop.f32.mrb[37].mxu0  ;;  %2454 = vrot.lane.b32.xlu1 %v2413_v6, %s7241_s22 }
 0x161   : > { %v2126_v17 = vpop.f32.mrb[38].mxu0  ;;  %v8458_v26 = vpop.f32.mrb[40].mxu1 }
 0x162   : > { %2424 = vrot.lane.b32.xlu0 %v2414_v11, %s7240_s21  ;;  %v6693_v21 = vpop.f32.mrb[39].mxu0  ;;  %v6716_v29 = vpop.f32.mrb[41].mxu1  ;;  %v2417_v32 = vrot.slane %v8458_v26, 2 }
 0x163   : > { %v2291_v33 = vpop.f32.mrb[42].mxu1 }
 0x164   : > { %2426 = vrot.lane.b32.xlu1 %v2415_v18, %s7240_s21  ;;  %v6717_v35 = vpop.f32.mrb[43].mxu1 }
 0x166   : > { %2456 = vrot.lane.b32.xlu0 %v2414_v11, %s7241_s22 }
 0x167   : > { %v8455_v24 = vpop.f32.mrb[40].mxu0 }
 0x168   : > { %v2416_v25 = vrot.slane %v8455_v24, 2  ;;  %v6708_v27 = vpop.f32.mrb[41].mxu0  ;;  %2458 = vrot.lane.b32.xlu1 %v2415_v18, %s7241_s22 }
 0x169   : > { %v2236_v31 = vpop.f32.mrb[42].mxu0  ;;  %v8468_v41 = vpop.f32.mrb[44].mxu1 }
 0x16a   : > { %2428 = vrot.lane.b32.xlu0 %v2416_v25, %s7240_s21  ;;  %v6709_v34 = vpop.f32.mrb[43].mxu0  ;;  %v6732_v44 = vpop.f32.mrb[45].mxu1  ;;  %v2419_v46 = vrot.slane %v8468_v41, 2 }
 0x16b   : > { %v2401_v47 = vpop.f32.mrb[46].mxu1 }
 0x16c   : > { %2430 = vrot.lane.b32.xlu1 %v2417_v32, %s7240_s21  ;;  %v6733_v49 = vpop.f32.mrb[47].mxu1 }
 0x16e   : > { %2460 = vrot.lane.b32.xlu0 %v2416_v25, %s7241_s22 }
 0x16f   : > { %v8465_v36 = vpop.f32.mrb[44].mxu0 }
 0x170   : > { %v2418_v37 = vrot.slane %v8465_v36, 2  ;;  %v6724_v43 = vpop.f32.mrb[45].mxu0  ;;  %2462 = vrot.lane.b32.xlu1 %v2417_v32, %s7241_s22 }
 0x171   : > { %v2346_v45 = vpop.f32.mrb[46].mxu0  ;;  %v8478_v54 = vpop.f32.mrb[48].mxu1 }
 0x172   : > { %2432 = vrot.lane.b32.xlu0 %v2418_v37, %s7240_s21  ;;  %v6725_v48 = vpop.f32.mrb[47].mxu0  ;;  %v6748_v57 = vpop.f32.mrb[49].mxu1  ;;  %v3033_v60 = vrot.slane %v8478_v54, 2 }
 0x173   : > { %v2691_v61 = vpop.f32.mrb[50].mxu1 }
 0x174   : > { %2434 = vrot.lane.b32.xlu1 %v2419_v46, %s7240_s21  ;;  %v6749_v1 = vpop.f32.mrb[51].mxu1 }
 0x176   : > { %2464 = vrot.lane.b32.xlu0 %v2418_v37, %s7241_s22 }
 0x177   : > { %v8475_v51 = vpop.f32.mrb[48].mxu0 }
 0x178   : > { %v3032_v53 = vrot.slane %v8475_v51, 2  ;;  %v6740_v55 = vpop.f32.mrb[49].mxu0  ;;  %2466 = vrot.lane.b32.xlu1 %v2419_v46, %s7241_s22 }
 0x179   : > { %v2636_v59 = vpop.f32.mrb[50].mxu0  ;;  %v8488_v6 = vpop.f32.mrb[52].mxu1 }
 0x17a   : > { %3040 = vrot.lane.b32.xlu0 %v3032_v53, %s7240_s21  ;;  %v6741_v63 = vpop.f32.mrb[51].mxu0  ;;  %v6764_v8 = vpop.f32.mrb[53].mxu1  ;;  %v3035_v11 = vrot.slane %v8488_v6, 2 }
 0x17b   : > { %v2801_v15 = vpop.f32.mrb[54].mxu1 }
 0x17c   : > { %3042 = vrot.lane.b32.xlu1 %v3033_v60, %s7240_s21  ;;  %v6765_v17 = vpop.f32.mrb[55].mxu1 }
 0x17e   : > { %3072 = vrot.lane.b32.xlu0 %v3032_v53, %s7241_s22 }
 0x17f   : > { %v8485_v2 = vpop.f32.mrb[52].mxu0 }
 0x180   : > { %v3034_v5 = vrot.slane %v8485_v2, 2  ;;  %v6756_v7 = vpop.f32.mrb[53].mxu0  ;;  %3074 = vrot.lane.b32.xlu1 %v3033_v60, %s7241_s22 }
 0x181   : > { %v2746_v9 = vpop.f32.mrb[54].mxu0  ;;  %v8498_v21 = vpop.f32.mrb[56].mxu1 }
 0x182   : > { %3044 = vrot.lane.b32.xlu0 %v3034_v5, %s7240_s21  ;;  %v6757_v16 = vpop.f32.mrb[55].mxu0  ;;  %v6780_v25 = vpop.f32.mrb[57].mxu1  ;;  %v3037_v29 = vrot.slane %v8498_v21, 2 }
 0x183   : > { %v2911_v31 = vpop.f32.mrb[58].mxu1 }
 0x184   : > { %3046 = vrot.lane.b32.xlu1 %v3035_v11, %s7240_s21  ;;  %v6781_v33 = vpop.f32.mrb[59].mxu1 }
 0x186   : > { %3076 = vrot.lane.b32.xlu0 %v3034_v5, %s7241_s22  ;;  %v1183_v34 = vpop.permute.xlu0 %1182 }
 0x187   : > { %v8495_v18 = vpop.f32.mrb[56].mxu0  ;;  %v1206_v35 = vsub.f32 %v8285_v3, %v1183_v34 }
 0x188   : > { %v3036_v20 = vrot.slane %v8495_v18, 2  ;;  %v6772_v22 = vpop.f32.mrb[57].mxu0  ;;  %3078 = vrot.lane.b32.xlu1 %v3035_v11, %s7241_s22  ;;  %v1217_v37 = vpop.permute.xlu1 %1216 }
 0x189   : > { %v2856_v27 = vpop.f32.mrb[58].mxu0  ;;  %1246 = vst.msk [vmem:[%s7386_s8] sm:$0x3] %vm526_vm0, %v1206_v35  ;;  %v8510_v45 = vpop.f32.mrb[60].mxu1  ;;  %v1239_v59 = vadd.f32 %v1217_v37, %v8290_v4 }
 0x18a   : > { %3048 = vrot.lane.b32.xlu0 %v3036_v20, %s7240_s21  ;;  %v6773_v32 = vpop.f32.mrb[59].mxu0  ;;  %v1185_v44 = vpop.permute.xlu0 %1184  ;;  %v3039_v5 = vrot.slane %v8510_v45, 2 }
 0x18b   : > { %v1207_v46 = vsub.f32 %v8290_v4, %v1185_v44  ;;  %v6796_v47 = vpop.f32.mrb[61].mxu1 }
 0x18c   : > { %3050 = vrot.lane.b32.xlu1 %v3037_v29, %s7240_s21  ;;  %v3021_v49 = vpop.f32.mrb[62].mxu1 }
 0x18d   : > { %1247 = vst.msk [vmem:[%s7386_s8 + $0x2] sm:$0x3] %vm526_vm0, %v1207_v46  ;;  %v6797_v55 = vpop.f32.mrb[63].mxu1 }
 0x18e   : > { %3080 = vrot.lane.b32.xlu0 %v3036_v20, %s7241_s22  ;;  %v1215_v60 = vpop.permute.xlu0 %1214 }
 0x18f   : > { %v8508_v43 = vpop.f32.mrb[60].mxu0  ;;  %v1238_v63 = vadd.f32 %v1215_v60, %v8285_v3 }
 0x190   : > { %v6788_v48 = vpop.f32.mrb[61].mxu0  ;;  %3082 = vrot.lane.b32.xlu1 %v3037_v29, %s7241_s22  ;;  %v1187_v61 = vpop.permute.xlu1 %1186  ;;  %v3038_v7 = vrot.slane %v8508_v43, 2 }
 0x191   : > { %v2966_v53 = vpop.f32.mrb[62].mxu0  ;;  %v1208_v1 = vsub.f32 %v8307_v19, %v1187_v61  ;;  %v8528_v11 = vpop.f32.mrb[64].mxu1 }
 0x192   : > { %v6789_v57 = vpop.f32.mrb[63].mxu0  ;;  %1262 = vrot.lane.b32.xlu0 %v1238_v63, %s7240_s21  ;;  %v1219_v4 = vpop.permute.xlu0 %1218  ;;  %v3653_v48 = vrot.slane %v8528_v11, 2 }
 0x193   : > { %1248 = vst.msk [vmem:[%s7386_s8 + $0x4] sm:$0x3] %vm526_vm0, %v1208_v1  ;;  %v6812_v16 = vpop.f32.mrb[65].mxu1  ;;  %v1240_v37 = vadd.f32 %v1219_v4, %v8307_v19 }
 0x194   : > { %1264 = vrot.lane.b32.xlu1 %v1239_v59, %s7240_s21  ;;  %v1189_v9 = vpop.permute.xlu1 %1188  ;;  %v3311_v20 = vpop.f32.mrb[66].mxu1 }
 0x195   : > { %v1209_v3 = vsub.f32 %v8313_v23, %v1189_v9  ;;  %v6813_v31 = vpop.f32.mrb[67].mxu1 }
 0x196   : > { %3052 = vrot.lane.b32.xlu0 %v3038_v7, %s7240_s21 }
 0x197   : > { %v8525_v8 = vpop.f32.mrb[64].mxu0  ;;  %1249 = vst.msk [vmem:[%s7386_s8 + $0x6] sm:$0x3] %vm526_vm0, %v1209_v3 }
 0x198   : > { %v6804_v15 = vpop.f32.mrb[65].mxu0  ;;  %3054 = vrot.lane.b32.xlu1 %v3039_v5, %s7240_s21 }
 0x199   : > { %v3256_v17 = vpop.f32.mrb[66].mxu0  ;;  %v1221_v25 = vpop.permute.xlu1 %1220 }
 0x19a   : > { %v6805_v22 = vpop.f32.mrb[67].mxu0  ;;  %v1191_v27 = vpop.permute.xlu0 %1190  ;;  %3084 = vrot.lane.b32.xlu0 %v3038_v7, %s7241_s22  ;;  %v1241_v33 = vadd.f32 %v1221_v25, %v8313_v23  ;;  %v3652_v23 = vrot.slane %v8525_v8, 2 }
 0x19b   : > { %v1210_v29 = vsub.f32 %v8334_v38, %v1191_v27  ;;  %v8544_v46 = vpop.f32.mrb[68].mxu1 }
 0x19c   : > { %3086 = vrot.lane.b32.xlu1 %v3039_v5, %s7241_s22  ;;  %v6828_v49 = vpop.f32.mrb[69].mxu1 }
 0x19d   : > { %1250 = vst.msk [vmem:[%s7386_s8 + $0x8] sm:$0x3] %vm526_vm0, %v1210_v29  ;;  %v1193_v34 = vpop.permute.xlu1 %1192  ;;  %v3421_v55 = vpop.f32.mrb[70].mxu1 }
 0x19e   : > { %v1223_v35 = vpop.permute.xlu0 %1222  ;;  %v1211_v44 = vsub.f32 %v8339_v40, %v1193_v34  ;;  %1266 = vrot.lane.b32.xlu0 %v1240_v37, %s7240_s21  ;;  %v6829_v61 = vpop.f32.mrb[71].mxu1 }
 0x19f   : > { %v8539_v32 = vpop.f32.mrb[68].mxu0  ;;  %v1242_v27 = vadd.f32 %v1223_v35, %v8334_v38 }
 0x1a0   : > { %v6820_v47 = vpop.f32.mrb[69].mxu0  ;;  %1268 = vrot.lane.b32.xlu1 %v1241_v33, %s7240_s21  ;;  %1251 = vst.msk [vmem:[%s7386_s8 + $0xa] sm:$0x3] %vm526_vm0, %v1211_v44  ;;  %v3655_v33 = vrot.slane %v8544_v46, 2  ;;  %v3654_v34 = vrot.slane %v8539_v32, 2 }
 0x1a1   : > { %v3366_v53 = vpop.f32.mrb[70].mxu0  ;;  %v1225_v57 = vpop.permute.xlu1 %1224 }
 0x1a2   : > { %v6821_v19 = vpop.f32.mrb[71].mxu0  ;;  %v1195_v59 = vpop.permute.xlu0 %1194  ;;  %3660 = vrot.lane.b32.xlu0 %v3652_v23, %s7240_s21  ;;  %v1243_v20 = vadd.f32 %v1225_v57, %v8339_v40 }
 0x1a3   : > { %v1212_v60 = vsub.f32 %v8358_v56, %v1195_v59  ;;  %v8560_v4 = vpop.f32.mrb[72].mxu1 }
 0x1a4   : > { %3662 = vrot.lane.b32.xlu1 %v3653_v48, %s7240_s21  ;;  %v6844_v3 = vpop.f32.mrb[73].mxu1 }
 0x1a5   : > { %1252 = vst.msk [vmem:[%s7386_s8 + $0xc] sm:$0x3] %vm526_vm0, %v1212_v60  ;;  %v1197_v1 = vpop.permute.xlu1 %1196  ;;  %v3531_v16 = vpop.f32.mrb[74].mxu1 }
 0x1a6   : > { %v1227_v5 = vpop.permute.xlu0 %1226  ;;  %v1213_v7 = vsub.f32 %v8363_v58, %v1197_v1  ;;  %3692 = vrot.lane.b32.xlu0 %v3652_v23, %s7241_s22  ;;  %v6845_v31 = vpop.f32.mrb[75].mxu1 }
 0x1a7   : > { %v8557_v63 = vpop.f32.mrb[72].mxu0 }
 0x1a8   : > { %v6836_v9 = vpop.f32.mrb[73].mxu0  ;;  %3694 = vrot.lane.b32.xlu1 %v3653_v48, %s7241_s22  ;;  %1253 = vst.msk [vmem:[%s7386_s8 + $0xe] sm:$0x3] %vm526_vm0, %v1213_v7 }
 0x1a9   : > { %v3476_v15 = vpop.f32.mrb[74].mxu0  ;;  %v8578_v35 = vpop.f32.mrb[76].mxu1  ;;  %v1244_v9 = vadd.f32 %v1227_v5, %v8358_v56 }
 0x1aa   : > { %v6837_v17 = vpop.f32.mrb[75].mxu0  ;;  %v1229_v22 = vpop.permute.xlu1 %1228  ;;  %1270 = vrot.lane.b32.xlu0 %v1242_v27, %s7240_s21 }
 0x1ab   : > { %v1801_v25 = vpop.permute.xlu0 %1800  ;;  %v6860_v48 = vpop.f32.mrb[77].mxu1  ;;  %v1245_v61 = vadd.f32 %v1229_v22, %v8363_v58  ;;  %v3657_v17 = vrot.slane %v8560_v4, 2  ;;  %v3656_v58 = vrot.slane %v8557_v63, 2 }
 0x1ac   : > { %v1824_v29 = vsub.f32 %v8384_v12, %v1801_v25  ;;  %1272 = vrot.lane.b32.xlu1 %v1243_v20, %s7240_s21  ;;  %v3641_v53 = vpop.f32.mrb[78].mxu1 }
 0x1ad   : > { %v6861_v59 = vpop.f32.mrb[79].mxu1 }
 0x1ae   : > { %5851 = vst.msk [vmem:[%s7386_s8 + $0x12] sm:$0x3] %vm526_vm0, %v1824_v29  ;;  %v1803_v40 = vpop.permute.xlu1 %1802  ;;  %3664 = vrot.lane.b32.xlu0 %v3654_v34, %s7240_s21 }
 0x1af   : > { %v8575_v37 = vpop.f32.mrb[76].mxu0  ;;  %v1833_v44 = vpop.permute.xlu0 %1832  ;;  %v1825_v38 = vsub.f32 %v8389_v14, %v1803_v40 }
 0x1b0   : > { %v6852_v47 = vpop.f32.mrb[77].mxu0  ;;  %3666 = vrot.lane.b32.xlu1 %v3655_v33, %s7240_s21 }
 0x1b1   : > { %v3586_v49 = vpop.f32.mrb[78].mxu0  ;;  %5852 = vst.msk [vmem:[%s7386_s8 + $0x14] sm:$0x3] %vm526_vm0, %v1825_v38  ;;  %v8596_v15 = vpop.f32.mrb[80].mxu1 }
 0x1b2   : > { %v6853_v23 = vpop.f32.mrb[79].mxu0  ;;  %v1835_v55 = vpop.permute.xlu1 %1834  ;;  %3696 = vrot.lane.b32.xlu0 %v3654_v34, %s7241_s22 }
 0x1b3   : > { %v1805_v19 = vpop.permute.xlu0 %1804  ;;  %v6876_v20 = vpop.f32.mrb[81].mxu1 }
 0x1b4   : > { %v1826_v57 = vsub.f32 %v8404_v28, %v1805_v19  ;;  %3698 = vrot.lane.b32.xlu1 %v3655_v33, %s7241_s22  ;;  %v3931_v22 = vpop.f32.mrb[82].mxu1 }
 0x1b5   : > { %v6877_v31 = vpop.f32.mrb[83].mxu1 }
 0x1b6   : > { %5853 = vst.msk [vmem:[%s7386_s8 + $0x16] sm:$0x3] %vm526_vm0, %v1826_v57  ;;  %v1807_v1 = vpop.permute.xlu1 %1806  ;;  %1274 = vrot.lane.b32.xlu0 %v1244_v9, %s7240_s21  ;;  %v1857_v57 = vadd.f32 %v1835_v55, %v8389_v14 }
 0x1b7   : > { %v8589_v60 = vpop.f32.mrb[80].mxu0  ;;  %v8592_v7 = vpop.permute.xlu0 %1836  ;;  %v1827_v3 = vsub.f32 %v8408_v30, %v1807_v1  ;;  %v1856_v1 = vadd.f32 %v1833_v44, %v8384_v12 }
 0x1b8   : > { %v6868_v16 = vpop.f32.mrb[81].mxu0  ;;  %1276 = vrot.lane.b32.xlu1 %v1245_v61, %s7240_s21 }
 0x1b9   : > { %v3876_v25 = vpop.f32.mrb[82].mxu0  ;;  %5854 = vst.msk [vmem:[%s7386_s8 + $0x18] sm:$0x3] %vm526_vm0, %v1827_v3  ;;  %v8614_v47 = vpop.f32.mrb[84].mxu1  ;;  %v3659_v16 = vrot.slane %v8578_v35, 2 }
 0x1ba   : > { %v6869_v56 = vpop.f32.mrb[83].mxu0  ;;  %v1839_v5 = vpop.permute.xlu1 %1838  ;;  %3668 = vrot.lane.b32.xlu0 %v3656_v58, %s7240_s21 }
 0x1bb   : > { %v1809_v27 = vpop.permute.xlu0 %1808  ;;  %v6892_v49 = vpop.f32.mrb[85].mxu1 }
 0x1bc   : > { %v1828_v29 = vsub.f32 %v8415_v39, %v1809_v27  ;;  %3670 = vrot.lane.b32.xlu1 %v3657_v17, %s7240_s21  ;;  %v4041_v23 = vpop.f32.mrb[86].mxu1  ;;  %v1859_v49 = vadd.f32 %v1839_v5, %v8408_v30  ;;  %v4272_v30 = vrot.slane %v8589_v60, 2 }
 0x1bd   : > { %v6893_v3 = vpop.f32.mrb[87].mxu1 }
 0x1be   : > { %5855 = vst.msk [vmem:[%s7386_s8 + $0x1a] sm:$0x3] %vm526_vm0, %v1828_v29  ;;  %v1811_v34 = vpop.permute.xlu1 %1810  ;;  %3700 = vrot.lane.b32.xlu0 %v3656_v58, %s7241_s22 }
 0x1bf   : > { %v8609_v33 = vpop.f32.mrb[84].mxu0  ;;  %v8611_v40 = vpop.permute.xlu0 %1840  ;;  %v1829_v38 = vsub.f32 %v8418_v42, %v1811_v34 }
 0x1c0   : > { %v6884_v48 = vpop.f32.mrb[85].mxu0  ;;  %3702 = vrot.lane.b32.xlu1 %v3657_v17, %s7241_s22  ;;  %v3658_v17 = vrot.slane %v8575_v37, 2 }
 0x1c1   : > { %v3986_v53 = vpop.f32.mrb[86].mxu0  ;;  %5856 = vst.msk [vmem:[%s7386_s8 + $0x1c] sm:$0x3] %vm526_vm0, %v1829_v38  ;;  %v8636_v44 = vpop.f32.mrb[88].mxu1 }
 0x1c2   : > { %v6885_v19 = vpop.f32.mrb[87].mxu0  ;;  %v8621_v59 = vpop.permute.xlu1 %1842  ;;  %1881 = vrot.lane.b32.xlu0 %v1856_v1, %s7240_s21 }
 0x1c3   : > { %v6908_v58 = vpop.f32.mrb[89].mxu1  ;;  %v1858_v19 = vadd.f32 %v8592_v7, %v8404_v28 }
 0x1c4   : > { %v1813_v61 = vpop.permute.xlu0 %1812  ;;  %1883 = vrot.lane.b32.xlu1 %v1857_v57, %s7240_s21  ;;  %v4151_v56 = vpop.f32.mrb[90].mxu1 }
 0x1c5   : > { %v1830_v9 = vsub.f32 %v8425_v50, %v1813_v61  ;;  %v6909_v38 = vpop.f32.mrb[91].mxu1 }
 0x1c6   : > { %v1815_v55 = vpop.permute.xlu1 %1814  ;;  %3672 = vrot.lane.b32.xlu0 %v3658_v17, %s7240_s21 }
 0x1c7   : > { %5857 = vst.msk [vmem:[%s7386_s8 + $0x1e] sm:$0x3] %vm526_vm0, %v1830_v9  ;;  %v8631_v14 = vpop.f32.mrb[88].mxu0  ;;  %v1831_v12 = vsub.f32 %v8428_v52, %v1815_v55  ;;  %v4273_v9 = vrot.slane %v8596_v15, 2 }
 0x1c8   : > { %v8633_v20 = vpop.permute.xlu0 %1844  ;;  %v6900_v25 = vpop.f32.mrb[89].mxu0  ;;  %3674 = vrot.lane.b32.xlu1 %v3659_v16, %s7240_s21 }
 0x1c9   : > { %v4096_v22 = vpop.f32.mrb[90].mxu0  ;;  %5858 = vst.msk [vmem:[%s7386_s8 + $0x20] sm:$0x3] %vm526_vm0, %v1831_v12  ;;  %v8657_v61 = vpop.f32.mrb[92].mxu1 }
 0x1ca   : > { %v6901_v27 = vpop.f32.mrb[91].mxu0  ;;  %v8642_v29 = vpop.permute.xlu1 %1846  ;;  %3704 = vrot.lane.b32.xlu0 %v3658_v17, %s7241_s22 }
 0x1cb   : > { %v6924_v3 = vpop.f32.mrb[93].mxu1 }
 0x1cc   : > { %v2421_v31 = vpop.permute.xlu0 %2420  ;;  %3706 = vrot.lane.b32.xlu1 %v3659_v16, %s7241_s22  ;;  %v4261_v5 = vpop.f32.mrb[94].mxu1  ;;  %v1860_v3 = vadd.f32 %v8611_v40, %v8415_v39 }
 0x1cd   : > { %v2444_v34 = vsub.f32 %v8435_v62, %v2421_v31  ;;  %v6925_v12 = vpop.f32.mrb[95].mxu1  ;;  %v4275_v5 = vrot.slane %v8614_v47, 2 }
 0x1ce   : > { %v2423_v53 = vpop.permute.xlu1 %2422  ;;  %1885 = vrot.lane.b32.xlu0 %v1858_v19, %s7240_s21  ;;  %v1861_v19 = vadd.f32 %v8621_v59, %v8418_v42 }
 0x1cf   : > { %5931 = vst.msk [vmem:[%s7386_s8 + $0x24] sm:$0x3] %vm526_vm0, %v2444_v34  ;;  %v8649_v48 = vpop.f32.mrb[92].mxu0  ;;  %v2445_v57 = vsub.f32 %v8438_v0, %v2423_v53 }
 0x1d0   : > { %v8652_v23 = vpop.permute.xlu0 %2452  ;;  %v6916_v1 = vpop.f32.mrb[93].mxu0  ;;  %1887 = vrot.lane.b32.xlu1 %v1859_v49, %s7240_s21 }
 0x1d1   : > { %v4206_v16 = vpop.f32.mrb[94].mxu0  ;;  %5932 = vst.msk [vmem:[%s7386_s8 + $0x26] sm:$0x3] %vm526_vm0, %v2445_v57  ;;  %v8677_v27 = vpop.f32.mrb[96].mxu1 }
 0x1d2   : > { %v6917_v28 = vpop.f32.mrb[95].mxu0  ;;  %v8665_v7 = vpop.permute.xlu1 %2454  ;;  %4280 = vrot.lane.b32.xlu0 %v4272_v30, %s7240_s21 }
 0x1d3   : > { %v6940_v34 = vpop.f32.mrb[97].mxu1 }
 0x1d4   : > { %v2425_v17 = vpop.permute.xlu0 %2424  ;;  %4282 = vrot.lane.b32.xlu1 %v4273_v9, %s7240_s21  ;;  %v4551_v49 = vpop.f32.mrb[98].mxu1 }
 0x1d5   : > { %v2446_v55 = vsub.f32 %v8445_v10, %v2425_v17 }
 0x1d6   : > { %v2427_v58 = vpop.permute.xlu1 %2426  ;;  %4312 = vrot.lane.b32.xlu0 %v4272_v30, %s7241_s22  ;;  %v4274_v30 = vrot.slane %v8609_v33, 2 }
 0x1d7   : > { %5933 = vst.msk [vmem:[%s7386_s8 + $0x28] sm:$0x3] %vm526_vm0, %v2446_v55  ;;  %v8672_v25 = vpop.f32.mrb[96].mxu0  ;;  %v2447_v56 = vsub.f32 %v8448_v13, %v2427_v58 }
 0x1d8   : > { %v8674_v22 = vpop.permute.xlu0 %2456  ;;  %v6932_v31 = vpop.f32.mrb[97].mxu0  ;;  %4314 = vrot.lane.b32.xlu1 %v4273_v9, %s7241_s22 }
 0x1d9   : > { %v4496_v38 = vpop.f32.mrb[98].mxu0  ;;  %5934 = vst.msk [vmem:[%s7386_s8 + $0x2a] sm:$0x3] %vm526_vm0, %v2447_v56  ;;  %v6941_v9 = vpop.f32.mrb[99].mxu1 }
 0x1da   : > { %v6933_v53 = vpop.f32.mrb[99].mxu0  ;;  %v8685_v57 = vpop.permute.xlu1 %2458  ;;  %1889 = vrot.lane.b32.xlu0 %v1860_v3, %s7240_s21 }
 0x1db   : > { %v8701_v40 = vpop.f32.mrb[100].mxu1 }
 0x1dc   : > { %v2429_v1 = vpop.permute.xlu0 %2428  ;;  %1891 = vrot.lane.b32.xlu1 %v1861_v19, %s7240_s21  ;;  %v6956_v55 = vpop.f32.mrb[101].mxu1  ;;  %v1863_v19 = vadd.f32 %v8642_v29, %v8428_v52  ;;  %v4276_v52 = vrot.slane %v8631_v14, 2 }
 0x1dd   : > { %v2448_v16 = vsub.f32 %v8455_v24, %v2429_v1  ;;  %v4661_v58 = vpop.f32.mrb[102].mxu1 }
 0x1de   : > { %v2431_v59 = vpop.permute.xlu1 %2430  ;;  %4284 = vrot.lane.b32.xlu0 %v4274_v30, %s7240_s21  ;;  %v6957_v49 = vpop.f32.mrb[103].mxu1 }
 0x1df   : > { %5935 = vst.msk [vmem:[%s7386_s8 + $0x2c] sm:$0x3] %vm526_vm0, %v2448_v16  ;;  %v8696_v42 = vpop.f32.mrb[100].mxu0  ;;  %v2449_v39 = vsub.f32 %v8458_v26, %v2431_v59  ;;  %v1862_v16 = vadd.f32 %v8633_v20, %v8425_v50 }
 0x1e0   : > { %v8698_v28 = vpop.permute.xlu0 %2460  ;;  %v6948_v17 = vpop.f32.mrb[101].mxu0  ;;  %4286 = vrot.lane.b32.xlu1 %v4275_v5, %s7240_s21 }
 0x1e1   : > { %v4606_v12 = vpop.f32.mrb[102].mxu0  ;;  %5936 = vst.msk [vmem:[%s7386_s8 + $0x2e] sm:$0x3] %vm526_vm0, %v2449_v39  ;;  %v8723_v59 = vpop.f32.mrb[104].mxu1  ;;  %v4277_v39 = vrot.slane %v8636_v44, 2 }
 0x1e2   : > { %v6949_v56 = vpop.f32.mrb[103].mxu0  ;;  %v8707_v31 = vpop.permute.xlu1 %2462  ;;  %4316 = vrot.lane.b32.xlu0 %v4274_v30, %s7241_s22 }
 0x1e3   : > { %v6972_v30 = vpop.f32.mrb[105].mxu1 }
 0x1e4   : > { %v2433_v34 = vpop.permute.xlu0 %2432  ;;  %4318 = vrot.lane.b32.xlu1 %v4275_v5, %s7241_s22  ;;  %v4771_v29 = vpop.f32.mrb[106].mxu1 }
 0x1e5   : > { %v2450_v38 = vsub.f32 %v8465_v36, %v2433_v34  ;;  %v6973_v58 = vpop.f32.mrb[107].mxu1 }
 0x1e6   : > { %v2435_v1 = vpop.permute.xlu1 %2434  ;;  %1893 = vrot.lane.b32.xlu0 %v1862_v16, %s7240_s21  ;;  %v4279_v58 = vrot.slane %v8657_v61, 2 }
 0x1e7   : > { %5937 = vst.msk [vmem:[%s7386_s8 + $0x30] sm:$0x3] %vm526_vm0, %v2450_v38  ;;  %v8714_v53 = vpop.f32.mrb[104].mxu0  ;;  %v2451_v9 = vsub.f32 %v8468_v41, %v2435_v1 }
 0x1e8   : > { %v8718_v3 = vpop.permute.xlu0 %2464  ;;  %v6964_v5 = vpop.f32.mrb[105].mxu0  ;;  %1895 = vrot.lane.b32.xlu1 %v1863_v19, %s7240_s21 }
 0x1e9   : > { %v4716_v17 = vpop.f32.mrb[106].mxu0  ;;  %5938 = vst.msk [vmem:[%s7386_s8 + $0x32] sm:$0x3] %vm526_vm0, %v2451_v9 }
 0x1ea   : > { %v6965_v50 = vpop.f32.mrb[107].mxu0  ;;  %v8731_v20 = vpop.permute.xlu1 %2466  ;;  %4288 = vrot.lane.b32.xlu0 %v4276_v52, %s7240_s21  ;;  %v2477_v17 = vadd.f32 %v8665_v7, %v8438_v0 }
 0x1eb   : > { %v8743_v19 = vpop.f32.mrb[108].mxu1 }
 0x1ec   : > { %v3041_v55 = vpop.permute.xlu0 %3040  ;;  %4290 = vrot.lane.b32.xlu1 %v4277_v39, %s7240_s21  ;;  %v6988_v16 = vpop.f32.mrb[109].mxu1 }
 0x1ed   : > { %v3064_v12 = vsub.f32 %v8475_v51, %v3041_v55  ;;  %v4881_v5 = vpop.f32.mrb[110].mxu1  ;;  %v2476_v55 = vadd.f32 %v8652_v23, %v8435_v62 }
 0x1ee   : > { %v3043_v34 = vpop.permute.xlu1 %3042  ;;  %4320 = vrot.lane.b32.xlu0 %v4276_v52, %s7241_s22  ;;  %v4278_v52 = vrot.slane %v8649_v48, 2 }
 0x1ef   : > { %6011 = vst.msk [vmem:[%s7386_s8 + $0x36] sm:$0x3] %vm526_vm0, %v3064_v12  ;;  %v8738_v56 = vpop.f32.mrb[108].mxu0  ;;  %v3065_v49 = vsub.f32 %v8478_v54, %v3043_v34  ;;  %v6989_v12 = vpop.f32.mrb[111].mxu1 }
 0x1f0   : > { %v8740_v38 = vpop.permute.xlu0 %3072  ;;  %v6980_v1 = vpop.f32.mrb[109].mxu0  ;;  %4322 = vrot.lane.b32.xlu1 %v4277_v39, %s7241_s22  ;;  %v2479_v12 = vadd.f32 %v8685_v57, %v8448_v13 }
 0x1f1   : > { %v4826_v9 = vpop.f32.mrb[110].mxu0  ;;  %6012 = vst.msk [vmem:[%s7386_s8 + $0x38] sm:$0x3] %vm526_vm0, %v3065_v49 }
 0x1f2   : > { %v6981_v30 = vpop.f32.mrb[111].mxu0  ;;  %v8751_v29 = vpop.permute.xlu1 %3074  ;;  %2501 = vrot.lane.b32.xlu0 %v2476_v55, %s7240_s21 }
 0x1f4   : > { %v3045_v50 = vpop.permute.xlu0 %3044  ;;  %2503 = vrot.lane.b32.xlu1 %v2477_v17, %s7240_s21 }
 0x1f5   : > { %v3066_v39 = vsub.f32 %v8485_v2, %v3045_v50 }
 0x1f6   : > { %v3047_v7 = vpop.permute.xlu1 %3046  ;;  %v8768_v49 = vpop.f32.mrb[112].mxu1  ;;  %4292 = vrot.lane.b32.xlu0 %v4278_v52, %s7240_s21 }
 0x1f7   : > { %6013 = vst.msk [vmem:[%s7386_s8 + $0x3a] sm:$0x3] %vm526_vm0, %v3066_v39  ;;  %v8762_v0 = vpop.f32.mrb[112].mxu0  ;;  %v3067_v62 = vsub.f32 %v8488_v6, %v3047_v7  ;;  %v7004_v16 = vpop.f32.mrb[113].mxu1 }
 0x1f8   : > { %v8764_v34 = vpop.permute.xlu0 %3076  ;;  %v6996_v23 = vpop.f32.mrb[113].mxu0  ;;  %4294 = vrot.lane.b32.xlu1 %v4279_v58, %s7240_s21  ;;  %v4893_v16 = vrot.slane %v8677_v27, 2 }
 0x1f9   : > { %v5116_v1 = vpop.f32.mrb[114].mxu0  ;;  %6014 = vst.msk [vmem:[%s7386_s8 + $0x3c] sm:$0x3] %vm526_vm0, %v3067_v62  ;;  %v5171_v50 = vpop.f32.mrb[114].mxu1  ;;  %v2478_v62 = vadd.f32 %v8674_v22, %v8445_v10 }
 0x1fa   : > { %v6997_v9 = vpop.f32.mrb[115].mxu0  ;;  %v8773_v5 = vpop.permute.xlu1 %3078  ;;  %4324 = vrot.lane.b32.xlu0 %v4278_v52, %s7241_s22 }
 0x1fb   : > { %v7005_v55 = vpop.f32.mrb[115].mxu1  ;;  %v4892_v9 = vrot.slane %v8672_v25, 2 }
 0x1fc   : > { %v3049_v30 = vpop.permute.xlu0 %3048  ;;  %4326 = vrot.lane.b32.xlu1 %v4279_v58, %s7241_s22 }
 0x1fd   : > { %v3068_v17 = vsub.f32 %v8495_v18, %v3049_v30 }
 0x1fe   : > { %v3051_v7 = vpop.permute.xlu1 %3050  ;;  %v8789_v58 = vpop.f32.mrb[116].mxu1  ;;  %2505 = vrot.lane.b32.xlu0 %v2478_v62, %s7240_s21 }
 0x1ff   : > { %6015 = vst.msk [vmem:[%s7386_s8 + $0x3e] sm:$0x3] %vm526_vm0, %v3068_v17  ;;  %v8780_v39 = vpop.f32.mrb[116].mxu0  ;;  %v3069_v23 = vsub.f32 %v8498_v21, %v3051_v7  ;;  %v7020_v13 = vpop.f32.mrb[117].mxu1 }
 0x200   : > { %v7012_v1 = vpop.f32.mrb[117].mxu0  ;;  %2507 = vrot.lane.b32.xlu1 %v2479_v12, %s7240_s21  ;;  %v5281_v57 = vpop.f32.mrb[118].mxu1  ;;  %v2481_v13 = vadd.f32 %v8707_v31, %v8458_v26  ;;  %v4894_v26 = vrot.slane %v8696_v42, 2 }
 0x201   : > { %v5226_v52 = vpop.f32.mrb[118].mxu0  ;;  %6016 = vst.msk [vmem:[%s7386_s8 + $0x40] sm:$0x3] %vm526_vm0, %v3069_v23  ;;  %v8797_v30 = vpop.permute.xlu0 %3080 }
 0x202   : > { %v7013_v10 = vpop.f32.mrb[119].mxu0  ;;  %v8795_v22 = vpop.permute.xlu1 %3082  ;;  %4932 = vrot.lane.b32.xlu0 %v4892_v9, %s7241_s22 }
 0x203   : > { %v7021_v17 = vpop.f32.mrb[119].mxu1 }
 0x204   : > { %4934 = vrot.lane.b32.xlu1 %v4893_v16, %s7241_s22  ;;  %v2480_v17 = vadd.f32 %v8698_v28, %v8455_v24 }
 0x205   : > { %v1263_v7 = vpop.permute.xlu0 %1262 }
 0x206   : > { %v1265_v55 = vpop.permute.xlu1 %1264  ;;  %1286 = vst.msk [vmem:[%s7614_s14] sm:$0x3] %vm526_vm0, %v1263_v7  ;;  %4900 = vrot.lane.b32.xlu0 %v4892_v9, %s7240_s21 }
 0x207   : > { %v8801_v50 = vpop.f32.mrb[120].mxu0  ;;  %1287 = vst.msk [vmem:[%s7614_s14 + $0x2] sm:$0x3] %vm526_vm0, %v1265_v55 }
 0x208   : > { %v7028_v12 = vpop.f32.mrb[121].mxu0  ;;  %4902 = vrot.lane.b32.xlu1 %v4893_v16, %s7240_s21  ;;  %v8808_v23 = vpop.f32.mrb[120].mxu1  ;;  %v4895_v16 = vrot.slane %v8701_v40, 2 }
 0x209   : > { %v5336_v62 = vpop.f32.mrb[122].mxu0  ;;  %v7036_v52 = vpop.f32.mrb[121].mxu1 }
 0x20a   : > { %v7029_v1 = vpop.f32.mrb[123].mxu0  ;;  %v3055_v10 = vpop.permute.xlu1 %3054  ;;  %2509 = vrot.lane.b32.xlu0 %v2480_v17, %s7240_s21 }
 0x20b   : > { %v5391_v57 = vpop.f32.mrb[122].mxu1  ;;  %v3071_v55 = vsub.f32 %v8510_v45, %v3055_v10  ;;  %v3053_v12 = vpop.permute.xlu0 %3052 }
 0x20c   : > { %v7037_v7 = vpop.f32.mrb[123].mxu1  ;;  %v3070_v62 = vsub.f32 %v8508_v43, %v3053_v12  ;;  %2511 = vrot.lane.b32.xlu1 %v2481_v13, %s7240_s21 }
 0x20d   : > { %6018 = vst.msk [vmem:[%s7386_s8 + $0x44] sm:$0x3] %vm526_vm0, %v3071_v55  ;;  %v2483_v7 = vadd.f32 %v8731_v20, %v8468_v41 }
 0x20e   : > { %6017 = vst.msk [vmem:[%s7386_s8 + $0x42] sm:$0x3] %vm526_vm0, %v3070_v62  ;;  %v8827_v24 = vpop.permute.xlu1 %3086  ;;  %4936 = vrot.lane.b32.xlu0 %v4894_v26, %s7241_s22 }
 0x20f   : > { %v8823_v31 = vpop.f32.mrb[124].mxu0  ;;  %v8829_v9 = vpop.permute.xlu0 %3084 }
 0x210   : > { %v7044_v28 = vpop.f32.mrb[125].mxu0  ;;  %4938 = vrot.lane.b32.xlu1 %v4895_v16, %s7241_s22  ;;  %v8832_v52 = vpop.f32.mrb[124].mxu1 }
 0x211   : > { %v5446_v1 = vpop.f32.mrb[126].mxu0  ;;  %v7052_v10 = vpop.f32.mrb[125].mxu1  ;;  %v2482_v28 = vadd.f32 %v8718_v3, %v8465_v36 }
 0x212   : > { %v7045_v13 = vpop.f32.mrb[127].mxu0  ;;  %v1269_v57 = vpop.permute.xlu1 %1268  ;;  %4904 = vrot.lane.b32.xlu0 %v4894_v26, %s7240_s21  ;;  %v4897_v10 = vrot.slane %v8723_v59, 2  ;;  %v3097_v26 = vadd.f32 %v8751_v29, %v8478_v54 }
 0x213   : > { %v5501_v17 = vpop.f32.mrb[126].mxu1  ;;  %1289 = vst.msk [vmem:[%s7614_s14 + $0x6] sm:$0x3] %vm526_vm0, %v1269_v57  ;;  %v1267_v55 = vpop.permute.xlu0 %1266 }
 0x214   : > { %v7053_v12 = vpop.f32.mrb[127].mxu1  ;;  %1288 = vst.msk [vmem:[%s7614_s14 + $0x4] sm:$0x3] %vm526_vm0, %v1267_v55  ;;  %4906 = vrot.lane.b32.xlu1 %v4895_v16, %s7240_s21  ;;  %v4896_v16 = vrot.slane %v8714_v53, 2  ;;  %v3096_v55 = vadd.f32 %v8740_v38, %v8475_v51 }
 0x216   : > { %v3663_v62 = vpop.permute.xlu1 %3662  ;;  %2513 = vrot.lane.b32.xlu0 %v2482_v28, %s7240_s21 }
 0x217   : > { %v3685_v1 = vsub.f32 %v8528_v11, %v3663_v62  ;;  %v3661_v13 = vpop.permute.xlu0 %3660  ;;  %v4899_v62 = vrot.slane %v8743_v19, 2 }
 0x218   : > { %v3684_v57 = vsub.f32 %v8525_v8, %v3661_v13  ;;  %2515 = vrot.lane.b32.xlu1 %v2483_v7, %s7240_s21  ;;  %v3099_v13 = vadd.f32 %v8773_v5, %v8488_v6 }
 0x219   : > { %6092 = vst.msk [vmem:[%s7386_s8 + $0x4a] sm:$0x3] %vm526_vm0, %v3685_v1  ;;  %v4898_v1 = vrot.slane %v8738_v56, 2 }
 0x21a   : > { %6091 = vst.msk [vmem:[%s7386_s8 + $0x48] sm:$0x3] %vm526_vm0, %v3684_v57  ;;  %v8855_v41 = vpop.permute.xlu1 %3694  ;;  %4940 = vrot.lane.b32.xlu0 %v4896_v16, %s7241_s22  ;;  %v3098_v57 = vadd.f32 %v8764_v34, %v8485_v2 }
 0x21b   : > { %v8857_v36 = vpop.permute.xlu0 %3692 }
 0x21c   : > { %4942 = vrot.lane.b32.xlu1 %v4897_v10, %s7241_s22 }
 0x21e   : > { %v1273_v3 = vpop.permute.xlu1 %1272  ;;  %4908 = vrot.lane.b32.xlu0 %v4896_v16, %s7240_s21 }
 0x21f   : > { %1291 = vst.msk [vmem:[%s7614_s14 + $0xa] sm:$0x3] %vm526_vm0, %v1273_v3  ;;  %v1271_v20 = vpop.permute.xlu0 %1270 }
 0x220   : > { %1290 = vst.msk [vmem:[%s7614_s14 + $0x8] sm:$0x3] %vm526_vm0, %v1271_v20  ;;  %4910 = vrot.lane.b32.xlu1 %v4897_v10, %s7240_s21  ;;  %v5513_v20 = vrot.slane %v8768_v49, 2 }
 0x222   : > { %v3667_v17 = vpop.permute.xlu1 %3666  ;;  %3121 = vrot.lane.b32.xlu0 %v3096_v55, %s7240_s21  ;;  %v3101_v55 = vadd.f32 %v8795_v22, %v8498_v21 }
 0x223   : > { %v3687_v12 = vsub.f32 %v8544_v46, %v3667_v17  ;;  %v3665_v7 = vpop.permute.xlu0 %3664  ;;  %v5512_v17 = vrot.slane %v8762_v0, 2 }
 0x224   : > { %v3686_v28 = vsub.f32 %v8539_v32, %v3665_v7  ;;  %3123 = vrot.lane.b32.xlu1 %v3097_v26, %s7240_s21  ;;  %v3100_v7 = vadd.f32 %v8797_v30, %v8495_v18 }
 0x225   : > { %6094 = vst.msk [vmem:[%s7386_s8 + $0x4e] sm:$0x3] %vm526_vm0, %v3687_v12 }
 0x226   : > { %6093 = vst.msk [vmem:[%s7386_s8 + $0x4c] sm:$0x3] %vm526_vm0, %v3686_v28  ;;  %v8881_v54 = vpop.permute.xlu1 %3698  ;;  %4944 = vrot.lane.b32.xlu0 %v4898_v1, %s7241_s22 }
 0x227   : > { %v8883_v51 = vpop.permute.xlu0 %3696 }
 0x228   : > { %4946 = vrot.lane.b32.xlu1 %v4899_v62, %s7241_s22 }
 0x22a   : > { %v1277_v38 = vpop.permute.xlu1 %1276  ;;  %4912 = vrot.lane.b32.xlu0 %v4898_v1, %s7240_s21  ;;  %v5515_v1 = vrot.slane %v8789_v58, 2 }
 0x22b   : > { %1293 = vst.msk [vmem:[%s7614_s14 + $0xe] sm:$0x3] %vm526_vm0, %v1277_v38  ;;  %v1275_v29 = vpop.permute.xlu0 %1274 }
 0x22c   : > { %1292 = vst.msk [vmem:[%s7614_s14 + $0xc] sm:$0x3] %vm526_vm0, %v1275_v29  ;;  %4914 = vrot.lane.b32.xlu1 %v4899_v62, %s7240_s21  ;;  %v5514_v29 = vrot.slane %v8780_v39, 2 }
 0x22e   : > { %v3671_v10 = vpop.permute.xlu1 %3670  ;;  %3125 = vrot.lane.b32.xlu0 %v3098_v57, %s7240_s21  ;;  %v3102_v57 = vadd.f32 %v8829_v9, %v8508_v43 }
 0x22f   : > { %v3689_v16 = vsub.f32 %v8560_v4, %v3671_v10  ;;  %v3669_v3 = vpop.permute.xlu0 %3668 }
 0x230   : > { %v3688_v26 = vsub.f32 %v8557_v63, %v3669_v3  ;;  %3127 = vrot.lane.b32.xlu1 %v3099_v13, %s7240_s21  ;;  %v3103_v13 = vadd.f32 %v8827_v24, %v8510_v45 }
 0x231   : > { %6096 = vst.msk [vmem:[%s7386_s8 + $0x52] sm:$0x3] %vm526_vm0, %v3689_v16 }
 0x232   : > { %6095 = vst.msk [vmem:[%s7386_s8 + $0x50] sm:$0x3] %vm526_vm0, %v3688_v26  ;;  %v8907_v6 = vpop.permute.xlu1 %3702  ;;  %5552 = vrot.lane.b32.xlu0 %v5512_v17, %s7241_s22 }
 0x233   : > { %v8909_v2 = vpop.permute.xlu0 %3700 }
 0x234   : > { %5554 = vrot.lane.b32.xlu1 %v5513_v20, %s7241_s22 }
 0x236   : > { %v1884_v34 = vpop.permute.xlu1 %1883  ;;  %5520 = vrot.lane.b32.xlu0 %v5512_v17, %s7240_s21  ;;  %v5516_v17 = vrot.slane %v8801_v50, 2 }
 0x237   : > { %5860 = vst.msk [vmem:[%s7614_s14 + $0x14] sm:$0x3] %vm526_vm0, %v1884_v34  ;;  %v1882_v5 = vpop.permute.xlu0 %1881  ;;  %v3717_v34 = vadd.f32 %v8855_v41, %v8528_v11 }
 0x238   : > { %5859 = vst.msk [vmem:[%s7614_s14 + $0x12] sm:$0x3] %vm526_vm0, %v1882_v5  ;;  %5522 = vrot.lane.b32.xlu1 %v5513_v20, %s7240_s21  ;;  %v5517_v20 = vrot.slane %v8808_v23, 2 }
 0x23a   : > { %v3675_v12 = vpop.permute.xlu1 %3674  ;;  %3129 = vrot.lane.b32.xlu0 %v3100_v7, %s7240_s21 }
 0x23b   : > { %v3691_v62 = vsub.f32 %v8578_v35, %v3675_v12  ;;  %v3673_v28 = vpop.permute.xlu0 %3672 }
 0x23c   : > { %v3690_v38 = vsub.f32 %v8575_v37, %v3673_v28  ;;  %3131 = vrot.lane.b32.xlu1 %v3101_v55, %s7240_s21  ;;  %v3716_v55 = vadd.f32 %v8857_v36, %v8525_v8 }
 0x23d   : > { %6098 = vst.msk [vmem:[%s7386_s8 + $0x56] sm:$0x3] %vm526_vm0, %v3691_v62  ;;  %v5519_v62 = vrot.slane %v8832_v52, 2 }
 0x23e   : > { %6097 = vst.msk [vmem:[%s7386_s8 + $0x54] sm:$0x3] %vm526_vm0, %v3690_v38  ;;  %v8933_v21 = vpop.permute.xlu1 %3706  ;;  %5556 = vrot.lane.b32.xlu0 %v5514_v29, %s7241_s22  ;;  %v3719_v38 = vadd.f32 %v8881_v54, %v8544_v46  ;;  %v3721_v46 = vadd.f32 %v8907_v6, %v8560_v4 }
 0x23f   : > { %v8935_v18 = vpop.permute.xlu0 %3704 }
 0x240   : > { %5558 = vrot.lane.b32.xlu1 %v5515_v1, %s7241_s22 }
 0x242   : > { %v1888_v22 = vpop.permute.xlu1 %1887  ;;  %5524 = vrot.lane.b32.xlu0 %v5514_v29, %s7240_s21 }
 0x243   : > { %5862 = vst.msk [vmem:[%s7614_s14 + $0x18] sm:$0x3] %vm526_vm0, %v1888_v22  ;;  %v1886_v30 = vpop.permute.xlu0 %1885  ;;  %v3718_v22 = vadd.f32 %v8883_v51, %v8539_v32  ;;  %v3720_v32 = vadd.f32 %v8909_v2, %v8557_v63 }
 0x244   : > { %5861 = vst.msk [vmem:[%s7614_s14 + $0x16] sm:$0x3] %vm526_vm0, %v1886_v30  ;;  %5526 = vrot.lane.b32.xlu1 %v5515_v1, %s7240_s21  ;;  %v5518_v1 = vrot.slane %v8823_v31, 2 }
 0x246   : > { %v4283_v10 = vpop.permute.xlu1 %4282  ;;  %3133 = vrot.lane.b32.xlu0 %v3102_v57, %s7240_s21  ;;  %v3723_v57 = vadd.f32 %v8933_v21, %v8578_v35 }
 0x247   : > { %v4305_v16 = vsub.f32 %v8596_v15, %v4283_v10  ;;  %v4281_v3 = vpop.permute.xlu0 %4280 }
 0x248   : > { %v4304_v26 = vsub.f32 %v8589_v60, %v4281_v3  ;;  %3135 = vrot.lane.b32.xlu1 %v3103_v13, %s7240_s21  ;;  %v3722_v3 = vadd.f32 %v8935_v18, %v8575_v37 }
 0x249   : > { %6172 = vst.msk [vmem:[%s7386_s8 + $0x5c] sm:$0x3] %vm526_vm0, %v4305_v16 }
 0x24a   : > { %6171 = vst.msk [vmem:[%s7386_s8 + $0x5a] sm:$0x3] %vm526_vm0, %v4304_v26  ;;  %v4315_v45 = vpop.permute.xlu1 %4314  ;;  %5560 = vrot.lane.b32.xlu0 %v5516_v17, %s7241_s22 }
 0x24b   : > { %v4313_v43 = vpop.permute.xlu0 %4312  ;;  %v4337_v63 = vadd.f32 %v4315_v45, %v8596_v15 }
 0x24c   : > { %5562 = vrot.lane.b32.xlu1 %v5517_v20, %s7241_s22  ;;  %v4336_v2 = vadd.f32 %v4313_v43, %v8589_v60 }
 0x24e   : > { %v1892_v24 = vpop.permute.xlu1 %1891  ;;  %5528 = vrot.lane.b32.xlu0 %v5516_v17, %s7240_s21 }
 0x24f   : > { %5864 = vst.msk [vmem:[%s7614_s14 + $0x1c] sm:$0x3] %vm526_vm0, %v1892_v24  ;;  %v1890_v9 = vpop.permute.xlu0 %1889 }
 0x250   : > { %5863 = vst.msk [vmem:[%s7614_s14 + $0x1a] sm:$0x3] %vm526_vm0, %v1890_v9  ;;  %5530 = vrot.lane.b32.xlu1 %v5517_v20, %s7240_s21 }
 0x252   : > { %v4287_v5 = vpop.permute.xlu1 %4286  ;;  %3741 = vrot.lane.b32.xlu0 %v3716_v55, %s7240_s21 }
 0x253   : > { %v4307_v12 = vsub.f32 %v8614_v47, %v4287_v5  ;;  %v4285_v7 = vpop.permute.xlu0 %4284 }
 0x254   : > { %v4306_v28 = vsub.f32 %v8609_v33, %v4285_v7  ;;  %3743 = vrot.lane.b32.xlu1 %v3717_v34, %s7240_s21 }
 0x255   : > { %6174 = vst.msk [vmem:[%s7386_s8 + $0x60] sm:$0x3] %vm526_vm0, %v4307_v12 }
 0x256   : > { %6173 = vst.msk [vmem:[%s7386_s8 + $0x5e] sm:$0x3] %vm526_vm0, %v4306_v28  ;;  %v4319_v11 = vpop.permute.xlu1 %4318  ;;  %5564 = vrot.lane.b32.xlu0 %v5518_v1, %s7241_s22 }
 0x257   : > { %v4317_v8 = vpop.permute.xlu0 %4316  ;;  %v4339_v18 = vadd.f32 %v4319_v11, %v8614_v47 }
 0x258   : > { %5566 = vrot.lane.b32.xlu1 %v5519_v62, %s7241_s22  ;;  %v4338_v60 = vadd.f32 %v4317_v8, %v8609_v33 }
 0x25a   : > { %v1896_v41 = vpop.permute.xlu1 %1895  ;;  %5532 = vrot.lane.b32.xlu0 %v5518_v1, %s7240_s21 }
 0x25b   : > { %5866 = vst.msk [vmem:[%s7614_s14 + $0x20] sm:$0x3] %vm526_vm0, %v1896_v41  ;;  %v1894_v36 = vpop.permute.xlu0 %1893 }
 0x25c   : > { %5865 = vst.msk [vmem:[%s7614_s14 + $0x1e] sm:$0x3] %vm526_vm0, %v1894_v36  ;;  %5534 = vrot.lane.b32.xlu1 %v5519_v62, %s7240_s21 }
 0x25e   : > { %v4291_v29 = vpop.permute.xlu1 %4290  ;;  %3745 = vrot.lane.b32.xlu0 %v3718_v22, %s7240_s21 }
 0x25f   : > { %v4309_v30 = vsub.f32 %v8636_v44, %v4291_v29  ;;  %v4289_v13 = vpop.permute.xlu0 %4288 }
 0x260   : > { %v4308_v10 = vsub.f32 %v8631_v14, %v4289_v13  ;;  %3747 = vrot.lane.b32.xlu1 %v3719_v38, %s7240_s21 }
 0x261   : > { %6176 = vst.msk [vmem:[%s7386_s8 + $0x64] sm:$0x3] %vm526_vm0, %v4309_v30 }
 0x262   : > { %6175 = vst.msk [vmem:[%s7386_s8 + $0x62] sm:$0x3] %vm526_vm0, %v4308_v10  ;;  %v4323_v54 = vpop.permute.xlu1 %4322  ;;  %3749 = vrot.lane.b32.xlu0 %v3720_v32, %s7240_s21 }
 0x263   : > { %v4321_v51 = vpop.permute.xlu0 %4320  ;;  %v4341_v26 = vadd.f32 %v4323_v54, %v8636_v44 }
 0x264   : > { %3751 = vrot.lane.b32.xlu1 %v3721_v46, %s7240_s21  ;;  %v4340_v45 = vadd.f32 %v4321_v51, %v8631_v14 }
 0x266   : > { %v2504_v16 = vpop.permute.xlu1 %2503  ;;  %3753 = vrot.lane.b32.xlu0 %v3722_v3, %s7240_s21 }
 0x267   : > { %5940 = vst.msk [vmem:[%s7614_s14 + $0x26] sm:$0x3] %vm526_vm0, %v2504_v16  ;;  %v2502_v4 = vpop.permute.xlu0 %2501 }
 0x268   : > { %5939 = vst.msk [vmem:[%s7614_s14 + $0x24] sm:$0x3] %vm526_vm0, %v2502_v4  ;;  %3755 = vrot.lane.b32.xlu1 %v3723_v57, %s7240_s21 }
 0x26a   : > { %v4295_v6 = vpop.permute.xlu1 %4294  ;;  %4361 = vrot.lane.b32.xlu0 %v4336_v2, %s7240_s21 }
 0x26b   : > { %v4311_v35 = vsub.f32 %v8657_v61, %v4295_v6  ;;  %v4293_v21 = vpop.permute.xlu0 %4292 }
 0x26c   : > { %v4310_v37 = vsub.f32 %v8649_v48, %v4293_v21  ;;  %4363 = vrot.lane.b32.xlu1 %v4337_v63, %s7240_s21 }
 0x26d   : > { %6178 = vst.msk [vmem:[%s7386_s8 + $0x68] sm:$0x3] %vm526_vm0, %v4311_v35 }
 0x26e   : > { %6177 = vst.msk [vmem:[%s7386_s8 + $0x66] sm:$0x3] %vm526_vm0, %v4310_v37  ;;  %v4327_v15 = vpop.permute.xlu1 %4326  ;;  %4365 = vrot.lane.b32.xlu0 %v4338_v60, %s7240_s21 }
 0x26f   : > { %v4325_v20 = vpop.permute.xlu0 %4324  ;;  %v4343_v33 = vadd.f32 %v4327_v15, %v8657_v61 }
 0x270   : > { %4367 = vrot.lane.b32.xlu1 %v4339_v18, %s7240_s21  ;;  %v4342_v44 = vadd.f32 %v4325_v20, %v8649_v48 }
 0x272   : > { %v2508_v17 = vpop.permute.xlu1 %2507  ;;  %4369 = vrot.lane.b32.xlu0 %v4340_v45, %s7240_s21 }
 0x273   : > { %5942 = vst.msk [vmem:[%s7614_s14 + $0x2a] sm:$0x3] %vm526_vm0, %v2508_v17  ;;  %v2506_v43 = vpop.permute.xlu0 %2505 }
 0x274   : > { %5941 = vst.msk [vmem:[%s7614_s14 + $0x28] sm:$0x3] %vm526_vm0, %v2506_v43  ;;  %4371 = vrot.lane.b32.xlu1 %v4341_v26, %s7240_s21 }
 0x276   : > { %v4935_v47 = vpop.permute.xlu1 %4934  ;;  %4373 = vrot.lane.b32.xlu0 %v4342_v44, %s7240_s21 }
 0x277   : > { %v4933_v24 = vpop.permute.xlu0 %4932  ;;  %v4957_v14 = vadd.f32 %v4935_v47, %v8677_v27 }
 0x278   : > { %4375 = vrot.lane.b32.xlu1 %v4343_v33, %s7240_s21  ;;  %v4956_v34 = vadd.f32 %v4933_v24, %v8672_v25 }
 0x27a   : > { %v4903_v9 = vpop.permute.xlu1 %4902  ;;  %4981 = vrot.lane.b32.xlu0 %v4956_v34, %s7240_s21 }
 0x27b   : > { %v4925_v5 = vsub.f32 %v8677_v27, %v4903_v9  ;;  %v4901_v55 = vpop.permute.xlu0 %4900 }
 0x27c   : > { %v4924_v61 = vsub.f32 %v8672_v25, %v4901_v55  ;;  %4983 = vrot.lane.b32.xlu1 %v4957_v14, %s7240_s21 }
 0x27d   : > { %6252 = vst.msk [vmem:[%s7386_s8 + $0x6e] sm:$0x3] %vm526_vm0, %v4925_v5 }
 0x27e   : > { %6251 = vst.msk [vmem:[%s7386_s8 + $0x6c] sm:$0x3] %vm526_vm0, %v4924_v61  ;;  %v2512_v48 = vpop.permute.xlu1 %2511 }
 0x27f   : > { %5944 = vst.msk [vmem:[%s7614_s14 + $0x2e] sm:$0x3] %vm526_vm0, %v2512_v48  ;;  %v2510_v12 = vpop.permute.xlu0 %2509 }
 0x280   : > { %5943 = vst.msk [vmem:[%s7614_s14 + $0x2c] sm:$0x3] %vm526_vm0, %v2510_v12 }
 0x282   : > { %v4939_v27 = vpop.permute.xlu1 %4938 }
 0x283   : > { %v4959_v25 = vadd.f32 %v4939_v27, %v8701_v40  ;;  %v4937_v7 = vpop.permute.xlu0 %4936 }
 0x284   : > { %v4958_v62 = vadd.f32 %v4937_v7, %v8696_v42 }
 0x285   : > { %4987 = vrot.lane.b32.xlu1 %v4959_v25, %s7240_s21 }
 0x286   : > { %v4907_v28 = vpop.permute.xlu1 %4906  ;;  %4985 = vrot.lane.b32.xlu0 %v4958_v62, %s7240_s21 }
 0x287   : > { %v4927_v1 = vsub.f32 %v8701_v40, %v4907_v28  ;;  %v4905_v11 = vpop.permute.xlu0 %4904 }
 0x288   : > { %v4926_v8 = vsub.f32 %v8696_v42, %v4905_v11 }
 0x289   : > { %6254 = vst.msk [vmem:[%s7386_s8 + $0x72] sm:$0x3] %vm526_vm0, %v4927_v1 }
 0x28a   : > { %6253 = vst.msk [vmem:[%s7386_s8 + $0x70] sm:$0x3] %vm526_vm0, %v4926_v8  ;;  %v2516_v41 = vpop.permute.xlu1 %2515 }
 0x28b   : > { %5946 = vst.msk [vmem:[%s7614_s14 + $0x32] sm:$0x3] %vm526_vm0, %v2516_v41  ;;  %v2514_v36 = vpop.permute.xlu0 %2513 }
 0x28c   : > { %5945 = vst.msk [vmem:[%s7614_s14 + $0x30] sm:$0x3] %vm526_vm0, %v2514_v36 }
 0x28e   : > { %v4943_v38 = vpop.permute.xlu1 %4942 }
 0x28f   : > { %v4961_v40 = vadd.f32 %v4943_v38, %v8723_v59  ;;  %v4941_v29 = vpop.permute.xlu0 %4940 }
 0x290   : > { %v4960_v42 = vadd.f32 %v4941_v29, %v8714_v53 }
 0x291   : > { %4991 = vrot.lane.b32.xlu1 %v4961_v40, %s7240_s21 }
 0x292   : > { %v4911_v22 = vpop.permute.xlu1 %4910  ;;  %4989 = vrot.lane.b32.xlu0 %v4960_v42, %s7240_s21 }
 0x293   : > { %v4929_v30 = vsub.f32 %v8723_v59, %v4911_v22  ;;  %v4909_v13 = vpop.permute.xlu0 %4908 }
 0x294   : > { %v4928_v10 = vsub.f32 %v8714_v53, %v4909_v13 }
 0x295   : > { %6256 = vst.msk [vmem:[%s7386_s8 + $0x76] sm:$0x3] %vm526_vm0, %v4929_v30 }
 0x296   : > { %6255 = vst.msk [vmem:[%s7386_s8 + $0x74] sm:$0x3] %vm526_vm0, %v4928_v10  ;;  %v3124_v46 = vpop.permute.xlu1 %3123 }
 0x297   : > { %6020 = vst.msk [vmem:[%s7614_s14 + $0x38] sm:$0x3] %vm526_vm0, %v3124_v46  ;;  %v3122_v54 = vpop.permute.xlu0 %3121 }
 0x298   : > { %6019 = vst.msk [vmem:[%s7614_s14 + $0x36] sm:$0x3] %vm526_vm0, %v3122_v54 }
 0x29a   : > { %v4947_v32 = vpop.permute.xlu1 %4946 }
 0x29b   : > { %v4963_v59 = vadd.f32 %v4947_v32, %v8743_v19  ;;  %v4945_v51 = vpop.permute.xlu0 %4944 }
 0x29c   : > { %v4962_v53 = vadd.f32 %v4945_v51, %v8738_v56 }
 0x29d   : > { %4995 = vrot.lane.b32.xlu1 %v4963_v59, %s7240_s21 }
 0x29e   : > { %v4915_v57 = vpop.permute.xlu1 %4914  ;;  %4993 = vrot.lane.b32.xlu0 %v4962_v53, %s7240_s21 }
 0x29f   : > { %v4931_v16 = vsub.f32 %v8743_v19, %v4915_v57  ;;  %v4913_v3 = vpop.permute.xlu0 %4912 }
 0x2a0   : > { %v4930_v4 = vsub.f32 %v8738_v56, %v4913_v3 }
 0x2a1   : > { %6258 = vst.msk [vmem:[%s7386_s8 + $0x7a] sm:$0x3] %vm526_vm0, %v4931_v16 }
 0x2a2   : > { %6257 = vst.msk [vmem:[%s7386_s8 + $0x78] sm:$0x3] %vm526_vm0, %v4930_v4  ;;  %v3128_v63 = vpop.permute.xlu1 %3127 }
 0x2a3   : > { %6022 = vst.msk [vmem:[%s7614_s14 + $0x3c] sm:$0x3] %vm526_vm0, %v3128_v63  ;;  %v3126_v6 = vpop.permute.xlu0 %3125 }
 0x2a4   : > { %6021 = vst.msk [vmem:[%s7614_s14 + $0x3a] sm:$0x3] %vm526_vm0, %v3126_v6 }
 0x2a6   : > { %v5555_v2 = vpop.permute.xlu1 %5554 }
 0x2a7   : > { %v5577_v19 = vadd.f32 %v5555_v2, %v8768_v49  ;;  %v5553_v35 = vpop.permute.xlu0 %5552 }
 0x2a8   : > { %v5576_v56 = vadd.f32 %v5553_v35, %v8762_v0 }
 0x2a9   : > { %5603 = vrot.lane.b32.xlu1 %v5577_v19, %s7240_s21 }
 0x2aa   : > { %v5523_v21 = vpop.permute.xlu1 %5522  ;;  %5601 = vrot.lane.b32.xlu0 %v5576_v56, %s7240_s21 }
 0x2ab   : > { %v5545_v37 = vsub.f32 %v8768_v49, %v5523_v21  ;;  %v5521_v18 = vpop.permute.xlu0 %5520 }
 0x2ac   : > { %v5544_v15 = vsub.f32 %v8762_v0, %v5521_v18 }
 0x2ad   : > { %6332 = vst.msk [vmem:[%s7386_s8 + $0x80] sm:$0x3] %vm526_vm0, %v5545_v37 }
 0x2ae   : > { %6331 = vst.msk [vmem:[%s7386_s8 + $0x7e] sm:$0x3] %vm526_vm0, %v5544_v15  ;;  %v3132_v60 = vpop.permute.xlu1 %3131 }
 0x2af   : > { %6024 = vst.msk [vmem:[%s7614_s14 + $0x40] sm:$0x3] %vm526_vm0, %v3132_v60  ;;  %v3130_v20 = vpop.permute.xlu0 %3129 }
 0x2b0   : > { %6023 = vst.msk [vmem:[%s7614_s14 + $0x3e] sm:$0x3] %vm526_vm0, %v3130_v20 }
 0x2b2   : > { %v5559_v26 = vpop.permute.xlu1 %5558 }
 0x2b3   : > { %v5579_v49 = vadd.f32 %v5559_v26, %v8789_v58  ;;  %v5557_v17 = vpop.permute.xlu0 %5556 }
 0x2b4   : > { %v5578_v0 = vadd.f32 %v5557_v17, %v8780_v39 }
 0x2b5   : > { %5607 = vrot.lane.b32.xlu1 %v5579_v49, %s7240_s21 }
 0x2b6   : > { %v5527_v45 = vpop.permute.xlu1 %5526  ;;  %5605 = vrot.lane.b32.xlu0 %v5578_v0, %s7240_s21 }
 0x2b7   : > { %v5547_v43 = vsub.f32 %v8789_v58, %v5527_v45  ;;  %v5525_v33 = vpop.permute.xlu0 %5524 }
 0x2b8   : > { %v5546_v47 = vsub.f32 %v8780_v39, %v5525_v33 }
 0x2b9   : > { %6334 = vst.msk [vmem:[%s7386_s8 + $0x84] sm:$0x3] %vm526_vm0, %v5547_v43 }
 0x2ba   : > { %6333 = vst.msk [vmem:[%s7386_s8 + $0x82] sm:$0x3] %vm526_vm0, %v5546_v47  ;;  %v3136_v44 = vpop.permute.xlu1 %3135 }
 0x2bb   : > { %6026 = vst.msk [vmem:[%s7614_s14 + $0x44] sm:$0x3] %vm526_vm0, %v3136_v44  ;;  %v3134_v24 = vpop.permute.xlu0 %3133 }
 0x2bc   : > { %6025 = vst.msk [vmem:[%s7614_s14 + $0x42] sm:$0x3] %vm526_vm0, %v3134_v24 }
 0x2be   : > { %v5563_v14 = vpop.permute.xlu1 %5562 }
 0x2bf   : > { %v5581_v58 = vadd.f32 %v5563_v14, %v8808_v23  ;;  %v5561_v9 = vpop.permute.xlu0 %5560 }
 0x2c0   : > { %v5580_v39 = vadd.f32 %v5561_v9, %v8801_v50 }
 0x2c1   : > { %5611 = vrot.lane.b32.xlu1 %v5581_v58, %s7240_s21 }
 0x2c2   : > { %v5531_v34 = vpop.permute.xlu1 %5530  ;;  %5609 = vrot.lane.b32.xlu0 %v5580_v39, %s7240_s21 }
 0x2c3   : > { %v5549_v5 = vsub.f32 %v8808_v23, %v5531_v34  ;;  %v5529_v55 = vpop.permute.xlu0 %5528 }
 0x2c4   : > { %v5548_v61 = vsub.f32 %v8801_v50, %v5529_v55 }
 0x2c5   : > { %6336 = vst.msk [vmem:[%s7386_s8 + $0x88] sm:$0x3] %vm526_vm0, %v5549_v5 }
 0x2c6   : > { %6335 = vst.msk [vmem:[%s7386_s8 + $0x86] sm:$0x3] %vm526_vm0, %v5548_v61  ;;  %v3744_v48 = vpop.permute.xlu1 %3743 }
 0x2c7   : > { %6100 = vst.msk [vmem:[%s7614_s14 + $0x4a] sm:$0x3] %vm526_vm0, %v3744_v48  ;;  %v3742_v12 = vpop.permute.xlu0 %3741 }
 0x2c8   : > { %6099 = vst.msk [vmem:[%s7614_s14 + $0x48] sm:$0x3] %vm526_vm0, %v3742_v12 }
 0x2ca   : > { %v5567_v27 = vpop.permute.xlu1 %5566 }
 0x2cb   : > { %v5583_v23 = vadd.f32 %v5567_v27, %v8832_v52  ;;  %v5565_v25 = vpop.permute.xlu0 %5564 }
 0x2cc   : > { %v5582_v50 = vadd.f32 %v5565_v25, %v8823_v31 }
 0x2cd   : > { %5615 = vrot.lane.b32.xlu1 %v5583_v23, %s7240_s21 }
 0x2ce   : > { %v5535_v7 = vpop.permute.xlu1 %5534  ;;  %5613 = vrot.lane.b32.xlu0 %v5582_v50, %s7240_s21 }
 0x2cf   : > { %v5551_v62 = vsub.f32 %v8832_v52, %v5535_v7  ;;  %v5533_v28 = vpop.permute.xlu0 %5532 }
 0x2d0   : > { %v5550_v1 = vsub.f32 %v8823_v31, %v5533_v28 }
 0x2d1   : > { %6338 = vst.msk [vmem:[%s7386_s8 + $0x8c] sm:$0x3] %vm526_vm0, %v5551_v62 }
 0x2d2   : > { %6337 = vst.msk [vmem:[%s7386_s8 + $0x8a] sm:$0x3] %vm526_vm0, %v5550_v1  ;;  %v3748_v11 = vpop.permute.xlu1 %3747 }
 0x2d3   : > { %6102 = vst.msk [vmem:[%s7614_s14 + $0x4e] sm:$0x3] %vm526_vm0, %v3748_v11  ;;  %v3746_v8 = vpop.permute.xlu0 %3745 }
 0x2d4   : > { %6101 = vst.msk [vmem:[%s7614_s14 + $0x4c] sm:$0x3] %vm526_vm0, %v3746_v8 }
 0x2d6   : > { %v3752_v41 = vpop.permute.xlu1 %3751 }
 0x2d7   : > { %6104 = vst.msk [vmem:[%s7614_s14 + $0x52] sm:$0x3] %vm526_vm0, %v3752_v41  ;;  %v3750_v52 = vpop.permute.xlu0 %3749 }
 0x2d8   : > { %6103 = vst.msk [vmem:[%s7614_s14 + $0x50] sm:$0x3] %vm526_vm0, %v3750_v52 }
 0x2da   : > { %v3756_v31 = vpop.permute.xlu1 %3755 }
 0x2db   : > { %6106 = vst.msk [vmem:[%s7614_s14 + $0x56] sm:$0x3] %vm526_vm0, %v3756_v31  ;;  %v3754_v36 = vpop.permute.xlu0 %3753 }
 0x2dc   : > { %6105 = vst.msk [vmem:[%s7614_s14 + $0x54] sm:$0x3] %vm526_vm0, %v3754_v36 }
 0x2de   : > { %v4364_v38 = vpop.permute.xlu1 %4363 }
 0x2df   : > { %6180 = vst.msk [vmem:[%s7614_s14 + $0x5c] sm:$0x3] %vm526_vm0, %v4364_v38  ;;  %v4362_v40 = vpop.permute.xlu0 %4361 }
 0x2e0   : > { %6179 = vst.msk [vmem:[%s7614_s14 + $0x5a] sm:$0x3] %vm526_vm0, %v4362_v40 }
 0x2e2   : > { %v4368_v29 = vpop.permute.xlu1 %4367 }
 0x2e3   : > { %6182 = vst.msk [vmem:[%s7614_s14 + $0x60] sm:$0x3] %vm526_vm0, %v4368_v29  ;;  %v4366_v42 = vpop.permute.xlu0 %4365 }
 0x2e4   : > { %6181 = vst.msk [vmem:[%s7614_s14 + $0x5e] sm:$0x3] %vm526_vm0, %v4366_v42 }
 0x2e6   : > { %v4372_v22 = vpop.permute.xlu1 %4371 }
 0x2e7   : > { %6184 = vst.msk [vmem:[%s7614_s14 + $0x64] sm:$0x3] %vm526_vm0, %v4372_v22  ;;  %v4370_v30 = vpop.permute.xlu0 %4369 }
 0x2e8   : > { %6183 = vst.msk [vmem:[%s7614_s14 + $0x62] sm:$0x3] %vm526_vm0, %v4370_v30 }
 0x2ea   : > { %v4376_v13 = vpop.permute.xlu1 %4375 }
 0x2eb   : > { %6186 = vst.msk [vmem:[%s7614_s14 + $0x68] sm:$0x3] %vm526_vm0, %v4376_v13  ;;  %v4374_v10 = vpop.permute.xlu0 %4373 }
 0x2ec   : > { %6185 = vst.msk [vmem:[%s7614_s14 + $0x66] sm:$0x3] %vm526_vm0, %v4374_v10 }
 0x2ee   : > { %v4984_v46 = vpop.permute.xlu1 %4983 }
 0x2ef   : > { %6260 = vst.msk [vmem:[%s7614_s14 + $0x6e] sm:$0x3] %vm526_vm0, %v4984_v46  ;;  %v4982_v54 = vpop.permute.xlu0 %4981 }
 0x2f0   : > { %6259 = vst.msk [vmem:[%s7614_s14 + $0x6c] sm:$0x3] %vm526_vm0, %v4982_v54 }
 0x2f7   : > { %v4988_v32 = vpop.permute.xlu1 %4987 }
 0x2f8   : > { %6262 = vst.msk [vmem:[%s7614_s14 + $0x72] sm:$0x3] %vm526_vm0, %v4988_v32  ;;  %v4986_v59 = vpop.permute.xlu0 %4985 }
 0x2f9   : > { %6261 = vst.msk [vmem:[%s7614_s14 + $0x70] sm:$0x3] %vm526_vm0, %v4986_v59 }
 0x303   : > { %v4992_v51 = vpop.permute.xlu1 %4991 }
 0x304   : > { %6264 = vst.msk [vmem:[%s7614_s14 + $0x76] sm:$0x3] %vm526_vm0, %v4992_v51  ;;  %v4990_v53 = vpop.permute.xlu0 %4989 }
 0x305   : > { %6263 = vst.msk [vmem:[%s7614_s14 + $0x74] sm:$0x3] %vm526_vm0, %v4990_v53 }
 0x30f   : > { %v4996_v57 = vpop.permute.xlu1 %4995 }
 0x310   : > { %6266 = vst.msk [vmem:[%s7614_s14 + $0x7a] sm:$0x3] %vm526_vm0, %v4996_v57  ;;  %v4994_v16 = vpop.permute.xlu0 %4993 }
 0x311   : > { %6265 = vst.msk [vmem:[%s7614_s14 + $0x78] sm:$0x3] %vm526_vm0, %v4994_v16 }
 0x31b   : > { %v5604_v3 = vpop.permute.xlu1 %5603 }
 0x31c   : > { %6340 = vst.msk [vmem:[%s7614_s14 + $0x80] sm:$0x3] %vm526_vm0, %v5604_v3  ;;  %v5602_v4 = vpop.permute.xlu0 %5601 }
 0x31d   : > { %6339 = vst.msk [vmem:[%s7614_s14 + $0x7e] sm:$0x3] %vm526_vm0, %v5602_v4 }
 0x327   : > { %v5608_v63 = vpop.permute.xlu1 %5607 }
 0x328   : > { %6342 = vst.msk [vmem:[%s7614_s14 + $0x84] sm:$0x3] %vm526_vm0, %v5608_v63  ;;  %v5606_v6 = vpop.permute.xlu0 %5605 }
 0x329   : > { %6341 = vst.msk [vmem:[%s7614_s14 + $0x82] sm:$0x3] %vm526_vm0, %v5606_v6 }
 0x333   : > { %v5612_v2 = vpop.permute.xlu1 %5611 }
 0x334   : > { %6344 = vst.msk [vmem:[%s7614_s14 + $0x88] sm:$0x3] %vm526_vm0, %v5612_v2  ;;  %v5610_v19 = vpop.permute.xlu0 %5609 }
 0x335   : > { %6343 = vst.msk [vmem:[%s7614_s14 + $0x86] sm:$0x3] %vm526_vm0, %v5610_v19 }
 0x33f   : > { %v5616_v35 = vpop.permute.xlu1 %5615 }
 0x340   : > { %6346 = vst.msk [vmem:[%s7614_s14 + $0x8c] sm:$0x3] %vm526_vm0, %v5616_v35  ;;  %v5614_v56 = vpop.permute.xlu0 %5613 }
 0x341   : > { %6345 = vst.msk [vmem:[%s7614_s14 + $0x8a] sm:$0x3] %vm526_vm0, %v5614_v56 }
 0x342 PF: > { %p11_p0 = scmp.ge.s32.totalorder %s7281_s16, 4   ;;  %s9226_s12 = smov %s7231_s13 }
 0x343   : > { %s9227_s13 = smov %s7290_s19  ;;  %s9228_s14 = smov %s7281_s16 }
 0x344   :  { %13 = sbr.rel (!%p11_p0) target bundleno = 2 (0x2), region = 151 }

// kernel: fno2d_forward.10
= control target key start
LH: loop header
LB: loop body
LE: loop exit
PB: predicated region body
PF: predicated region fallthrough
CT: control target
= control target key end

     0   :  { %s898_s15 = smov 0   ;;  %s1244_s0 = inlined_call_operand.vmem [shape: f32[512,32], index: 0, kind: input, shape index: {}, may-alias: {0,4}]   ;;  %s1245_s1 = inlined_call_operand.vmem [shape: f32[512,32], index: 1, kind: input, shape index: {}]   ;;  %s1246_s2 = inlined_call_operand.vmem [shape: bf16[32,32], index: 2, kind: input, shape index: {}]   ;;  %s1247_s3 = inlined_call_operand.vmem [shape: f32[1,32], index: 3, kind: input, shape index: {}]   ;;  %s1248_s4 = inlined_call_operand.vmem [shape: f32[512,32], index: 4, kind: output, shape index: {}, may-alias: {0,4}]  }
   0x1 LB: > { %s765_s16 = sadd.s32 4294967295, %s871_s15   ;;  %p769_p0 = scmp.ge.s32.totalorder %s871_s15, 1  ;;  %s871_s15 = sphi %s898_s15, %s14_s15  }
   0x2   : > { %p174_p1 = scmp.lt.s32.totalorder %s871_s15, 3 }
   0x4   : > { %p175_p2 = pnand %p769_p0, %p174_p1 }
   0x5   : > { %v863_v0 = vld [vmem:[%s1246_s2] sm:$0xff] (!%p175_p2)   ;;  %s770_s19 = sshll.u32 (!%p175_p2), %s765_s16, 5  ;;  %v864_v1 = vld [vmem:[%s1246_s2 + $0x8] sm:$0xff] (!%p175_p2)   ;;  %vm295_vm0 = vcmask (!%p175_p2), 261120  }
   0x6   : > { %178 = sbr.rel (%p175_p2) target bundleno = 279 (0x117), region = 36  ;;  %p206_p3 = scmp.lt.s32.totalorder (!%p175_p2), %s770_s19, 63  ;;  %815 = vmatprep.subr.bf16.mxu0 (!%p175_p2), %v863_v0  ;;  %851 = vmatprep.subr.bf16.mxu1 (!%p175_p2), %v863_v0  ;;  %v1073_v50 = vld [vmem:[%s1247_s3] ss:$0 sm:$0xff] (!%p175_p2) }
   0x7   : > { %816 = vmatpush3.bf16.msra.mxu0 (!%p175_p2), %v863_v0  ;;  %853 = vmatpush3.bf16.msra.mxu1 (!%p175_p2), %v863_v0 }
   0x8   : > { %817 = vmatprep.subr.bf16.mxu0 (!%p175_p2), %v864_v1  ;;  %852 = vmatprep.subr.bf16.mxu1 (!%p175_p2), %v864_v1 }
   0xb   : > { %818 = vmatpush3.bf16.msra.mxu0 (!%p175_p2), %v864_v1  ;;  %854 = vmatpush3.bf16.msra.mxu1 (!%p175_p2), %v864_v1 }
   0xd   : > { %s1250_s19 = smov (!%p206_p3, %s770_s19), 63 }
   0xe   : > { %s912_s22 = sshll.u32 %s1250_s19, 3 }
   0xf   : > { %s918_s25 = scalar_lea.vmem %s1244_s0, %s912_s22  ;;  %s1068_s28 = scalar_lea.vmem %s1245_s1, %s912_s22 }
  0x10   : > { %v921_v2 = vld [vmem:[%s918_s25] sm:$0xff]  ;;  %v924_v3 = vld [vmem:[%s918_s25 + $0x8] sm:$0xff]  ;;  %v935_v7 = vld [vmem:[%s918_s25 + $0x10] sm:$0xff]  ;;  %s1095_s7 = scalar_lea.vmem %s1248_s4, %s912_s22 }
  0x11   : > { %v927_v4 = vld [vmem:[%s918_s25 + $0x80] sm:$0xff]  ;;  %v256_v5 = vpack.c.bf16 %v924_v3, %v921_v2  ;;  %v932_v6 = vld [vmem:[%s918_s25 + $0x88] sm:$0xff]  ;;  %v938_v8 = vld [vmem:[%s918_s25 + $0x18] sm:$0xff] }
  0x12   : > { %v264_v9 = vpack.c.bf16 %v932_v6, %v927_v4  ;;  %v257_v10 = vpack.c.bf16 %v938_v8, %v935_v7  ;;  %v945_v11 = vld [vmem:[%s918_s25 + $0x90] sm:$0xff]  ;;  %v948_v12 = vld [vmem:[%s918_s25 + $0x98] sm:$0xff]  ;;  %v951_v13 = vld [vmem:[%s918_s25 + $0x20] sm:$0xff] }
  0x13   : > { %819 = vmatprep.mubr.msk.bf16.mxu0 %vm295_vm0, %v256_v5  ;;  %v265_v14 = vpack.c.bf16 %v948_v12, %v945_v11  ;;  %v957_v15 = vld [vmem:[%s918_s25 + $0x28] sm:$0xff]  ;;  %v960_v16 = vld [vmem:[%s918_s25 + $0xa0] sm:$0xff]  ;;  %v973_v20 = vld [vmem:[%s918_s25 + $0x30] sm:$0xff] }
  0x14   : > { %v963_v17 = vld [vmem:[%s918_s25 + $0xa8] sm:$0xff]  ;;  %835 = vmatprep.mubr.msk.bf16.mxu1 %vm295_vm0, %v264_v9  ;;  %820 = vmatmul.mubr.msk.bf16.vlgmr.msra.gmra.mrb[0].mxu0 %vm295_vm0, %v257_v10  ;;  %v258_v18 = vpack.c.bf16 %v957_v15, %v951_v13  ;;  %v976_v21 = vld [vmem:[%s918_s25 + $0x38] sm:$0xff]  ;;  %v979_v22 = vld [vmem:[%s918_s25 + $0xb0] sm:$0xff] }
  0x15   : > { %v266_v19 = vpack.c.bf16 %v963_v17, %v960_v16  ;;  %836 = vmatmul.mubr.msk.bf16.vlgmr.msra.gmra.mrb[0].mxu1 %vm295_vm0, %v265_v14  ;;  %v984_v23 = vld [vmem:[%s918_s25 + $0xb8] sm:$0xff]  ;;  %v987_v24 = vld [vmem:[%s918_s25 + $0x40] sm:$0xff]  ;;  %v990_v25 = vld [vmem:[%s918_s25 + $0x48] sm:$0xff]  ;;  %v259_v28 = vpack.c.bf16 %v976_v21, %v973_v20 }
  0x16   : > { %823 = vmatprep.mubr.msk.bf16.mxu0 %vm295_vm0, %v258_v18  ;;  %v993_v26 = vld [vmem:[%s918_s25 + $0xc0] sm:$0xff]  ;;  %v996_v27 = vld [vmem:[%s918_s25 + $0xc8] sm:$0xff]  ;;  %v267_v29 = vpack.c.bf16 %v984_v23, %v979_v22  ;;  %v260_v30 = vpack.c.bf16 %v990_v25, %v987_v24  ;;  %v1010_v32 = vld [vmem:[%s918_s25 + $0x50] sm:$0xff] }
  0x17   : > { %839 = vmatprep.mubr.msk.bf16.mxu1 %vm295_vm0, %v266_v19  ;;  %v268_v31 = vpack.c.bf16 %v996_v27, %v993_v26  ;;  %v1013_v33 = vld [vmem:[%s918_s25 + $0x58] sm:$0xff]  ;;  %v1016_v34 = vld [vmem:[%s918_s25 + $0xd0] sm:$0xff]  ;;  %v1023_v36 = vld [vmem:[%s918_s25 + $0x60] sm:$0xff] }
  0x18   : > { %v1020_v35 = vld [vmem:[%s918_s25 + $0xd8] sm:$0xff]  ;;  %v1026_v37 = vld [vmem:[%s918_s25 + $0x68] sm:$0xff]  ;;  %v1029_v38 = vld [vmem:[%s918_s25 + $0xe0] sm:$0xff]  ;;  %v261_v40 = vpack.c.bf16 %v1013_v33, %v1010_v32 }
  0x19   : > { %v1032_v39 = vld [vmem:[%s918_s25 + $0xe8] sm:$0xff]  ;;  %v269_v41 = vpack.c.bf16 %v1020_v35, %v1016_v34  ;;  %v262_v42 = vpack.c.bf16 %v1026_v37, %v1023_v36  ;;  %v1046_v44 = vld [vmem:[%s918_s25 + $0x70] sm:$0xff]  ;;  %v1049_v45 = vld [vmem:[%s918_s25 + $0x78] sm:$0xff] }
  0x1a   : > { %v270_v43 = vpack.c.bf16 %v1032_v39, %v1029_v38  ;;  %v1053_v46 = vld [vmem:[%s918_s25 + $0xf0] sm:$0xff]  ;;  %v1056_v47 = vld [vmem:[%s918_s25 + $0xf8] sm:$0xff]  ;;  %v263_v48 = vpack.c.bf16 %v1049_v45, %v1046_v44  ;;  %v505_v57 = vld [vmem:[%s1068_s28] sm:$0xff] }
  0x1b   : > { %v271_v49 = vpack.c.bf16 %v1056_v47, %v1053_v46  ;;  %v507_v52 = vld [vmem:[%s1068_s28 + $0x10] sm:$0xff]  ;;  %v521_v61 = vld [vmem:[%s1068_s28 + $0x80] sm:$0xff]  ;;  %v508_v63 = vld [vmem:[%s1068_s28 + $0x18] sm:$0xff] }
  0x1c   : > { %824 = vmatmul.mubr.msk.bf16.gmra.mrb[4].mxu0 %vm295_vm0, %v259_v28  ;;  %v523_v55 = vld [vmem:[%s1068_s28 + $0x90] sm:$0xff]  ;;  %v524_v10 = vld [vmem:[%s1068_s28 + $0x98] sm:$0xff]  ;;  %v506_v18 = vld [vmem:[%s1068_s28 + $0x8] sm:$0xff] }
  0x1d   : > { %840 = vmatmul.mubr.msk.bf16.gmra.mrb[4].mxu1 %vm295_vm0, %v267_v29  ;;  %827 = vmatprep.mubr.msk.bf16.mxu0 %vm295_vm0, %v260_v30 }
  0x1e   : > { %843 = vmatprep.mubr.msk.bf16.mxu1 %vm295_vm0, %v268_v31 }
  0x24   : > { %828 = vmatmul.mubr.msk.bf16.gmra.mrb[8].mxu0 %vm295_vm0, %v261_v40  ;;  %v522_v40 = vld [vmem:[%s1068_s28 + $0x88] sm:$0xff] }
  0x25   : > { %844 = vmatmul.mubr.msk.bf16.gmra.mrb[8].mxu1 %vm295_vm0, %v269_v41  ;;  %831 = vmatprep.mubr.msk.bf16.mxu0 %vm295_vm0, %v262_v42 }
  0x26   : > { %847 = vmatprep.mubr.msk.bf16.mxu1 %vm295_vm0, %v270_v43 }
  0x2c   : > { %832 = vmatmul.mubr.msk.bf16.gmra.mrb[12].mxu0 %vm295_vm0, %v263_v48 }
  0x2d   : > { %848 = vmatmul.mubr.msk.bf16.gmra.mrb[12].mxu1 %vm295_vm0, %v271_v49 }
  0xe7   : > { %v821_v51 = vpop.f32.mrb[0].mxu0 }
  0xe8   : > { %v387_v53 = vadd.f32 %v821_v51, %v1073_v50  ;;  %v837_v54 = vpop.f32.mrb[0].mxu1  ;;  %v378_v56 = vpop.f32.mrb[1].mxu0 }
  0xe9   : > { %v451_v58 = vadd.f32 %v837_v54, %v1073_v50  ;;  %v379_v59 = vadd.f32 %v1073_v50, %v378_v56  ;;  %v442_v60 = vpop.f32.mrb[1].mxu1  ;;  %v822_v62 = vpop.f32.mrb[2].mxu0 }
  0xea   : > { %v539_v0 = vadd.f32 %v507_v52, %v387_v53  ;;  %v443_v1 = vadd.f32 %v1073_v50, %v442_v60  ;;  %v390_v5 = vadd.f32 %v822_v62, %v1073_v50  ;;  %v838_v9 = vpop.f32.mrb[2].mxu1  ;;  %v381_v14 = vpop.f32.mrb[3].mxu0  ;;  %v511_v62 = vld [vmem:[%s1068_s28 + $0x30] sm:$0xff] }
  0xeb   : > { %v555_v19 = vadd.f32 %v523_v55, %v451_v58  ;;  %v537_v28 = vadd.f32 %v505_v57, %v379_v59  ;;  %v454_v29 = vadd.f32 %v838_v9, %v1073_v50  ;;  %v382_v30 = vadd.f32 %v1073_v50, %v381_v14  ;;  %v445_v31 = vpop.f32.mrb[3].mxu1 }
  0xec   : > { %v571_v41 = vmax.f32 %v539_v0, 0.0  ;;  %v553_v42 = vadd.f32 %v521_v61, %v443_v1  ;;  %v540_v43 = vadd.f32 %v508_v63, %v390_v5  ;;  %v446_v48 = vadd.f32 %v1073_v50, %v445_v31 }
  0xed   : > { %v587_v49 = vmax.f32 %v555_v19, 0.0  ;;  %v569_v51 = vmax.f32 %v537_v28, 0.0  ;;  %v556_v52 = vadd.f32 %v524_v10, %v454_v29  ;;  %v538_v53 = vadd.f32 %v506_v18, %v382_v30 }
  0xee   : > { %v603_v54 = vmul.f32 0.33333334, %v571_v41  ;;  %v585_v55 = vmax.f32 %v553_v42, 0.0  ;;  %v572_v56 = vmax.f32 %v540_v43, 0.0  ;;  %v554_v57 = vadd.f32 %v522_v40, %v446_v48  ;;  %v509_v41 = vld [vmem:[%s1068_s28 + $0x20] sm:$0xff] }
  0xef   : > { %v619_v58 = vmul.f32 0.33333334, %v587_v49  ;;  %v601_v59 = vmul.f32 0.33333334, %v569_v51  ;;  %v588_v60 = vmax.f32 %v556_v52, 0.0  ;;  %v570_v61 = vmax.f32 %v538_v53, 0.0 }
  0xf0   : > { %v635_v63 = vadd.f32 %v603_v54, %v935_v7  ;;  %v617_v0 = vmul.f32 0.33333334, %v585_v55  ;;  %v604_v1 = vmul.f32 0.33333334, %v572_v56  ;;  %v586_v5 = vmax.f32 %v554_v57, 0.0  ;;  %v825_v9 = vpop.f32.mrb[4].mxu0 }
  0xf1   : > { %v651_v10 = vadd.f32 %v619_v58, %v945_v11  ;;  %v633_v14 = vadd.f32 %v601_v59, %v921_v2  ;;  %v620_v18 = vmul.f32 0.33333334, %v588_v60  ;;  %v602_v19 = vmul.f32 0.33333334, %v570_v61  ;;  %v841_v28 = vpop.f32.mrb[4].mxu1  ;;  %v394_v29 = vpop.f32.mrb[5].mxu0 }
  0xf2   : > { %667 = vst.msk [vmem:[%s1095_s7 + $0x10] sm:$0xff] %vm295_vm0, %v635_v63  ;;  %v649_v7 = vadd.f32 %v617_v0, %v927_v4  ;;  %v636_v30 = vadd.f32 %v604_v1, %v938_v8  ;;  %v618_v31 = vmul.f32 0.33333334, %v586_v5  ;;  %v403_v40 = vadd.f32 %v825_v9, %v1073_v50  ;;  %v527_v11 = vld [vmem:[%s1068_s28 + $0xb0] sm:$0xff]  ;;  %v458_v2 = vpop.f32.mrb[5].mxu1  ;;  %v826_v42 = vpop.f32.mrb[6].mxu0 }
  0xf3   : > { %683 = vst.msk [vmem:[%s1095_s7 + $0x90] sm:$0xff] %vm295_vm0, %v651_v10  ;;  %665 = vst.msk [vmem:[%s1095_s7] sm:$0xff] %vm295_vm0, %v633_v14  ;;  %v652_v43 = vadd.f32 %v620_v18, %v948_v12  ;;  %v634_v4 = vadd.f32 %v602_v19, %v924_v3  ;;  %v467_v8 = vadd.f32 %v841_v28, %v1073_v50  ;;  %v525_v49 = vld [vmem:[%s1068_s28 + $0xa0] sm:$0xff]  ;;  %v512_v51 = vld [vmem:[%s1068_s28 + $0x38] sm:$0xff]  ;;  %v842_v52 = vpop.f32.mrb[6].mxu1  ;;  %v397_v53 = vpop.f32.mrb[7].mxu0 }
  0xf4   : > { %v395_v48 = vadd.f32 %v1073_v50, %v394_v29  ;;  %681 = vst.msk [vmem:[%s1095_s7 + $0x80] sm:$0xff] %vm295_vm0, %v649_v7  ;;  %668 = vst.msk [vmem:[%s1095_s7 + $0x18] sm:$0xff] %vm295_vm0, %v636_v30  ;;  %v650_v12 = vadd.f32 %v618_v31, %v932_v6  ;;  %v543_v54 = vadd.f32 %v511_v62, %v403_v40  ;;  %v528_v56 = vld [vmem:[%s1068_s28 + $0xb8] sm:$0xff]  ;;  %v510_v57 = vld [vmem:[%s1068_s28 + $0x28] sm:$0xff]  ;;  %v461_v58 = vpop.f32.mrb[7].mxu1 }
  0xf5   : > { %v459_v3 = vadd.f32 %v1073_v50, %v458_v2  ;;  %v406_v55 = vadd.f32 %v826_v42, %v1073_v50  ;;  %684 = vst.msk [vmem:[%s1095_s7 + $0x98] sm:$0xff] %vm295_vm0, %v652_v43  ;;  %666 = vst.msk [vmem:[%s1095_s7 + $0x8] sm:$0xff] %vm295_vm0, %v634_v4  ;;  %v559_v59 = vadd.f32 %v527_v11, %v467_v8  ;;  %v526_v0 = vld [vmem:[%s1068_s28 + $0xa8] sm:$0xff]  ;;  %v515_v43 = vld [vmem:[%s1068_s28 + $0x50] sm:$0xff] }
  0xf6   : > { %v541_v60 = vadd.f32 %v509_v41, %v395_v48  ;;  %v470_v61 = vadd.f32 %v842_v52, %v1073_v50  ;;  %v398_v63 = vadd.f32 %v1073_v50, %v397_v53  ;;  %682 = vst.msk [vmem:[%s1095_s7 + $0x88] sm:$0xff] %vm295_vm0, %v650_v12  ;;  %v575_v6 = vmax.f32 %v543_v54, 0.0 }
  0xf7   : > { %v557_v62 = vadd.f32 %v525_v49, %v459_v3  ;;  %v544_v1 = vadd.f32 %v512_v51, %v406_v55  ;;  %v462_v5 = vadd.f32 %v1073_v50, %v461_v58  ;;  %v591_v9 = vmax.f32 %v559_v59, 0.0  ;;  %v829_v19 = vpop.f32.mrb[8].mxu0  ;;  %v531_v58 = vld [vmem:[%s1068_s28 + $0xd0] sm:$0xff]  ;;  %v513_v59 = vld [vmem:[%s1068_s28 + $0x40] sm:$0xff] }
  0xf8   : > { %v573_v10 = vmax.f32 %v541_v60, 0.0  ;;  %v560_v14 = vadd.f32 %v528_v56, %v470_v61  ;;  %v542_v18 = vadd.f32 %v510_v57, %v398_v63  ;;  %v607_v28 = vmul.f32 0.33333334, %v575_v6  ;;  %v845_v31 = vpop.f32.mrb[8].mxu1  ;;  %v410_v40 = vpop.f32.mrb[9].mxu0  ;;  %v516_v6 = vld [vmem:[%s1068_s28 + $0x58] sm:$0xff] }
  0xf9   : > { %v589_v29 = vmax.f32 %v557_v62, 0.0  ;;  %v576_v7 = vmax.f32 %v544_v1, 0.0  ;;  %v558_v30 = vadd.f32 %v526_v0, %v462_v5  ;;  %v623_v11 = vmul.f32 0.33333334, %v591_v9  ;;  %v474_v51 = vpop.f32.mrb[9].mxu1  ;;  %v830_v3 = vpop.f32.mrb[10].mxu0 }
  0xfa   : > { %v605_v41 = vmul.f32 0.33333334, %v573_v10  ;;  %v592_v2 = vmax.f32 %v560_v14, 0.0  ;;  %v574_v42 = vmax.f32 %v542_v18, 0.0  ;;  %v639_v4 = vadd.f32 %v607_v28, %v973_v20  ;;  %v846_v55 = vpop.f32.mrb[10].mxu1  ;;  %v529_v0 = vld [vmem:[%s1068_s28 + $0xc0] sm:$0xff] }
  0xfb   : > { %v621_v8 = vmul.f32 0.33333334, %v589_v29  ;;  %v608_v48 = vmul.f32 0.33333334, %v576_v7  ;;  %v590_v49 = vmax.f32 %v558_v30, 0.0  ;;  %v655_v52 = vadd.f32 %v623_v11, %v979_v22  ;;  %v477_v60 = vpop.f32.mrb[11].mxu1 }
  0xfc   : > { %v637_v53 = vadd.f32 %v605_v41, %v951_v13  ;;  %v624_v12 = vmul.f32 0.33333334, %v592_v2  ;;  %v606_v54 = vmul.f32 0.33333334, %v574_v42  ;;  %671 = vst.msk [vmem:[%s1095_s7 + $0x30] sm:$0xff] %vm295_vm0, %v639_v4  ;;  %v419_v22 = vadd.f32 %v829_v19, %v1073_v50  ;;  %v413_v13 = vpop.f32.mrb[11].mxu0 }
  0xfd   : > { %v653_v20 = vadd.f32 %v621_v8, %v960_v16  ;;  %v640_v56 = vadd.f32 %v608_v48, %v976_v21  ;;  %v622_v57 = vmul.f32 0.33333334, %v590_v49  ;;  %687 = vst.msk [vmem:[%s1095_s7 + $0xb0] sm:$0xff] %vm295_vm0, %v655_v52  ;;  %v483_v61 = vadd.f32 %v845_v31, %v1073_v50  ;;  %v514_v9 = vld [vmem:[%s1068_s28 + $0x48] sm:$0xff] }
  0xfe   : > { %669 = vst.msk [vmem:[%s1095_s7 + $0x20] sm:$0xff] %vm295_vm0, %v637_v53  ;;  %v656_v16 = vadd.f32 %v624_v12, %v984_v23  ;;  %v638_v21 = vadd.f32 %v606_v54, %v957_v15  ;;  %v411_v63 = vadd.f32 %v1073_v50, %v410_v40  ;;  %v547_v1 = vadd.f32 %v515_v43, %v419_v22  ;;  %v532_v15 = vld [vmem:[%s1068_s28 + $0xd8] sm:$0xff]  ;;  %v530_v28 = vld [vmem:[%s1068_s28 + $0xc8] sm:$0xff] }
  0xff   : > { %685 = vst.msk [vmem:[%s1095_s7 + $0xa0] sm:$0xff] %vm295_vm0, %v653_v20  ;;  %672 = vst.msk [vmem:[%s1095_s7 + $0x38] sm:$0xff] %vm295_vm0, %v640_v56  ;;  %v654_v62 = vadd.f32 %v622_v57, %v963_v17  ;;  %v475_v5 = vadd.f32 %v1073_v50, %v474_v51  ;;  %v422_v23 = vadd.f32 %v830_v3, %v1073_v50  ;;  %v833_v29 = vpop.f32.mrb[12].mxu0 }
 0x100   : > { %688 = vst.msk [vmem:[%s1095_s7 + $0xb8] sm:$0xff] %vm295_vm0, %v656_v16  ;;  %670 = vst.msk [vmem:[%s1095_s7 + $0x28] sm:$0xff] %vm295_vm0, %v638_v21  ;;  %v563_v10 = vadd.f32 %v531_v58, %v483_v61  ;;  %v545_v14 = vadd.f32 %v513_v59, %v411_v63  ;;  %v486_v18 = vadd.f32 %v846_v55, %v1073_v50  ;;  %v579_v17 = vmax.f32 %v547_v1, 0.0  ;;  %v849_v40 = vpop.f32.mrb[12].mxu1  ;;  %v426_v11 = vpop.f32.mrb[13].mxu0  ;;  %v519_v61 = vld [vmem:[%s1068_s28 + $0x70] sm:$0xff] }
 0x101   : > { %v414_v19 = vadd.f32 %v1073_v50, %v413_v13  ;;  %686 = vst.msk [vmem:[%s1095_s7 + $0xa8] sm:$0xff] %vm295_vm0, %v654_v62  ;;  %v561_v7 = vadd.f32 %v529_v0, %v475_v5  ;;  %v548_v30 = vadd.f32 %v516_v6, %v422_v23  ;;  %v478_v31 = vadd.f32 %v1073_v50, %v477_v60  ;;  %v490_v4 = vpop.f32.mrb[13].mxu1  ;;  %v834_v8 = vpop.f32.mrb[14].mxu0  ;;  %v535_v62 = vld [vmem:[%s1068_s28 + $0xf0] sm:$0xff]  ;;  %v533_v5 = vld [vmem:[%s1068_s28 + $0xe0] sm:$0xff]  ;;  %v520_v23 = vld [vmem:[%s1068_s28 + $0x78] sm:$0xff] }
 0x102   : > { %v595_v41 = vmax.f32 %v563_v10, 0.0  ;;  %v577_v2 = vmax.f32 %v545_v14, 0.0  ;;  %v564_v42 = vadd.f32 %v532_v15, %v486_v18  ;;  %v611_v48 = vmul.f32 0.33333334, %v579_v17  ;;  %v850_v53 = vpop.f32.mrb[14].mxu1  ;;  %v429_v12 = vpop.f32.mrb[15].mxu0 }
 0x103   : > { %v546_v43 = vadd.f32 %v514_v9, %v414_v19  ;;  %v593_v49 = vmax.f32 %v561_v7, 0.0  ;;  %v580_v51 = vmax.f32 %v548_v30, 0.0  ;;  %v562_v52 = vadd.f32 %v530_v28, %v478_v31  ;;  %v493_v59 = vpop.f32.mrb[15].mxu1  ;;  %v518_v14 = vld [vmem:[%s1068_s28 + $0x68] sm:$0xff] }
 0x104   : > { %v627_v54 = vmul.f32 0.33333334, %v595_v41  ;;  %v609_v3 = vmul.f32 0.33333334, %v577_v2  ;;  %v596_v55 = vmax.f32 %v564_v42, 0.0  ;;  %v643_v56 = vadd.f32 %v611_v48, %v1010_v32  ;;  %v534_v17 = vld [vmem:[%s1068_s28 + $0xe8] sm:$0xff] }
 0x105   : > { %v578_v20 = vmax.f32 %v546_v43, 0.0  ;;  %v625_v57 = vmul.f32 0.33333334, %v593_v49  ;;  %v612_v22 = vmul.f32 0.33333334, %v580_v51  ;;  %v594_v58 = vmax.f32 %v562_v52, 0.0 }
 0x106   : > { %v659_v13 = vadd.f32 %v627_v54, %v1016_v34  ;;  %v641_v60 = vadd.f32 %v609_v3, %v987_v24  ;;  %v628_v16 = vmul.f32 0.33333334, %v596_v55  ;;  %675 = vst.msk [vmem:[%s1095_s7 + $0x50] sm:$0xff] %vm295_vm0, %v643_v56  ;;  %v435_v6 = vadd.f32 %v833_v29, %v1073_v50  ;;  %v517_v34 = vld [vmem:[%s1068_s28 + $0x60] sm:$0xff] }
 0x107   : > { %v610_v21 = vmul.f32 0.33333334, %v578_v20  ;;  %v657_v32 = vadd.f32 %v625_v57, %v993_v26  ;;  %v644_v63 = vadd.f32 %v612_v22, %v1013_v33  ;;  %v626_v0 = vmul.f32 0.33333334, %v594_v58 }
 0x108   : > { %691 = vst.msk [vmem:[%s1095_s7 + $0xd0] sm:$0xff] %vm295_vm0, %v659_v13  ;;  %673 = vst.msk [vmem:[%s1095_s7 + $0x40] sm:$0xff] %vm295_vm0, %v641_v60  ;;  %v660_v24 = vadd.f32 %v628_v16, %v1020_v35  ;;  %v499_v26 = vadd.f32 %v849_v40, %v1073_v50  ;;  %v427_v33 = vadd.f32 %v1073_v50, %v426_v11 }
 0x109   : > { %v642_v1 = vadd.f32 %v610_v21, %v990_v25  ;;  %689 = vst.msk [vmem:[%s1095_s7 + $0xc0] sm:$0xff] %vm295_vm0, %v657_v32  ;;  %676 = vst.msk [vmem:[%s1095_s7 + $0x58] sm:$0xff] %vm295_vm0, %v644_v63  ;;  %v658_v15 = vadd.f32 %v626_v0, %v996_v27  ;;  %v551_v9 = vadd.f32 %v519_v61, %v435_v6  ;;  %v536_v25 = vld [vmem:[%s1068_s28 + $0xf8] sm:$0xff] }
 0x10a   : > { %v491_v10 = vadd.f32 %v1073_v50, %v490_v4  ;;  %v438_v35 = vadd.f32 %v834_v8, %v1073_v50  ;;  %692 = vst.msk [vmem:[%s1095_s7 + $0xd8] sm:$0xff] %vm295_vm0, %v660_v24  ;;  %v567_v18 = vadd.f32 %v535_v62, %v499_v26  ;;  %v549_v19 = vadd.f32 %v517_v34, %v427_v33 }
 0x10b   : > { %674 = vst.msk [vmem:[%s1095_s7 + $0x48] sm:$0xff] %vm295_vm0, %v642_v1  ;;  %v502_v28 = vadd.f32 %v850_v53, %v1073_v50  ;;  %v430_v29 = vadd.f32 %v1073_v50, %v429_v12  ;;  %690 = vst.msk [vmem:[%s1095_s7 + $0xc8] sm:$0xff] %vm295_vm0, %v658_v15  ;;  %v583_v27 = vmax.f32 %v551_v9, 0.0  ;;  %v494_v31 = vadd.f32 %v1073_v50, %v493_v59 }
 0x10c   : > { %v565_v7 = vadd.f32 %v533_v5, %v491_v10  ;;  %v552_v30 = vadd.f32 %v520_v23, %v438_v35  ;;  %v599_v40 = vmax.f32 %v567_v18, 0.0  ;;  %v581_v11 = vmax.f32 %v549_v19, 0.0 }
 0x10d   : > { %v568_v41 = vadd.f32 %v536_v25, %v502_v28  ;;  %v550_v2 = vadd.f32 %v518_v14, %v430_v29  ;;  %v615_v42 = vmul.f32 0.33333334, %v583_v27  ;;  %v566_v8 = vadd.f32 %v534_v17, %v494_v31 }
 0x10e   : > { %v597_v43 = vmax.f32 %v565_v7, 0.0  ;;  %v584_v4 = vmax.f32 %v552_v30, 0.0  ;;  %v631_v48 = vmul.f32 0.33333334, %v599_v40  ;;  %v613_v49 = vmul.f32 0.33333334, %v581_v11 }
 0x10f   : > { %v600_v51 = vmax.f32 %v568_v41, 0.0  ;;  %v582_v52 = vmax.f32 %v550_v2, 0.0  ;;  %v647_v53 = vadd.f32 %v615_v42, %v1046_v44  ;;  %v598_v54 = vmax.f32 %v566_v8, 0.0 }
 0x110   : > { %v629_v12 = vmul.f32 0.33333334, %v597_v43  ;;  %v616_v50 = vmul.f32 0.33333334, %v584_v4  ;;  %v663_v3 = vadd.f32 %v631_v48, %v1053_v46  ;;  %v645_v55 = vadd.f32 %v613_v49, %v1023_v36 }
 0x111   : > { %v632_v20 = vmul.f32 0.33333334, %v600_v51  ;;  %v614_v56 = vmul.f32 0.33333334, %v582_v52  ;;  %679 = vst.msk [vmem:[%s1095_s7 + $0x70] sm:$0xff] %vm295_vm0, %v647_v53 }
 0x112   : > { %v661_v57 = vadd.f32 %v629_v12, %v1029_v38  ;;  %v648_v44 = vadd.f32 %v616_v50, %v1049_v45  ;;  %v630_v22 = vmul.f32 0.33333334, %v598_v54  ;;  %695 = vst.msk [vmem:[%s1095_s7 + $0xf0] sm:$0xff] %vm295_vm0, %v663_v3  ;;  %677 = vst.msk [vmem:[%s1095_s7 + $0x60] sm:$0xff] %vm295_vm0, %v645_v55 }
 0x113   : > { %v664_v58 = vadd.f32 %v632_v20, %v1056_v47  ;;  %v646_v46 = vadd.f32 %v614_v56, %v1026_v37 }
 0x114   : > { %693 = vst.msk [vmem:[%s1095_s7 + $0xe0] sm:$0xff] %vm295_vm0, %v661_v57  ;;  %680 = vst.msk [vmem:[%s1095_s7 + $0x78] sm:$0xff] %vm295_vm0, %v648_v44  ;;  %v662_v36 = vadd.f32 %v630_v22, %v1032_v39 }
 0x115   : > { %696 = vst.msk [vmem:[%s1095_s7 + $0xf8] sm:$0xff] %vm295_vm0, %v664_v58  ;;  %678 = vst.msk [vmem:[%s1095_s7 + $0x68] sm:$0xff] %vm295_vm0, %v646_v46 }
 0x116   : > { %694 = vst.msk [vmem:[%s1095_s7 + $0xe8] sm:$0xff] %vm295_vm0, %v662_v36 }
 0x117 PF: > { %s14_s15 = sadd.s32 1, %s871_s15  }
 0x118   : > { %p11_p4 = scmp.ge.s32.totalorder %s14_s15, 4  }
 0x11a   :  { %13 = sbr.rel (!%p11_p4) target bundleno = 1 (0x1), region = 69 }

// kernel: fno2d_forward.14
= control target key start
LH: loop header
LB: loop body
LE: loop exit
PB: predicated region body
PF: predicated region fallthrough
CT: control target
= control target key end

     0   :  { %s866_s15 = smov 0   ;;  %s1212_s0 = inlined_call_operand.vmem [shape: f32[512,32], index: 0, kind: input, shape index: {}, may-alias: {0,4}]   ;;  %s1213_s1 = inlined_call_operand.vmem [shape: f32[512,32], index: 1, kind: input, shape index: {}]   ;;  %s1214_s2 = inlined_call_operand.vmem [shape: bf16[32,32], index: 2, kind: input, shape index: {}]   ;;  %s1215_s3 = inlined_call_operand.vmem [shape: f32[1,32], index: 3, kind: input, shape index: {}]   ;;  %s1216_s4 = inlined_call_operand.vmem [shape: f32[512,32], index: 4, kind: output, shape index: {}, may-alias: {0,4}]  }
   0x1 LB: > { %s733_s16 = sadd.s32 4294967295, %s839_s15   ;;  %p737_p0 = scmp.ge.s32.totalorder %s839_s15, 1  ;;  %s839_s15 = sphi %s866_s15, %s14_s15  }
   0x2   : > { %p174_p1 = scmp.lt.s32.totalorder %s839_s15, 3 }
   0x4   : > { %p175_p2 = pnand %p737_p0, %p174_p1 }
   0x5   : > { %v831_v0 = vld [vmem:[%s1214_s2] sm:$0xff] (!%p175_p2)   ;;  %s738_s19 = sshll.u32 (!%p175_p2), %s733_s16, 5  ;;  %v832_v1 = vld [vmem:[%s1214_s2 + $0x8] sm:$0xff] (!%p175_p2)   ;;  %vm295_vm0 = vcmask (!%p175_p2), 261120  }
   0x6   : > { %178 = sbr.rel (%p175_p2) target bundleno = 271 (0x10f), region = 36  ;;  %p206_p3 = scmp.lt.s32.totalorder (!%p175_p2), %s738_s19, 63  ;;  %783 = vmatprep.subr.bf16.mxu0 (!%p175_p2), %v831_v0  ;;  %819 = vmatprep.subr.bf16.mxu1 (!%p175_p2), %v831_v0  ;;  %v1041_v50 = vld [vmem:[%s1215_s3] ss:$0 sm:$0xff] (!%p175_p2) }
   0x7   : > { %784 = vmatpush3.bf16.msra.mxu0 (!%p175_p2), %v831_v0  ;;  %821 = vmatpush3.bf16.msra.mxu1 (!%p175_p2), %v831_v0 }
   0x8   : > { %785 = vmatprep.subr.bf16.mxu0 (!%p175_p2), %v832_v1  ;;  %820 = vmatprep.subr.bf16.mxu1 (!%p175_p2), %v832_v1 }
   0xb   : > { %786 = vmatpush3.bf16.msra.mxu0 (!%p175_p2), %v832_v1  ;;  %822 = vmatpush3.bf16.msra.mxu1 (!%p175_p2), %v832_v1 }
   0xd   : > { %s1218_s19 = smov (!%p206_p3, %s738_s19), 63 }
   0xe   : > { %s880_s22 = sshll.u32 %s1218_s19, 3 }
   0xf   : > { %s886_s25 = scalar_lea.vmem %s1212_s0, %s880_s22  ;;  %s1036_s28 = scalar_lea.vmem %s1213_s1, %s880_s22 }
  0x10   : > { %v889_v2 = vld [vmem:[%s886_s25] sm:$0xff]  ;;  %v892_v3 = vld [vmem:[%s886_s25 + $0x8] sm:$0xff]  ;;  %v903_v7 = vld [vmem:[%s886_s25 + $0x10] sm:$0xff]  ;;  %s1063_s7 = scalar_lea.vmem %s1216_s4, %s880_s22 }
  0x11   : > { %v895_v4 = vld [vmem:[%s886_s25 + $0x80] sm:$0xff]  ;;  %v256_v5 = vpack.c.bf16 %v892_v3, %v889_v2  ;;  %v900_v6 = vld [vmem:[%s886_s25 + $0x88] sm:$0xff]  ;;  %v906_v8 = vld [vmem:[%s886_s25 + $0x18] sm:$0xff] }
  0x12   : > { %v264_v9 = vpack.c.bf16 %v900_v6, %v895_v4  ;;  %v257_v10 = vpack.c.bf16 %v906_v8, %v903_v7  ;;  %v913_v11 = vld [vmem:[%s886_s25 + $0x90] sm:$0xff]  ;;  %v916_v12 = vld [vmem:[%s886_s25 + $0x98] sm:$0xff]  ;;  %v919_v13 = vld [vmem:[%s886_s25 + $0x20] sm:$0xff] }
  0x13   : > { %787 = vmatprep.mubr.msk.bf16.mxu0 %vm295_vm0, %v256_v5  ;;  %v265_v14 = vpack.c.bf16 %v916_v12, %v913_v11  ;;  %v925_v15 = vld [vmem:[%s886_s25 + $0x28] sm:$0xff]  ;;  %v928_v16 = vld [vmem:[%s886_s25 + $0xa0] sm:$0xff]  ;;  %v941_v20 = vld [vmem:[%s886_s25 + $0x30] sm:$0xff] }
  0x14   : > { %v931_v17 = vld [vmem:[%s886_s25 + $0xa8] sm:$0xff]  ;;  %803 = vmatprep.mubr.msk.bf16.mxu1 %vm295_vm0, %v264_v9  ;;  %788 = vmatmul.mubr.msk.bf16.vlgmr.msra.gmra.mrb[0].mxu0 %vm295_vm0, %v257_v10  ;;  %v258_v18 = vpack.c.bf16 %v925_v15, %v919_v13  ;;  %v944_v21 = vld [vmem:[%s886_s25 + $0x38] sm:$0xff]  ;;  %v947_v22 = vld [vmem:[%s886_s25 + $0xb0] sm:$0xff] }
  0x15   : > { %v266_v19 = vpack.c.bf16 %v931_v17, %v928_v16  ;;  %804 = vmatmul.mubr.msk.bf16.vlgmr.msra.gmra.mrb[0].mxu1 %vm295_vm0, %v265_v14  ;;  %v952_v23 = vld [vmem:[%s886_s25 + $0xb8] sm:$0xff]  ;;  %v955_v24 = vld [vmem:[%s886_s25 + $0x40] sm:$0xff]  ;;  %v958_v25 = vld [vmem:[%s886_s25 + $0x48] sm:$0xff]  ;;  %v259_v28 = vpack.c.bf16 %v944_v21, %v941_v20 }
  0x16   : > { %791 = vmatprep.mubr.msk.bf16.mxu0 %vm295_vm0, %v258_v18  ;;  %v961_v26 = vld [vmem:[%s886_s25 + $0xc0] sm:$0xff]  ;;  %v964_v27 = vld [vmem:[%s886_s25 + $0xc8] sm:$0xff]  ;;  %v267_v29 = vpack.c.bf16 %v952_v23, %v947_v22  ;;  %v260_v30 = vpack.c.bf16 %v958_v25, %v955_v24  ;;  %v978_v32 = vld [vmem:[%s886_s25 + $0x50] sm:$0xff] }
  0x17   : > { %807 = vmatprep.mubr.msk.bf16.mxu1 %vm295_vm0, %v266_v19  ;;  %v268_v31 = vpack.c.bf16 %v964_v27, %v961_v26  ;;  %v981_v33 = vld [vmem:[%s886_s25 + $0x58] sm:$0xff]  ;;  %v984_v34 = vld [vmem:[%s886_s25 + $0xd0] sm:$0xff]  ;;  %v991_v36 = vld [vmem:[%s886_s25 + $0x60] sm:$0xff] }
  0x18   : > { %v988_v35 = vld [vmem:[%s886_s25 + $0xd8] sm:$0xff]  ;;  %v994_v37 = vld [vmem:[%s886_s25 + $0x68] sm:$0xff]  ;;  %v997_v38 = vld [vmem:[%s886_s25 + $0xe0] sm:$0xff]  ;;  %v261_v40 = vpack.c.bf16 %v981_v33, %v978_v32 }
  0x19   : > { %v1000_v39 = vld [vmem:[%s886_s25 + $0xe8] sm:$0xff]  ;;  %v269_v41 = vpack.c.bf16 %v988_v35, %v984_v34  ;;  %v262_v42 = vpack.c.bf16 %v994_v37, %v991_v36  ;;  %v1014_v44 = vld [vmem:[%s886_s25 + $0x70] sm:$0xff]  ;;  %v1017_v45 = vld [vmem:[%s886_s25 + $0x78] sm:$0xff] }
  0x1a   : > { %v270_v43 = vpack.c.bf16 %v1000_v39, %v997_v38  ;;  %v1021_v46 = vld [vmem:[%s886_s25 + $0xf0] sm:$0xff]  ;;  %v1024_v47 = vld [vmem:[%s886_s25 + $0xf8] sm:$0xff]  ;;  %v263_v48 = vpack.c.bf16 %v1017_v45, %v1014_v44  ;;  %v505_v57 = vld [vmem:[%s1036_s28] sm:$0xff] }
  0x1b   : > { %v271_v49 = vpack.c.bf16 %v1024_v47, %v1021_v46  ;;  %v507_v52 = vld [vmem:[%s1036_s28 + $0x10] sm:$0xff]  ;;  %v521_v61 = vld [vmem:[%s1036_s28 + $0x80] sm:$0xff]  ;;  %v508_v63 = vld [vmem:[%s1036_s28 + $0x18] sm:$0xff] }
  0x1c   : > { %792 = vmatmul.mubr.msk.bf16.gmra.mrb[4].mxu0 %vm295_vm0, %v259_v28  ;;  %v523_v55 = vld [vmem:[%s1036_s28 + $0x90] sm:$0xff]  ;;  %v524_v10 = vld [vmem:[%s1036_s28 + $0x98] sm:$0xff]  ;;  %v506_v18 = vld [vmem:[%s1036_s28 + $0x8] sm:$0xff] }
  0x1d   : > { %808 = vmatmul.mubr.msk.bf16.gmra.mrb[4].mxu1 %vm295_vm0, %v267_v29  ;;  %795 = vmatprep.mubr.msk.bf16.mxu0 %vm295_vm0, %v260_v30 }
  0x1e   : > { %811 = vmatprep.mubr.msk.bf16.mxu1 %vm295_vm0, %v268_v31 }
  0x24   : > { %796 = vmatmul.mubr.msk.bf16.gmra.mrb[8].mxu0 %vm295_vm0, %v261_v40  ;;  %v522_v40 = vld [vmem:[%s1036_s28 + $0x88] sm:$0xff] }
  0x25   : > { %812 = vmatmul.mubr.msk.bf16.gmra.mrb[8].mxu1 %vm295_vm0, %v269_v41  ;;  %799 = vmatprep.mubr.msk.bf16.mxu0 %vm295_vm0, %v262_v42 }
  0x26   : > { %815 = vmatprep.mubr.msk.bf16.mxu1 %vm295_vm0, %v270_v43 }
  0x2c   : > { %800 = vmatmul.mubr.msk.bf16.gmra.mrb[12].mxu0 %vm295_vm0, %v263_v48 }
  0x2d   : > { %816 = vmatmul.mubr.msk.bf16.gmra.mrb[12].mxu1 %vm295_vm0, %v271_v49 }
  0xe7   : > { %v789_v51 = vpop.f32.mrb[0].mxu0 }
  0xe8   : > { %v387_v53 = vadd.f32 %v789_v51, %v1041_v50  ;;  %v805_v54 = vpop.f32.mrb[0].mxu1  ;;  %v378_v56 = vpop.f32.mrb[1].mxu0 }
  0xe9   : > { %v451_v58 = vadd.f32 %v805_v54, %v1041_v50  ;;  %v379_v59 = vadd.f32 %v1041_v50, %v378_v56  ;;  %v442_v60 = vpop.f32.mrb[1].mxu1  ;;  %v790_v62 = vpop.f32.mrb[2].mxu0 }
  0xea   : > { %v539_v0 = vadd.f32 %v507_v52, %v387_v53  ;;  %v443_v1 = vadd.f32 %v1041_v50, %v442_v60  ;;  %v390_v5 = vadd.f32 %v790_v62, %v1041_v50  ;;  %v806_v9 = vpop.f32.mrb[2].mxu1  ;;  %v381_v14 = vpop.f32.mrb[3].mxu0 }
  0xeb   : > { %v555_v19 = vadd.f32 %v523_v55, %v451_v58  ;;  %v537_v28 = vadd.f32 %v505_v57, %v379_v59  ;;  %v454_v29 = vadd.f32 %v806_v9, %v1041_v50  ;;  %v382_v30 = vadd.f32 %v1041_v50, %v381_v14  ;;  %v445_v31 = vpop.f32.mrb[3].mxu1  ;;  %v527_v9 = vld [vmem:[%s1036_s28 + $0xb0] sm:$0xff] }
  0xec   : > { %v571_v41 = vmul.f32 0.33333334, %v539_v0  ;;  %v553_v42 = vadd.f32 %v521_v61, %v443_v1  ;;  %v540_v43 = vadd.f32 %v508_v63, %v390_v5  ;;  %v446_v48 = vadd.f32 %v1041_v50, %v445_v31  ;;  %v511_v63 = vld [vmem:[%s1036_s28 + $0x30] sm:$0xff] }
  0xed   : > { %v587_v49 = vmul.f32 0.33333334, %v555_v19  ;;  %v569_v51 = vmul.f32 0.33333334, %v537_v28  ;;  %v556_v52 = vadd.f32 %v524_v10, %v454_v29  ;;  %v538_v53 = vadd.f32 %v506_v18, %v382_v30  ;;  %v509_v10 = vld [vmem:[%s1036_s28 + $0x20] sm:$0xff]  ;;  %v512_v30 = vld [vmem:[%s1036_s28 + $0x38] sm:$0xff] }
  0xee   : > { %v603_v54 = vadd.f32 %v571_v41, %v903_v7  ;;  %v585_v55 = vmul.f32 0.33333334, %v553_v42  ;;  %v572_v56 = vmul.f32 0.33333334, %v540_v43  ;;  %v554_v57 = vadd.f32 %v522_v40, %v446_v48  ;;  %v525_v28 = vld [vmem:[%s1036_s28 + $0xa0] sm:$0xff]  ;;  %v528_v42 = vld [vmem:[%s1036_s28 + $0xb8] sm:$0xff] }
  0xef   : > { %v619_v58 = vadd.f32 %v587_v49, %v913_v11  ;;  %v601_v59 = vadd.f32 %v569_v51, %v889_v2  ;;  %v588_v60 = vmul.f32 0.33333334, %v556_v52  ;;  %v570_v61 = vmul.f32 0.33333334, %v538_v53  ;;  %v793_v62 = vpop.f32.mrb[4].mxu0  ;;  %v510_v48 = vld [vmem:[%s1036_s28 + $0x28] sm:$0xff] }
  0xf0   : > { %635 = vst.msk [vmem:[%s1063_s7 + $0x10] sm:$0xff] %vm295_vm0, %v603_v54  ;;  %v617_v7 = vadd.f32 %v585_v55, %v895_v4  ;;  %v604_v0 = vadd.f32 %v572_v56, %v906_v8  ;;  %v586_v1 = vmul.f32 0.33333334, %v554_v57  ;;  %v403_v5 = vadd.f32 %v793_v62, %v1041_v50  ;;  %v809_v11 = vpop.f32.mrb[4].mxu1  ;;  %v394_v2 = vpop.f32.mrb[5].mxu0  ;;  %v526_v54 = vld [vmem:[%s1036_s28 + $0xa8] sm:$0xff] }
  0xf1   : > { %651 = vst.msk [vmem:[%s1063_s7 + $0x90] sm:$0xff] %vm295_vm0, %v619_v58  ;;  %633 = vst.msk [vmem:[%s1063_s7] sm:$0xff] %vm295_vm0, %v601_v59  ;;  %v620_v14 = vadd.f32 %v588_v60, %v916_v12  ;;  %v602_v4 = vadd.f32 %v570_v61, %v892_v3  ;;  %v467_v8 = vadd.f32 %v809_v11, %v1041_v50  ;;  %v458_v19 = vpop.f32.mrb[5].mxu1  ;;  %v794_v29 = vpop.f32.mrb[6].mxu0 }
  0xf2   : > { %v395_v18 = vadd.f32 %v1041_v50, %v394_v2  ;;  %649 = vst.msk [vmem:[%s1063_s7 + $0x80] sm:$0xff] %vm295_vm0, %v617_v7  ;;  %636 = vst.msk [vmem:[%s1063_s7 + $0x18] sm:$0xff] %vm295_vm0, %v604_v0  ;;  %v618_v12 = vadd.f32 %v586_v1, %v900_v6  ;;  %v543_v3 = vadd.f32 %v511_v63, %v403_v5  ;;  %v810_v41 = vpop.f32.mrb[6].mxu1  ;;  %v397_v43 = vpop.f32.mrb[7].mxu0 }
  0xf3   : > { %v459_v31 = vadd.f32 %v1041_v50, %v458_v19  ;;  %v406_v40 = vadd.f32 %v794_v29, %v1041_v50  ;;  %652 = vst.msk [vmem:[%s1063_s7 + $0x98] sm:$0xff] %vm295_vm0, %v620_v14  ;;  %634 = vst.msk [vmem:[%s1063_s7 + $0x8] sm:$0xff] %vm295_vm0, %v602_v4  ;;  %v559_v49 = vadd.f32 %v527_v9, %v467_v8  ;;  %v461_v53 = vpop.f32.mrb[7].mxu1  ;;  %v515_v14 = vld [vmem:[%s1036_s28 + $0x50] sm:$0xff] }
  0xf4   : > { %v541_v51 = vadd.f32 %v509_v10, %v395_v18  ;;  %v470_v52 = vadd.f32 %v810_v41, %v1041_v50  ;;  %v398_v6 = vadd.f32 %v1041_v50, %v397_v43  ;;  %650 = vst.msk [vmem:[%s1063_s7 + $0x88] sm:$0xff] %vm295_vm0, %v618_v12  ;;  %v575_v55 = vmul.f32 0.33333334, %v543_v3  ;;  %v531_v19 = vld [vmem:[%s1036_s28 + $0xd0] sm:$0xff]  ;;  %v529_v3 = vld [vmem:[%s1036_s28 + $0xc0] sm:$0xff] }
  0xf5   : > { %v557_v56 = vadd.f32 %v525_v28, %v459_v31  ;;  %v544_v57 = vadd.f32 %v512_v30, %v406_v40  ;;  %v462_v58 = vadd.f32 %v1041_v50, %v461_v53  ;;  %v591_v59 = vmul.f32 0.33333334, %v559_v49  ;;  %v513_v28 = vld [vmem:[%s1036_s28 + $0x40] sm:$0xff]  ;;  %v516_v40 = vld [vmem:[%s1036_s28 + $0x58] sm:$0xff] }
  0xf6   : > { %v573_v60 = vmul.f32 0.33333334, %v541_v51  ;;  %v560_v61 = vadd.f32 %v528_v42, %v470_v52  ;;  %v542_v62 = vadd.f32 %v510_v48, %v398_v6  ;;  %v607_v63 = vadd.f32 %v575_v55, %v941_v20  ;;  %v532_v48 = vld [vmem:[%s1036_s28 + $0xd8] sm:$0xff]  ;;  %v514_v51 = vld [vmem:[%s1036_s28 + $0x48] sm:$0xff] }
  0xf7   : > { %v589_v7 = vmul.f32 0.33333334, %v557_v56  ;;  %v576_v0 = vmul.f32 0.33333334, %v544_v57  ;;  %v558_v1 = vadd.f32 %v526_v54, %v462_v58  ;;  %v623_v5 = vadd.f32 %v591_v59, %v947_v22  ;;  %v797_v10 = vpop.f32.mrb[8].mxu0  ;;  %v530_v55 = vld [vmem:[%s1036_s28 + $0xc8] sm:$0xff] }
  0xf8   : > { %v605_v11 = vadd.f32 %v573_v60, %v919_v13  ;;  %v592_v9 = vmul.f32 0.33333334, %v560_v61  ;;  %v574_v2 = vmul.f32 0.33333334, %v542_v62  ;;  %639 = vst.msk [vmem:[%s1063_s7 + $0x30] sm:$0xff] %vm295_vm0, %v607_v63  ;;  %v419_v18 = vadd.f32 %v797_v10, %v1041_v50  ;;  %v813_v22 = vpop.f32.mrb[8].mxu1 }
  0xf9   : > { %v621_v20 = vadd.f32 %v589_v7, %v928_v16  ;;  %v608_v4 = vadd.f32 %v576_v0, %v944_v21  ;;  %v590_v8 = vmul.f32 0.33333334, %v558_v1  ;;  %v410_v13 = vpop.f32.mrb[9].mxu0  ;;  %655 = vst.msk [vmem:[%s1063_s7 + $0xb0] sm:$0xff] %vm295_vm0, %v623_v5  ;;  %v483_v21 = vadd.f32 %v813_v22, %v1041_v50  ;;  %v474_v12 = vpop.f32.mrb[9].mxu1  ;;  %v535_v22 = vld [vmem:[%s1036_s28 + $0xf0] sm:$0xff] }
  0xfa   : > { %637 = vst.msk [vmem:[%s1063_s7 + $0x20] sm:$0xff] %vm295_vm0, %v605_v11  ;;  %v624_v29 = vadd.f32 %v592_v9, %v952_v23  ;;  %v606_v16 = vadd.f32 %v574_v2, %v925_v15  ;;  %v411_v30 = vadd.f32 %v1041_v50, %v410_v13  ;;  %v798_v31 = vpop.f32.mrb[10].mxu0  ;;  %v547_v15 = vadd.f32 %v515_v14, %v419_v18  ;;  %v814_v43 = vpop.f32.mrb[10].mxu1 }
  0xfb   : > { %653 = vst.msk [vmem:[%s1063_s7 + $0xa0] sm:$0xff] %vm295_vm0, %v621_v20  ;;  %640 = vst.msk [vmem:[%s1063_s7 + $0x38] sm:$0xff] %vm295_vm0, %v608_v4  ;;  %v622_v23 = vadd.f32 %v590_v8, %v931_v17  ;;  %v475_v41 = vadd.f32 %v1041_v50, %v474_v12  ;;  %v422_v42 = vadd.f32 %v798_v31, %v1041_v50  ;;  %v413_v49 = vpop.f32.mrb[11].mxu0  ;;  %v477_v54 = vpop.f32.mrb[11].mxu1  ;;  %v519_v20 = vld [vmem:[%s1036_s28 + $0x70] sm:$0xff] }
  0xfc   : > { %656 = vst.msk [vmem:[%s1063_s7 + $0xb8] sm:$0xff] %vm295_vm0, %v624_v29  ;;  %638 = vst.msk [vmem:[%s1063_s7 + $0x28] sm:$0xff] %vm295_vm0, %v606_v16  ;;  %v563_v52 = vadd.f32 %v531_v19, %v483_v21  ;;  %v545_v6 = vadd.f32 %v513_v28, %v411_v30  ;;  %v486_v53 = vadd.f32 %v814_v43, %v1041_v50  ;;  %v579_v56 = vmul.f32 0.33333334, %v547_v15  ;;  %v517_v19 = vld [vmem:[%s1036_s28 + $0x60] sm:$0xff]  ;;  %v520_v30 = vld [vmem:[%s1036_s28 + $0x78] sm:$0xff] }
  0xfd   : > { %v414_v17 = vadd.f32 %v1041_v50, %v413_v49  ;;  %654 = vst.msk [vmem:[%s1063_s7 + $0xa8] sm:$0xff] %vm295_vm0, %v622_v23  ;;  %v561_v57 = vadd.f32 %v529_v3, %v475_v41  ;;  %v548_v58 = vadd.f32 %v516_v40, %v422_v42  ;;  %v478_v59 = vadd.f32 %v1041_v50, %v477_v54  ;;  %v533_v16 = vld [vmem:[%s1036_s28 + $0xe0] sm:$0xff]  ;;  %v536_v40 = vld [vmem:[%s1036_s28 + $0xf8] sm:$0xff]  ;;  %v518_v15 = vld [vmem:[%s1036_s28 + $0x68] sm:$0xff] }
  0xfe   : > { %v595_v60 = vmul.f32 0.33333334, %v563_v52  ;;  %v577_v61 = vmul.f32 0.33333334, %v545_v6  ;;  %v564_v62 = vadd.f32 %v532_v48, %v486_v53  ;;  %v611_v7 = vadd.f32 %v579_v56, %v978_v32  ;;  %v534_v49 = vld [vmem:[%s1036_s28 + $0xe8] sm:$0xff] }
  0xff   : > { %v546_v63 = vadd.f32 %v514_v51, %v414_v17  ;;  %v593_v0 = vmul.f32 0.33333334, %v561_v57  ;;  %v580_v1 = vmul.f32 0.33333334, %v548_v58  ;;  %v562_v5 = vadd.f32 %v530_v55, %v478_v59  ;;  %v801_v14 = vpop.f32.mrb[12].mxu0 }
 0x100   : > { %v627_v11 = vadd.f32 %v595_v60, %v984_v34  ;;  %v609_v9 = vadd.f32 %v577_v61, %v955_v24  ;;  %v596_v2 = vmul.f32 0.33333334, %v564_v62  ;;  %643 = vst.msk [vmem:[%s1063_s7 + $0x50] sm:$0xff] %vm295_vm0, %v611_v7  ;;  %v435_v18 = vadd.f32 %v801_v14, %v1041_v50  ;;  %v817_v34 = vpop.f32.mrb[12].mxu1  ;;  %v426_v24 = vpop.f32.mrb[13].mxu0 }
 0x101   : > { %v578_v10 = vmul.f32 0.33333334, %v546_v63  ;;  %v625_v32 = vadd.f32 %v593_v0, %v961_v26  ;;  %v612_v4 = vadd.f32 %v580_v1, %v981_v33  ;;  %v594_v8 = vmul.f32 0.33333334, %v562_v5  ;;  %v490_v29 = vpop.f32.mrb[13].mxu1  ;;  %v802_v21 = vpop.f32.mrb[14].mxu0 }
 0x102   : > { %659 = vst.msk [vmem:[%s1063_s7 + $0xd0] sm:$0xff] %vm295_vm0, %v627_v11  ;;  %641 = vst.msk [vmem:[%s1063_s7 + $0x40] sm:$0xff] %vm295_vm0, %v609_v9  ;;  %v628_v13 = vadd.f32 %v596_v2, %v988_v35  ;;  %v499_v33 = vadd.f32 %v817_v34, %v1041_v50  ;;  %v427_v28 = vadd.f32 %v1041_v50, %v426_v24  ;;  %v818_v31 = vpop.f32.mrb[14].mxu1  ;;  %v429_v23 = vpop.f32.mrb[15].mxu0 }
 0x103   : > { %v610_v26 = vadd.f32 %v578_v10, %v958_v25  ;;  %657 = vst.msk [vmem:[%s1063_s7 + $0xc0] sm:$0xff] %vm295_vm0, %v625_v32  ;;  %644 = vst.msk [vmem:[%s1063_s7 + $0x58] sm:$0xff] %vm295_vm0, %v612_v4  ;;  %v626_v35 = vadd.f32 %v594_v8, %v964_v27  ;;  %v551_v25 = vadd.f32 %v519_v20, %v435_v18  ;;  %v493_v48 = vpop.f32.mrb[15].mxu1 }
 0x104   : > { %v491_v12 = vadd.f32 %v1041_v50, %v490_v29  ;;  %v438_v3 = vadd.f32 %v802_v21, %v1041_v50  ;;  %660 = vst.msk [vmem:[%s1063_s7 + $0xd8] sm:$0xff] %vm295_vm0, %v628_v13  ;;  %v567_v41 = vadd.f32 %v535_v22, %v499_v33  ;;  %v549_v42 = vadd.f32 %v517_v19, %v427_v28 }
 0x105   : > { %642 = vst.msk [vmem:[%s1063_s7 + $0x48] sm:$0xff] %vm295_vm0, %v610_v26  ;;  %v502_v43 = vadd.f32 %v818_v31, %v1041_v50  ;;  %v430_v27 = vadd.f32 %v1041_v50, %v429_v23  ;;  %658 = vst.msk [vmem:[%s1063_s7 + $0xc8] sm:$0xff] %vm295_vm0, %v626_v35  ;;  %v583_v51 = vmul.f32 0.33333334, %v551_v25  ;;  %v494_v53 = vadd.f32 %v1041_v50, %v493_v48 }
 0x106   : > { %v565_v52 = vadd.f32 %v533_v16, %v491_v12  ;;  %v552_v6 = vadd.f32 %v520_v30, %v438_v3  ;;  %v599_v17 = vmul.f32 0.33333334, %v567_v41  ;;  %v581_v54 = vmul.f32 0.33333334, %v549_v42 }
 0x107   : > { %v568_v55 = vadd.f32 %v536_v40, %v502_v43  ;;  %v550_v56 = vadd.f32 %v518_v15, %v430_v27  ;;  %v615_v57 = vadd.f32 %v583_v51, %v1014_v44  ;;  %v566_v60 = vadd.f32 %v534_v49, %v494_v53 }
 0x108   : > { %v597_v58 = vmul.f32 0.33333334, %v565_v52  ;;  %v584_v59 = vmul.f32 0.33333334, %v552_v6  ;;  %v631_v61 = vadd.f32 %v599_v17, %v1021_v46  ;;  %v613_v62 = vadd.f32 %v581_v54, %v991_v36 }
 0x109   : > { %v600_v50 = vmul.f32 0.33333334, %v568_v55  ;;  %v582_v63 = vmul.f32 0.33333334, %v550_v56  ;;  %647 = vst.msk [vmem:[%s1063_s7 + $0x70] sm:$0xff] %vm295_vm0, %v615_v57 }
 0x10a   : > { %v629_v7 = vadd.f32 %v597_v58, %v997_v38  ;;  %v616_v44 = vadd.f32 %v584_v59, %v1017_v45  ;;  %v598_v0 = vmul.f32 0.33333334, %v566_v60  ;;  %663 = vst.msk [vmem:[%s1063_s7 + $0xf0] sm:$0xff] %vm295_vm0, %v631_v61  ;;  %645 = vst.msk [vmem:[%s1063_s7 + $0x60] sm:$0xff] %vm295_vm0, %v613_v62 }
 0x10b   : > { %v632_v1 = vadd.f32 %v600_v50, %v1024_v47  ;;  %v614_v46 = vadd.f32 %v582_v63, %v994_v37 }
 0x10c   : > { %661 = vst.msk [vmem:[%s1063_s7 + $0xe0] sm:$0xff] %vm295_vm0, %v629_v7  ;;  %648 = vst.msk [vmem:[%s1063_s7 + $0x78] sm:$0xff] %vm295_vm0, %v616_v44  ;;  %v630_v36 = vadd.f32 %v598_v0, %v1000_v39 }
 0x10d   : > { %664 = vst.msk [vmem:[%s1063_s7 + $0xf8] sm:$0xff] %vm295_vm0, %v632_v1  ;;  %646 = vst.msk [vmem:[%s1063_s7 + $0x68] sm:$0xff] %vm295_vm0, %v614_v46 }
 0x10e   : > { %662 = vst.msk [vmem:[%s1063_s7 + $0xe8] sm:$0xff] %vm295_vm0, %v630_v36 }
 0x10f PF: > { %s14_s15 = sadd.s32 1, %s839_s15  }
 0x110   : > { %p11_p4 = scmp.ge.s32.totalorder %s14_s15, 4  }
 0x112   :  { %13 = sbr.rel (!%p11_p4) target bundleno = 1 (0x1), region = 69 }

// kernel: fno2d_forward.15
= control target key start
LH: loop header
LB: loop body
LE: loop exit
PB: predicated region body
PF: predicated region fallthrough
CT: control target
= control target key end

     0   :  { %s1621_s24 = smov 0   ;;  %s2002_s0 = inlined_call_operand.vmem [shape: f32[512,32], index: 0, kind: input, shape index: {}]   ;;  %s2003_s1 = inlined_call_operand.vmem [shape: f32[512,1], index: 1, kind: input, shape index: {}]   ;;  %s2004_s2 = inlined_call_operand.vmem [shape: bf16[32,128], index: 2, kind: input, shape index: {}]   ;;  %s2005_s3 = inlined_call_operand.vmem [shape: f32[1,128], index: 3, kind: input, shape index: {}]   ;;  %s2006_s4 = inlined_call_operand.vmem [shape: bf16[128,3], index: 4, kind: input, shape index: {}]   ;;  %s2007_s5 = inlined_call_operand.vmem [shape: f32[1,3], index: 5, kind: input, shape index: {}]   ;;  %s2008_s6 = inlined_call_operand.vmem [shape: f32[512,1], index: 6, kind: output, shape index: {0}]   ;;  %s2009_s7 = inlined_call_operand.vmem [shape: f32[512,2], index: 7, kind: output, shape index: {1}]  }
   0x1 LB: > { %s1304_s25 = sadd.s32 4294967295, %s1578_s24   ;;  %p1308_p0 = scmp.ge.s32.totalorder %s1578_s24, 1  ;;  %s1578_s24 = sphi %s1621_s24, %s18_s24  }
   0x2   : > { %p252_p1 = scmp.lt.s32.totalorder %s1578_s24, 3 }
   0x4   : > { %p253_p2 = pnand %p1308_p0, %p252_p1 }
   0x5   : > { %v1498_v0 = vld [vmem:[%s2004_s2] sm:$0xff] (!%p253_p2)   ;;  %s1309_s28 = sshll.u32 (!%p253_p2), %s1304_s25, 5  ;;  %v1499_v1 = vld [vmem:[%s2004_s2 + $0x8] sm:$0xff] (!%p253_p2)   ;;  %v1502_v4 = vld [vmem:[%s2006_s4 + $0x10] sm:$0xff] (!%p253_p2)   ;;  %vm390_vm0 = vcmask (!%p253_p2), 261120   ;;  %s1580_s10 = smov (!%p253_p2), 127  }
   0x6   : > { %256 = sbr.rel (%p253_p2) target bundleno = 635 (0x27b), region = 44  ;;  %p295_p3 = scmp.lt.s32.totalorder (!%p253_p2), %s1309_s28, 63  ;;  %1389 = vmatprep.subr.bf16.mxu0 (!%p253_p2), %v1498_v0  ;;  %v1500_v2 = vld [vmem:[%s2006_s4] sm:$0xff] (!%p253_p2)   ;;  %v1501_v3 = vld [vmem:[%s2006_s4 + $0x8] sm:$0xff] (!%p253_p2)   ;;  %v1503_v16 = vld [vmem:[%s2006_s4 + $0x18] sm:$0xff] (!%p253_p2)   ;;  %vm1008_vm1 = vcmask (!%p253_p2), 7168  }
   0x7   : > { %1390 = vmatpush3.bf16.msra.mxu0 (!%p253_p2), %v1498_v0  ;;  %1473 = vmatprep.subr.bf16.mxu1 (!%p253_p2), %v1500_v2  ;;  %v1504_v21 = vld [vmem:[%s2006_s4 + $0x20] sm:$0xff] (!%p253_p2)   ;;  %v1505_v24 = vld [vmem:[%s2006_s4 + $0x28] sm:$0xff] (!%p253_p2)   ;;  %v1506_v29 = vld [vmem:[%s2006_s4 + $0x30] sm:$0xff] (!%p253_p2)   ;;  %vm1169_vm2 = vcmask (!%p253_p2), 15360  }
   0x8   : > { %1391 = vmatprep.subr.bf16.mxu0 (!%p253_p2), %v1499_v1  ;;  %1481 = vmatpush3.bf16.msra.mxu1 (!%p253_p2), %v1500_v2  ;;  %v1507_v57 = vld [vmem:[%s2006_s4 + $0x38] sm:$0xff] (!%p253_p2)   ;;  %v1718_v58 = vld [vmem:[%s2005_s3] ss:$0 sm:$0xff] (!%p253_p2) }
   0x9   : > { %1474 = vmatprep.subr.bf16.mxu1 (!%p253_p2), %v1501_v3 }
   0xb   : > { %1392 = vmatpush3.bf16.msra.mxu0 (!%p253_p2), %v1499_v1 }
   0xc   : > { %1425 = vmatprep.subr.bf16.mxu0 (!%p253_p2), %v1500_v2  ;;  %1482 = vmatpush3.bf16.msra.mxu1 (!%p253_p2), %v1501_v3 }
   0xd   : > { %s2011_s28 = smov (!%p295_p3, %s1309_s28), 63  ;;  %1475 = vmatprep.subr.bf16.mxu1 %v1502_v4 }
   0xe   : > { %s1641_s12 = sshll.u32 %s2011_s28, 3 }
   0xf   : > { %s1647_s15 = scalar_lea.vmem %s2002_s0, %s1641_s12  ;;  %s1770_s14 = scalar_lea.vmem %s2003_s1, %s1641_s12 }
  0x10   : > { %v319_v5 = vld [vmem:[%s1647_s15] sm:$0xff]  ;;  %v320_v6 = vld [vmem:[%s1647_s15 + $0x8] sm:$0xff]  ;;  %v321_v7 = vld [vmem:[%s1647_s15 + $0x10] sm:$0xff]  ;;  %1483 = vmatpush3.bf16.msra.mxu1 %v1502_v4  ;;  %s1783_s17 = scalar_lea.vmem %s2008_s6, %s1641_s12  ;;  %s1933_s20 = scalar_lea.vmem %s2009_s7, %s1641_s12 }
  0x11   : > { %v351_v8 = vpack.c.bf16 %v320_v6, %v319_v5  ;;  %v322_v9 = vld [vmem:[%s1647_s15 + $0x18] sm:$0xff]  ;;  %v323_v10 = vld [vmem:[%s1647_s15 + $0x20] sm:$0xff]  ;;  %v324_v11 = vld [vmem:[%s1647_s15 + $0x28] sm:$0xff]  ;;  %1476 = vmatprep.subr.bf16.mxu1 %v1503_v16 }
  0x12   : > { %v352_v12 = vpack.c.bf16 %v322_v9, %v321_v7  ;;  %v353_v13 = vpack.c.bf16 %v324_v11, %v323_v10  ;;  %v325_v14 = vld [vmem:[%s1647_s15 + $0x30] sm:$0xff]  ;;  %v326_v15 = vld [vmem:[%s1647_s15 + $0x38] sm:$0xff]  ;;  %v327_v17 = vld [vmem:[%s1647_s15 + $0x40] sm:$0xff] }
  0x13   : > { %1393 = vmatprep.mubr.msk.bf16.mxu0 %vm390_vm0, %v351_v8  ;;  %v328_v18 = vld [vmem:[%s1647_s15 + $0x48] sm:$0xff]  ;;  %v354_v19 = vpack.c.bf16 %v326_v15, %v325_v14  ;;  %v329_v22 = vld [vmem:[%s1647_s15 + $0x50] sm:$0xff]  ;;  %v330_v23 = vld [vmem:[%s1647_s15 + $0x58] sm:$0xff] }
  0x14   : > { %1394 = vmatmul.mubr.msk.bf16.vlgmr.msra.gmra.mrb[0].mxu0 %vm390_vm0, %v352_v12  ;;  %v355_v20 = vpack.c.bf16 %v328_v18, %v327_v17  ;;  %1484 = vmatpush3.bf16.msra.mxu1 %v1503_v16  ;;  %v331_v25 = vld [vmem:[%s1647_s15 + $0x60] sm:$0xff]  ;;  %v332_v26 = vld [vmem:[%s1647_s15 + $0x68] sm:$0xff]  ;;  %v356_v27 = vpack.c.bf16 %v330_v23, %v329_v22  ;;  %v333_v30 = vld [vmem:[%s1647_s15 + $0x70] sm:$0xff] }
  0x15   : > { %1397 = vmatprep.mubr.msk.bf16.mxu0 %vm390_vm0, %v353_v13  ;;  %1426 = vmatpush3.bf16.msra.mxu0 %v1500_v2  ;;  %v357_v28 = vpack.c.bf16 %v332_v26, %v331_v25  ;;  %v334_v31 = vld [vmem:[%s1647_s15 + $0x78] sm:$0xff]  ;;  %v335_v32 = vld [vmem:[%s1647_s15 + $0x80] sm:$0xff]  ;;  %v336_v33 = vld [vmem:[%s1647_s15 + $0x88] sm:$0xff] }
  0x16   : > { %1427 = vmatprep.subr.bf16.mxu0 %v1501_v3  ;;  %1477 = vmatprep.subr.bf16.mxu1 %v1504_v21  ;;  %v358_v34 = vpack.c.bf16 %v334_v31, %v333_v30  ;;  %v359_v35 = vpack.c.bf16 %v336_v33, %v335_v32  ;;  %v337_v36 = vld [vmem:[%s1647_s15 + $0x90] sm:$0xff]  ;;  %v338_v37 = vld [vmem:[%s1647_s15 + $0x98] sm:$0xff]  ;;  %v339_v38 = vld [vmem:[%s1647_s15 + $0xa0] sm:$0xff] }
  0x17   : > { %v340_v39 = vld [vmem:[%s1647_s15 + $0xa8] sm:$0xff]  ;;  %v360_v40 = vpack.c.bf16 %v338_v37, %v337_v36  ;;  %v341_v42 = vld [vmem:[%s1647_s15 + $0xb0] sm:$0xff]  ;;  %v342_v43 = vld [vmem:[%s1647_s15 + $0xb8] sm:$0xff] }
  0x18   : > { %1485 = vmatpush3.bf16.msra.mxu1 %v1504_v21  ;;  %v361_v41 = vpack.c.bf16 %v340_v39, %v339_v38  ;;  %v343_v44 = vld [vmem:[%s1647_s15 + $0xc0] sm:$0xff]  ;;  %v344_v45 = vld [vmem:[%s1647_s15 + $0xc8] sm:$0xff]  ;;  %v362_v46 = vpack.c.bf16 %v342_v43, %v341_v42  ;;  %v345_v48 = vld [vmem:[%s1647_s15 + $0xd0] sm:$0xff] }
  0x19   : > { %1428 = vmatpush3.bf16.msra.mxu0 %v1501_v3  ;;  %1478 = vmatprep.subr.bf16.mxu1 %v1505_v24  ;;  %v363_v47 = vpack.c.bf16 %v344_v45, %v343_v44  ;;  %v346_v49 = vld [vmem:[%s1647_s15 + $0xd8] sm:$0xff]  ;;  %v347_v50 = vld [vmem:[%s1647_s15 + $0xe0] sm:$0xff]  ;;  %v348_v51 = vld [vmem:[%s1647_s15 + $0xe8] sm:$0xff] }
  0x1a   : > { %1429 = vmatprep.subr.bf16.mxu0 %v1502_v4  ;;  %v364_v52 = vpack.c.bf16 %v346_v49, %v345_v48  ;;  %v365_v53 = vpack.c.bf16 %v348_v51, %v347_v50  ;;  %v349_v54 = vld [vmem:[%s1647_s15 + $0xf0] sm:$0xff]  ;;  %v350_v55 = vld [vmem:[%s1647_s15 + $0xf8] sm:$0xff] }
  0x1b   : > { %v366_v56 = vpack.c.bf16 %v350_v55, %v349_v54 }
  0x1c   : > { %1398 = vmatmul.mubr.msk.bf16.gmra.mrb[4].mxu0 %vm390_vm0, %v354_v19  ;;  %1486 = vmatpush3.bf16.msra.mxu1 %v1505_v24 }
  0x1d   : > { %1401 = vmatprep.mubr.msk.bf16.mxu0 %vm390_vm0, %v355_v20  ;;  %1430 = vmatpush3.bf16.msra.mxu0 %v1502_v4 }
  0x1e   : > { %1431 = vmatprep.subr.bf16.mxu0 %v1503_v16  ;;  %1479 = vmatprep.subr.bf16.mxu1 %v1506_v29 }
  0x20   : > { %1487 = vmatpush3.bf16.msra.mxu1 %v1506_v29 }
  0x21   : > { %1432 = vmatpush3.bf16.msra.mxu0 %v1503_v16  ;;  %1480 = vmatprep.subr.bf16.mxu1 %v1507_v57 }
  0x22   : > { %1433 = vmatprep.subr.bf16.mxu0 %v1504_v21 }
  0x24   : > { %1402 = vmatmul.mubr.msk.bf16.gmra.mrb[8].mxu0 %vm390_vm0, %v356_v27  ;;  %1488 = vmatpush3.bf16.msra.mxu1 %v1507_v57 }
  0x25   : > { %1405 = vmatprep.mubr.msk.bf16.mxu0 %vm390_vm0, %v357_v28  ;;  %1434 = vmatpush3.bf16.msra.mxu0 %v1504_v21 }
  0x26   : > { %1435 = vmatprep.subr.bf16.mxu0 %v1505_v24 }
  0x29   : > { %1436 = vmatpush3.bf16.msra.mxu0 %v1505_v24 }
  0x2a   : > { %1437 = vmatprep.subr.bf16.mxu0 %v1506_v29 }
  0x2c   : > { %1406 = vmatmul.mubr.msk.bf16.gmra.mrb[12].mxu0 %vm390_vm0, %v358_v34 }
  0x2d   : > { %1409 = vmatprep.mubr.msk.bf16.mxu0 %vm390_vm0, %v359_v35  ;;  %1438 = vmatpush3.bf16.msra.mxu0 %v1506_v29 }
  0x2e   : > { %1439 = vmatprep.subr.bf16.mxu0 %v1507_v57 }
  0x31   : > { %1440 = vmatpush3.bf16.msra.mxu0 %v1507_v57 }
  0x34   : > { %1410 = vmatmul.mubr.msk.bf16.gmra.mrb[16].mxu0 %vm390_vm0, %v360_v40 }
  0x35   : > { %1413 = vmatprep.mubr.msk.bf16.mxu0 %vm390_vm0, %v361_v41 }
  0x3c   : > { %1414 = vmatmul.mubr.msk.bf16.gmra.mrb[20].mxu0 %vm390_vm0, %v362_v46 }
  0x3d   : > { %1417 = vmatprep.mubr.msk.bf16.mxu0 %vm390_vm0, %v363_v47 }
  0x44   : > { %1418 = vmatmul.mubr.msk.bf16.gmra.mrb[24].mxu0 %vm390_vm0, %v364_v52 }
  0x45   : > { %1421 = vmatprep.mubr.msk.bf16.mxu0 %vm390_vm0, %v365_v53 }
  0x4c   : > { %1422 = vmatmul.mubr.msk.bf16.gmra.mrb[28].mxu0 %vm390_vm0, %v366_v56 }
  0xe7   : > { %v1395_v59 = vpop.f32.mrb[0].mxu0 }
  0xe8   : > { %v482_v60 = vadd.f32 %v1395_v59, %v1718_v58  ;;  %v473_v61 = vpop.f32.mrb[1].mxu0 }
  0xe9   : > { %v474_v62 = vadd.f32 %v1718_v58, %v473_v61  ;;  %v1396_v63 = vpop.f32.mrb[2].mxu0 }
  0xea   : > { %v485_v0 = vadd.f32 %v1396_v63, %v1718_v58  ;;  %v476_v1 = vpop.f32.mrb[3].mxu0  ;;  %v602_v3 = vmax.f32 %v482_v60, 0.0 }
  0xeb   : > { %v477_v2 = vadd.f32 %v1718_v58, %v476_v1  ;;  %v600_v5 = vmax.f32 %v474_v62, 0.0 }
  0xec   : > { %v603_v4 = vmax.f32 %v485_v0, 0.0 }
  0xed   : > { %v601_v6 = vmax.f32 %v477_v2, 0.0 }
  0xee   : > { %v633_v7 = vpack.c.bf16 %v603_v4, %v602_v3 }
  0xef   : > { %v632_v8 = vpack.c.bf16 %v601_v6, %v600_v5  ;;  %v1399_v9 = vpop.f32.mrb[4].mxu0 }
  0xf0   : > { %v498_v10 = vadd.f32 %v1399_v9, %v1718_v58  ;;  %v489_v11 = vpop.f32.mrb[5].mxu0 }
  0xf1   : > { %v490_v12 = vadd.f32 %v1718_v58, %v489_v11  ;;  %v1400_v13 = vpop.f32.mrb[6].mxu0  ;;  %1441 = vmatprep.mubr.bf16.mxu0 %v632_v8 }
  0xf2   : > { %v501_v14 = vadd.f32 %v1400_v13, %v1718_v58  ;;  %v492_v15 = vpop.f32.mrb[7].mxu0  ;;  %1442 = vmatmul.mubr.bf16.vlgmr.msra.gmra.mrb[32].mxu0 %v633_v7  ;;  %v606_v17 = vmax.f32 %v498_v10, 0.0 }
  0xf3   : > { %v493_v16 = vadd.f32 %v1718_v58, %v492_v15  ;;  %v604_v19 = vmax.f32 %v490_v12, 0.0 }
  0xf4   : > { %v607_v18 = vmax.f32 %v501_v14, 0.0 }
  0xf5   : > { %v605_v20 = vmax.f32 %v493_v16, 0.0 }
  0xf6   : > { %v635_v21 = vpack.c.bf16 %v607_v18, %v606_v17 }
  0xf7   : > { %v1403_v22 = vpop.f32.mrb[8].mxu0  ;;  %v634_v23 = vpack.c.bf16 %v605_v20, %v604_v19 }
  0xf8   : > { %v514_v24 = vadd.f32 %v1403_v22, %v1718_v58  ;;  %v505_v25 = vpop.f32.mrb[9].mxu0 }
  0xf9   : > { %v506_v26 = vadd.f32 %v1718_v58, %v505_v25  ;;  %v1404_v27 = vpop.f32.mrb[10].mxu0  ;;  %1445 = vmatprep.mubr.bf16.mxu1 %v634_v23 }
  0xfa   : > { %v517_v28 = vadd.f32 %v1404_v27, %v1718_v58  ;;  %v508_v29 = vpop.f32.mrb[11].mxu0  ;;  %1446 = vmatmul.mubr.bf16.vlgmr.msra.gmra.mrb[0].mxu1 %v635_v21  ;;  %v610_v31 = vmax.f32 %v514_v24, 0.0 }
  0xfb   : > { %v509_v30 = vadd.f32 %v1718_v58, %v508_v29  ;;  %v608_v33 = vmax.f32 %v506_v26, 0.0 }
  0xfc   : > { %v611_v32 = vmax.f32 %v517_v28, 0.0 }
  0xfd   : > { %v609_v34 = vmax.f32 %v509_v30, 0.0 }
  0xfe   : > { %v637_v35 = vpack.c.bf16 %v611_v32, %v610_v31 }
  0xff   : > { %v636_v36 = vpack.c.bf16 %v609_v34, %v608_v33  ;;  %v1407_v37 = vpop.f32.mrb[12].mxu0 }
 0x100   : > { %v530_v38 = vadd.f32 %v1407_v37, %v1718_v58  ;;  %v521_v39 = vpop.f32.mrb[13].mxu0 }
 0x101   : > { %v522_v40 = vadd.f32 %v1718_v58, %v521_v39  ;;  %v1408_v41 = vpop.f32.mrb[14].mxu0  ;;  %1449 = vmatprep.mubr.bf16.mxu1 %v636_v36 }
 0x102   : > { %v533_v42 = vadd.f32 %v1408_v41, %v1718_v58  ;;  %v524_v43 = vpop.f32.mrb[15].mxu0  ;;  %1450 = vmatmul.mubr.bf16.gmra.mrb[4].mxu1 %v637_v35  ;;  %v614_v45 = vmax.f32 %v530_v38, 0.0 }
 0x103   : > { %v525_v44 = vadd.f32 %v1718_v58, %v524_v43  ;;  %v612_v47 = vmax.f32 %v522_v40, 0.0 }
 0x104   : > { %v615_v46 = vmax.f32 %v533_v42, 0.0 }
 0x105   : > { %v613_v48 = vmax.f32 %v525_v44, 0.0  ;;  %v1755_v44 = vld [vmem:[%s2007_s5] ss:$0 sm:$0xff] }
 0x106   : > { %v639_v49 = vpack.c.bf16 %v615_v46, %v614_v45 }
 0x107   : > { %v638_v50 = vpack.c.bf16 %v613_v48, %v612_v47  ;;  %v1411_v51 = vpop.f32.mrb[16].mxu0 }
 0x108   : > { %v546_v52 = vadd.f32 %v1411_v51, %v1718_v58  ;;  %v537_v53 = vpop.f32.mrb[17].mxu0 }
 0x109   : > { %v538_v54 = vadd.f32 %v1718_v58, %v537_v53  ;;  %v1412_v55 = vpop.f32.mrb[18].mxu0  ;;  %1453 = vmatprep.mubr.bf16.mxu1 %v638_v50 }
 0x10a   : > { %v549_v56 = vadd.f32 %v1412_v55, %v1718_v58  ;;  %v540_v57 = vpop.f32.mrb[19].mxu0  ;;  %1454 = vmatmul.mubr.bf16.gmra.mrb[8].mxu1 %v639_v49  ;;  %v618_v60 = vmax.f32 %v546_v52, 0.0 }
 0x10b   : > { %v541_v59 = vadd.f32 %v1718_v58, %v540_v57  ;;  %v616_v62 = vmax.f32 %v538_v54, 0.0 }
 0x10c   : > { %v619_v61 = vmax.f32 %v549_v56, 0.0 }
 0x10d   : > { %v617_v63 = vmax.f32 %v541_v59, 0.0 }
 0x10e   : > { %v641_v0 = vpack.c.bf16 %v619_v61, %v618_v60 }
 0x10f   : > { %v640_v1 = vpack.c.bf16 %v617_v63, %v616_v62  ;;  %v1415_v2 = vpop.f32.mrb[20].mxu0 }
 0x110   : > { %v562_v3 = vadd.f32 %v1415_v2, %v1718_v58  ;;  %v553_v4 = vpop.f32.mrb[21].mxu0 }
 0x111   : > { %v554_v5 = vadd.f32 %v1718_v58, %v553_v4  ;;  %v1416_v6 = vpop.f32.mrb[22].mxu0  ;;  %1457 = vmatprep.mubr.bf16.mxu1 %v640_v1 }
 0x112   : > { %v565_v7 = vadd.f32 %v1416_v6, %v1718_v58  ;;  %v556_v8 = vpop.f32.mrb[23].mxu0  ;;  %1458 = vmatmul.mubr.bf16.gmra.mrb[12].mxu1 %v641_v0  ;;  %v622_v10 = vmax.f32 %v562_v3, 0.0  ;;  %v882_v3 = vld [vmem:[%s1770_s14 + $0x10] sm:$0xff] }
 0x113   : > { %v557_v9 = vadd.f32 %v1718_v58, %v556_v8  ;;  %v620_v12 = vmax.f32 %v554_v5, 0.0  ;;  %v880_v5 = vld [vmem:[%s1770_s14] sm:$0xff]  ;;  %v883_v8 = vld [vmem:[%s1770_s14 + $0x18] sm:$0xff] }
 0x114   : > { %v623_v11 = vmax.f32 %v565_v7, 0.0 }
 0x115   : > { %v621_v13 = vmax.f32 %v557_v9, 0.0 }
 0x116   : > { %v643_v14 = vpack.c.bf16 %v623_v11, %v622_v10  ;;  %v881_v11 = vld [vmem:[%s1770_s14 + $0x8] sm:$0xff] }
 0x117   : > { %v642_v15 = vpack.c.bf16 %v621_v13, %v620_v12  ;;  %v1419_v16 = vpop.f32.mrb[24].mxu0 }
 0x118   : > { %v578_v17 = vadd.f32 %v1419_v16, %v1718_v58  ;;  %v569_v18 = vpop.f32.mrb[25].mxu0 }
 0x119   : > { %v570_v19 = vadd.f32 %v1718_v58, %v569_v18  ;;  %v1420_v20 = vpop.f32.mrb[26].mxu0  ;;  %1461 = vmatprep.mubr.bf16.mxu1 %v642_v15 }
 0x11a   : > { %v581_v21 = vadd.f32 %v1420_v20, %v1718_v58  ;;  %v572_v22 = vpop.f32.mrb[27].mxu0  ;;  %1462 = vmatmul.mubr.bf16.gmra.mrb[16].mxu1 %v643_v14  ;;  %v626_v24 = vmax.f32 %v578_v17, 0.0 }
 0x11b   : > { %v573_v23 = vadd.f32 %v1718_v58, %v572_v22  ;;  %v624_v26 = vmax.f32 %v570_v19, 0.0 }
 0x11c   : > { %v627_v25 = vmax.f32 %v581_v21, 0.0 }
 0x11d   : > { %v625_v27 = vmax.f32 %v573_v23, 0.0 }
 0x11e   : > { %v645_v28 = vpack.c.bf16 %v627_v25, %v626_v24 }
 0x11f   : > { %v644_v29 = vpack.c.bf16 %v625_v27, %v624_v26  ;;  %v1423_v30 = vpop.f32.mrb[28].mxu0  ;;  %v886_v27 = vld [vmem:[%s1770_s14 + $0x30] sm:$0xff] }
 0x120   : > { %v594_v31 = vadd.f32 %v1423_v30, %v1718_v58  ;;  %v585_v32 = vpop.f32.mrb[29].mxu0 }
 0x121   : > { %v586_v33 = vadd.f32 %v1718_v58, %v585_v32  ;;  %v1424_v34 = vpop.f32.mrb[30].mxu0  ;;  %1465 = vmatprep.mubr.bf16.mxu1 %v644_v29  ;;  %v884_v29 = vld [vmem:[%s1770_s14 + $0x20] sm:$0xff]  ;;  %v887_v32 = vld [vmem:[%s1770_s14 + $0x38] sm:$0xff] }
 0x122   : > { %v597_v35 = vadd.f32 %v1424_v34, %v1718_v58  ;;  %v588_v36 = vpop.f32.mrb[31].mxu0  ;;  %1466 = vmatmul.mubr.bf16.gmra.mrb[20].mxu1 %v645_v28  ;;  %v630_v38 = vmax.f32 %v594_v31, 0.0 }
 0x123   : > { %v589_v37 = vadd.f32 %v1718_v58, %v588_v36  ;;  %v628_v40 = vmax.f32 %v586_v33, 0.0 }
 0x124   : > { %v631_v39 = vmax.f32 %v597_v35, 0.0  ;;  %v885_v35 = vld [vmem:[%s1770_s14 + $0x28] sm:$0xff] }
 0x125   : > { %v629_v41 = vmax.f32 %v589_v37, 0.0 }
 0x126   : > { %v647_v42 = vpack.c.bf16 %v631_v39, %v630_v38 }
 0x127   : > { %v646_v43 = vpack.c.bf16 %v629_v41, %v628_v40 }
 0x129   : > { %1469 = vmatprep.mubr.bf16.mxu1 %v646_v43 }
 0x12a   : > { %1470 = vmatmul.mubr.bf16.gmra.mrb[24].mxu1 %v647_v42 }
 0x1c5   : > { %v1443_v45 = vpop.f32.mrb[32].mxu0 }
 0x1c6   : > { %v762_v46 = vadd.f32 %v1443_v45, %v1755_v44  ;;  %v753_v47 = vpop.f32.mrb[33].mxu0 }
 0x1c7   : > { %v754_v48 = vadd.f32 %v1755_v44, %v753_v47  ;;  %v1444_v58 = vpop.f32.mrb[34].mxu0 }
 0x1c8   : > { %v914_v49 = vmul.f32 0.1, %v762_v46  ;;  %v765_v50 = vadd.f32 %v1444_v58, %v1755_v44  ;;  %1077 = vrot.lane.b32.xlu1 %v762_v46, %s1580_s10  ;;  %v756_v51 = vpop.f32.mrb[35].mxu0 }
 0x1c9   : > { %v912_v52 = vmul.f32 0.1, %v754_v48  ;;  %v757_v53 = vadd.f32 %v1755_v44, %v756_v51  ;;  %1073 = vrot.lane.b32.xlu0 %v754_v48, %s1580_s10  ;;  %v890_v51 = vld [vmem:[%s1770_s14 + $0x50] sm:$0xff] }
 0x1ca   : > { %1508 = vtanh.f32 %v914_v49  ;;  %v915_v54 = vmul.f32 0.1, %v765_v50 }
 0x1cb   : > { %1510 = vtanh.f32 %v912_v52  ;;  %v913_v55 = vmul.f32 0.1, %v757_v53 }
 0x1cc   : > { %1512 = vtanh.f32 %v915_v54  ;;  %1079 = vrot.lane.b32.xlu1 %v765_v50, %s1580_s10 }
 0x1cd   : > { %1514 = vtanh.f32 %v913_v55  ;;  %v1447_v56 = vpop.f32.mrb[0].mxu1  ;;  %1075 = vrot.lane.b32.xlu0 %v757_v53, %s1580_s10  ;;  %v888_v53 = vld [vmem:[%s1770_s14 + $0x40] sm:$0xff] }
 0x1ce   : > { %v778_v57 = vadd.f32 %v1447_v56, %v1755_v44  ;;  %v769_v59 = vpop.f32.mrb[1].mxu1  ;;  %v891_v56 = vld [vmem:[%s1770_s14 + $0x58] sm:$0xff] }
 0x1cf   : > { %v770_v60 = vadd.f32 %v1755_v44, %v769_v59  ;;  %v1448_v61 = vpop.f32.mrb[2].mxu1 }
 0x1d0   : > { %v918_v62 = vmul.f32 0.1, %v778_v57  ;;  %v781_v63 = vadd.f32 %v1448_v61, %v1755_v44  ;;  %v772_v0 = vpop.f32.mrb[3].mxu1 }
 0x1d1   : > { %v916_v1 = vmul.f32 0.1, %v770_v60  ;;  %v773_v2 = vadd.f32 %v1755_v44, %v772_v0  ;;  %1085 = vrot.lane.b32.xlu0 %v778_v57, %s1580_s10 }
 0x1d2   : > { %1516 = vtanh.f32 %v918_v62  ;;  %v919_v4 = vmul.f32 0.1, %v781_v63  ;;  %1087 = vrot.lane.b32.xlu1 %v781_v63, %s1580_s10 }
 0x1d3   : > { %1518 = vtanh.f32 %v916_v1  ;;  %v917_v6 = vmul.f32 0.1, %v773_v2 }
 0x1d4   : > { %v1509_v7 = vpop.eup %1508  ;;  %1520 = vtanh.f32 %v919_v4 }
 0x1d5   : > { %v1511_v9 = vpop.eup %1510  ;;  %v978_v10 = vadd.f32 %v1509_v7, %v882_v3  ;;  %1522 = vtanh.f32 %v917_v6  ;;  %v1451_v12 = vpop.f32.mrb[4].mxu1  ;;  %1081 = vrot.lane.b32.xlu0 %v770_v60, %s1580_s10  ;;  %v889_v60 = vld [vmem:[%s1770_s14 + $0x48] sm:$0xff] }
 0x1d6   : > { %v1513_v13 = vpop.eup %1512  ;;  %v976_v14 = vadd.f32 %v1511_v9, %v880_v5  ;;  %v794_v15 = vadd.f32 %v1451_v12, %v1755_v44  ;;  %v785_v16 = vpop.f32.mrb[5].mxu1  ;;  %1083 = vrot.lane.b32.xlu1 %v773_v2, %s1580_s10  ;;  %v894_v12 = vld [vmem:[%s1770_s14 + $0x70] sm:$0xff] }
 0x1d7   : > { %v1515_v17 = vpop.eup %1514  ;;  %1011 = vst.msk [vmem:[%s1783_s17 + $0x10] sm:$0xff] %vm1008_vm1, %v978_v10  ;;  %v979_v18 = vadd.f32 %v1513_v13, %v883_v8  ;;  %v786_v19 = vadd.f32 %v1755_v44, %v785_v16  ;;  %v1452_v20 = vpop.f32.mrb[6].mxu1 }
 0x1d8   : > { %1009 = vst.msk [vmem:[%s1783_s17] sm:$0xff] %vm1008_vm1, %v976_v14  ;;  %v977_v21 = vadd.f32 %v1515_v17, %v881_v11  ;;  %v922_v22 = vmul.f32 0.1, %v794_v15  ;;  %v797_v23 = vadd.f32 %v1452_v20, %v1755_v44  ;;  %v788_v24 = vpop.f32.mrb[7].mxu1  ;;  %v892_v14 = vld [vmem:[%s1770_s14 + $0x60] sm:$0xff]  ;;  %v895_v17 = vld [vmem:[%s1770_s14 + $0x78] sm:$0xff] }
 0x1d9   : > { %1012 = vst.msk [vmem:[%s1783_s17 + $0x18] sm:$0xff] %vm1008_vm1, %v979_v18  ;;  %v920_v25 = vmul.f32 0.1, %v786_v19  ;;  %v789_v26 = vadd.f32 %v1755_v44, %v788_v24  ;;  %1093 = vrot.lane.b32.xlu0 %v794_v15, %s1580_s10  ;;  %v893_v20 = vld [vmem:[%s1770_s14 + $0x68] sm:$0xff] }
 0x1da   : > { %1010 = vst.msk [vmem:[%s1783_s17 + $0x8] sm:$0xff] %vm1008_vm1, %v977_v21  ;;  %1524 = vtanh.f32 %v922_v22  ;;  %v923_v28 = vmul.f32 0.1, %v797_v23  ;;  %1095 = vrot.lane.b32.xlu1 %v797_v23, %s1580_s10 }
 0x1db   : > { %1526 = vtanh.f32 %v920_v25  ;;  %v921_v30 = vmul.f32 0.1, %v789_v26 }
 0x1dc   : > { %v1517_v31 = vpop.eup %1516  ;;  %1528 = vtanh.f32 %v923_v28 }
 0x1dd   : > { %v1519_v33 = vpop.eup %1518  ;;  %v982_v34 = vadd.f32 %v1517_v31, %v886_v27  ;;  %1530 = vtanh.f32 %v921_v30  ;;  %v1455_v36 = vpop.f32.mrb[8].mxu1  ;;  %1089 = vrot.lane.b32.xlu0 %v786_v19, %s1580_s10 }
 0x1de   : > { %v1521_v37 = vpop.eup %1520  ;;  %v980_v38 = vadd.f32 %v1519_v33, %v884_v29  ;;  %v810_v39 = vadd.f32 %v1455_v36, %v1755_v44  ;;  %v801_v40 = vpop.f32.mrb[9].mxu1  ;;  %1091 = vrot.lane.b32.xlu1 %v789_v26, %s1580_s10  ;;  %v898_v36 = vld [vmem:[%s1770_s14 + $0x90] sm:$0xff] }
 0x1df   : > { %v1523_v41 = vpop.eup %1522  ;;  %1015 = vst.msk [vmem:[%s1783_s17 + $0x30] sm:$0xff] %vm1008_vm1, %v982_v34  ;;  %v983_v42 = vadd.f32 %v1521_v37, %v887_v32  ;;  %v802_v43 = vadd.f32 %v1755_v44, %v801_v40  ;;  %v1456_v45 = vpop.f32.mrb[10].mxu1 }
 0x1e0   : > { %1013 = vst.msk [vmem:[%s1783_s17 + $0x20] sm:$0xff] %vm1008_vm1, %v980_v38  ;;  %v981_v46 = vadd.f32 %v1523_v41, %v885_v35  ;;  %v926_v47 = vmul.f32 0.1, %v810_v39  ;;  %v813_v48 = vadd.f32 %v1456_v45, %v1755_v44  ;;  %v804_v58 = vpop.f32.mrb[11].mxu1  ;;  %v896_v38 = vld [vmem:[%s1770_s14 + $0x80] sm:$0xff]  ;;  %v899_v41 = vld [vmem:[%s1770_s14 + $0x98] sm:$0xff] }
 0x1e1   : > { %1016 = vst.msk [vmem:[%s1783_s17 + $0x38] sm:$0xff] %vm1008_vm1, %v983_v42  ;;  %v924_v49 = vmul.f32 0.1, %v802_v43  ;;  %v805_v50 = vadd.f32 %v1755_v44, %v804_v58  ;;  %1101 = vrot.lane.b32.xlu0 %v810_v39, %s1580_s10  ;;  %v897_v45 = vld [vmem:[%s1770_s14 + $0x88] sm:$0xff] }
 0x1e2   : > { %1014 = vst.msk [vmem:[%s1783_s17 + $0x28] sm:$0xff] %vm1008_vm1, %v981_v46  ;;  %1532 = vtanh.f32 %v926_v47  ;;  %v927_v52 = vmul.f32 0.1, %v813_v48  ;;  %1103 = vrot.lane.b32.xlu1 %v813_v48, %s1580_s10 }
 0x1e3   : > { %1534 = vtanh.f32 %v924_v49  ;;  %v925_v54 = vmul.f32 0.1, %v805_v50 }
 0x1e4   : > { %v1525_v55 = vpop.eup %1524  ;;  %1536 = vtanh.f32 %v927_v52 }
 0x1e5   : > { %v1527_v57 = vpop.eup %1526  ;;  %v986_v59 = vadd.f32 %v1525_v55, %v890_v51  ;;  %1538 = vtanh.f32 %v925_v54  ;;  %v1459_v61 = vpop.f32.mrb[12].mxu1  ;;  %1097 = vrot.lane.b32.xlu0 %v802_v43, %s1580_s10 }
 0x1e6   : > { %v1529_v62 = vpop.eup %1528  ;;  %v984_v63 = vadd.f32 %v1527_v57, %v888_v53  ;;  %v826_v0 = vadd.f32 %v1459_v61, %v1755_v44  ;;  %v817_v1 = vpop.f32.mrb[13].mxu1  ;;  %1099 = vrot.lane.b32.xlu1 %v805_v50, %s1580_s10  ;;  %v902_v61 = vld [vmem:[%s1770_s14 + $0xb0] sm:$0xff] }
 0x1e7   : > { %v1531_v2 = vpop.eup %1530  ;;  %1019 = vst.msk [vmem:[%s1783_s17 + $0x50] sm:$0xff] %vm1008_vm1, %v986_v59  ;;  %v987_v3 = vadd.f32 %v1529_v62, %v891_v56  ;;  %v818_v4 = vadd.f32 %v1755_v44, %v817_v1  ;;  %v1460_v5 = vpop.f32.mrb[14].mxu1 }
 0x1e8   : > { %1017 = vst.msk [vmem:[%s1783_s17 + $0x40] sm:$0xff] %vm1008_vm1, %v984_v63  ;;  %v985_v6 = vadd.f32 %v1531_v2, %v889_v60  ;;  %v930_v7 = vmul.f32 0.1, %v826_v0  ;;  %v829_v8 = vadd.f32 %v1460_v5, %v1755_v44  ;;  %v820_v9 = vpop.f32.mrb[15].mxu1  ;;  %v900_v63 = vld [vmem:[%s1770_s14 + $0xa0] sm:$0xff]  ;;  %v903_v2 = vld [vmem:[%s1770_s14 + $0xb8] sm:$0xff] }
 0x1e9   : > { %1020 = vst.msk [vmem:[%s1783_s17 + $0x58] sm:$0xff] %vm1008_vm1, %v987_v3  ;;  %v928_v10 = vmul.f32 0.1, %v818_v4  ;;  %v821_v11 = vadd.f32 %v1755_v44, %v820_v9  ;;  %1109 = vrot.lane.b32.xlu0 %v826_v0, %s1580_s10  ;;  %v901_v5 = vld [vmem:[%s1770_s14 + $0xa8] sm:$0xff] }
 0x1ea   : > { %1018 = vst.msk [vmem:[%s1783_s17 + $0x48] sm:$0xff] %vm1008_vm1, %v985_v6  ;;  %1540 = vtanh.f32 %v930_v7  ;;  %v931_v13 = vmul.f32 0.1, %v829_v8  ;;  %1111 = vrot.lane.b32.xlu1 %v829_v8, %s1580_s10 }
 0x1eb   : > { %1542 = vtanh.f32 %v928_v10  ;;  %v929_v15 = vmul.f32 0.1, %v821_v11 }
 0x1ec   : > { %v1533_v16 = vpop.eup %1532  ;;  %1544 = vtanh.f32 %v931_v13 }
 0x1ed   : > { %v1535_v18 = vpop.eup %1534  ;;  %v990_v19 = vadd.f32 %v1533_v16, %v894_v12  ;;  %1546 = vtanh.f32 %v929_v15  ;;  %v1463_v21 = vpop.f32.mrb[16].mxu1  ;;  %1105 = vrot.lane.b32.xlu0 %v818_v4, %s1580_s10 }
 0x1ee   : > { %v1537_v22 = vpop.eup %1536  ;;  %v988_v23 = vadd.f32 %v1535_v18, %v892_v14  ;;  %v842_v24 = vadd.f32 %v1463_v21, %v1755_v44  ;;  %v833_v25 = vpop.f32.mrb[17].mxu1  ;;  %1107 = vrot.lane.b32.xlu1 %v821_v11, %s1580_s10  ;;  %v906_v21 = vld [vmem:[%s1770_s14 + $0xd0] sm:$0xff] }
 0x1ef   : > { %v1539_v26 = vpop.eup %1538  ;;  %1023 = vst.msk [vmem:[%s1783_s17 + $0x70] sm:$0xff] %vm1008_vm1, %v990_v19  ;;  %v991_v27 = vadd.f32 %v1537_v22, %v895_v17  ;;  %v834_v28 = vadd.f32 %v1755_v44, %v833_v25  ;;  %v1464_v29 = vpop.f32.mrb[18].mxu1 }
 0x1f0   : > { %1021 = vst.msk [vmem:[%s1783_s17 + $0x60] sm:$0xff] %vm1008_vm1, %v988_v23  ;;  %v989_v30 = vadd.f32 %v1539_v26, %v893_v20  ;;  %v934_v31 = vmul.f32 0.1, %v842_v24  ;;  %v845_v32 = vadd.f32 %v1464_v29, %v1755_v44  ;;  %v836_v33 = vpop.f32.mrb[19].mxu1  ;;  %v904_v23 = vld [vmem:[%s1770_s14 + $0xc0] sm:$0xff]  ;;  %v907_v26 = vld [vmem:[%s1770_s14 + $0xd8] sm:$0xff] }
 0x1f1   : > { %1024 = vst.msk [vmem:[%s1783_s17 + $0x78] sm:$0xff] %vm1008_vm1, %v991_v27  ;;  %v932_v34 = vmul.f32 0.1, %v834_v28  ;;  %v837_v35 = vadd.f32 %v1755_v44, %v836_v33  ;;  %1117 = vrot.lane.b32.xlu0 %v842_v24, %s1580_s10 }
 0x1f2   : > { %1022 = vst.msk [vmem:[%s1783_s17 + $0x68] sm:$0xff] %vm1008_vm1, %v989_v30  ;;  %1548 = vtanh.f32 %v934_v31  ;;  %v935_v37 = vmul.f32 0.1, %v845_v32  ;;  %1119 = vrot.lane.b32.xlu1 %v845_v32, %s1580_s10 }
 0x1f3   : > { %1550 = vtanh.f32 %v932_v34  ;;  %v933_v39 = vmul.f32 0.1, %v837_v35  ;;  %v910_v34 = vld [vmem:[%s1770_s14 + $0xf0] sm:$0xff] }
 0x1f4   : > { %v1541_v40 = vpop.eup %1540  ;;  %1552 = vtanh.f32 %v935_v37  ;;  %v911_v37 = vld [vmem:[%s1770_s14 + $0xf8] sm:$0xff] }
 0x1f5   : > { %v1543_v42 = vpop.eup %1542  ;;  %v994_v43 = vadd.f32 %v1541_v40, %v898_v36  ;;  %1554 = vtanh.f32 %v933_v39  ;;  %v1467_v46 = vpop.f32.mrb[20].mxu1  ;;  %1113 = vrot.lane.b32.xlu0 %v834_v28, %s1580_s10  ;;  %v905_v28 = vld [vmem:[%s1770_s14 + $0xc8] sm:$0xff] }
 0x1f6   : > { %v1545_v47 = vpop.eup %1544  ;;  %v992_v48 = vadd.f32 %v1543_v42, %v896_v38  ;;  %v858_v58 = vadd.f32 %v1467_v46, %v1755_v44  ;;  %v849_v49 = vpop.f32.mrb[21].mxu1  ;;  %1115 = vrot.lane.b32.xlu1 %v837_v35, %s1580_s10  ;;  %v908_v35 = vld [vmem:[%s1770_s14 + $0xe0] sm:$0xff]  ;;  %v909_v40 = vld [vmem:[%s1770_s14 + $0xe8] sm:$0xff] }
 0x1f7   : > { %v1547_v50 = vpop.eup %1546  ;;  %1027 = vst.msk [vmem:[%s1783_s17 + $0x90] sm:$0xff] %vm1008_vm1, %v994_v43  ;;  %v995_v51 = vadd.f32 %v1545_v47, %v899_v41  ;;  %v850_v52 = vadd.f32 %v1755_v44, %v849_v49  ;;  %v1468_v53 = vpop.f32.mrb[22].mxu1 }
 0x1f8   : > { %1025 = vst.msk [vmem:[%s1783_s17 + $0x80] sm:$0xff] %vm1008_vm1, %v992_v48  ;;  %v993_v54 = vadd.f32 %v1547_v50, %v897_v45  ;;  %v938_v55 = vmul.f32 0.1, %v858_v58  ;;  %v861_v56 = vadd.f32 %v1468_v53, %v1755_v44  ;;  %v852_v57 = vpop.f32.mrb[23].mxu1 }
 0x1f9   : > { %1028 = vst.msk [vmem:[%s1783_s17 + $0x98] sm:$0xff] %vm1008_vm1, %v995_v51  ;;  %v936_v59 = vmul.f32 0.1, %v850_v52  ;;  %v853_v60 = vadd.f32 %v1755_v44, %v852_v57  ;;  %1125 = vrot.lane.b32.xlu0 %v858_v58, %s1580_s10 }
 0x1fa   : > { %1026 = vst.msk [vmem:[%s1783_s17 + $0x88] sm:$0xff] %vm1008_vm1, %v993_v54  ;;  %1556 = vtanh.f32 %v938_v55  ;;  %v939_v62 = vmul.f32 0.1, %v861_v56  ;;  %1127 = vrot.lane.b32.xlu1 %v861_v56, %s1580_s10 }
 0x1fb   : > { %1558 = vtanh.f32 %v936_v59  ;;  %v937_v0 = vmul.f32 0.1, %v853_v60 }
 0x1fc   : > { %v1549_v1 = vpop.eup %1548  ;;  %1560 = vtanh.f32 %v939_v62 }
 0x1fd   : > { %v1551_v3 = vpop.eup %1550  ;;  %v998_v4 = vadd.f32 %v1549_v1, %v902_v61  ;;  %1562 = vtanh.f32 %v937_v0  ;;  %v1471_v6 = vpop.f32.mrb[24].mxu1  ;;  %1121 = vrot.lane.b32.xlu0 %v850_v52, %s1580_s10 }
 0x1fe   : > { %v1553_v7 = vpop.eup %1552  ;;  %v996_v8 = vadd.f32 %v1551_v3, %v900_v63  ;;  %v874_v9 = vadd.f32 %v1471_v6, %v1755_v44  ;;  %v865_v10 = vpop.f32.mrb[25].mxu1  ;;  %1123 = vrot.lane.b32.xlu1 %v853_v60, %s1580_s10 }
 0x1ff   : > { %v1555_v11 = vpop.eup %1554  ;;  %1031 = vst.msk [vmem:[%s1783_s17 + $0xb0] sm:$0xff] %vm1008_vm1, %v998_v4  ;;  %v999_v12 = vadd.f32 %v1553_v7, %v903_v2  ;;  %v866_v13 = vadd.f32 %v1755_v44, %v865_v10  ;;  %v1472_v14 = vpop.f32.mrb[26].mxu1 }
 0x200   : > { %1029 = vst.msk [vmem:[%s1783_s17 + $0xa0] sm:$0xff] %vm1008_vm1, %v996_v8  ;;  %v997_v15 = vadd.f32 %v1555_v11, %v901_v5  ;;  %v942_v16 = vmul.f32 0.1, %v874_v9  ;;  %v877_v17 = vadd.f32 %v1472_v14, %v1755_v44  ;;  %v868_v18 = vpop.f32.mrb[27].mxu1 }
 0x201   : > { %1032 = vst.msk [vmem:[%s1783_s17 + $0xb8] sm:$0xff] %vm1008_vm1, %v999_v12  ;;  %v940_v19 = vmul.f32 0.1, %v866_v13  ;;  %v869_v20 = vadd.f32 %v1755_v44, %v868_v18  ;;  %1129 = vrot.lane.b32.xlu0 %v866_v13, %s1580_s10 }
 0x202   : > { %1030 = vst.msk [vmem:[%s1783_s17 + $0xa8] sm:$0xff] %vm1008_vm1, %v997_v15  ;;  %1564 = vtanh.f32 %v942_v16  ;;  %v943_v22 = vmul.f32 0.1, %v877_v17 }
 0x203   : > { %1566 = vtanh.f32 %v940_v19  ;;  %v941_v24 = vmul.f32 0.1, %v869_v20  ;;  %1131 = vrot.lane.b32.xlu1 %v869_v20, %s1580_s10 }
 0x204   : > { %v1557_v25 = vpop.eup %1556  ;;  %1568 = vtanh.f32 %v943_v22 }
 0x205   : > { %v1559_v44 = vpop.eup %1558  ;;  %v1002_v27 = vadd.f32 %v1557_v25, %v906_v21  ;;  %1570 = vtanh.f32 %v941_v24  ;;  %1133 = vrot.lane.b32.xlu0 %v874_v9, %s1580_s10 }
 0x206   : > { %v1561_v29 = vpop.eup %1560  ;;  %v1000_v30 = vadd.f32 %v1559_v44, %v904_v23 }
 0x207   : > { %v1563_v31 = vpop.eup %1562  ;;  %1035 = vst.msk [vmem:[%s1783_s17 + $0xd0] sm:$0xff] %vm1008_vm1, %v1002_v27  ;;  %v1003_v32 = vadd.f32 %v1561_v29, %v907_v26  ;;  %1135 = vrot.lane.b32.xlu1 %v877_v17, %s1580_s10 }
 0x208   : > { %1033 = vst.msk [vmem:[%s1783_s17 + $0xc0] sm:$0xff] %vm1008_vm1, %v1000_v30  ;;  %v1001_v33 = vadd.f32 %v1563_v31, %v905_v28 }
 0x209   : > { %1036 = vst.msk [vmem:[%s1783_s17 + $0xd8] sm:$0xff] %vm1008_vm1, %v1003_v32 }
 0x20a   : > { %1034 = vst.msk [vmem:[%s1783_s17 + $0xc8] sm:$0xff] %vm1008_vm1, %v1001_v33 }
 0x20c   : > { %v1565_v36 = vpop.eup %1564 }
 0x20d   : > { %v1567_v38 = vpop.eup %1566  ;;  %v1006_v39 = vadd.f32 %v1565_v36, %v910_v34 }
 0x20e   : > { %v1569_v41 = vpop.eup %1568  ;;  %v1004_v42 = vadd.f32 %v1567_v38, %v908_v35 }
 0x20f   : > { %v1571_v43 = vpop.eup %1570  ;;  %1039 = vst.msk [vmem:[%s1783_s17 + $0xf0] sm:$0xff] %vm1008_vm1, %v1006_v39  ;;  %v1007_v45 = vadd.f32 %v1569_v41, %v911_v37 }
 0x210   : > { %1037 = vst.msk [vmem:[%s1783_s17 + $0xe0] sm:$0xff] %vm1008_vm1, %v1004_v42  ;;  %v1005_v46 = vadd.f32 %v1571_v43, %v909_v40 }
 0x211   : > { %1040 = vst.msk [vmem:[%s1783_s17 + $0xf8] sm:$0xff] %vm1008_vm1, %v1007_v45 }
 0x212   : > { %1038 = vst.msk [vmem:[%s1783_s17 + $0xe8] sm:$0xff] %vm1008_vm1, %v1005_v46 }
 0x23a   : > { %v1078_v47 = vpop.permute.xlu1 %1077 }
 0x23b   : > { %1172 = vst.msk [vmem:[%s1933_s20 + $0x10] sm:$0xff] %vm1169_vm2, %v1078_v47  ;;  %v1074_v48 = vpop.permute.xlu0 %1073 }
 0x23c   : > { %1170 = vst.msk [vmem:[%s1933_s20] sm:$0xff] %vm1169_vm2, %v1074_v48 }
 0x23e   : > { %v1080_v58 = vpop.permute.xlu1 %1079 }
 0x23f   : > { %1173 = vst.msk [vmem:[%s1933_s20 + $0x18] sm:$0xff] %vm1169_vm2, %v1080_v58  ;;  %v1076_v49 = vpop.permute.xlu0 %1075 }
 0x240   : > { %1171 = vst.msk [vmem:[%s1933_s20 + $0x8] sm:$0xff] %vm1169_vm2, %v1076_v49 }
 0x243   : > { %v1086_v50 = vpop.permute.xlu0 %1085 }
 0x244   : > { %1176 = vst.msk [vmem:[%s1933_s20 + $0x30] sm:$0xff] %vm1169_vm2, %v1086_v50  ;;  %v1088_v51 = vpop.permute.xlu1 %1087 }
 0x245   : > { %1177 = vst.msk [vmem:[%s1933_s20 + $0x38] sm:$0xff] %vm1169_vm2, %v1088_v51 }
 0x247   : > { %v1082_v52 = vpop.permute.xlu0 %1081 }
 0x248   : > { %1174 = vst.msk [vmem:[%s1933_s20 + $0x20] sm:$0xff] %vm1169_vm2, %v1082_v52  ;;  %v1084_v53 = vpop.permute.xlu1 %1083 }
 0x249   : > { %1175 = vst.msk [vmem:[%s1933_s20 + $0x28] sm:$0xff] %vm1169_vm2, %v1084_v53 }
 0x24b   : > { %v1094_v54 = vpop.permute.xlu0 %1093 }
 0x24c   : > { %1180 = vst.msk [vmem:[%s1933_s20 + $0x50] sm:$0xff] %vm1169_vm2, %v1094_v54  ;;  %v1096_v55 = vpop.permute.xlu1 %1095 }
 0x24d   : > { %1181 = vst.msk [vmem:[%s1933_s20 + $0x58] sm:$0xff] %vm1169_vm2, %v1096_v55 }
 0x24f   : > { %v1090_v56 = vpop.permute.xlu0 %1089 }
 0x250   : > { %1178 = vst.msk [vmem:[%s1933_s20 + $0x40] sm:$0xff] %vm1169_vm2, %v1090_v56  ;;  %v1092_v57 = vpop.permute.xlu1 %1091 }
 0x251   : > { %1179 = vst.msk [vmem:[%s1933_s20 + $0x48] sm:$0xff] %vm1169_vm2, %v1092_v57 }
 0x253   : > { %v1102_v59 = vpop.permute.xlu0 %1101 }
 0x254   : > { %1184 = vst.msk [vmem:[%s1933_s20 + $0x70] sm:$0xff] %vm1169_vm2, %v1102_v59  ;;  %v1104_v60 = vpop.permute.xlu1 %1103 }
 0x255   : > { %1185 = vst.msk [vmem:[%s1933_s20 + $0x78] sm:$0xff] %vm1169_vm2, %v1104_v60 }
 0x257   : > { %v1098_v61 = vpop.permute.xlu0 %1097 }
 0x258   : > { %1182 = vst.msk [vmem:[%s1933_s20 + $0x60] sm:$0xff] %vm1169_vm2, %v1098_v61  ;;  %v1100_v62 = vpop.permute.xlu1 %1099 }
 0x259   : > { %1183 = vst.msk [vmem:[%s1933_s20 + $0x68] sm:$0xff] %vm1169_vm2, %v1100_v62 }
 0x25b   : > { %v1110_v63 = vpop.permute.xlu0 %1109 }
 0x25c   : > { %1188 = vst.msk [vmem:[%s1933_s20 + $0x90] sm:$0xff] %vm1169_vm2, %v1110_v63  ;;  %v1112_v0 = vpop.permute.xlu1 %1111 }
 0x25d   : > { %1189 = vst.msk [vmem:[%s1933_s20 + $0x98] sm:$0xff] %vm1169_vm2, %v1112_v0 }
 0x25f   : > { %v1106_v1 = vpop.permute.xlu0 %1105 }
 0x260   : > { %1186 = vst.msk [vmem:[%s1933_s20 + $0x80] sm:$0xff] %vm1169_vm2, %v1106_v1  ;;  %v1108_v2 = vpop.permute.xlu1 %1107 }
 0x261   : > { %1187 = vst.msk [vmem:[%s1933_s20 + $0x88] sm:$0xff] %vm1169_vm2, %v1108_v2 }
 0x263   : > { %v1118_v3 = vpop.permute.xlu0 %1117 }
 0x264   : > { %1192 = vst.msk [vmem:[%s1933_s20 + $0xb0] sm:$0xff] %vm1169_vm2, %v1118_v3  ;;  %v1120_v4 = vpop.permute.xlu1 %1119 }
 0x265   : > { %1193 = vst.msk [vmem:[%s1933_s20 + $0xb8] sm:$0xff] %vm1169_vm2, %v1120_v4 }
 0x267   : > { %v1114_v5 = vpop.permute.xlu0 %1113 }
 0x268   : > { %1190 = vst.msk [vmem:[%s1933_s20 + $0xa0] sm:$0xff] %vm1169_vm2, %v1114_v5  ;;  %v1116_v6 = vpop.permute.xlu1 %1115 }
 0x269   : > { %1191 = vst.msk [vmem:[%s1933_s20 + $0xa8] sm:$0xff] %vm1169_vm2, %v1116_v6 }
 0x26b   : > { %v1126_v7 = vpop.permute.xlu0 %1125 }
 0x26c   : > { %1196 = vst.msk [vmem:[%s1933_s20 + $0xd0] sm:$0xff] %vm1169_vm2, %v1126_v7  ;;  %v1128_v8 = vpop.permute.xlu1 %1127 }
 0x26d   : > { %1197 = vst.msk [vmem:[%s1933_s20 + $0xd8] sm:$0xff] %vm1169_vm2, %v1128_v8 }
 0x26f   : > { %v1122_v9 = vpop.permute.xlu0 %1121 }
 0x270   : > { %1194 = vst.msk [vmem:[%s1933_s20 + $0xc0] sm:$0xff] %vm1169_vm2, %v1122_v9  ;;  %v1124_v10 = vpop.permute.xlu1 %1123 }
 0x271   : > { %1195 = vst.msk [vmem:[%s1933_s20 + $0xc8] sm:$0xff] %vm1169_vm2, %v1124_v10 }
 0x273   : > { %v1130_v11 = vpop.permute.xlu0 %1129 }
 0x274   : > { %1198 = vst.msk [vmem:[%s1933_s20 + $0xe0] sm:$0xff] %vm1169_vm2, %v1130_v11 }
 0x275   : > { %v1132_v12 = vpop.permute.xlu1 %1131 }
 0x276   : > { %1199 = vst.msk [vmem:[%s1933_s20 + $0xe8] sm:$0xff] %vm1169_vm2, %v1132_v12 }
 0x277   : > { %v1134_v13 = vpop.permute.xlu0 %1133 }
 0x278   : > { %1200 = vst.msk [vmem:[%s1933_s20 + $0xf0] sm:$0xff] %vm1169_vm2, %v1134_v13 }
 0x279   : > { %v1136_v14 = vpop.permute.xlu1 %1135 }
 0x27a   : > { %1201 = vst.msk [vmem:[%s1933_s20 + $0xf8] sm:$0xff] %vm1169_vm2, %v1136_v14 }
 0x27b PF: > { %s18_s24 = sadd.s32 1, %s1578_s24  }
 0x27c   : > { %p15_p4 = scmp.ge.s32.totalorder %s18_s24, 4  }
 0x27e   :  { %17 = sbr.rel (!%p15_p4) target bundleno = 1 (0x1), region = 89 }

</bundles_post_ra>
